<compile_context>
chip_gen: v5e
topology: v5e:2x2
jax: 0.10.0
libtpu: 0.0.40
codegen_flags: <defaults>
</compile_context>

<pallas_src>
import functools

import jax
import jax.numpy as jnp
import numpy as np
from jax.experimental import pallas as pl
from jax.experimental.pallas import tpu as pltpu

_MM_DTYPE = jnp.bfloat16  # MXU operand dtype (accumulation is always f32).


# --------------------------- in-kernel building blocks ---------------------------
def _conv3x3_banded(h, a0_ref, a1_ref, a2_ref):
    """3x3 'same' conv on a W-folded activation.

    h: (H, W*Cin) f32, lane index = w*Cin + cin.
    a{0,1,2}_ref: (W*Cin, W*Cout) bf16 banded matrices (host-prebuilt) encoding
    the kw taps (block-tridiagonal band == zero padding at the W edges) and the
    channel mixing.  The kh taps become two single-row sublane shifts with a
    zero row (== zero padding at the H edges).
    """
    wc = h.shape[1]
    zero_row = jnp.zeros((1, wc), h.dtype)
    h_dn = jnp.concatenate([zero_row, h[:-1]], axis=0)   # row i -> h[i-1]
    h_up = jnp.concatenate([h[1:], zero_row], axis=0)    # row i -> h[i+1]
    return (jnp.dot(h_dn.astype(_MM_DTYPE), a0_ref[...], preferred_element_type=jnp.float32)
            + jnp.dot(h.astype(_MM_DTYPE), a1_ref[...], preferred_element_type=jnp.float32)
            + jnp.dot(h_up.astype(_MM_DTYPE), a2_ref[...], preferred_element_type=jnp.float32))


def _cab_folded(h, refs):
    """CAB on W-folded layout: conv3x3 -> ReLU -> conv3x3 -> channel attention -> + input."""
    c1a, c1b, c1c, c2a, c2b, c2c, ca1_ref, ca2_ref = refs
    r = jnp.maximum(_conv3x3_banded(h, c1a, c1b, c1c), 0.0)
    r = _conv3x3_banded(r, c2a, c2b, c2c)
    # Channel attention.  ca1 is the W-tiled (and already /W) squeeze matrix,
    # ca2 the W-tiled excite matrix, so the pool-over-W and the re-broadcast
    # over W are folded into the two tiny matmuls (no in-kernel relayout).
    m = jnp.mean(r, axis=0, keepdims=True)                                    # (1, W*C)
    a = jnp.maximum(
        jnp.dot(m.astype(_MM_DTYPE), ca1_ref[...], preferred_element_type=jnp.float32), 0.0)
    s = jax.nn.sigmoid(
        jnp.dot(a.astype(_MM_DTYPE), ca2_ref[...], preferred_element_type=jnp.float32))  # (1, W*C)
    return r * s + h


def _upblock_kernel(*refs, n_cab):
    # refs = (x, prompt, skip, ex, ep, fuse CAB weights..., ru, mh, wup,
    #         final CAB weights..., out)
    x_ref, p_ref, skip_ref = refs[:3]
    o_ref = refs[-1]
    w = refs[3:-1]

    x = x_ref[0].astype(jnp.float32)       # (H, W*Cin) folded
    p = p_ref[0].astype(jnp.float32)       # (H, W*Cp)  folded

    # Channel concat x||prompt in folded layout via exact 0/1 embedding
    # matmuls (VMEM-only, no lane-shuffle relayout, f32-exact residual path).
    ex_ref, ep_ref = w[0], w[1]
    h = (jnp.dot(x, ex_ref[...], preferred_element_type=jnp.float32)
         + jnp.dot(p, ep_ref[...], preferred_element_type=jnp.float32))   # (H, W*Cf)

    i = 2
    for _ in range(n_cab):                 # self.fuse
        h = _cab_folded(h, w[i:i + 8])
        i += 8

    ru_ref, mh_ref, wup_ref = w[i], w[i + 1], w[i + 2]
    i += 3

    # self.reduce (1x1) fused with the 1x1 "up" conv (both commute with the
    # per-channel-linear upsample), applied on H*W pixels; then the separable
    # bilinear 2x upsample (rows: Mh matmul, cols: kron(Mw^T, I_Cout) matmul).
    # All matmul operands bf16, f32 accumulation.
    t = jnp.dot(h.astype(_MM_DTYPE), ru_ref[...], preferred_element_type=jnp.float32)   # (H, W*Cout)
    t = jnp.dot(mh_ref[...], t.astype(_MM_DTYPE), preferred_element_type=jnp.float32)   # (2H, W*Cout)
    t = jnp.dot(t.astype(_MM_DTYPE), wup_ref[...], preferred_element_type=jnp.float32)  # (2H, 2W*Cout)

    y = t + skip_ref[0].astype(jnp.float32)

    y = _cab_folded(y, w[i:i + 8])         # self.ca (width 2W, Cout channels)

    o_ref[0] = y.astype(o_ref.dtype)       # lane-dense (2H, 2W*Cout) store


# ------------------------------- host-side weight prep -------------------------------
def _bilinear_matrix_1d(n):
    # (2n, n) matrix matching nn.Upsample(scale_factor=2, mode='bilinear',
    # align_corners=False): src = (dst + 0.5)/2 - 0.5, clamped.  Weights are
    # 0.25/0.75/1.0 -> exact in bf16.
    m = np.zeros((2 * n, n), dtype=np.float32)
    for i in range(2 * n):
        src = (i + 0.5) / 2.0 - 0.5
        i0 = int(np.floor(src))
        frac = src - i0
        m[i, min(max(i0, 0), n - 1)] += 1.0 - frac
        m[i, min(max(i0 + 1, 0), n - 1)] += frac
    return m


def _banded_conv_mats(w4, Wd):
    """w4: (3, 3, Cin, Cout).  Returns [A0, A1, A2], each (Wd*Cin, Wd*Cout), s.t.
    out[i] = h[i-1] @ A0 + h[i] @ A1 + h[i+1] @ A2 equals the 3x3 'same' conv
    (padding=1, no bias) on the W-folded layout (lane index = w*C + c)."""
    cin, cout = w4.shape[2], w4.shape[3]
    mats = []
    for kh in range(3):
        a = np.zeros((Wd * cin, Wd * cout), np.float32)
        for jo in range(Wd):
            for kw in range(3):
                jin = jo + kw - 1
                if 0 <= jin < Wd:
                    a[jin * cin:(jin + 1) * cin, jo * cout:(jo + 1) * cout] = w4[kh, kw]
        mats.append(a)
    return mats


def _prep_cab_weights(p, Wd):
    """Host-prep of one CAB's weights for spatial width Wd, all bf16."""
    conv_mats = (_banded_conv_mats(np.asarray(p["conv1"], np.float32), Wd)
                 + _banded_conv_mats(np.asarray(p["conv2"], np.float32), Wd))
    ca1 = np.tile(np.asarray(p["ca_w1"], np.float32), (Wd, 1)) / Wd   # (Wd*C, Cr), pool folded in
    ca2 = np.tile(np.asarray(p["ca_w2"], np.float32), (1, Wd))        # (Cr, Wd*C), tile folded in
    return [jnp.asarray(m, dtype=_MM_DTYPE) for m in conv_mats + [ca1, ca2]]


def prepare_upblock_weights(params, H, W):
    """Build the flat, kernel-ready weight list (call once, outside jit)."""
    cf = params["reduce_w"].shape[0]
    cin = params["up_w"].shape[0]
    cout = params["up_w"].shape[1]
    cp = cf - cin

    ws = []
    # Exact 0/1 embedding matrices for the x||prompt channel concat (kept f32).
    px = np.zeros((cin, cf), np.float32)
    px[np.arange(cin), np.arange(cin)] = 1.0
    pp = np.zeros((cp, cf), np.float32)
    pp[np.arange(cp), cin + np.arange(cp)] = 1.0
    eye_w = np.eye(W, dtype=np.float32)
    ws.append(jnp.asarray(np.kron(eye_w, px)))                     # (W*Cin, W*Cf)
    ws.append(jnp.asarray(np.kron(eye_w, pp)))                     # (W*Cp,  W*Cf)

    for p in params["fuse"]:
        ws += _prep_cab_weights(p, W)

    # reduce (1x1) composed with up (1x1): exact fold (no bias/act between).
    ru = np.asarray(params["reduce_w"], np.float32) @ np.asarray(params["up_w"], np.float32)
    ws.append(jnp.asarray(np.kron(eye_w, ru), dtype=_MM_DTYPE))    # (W*Cf, W*Cout)
    # Separable bilinear 2x upsample matrices.
    ws.append(jnp.asarray(_bilinear_matrix_1d(H), dtype=_MM_DTYPE))                 # (2H, H)
    ws.append(jnp.asarray(np.kron(_bilinear_matrix_1d(W).T, np.eye(cout, dtype=np.float32)),
                          dtype=_MM_DTYPE))                                          # (W*Cout, 2W*Cout)

    ws += _prep_cab_weights(params["ca"], 2 * W)
    return ws


# ------------------------------- pallas_call wrapper -------------------------------
def upblock_apply(weights, x_nchw, prompt_nchw, skip_nchw):
    """UpBlock forward.  Inputs/outputs are PyTorch-style NCHW."""
    x = jnp.transpose(x_nchw, (0, 2, 3, 1))
    prompt = jnp.transpose(prompt_nchw, (0, 2, 3, 1))
    skip = jnp.transpose(skip_nchw, (0, 2, 3, 1))

    B, H, W, Cin = x.shape
    Cp = prompt.shape[-1]
    Cout = skip.shape[-1]
    n_cab = (len(weights) - 13) // 8       # 2 embed + 3 (ru, mh, wup) + 8 final-CAB

    # Free (contiguous) folds to the lane-dense (H, W*C) layout.
    xf = x.reshape(B, H, W * Cin)
    pf = prompt.reshape(B, H, W * Cp)
    sf = skip.reshape(B, 2 * H, 2 * W * Cout)

    in_specs = [
        pl.BlockSpec((1, H, W * Cin), lambda b: (b, 0, 0)),
        pl.BlockSpec((1, H, W * Cp), lambda b: (b, 0, 0)),
        pl.BlockSpec((1, 2 * H, 2 * W * Cout), lambda b: (b, 0, 0)),
    ]
    for wt in weights:
        in_specs.append(pl.BlockSpec(wt.shape, lambda b, _nd=wt.ndim: (0,) * _nd))

    out = pl.pallas_call(
        functools.partial(_upblock_kernel, n_cab=n_cab),
        grid=(B,),
        in_specs=in_specs,
        out_specs=pl.BlockSpec((1, 2 * H, 2 * W * Cout), lambda b: (b, 0, 0)),
        out_shape=jax.ShapeDtypeStruct((B, 2 * H, 2 * W * Cout), x.dtype),
        compiler_params=pltpu.CompilerParams(dimension_semantics=("parallel",)),
    )(xf, pf, sf, *weights)

    out = out.reshape(B, 2 * H, 2 * W, Cout)      # un-fold (free) ...
    return jnp.transpose(out, (0, 3, 1, 2))       # ... back to NCHW


def upblock_forward(params, x_nchw, prompt_nchw, skip_nchw):
    """Convenience wrapper: host weight prep (once) + jitted apply."""
    H, W = x_nchw.shape[2], x_nchw.shape[3]
    weights = prepare_upblock_weights(params, H, W)
    return upblock_apply(weights, x_nchw, prompt_nchw, skip_nchw)


# ---------------------------------- parameter init ----------------------------------
def init_cab_params(key, c, reduction):
    k1, k2, k3, k4 = jax.random.split(key, 4)
    cr = max(c // reduction, 1)
    return {
        # (3, 3, Cin, Cout) layout; a torch checkpoint (Cout, Cin, 3, 3) would be
        # transposed with (2, 3, 1, 0) to match.
        "conv1": 0.1 * jax.random.normal(k1, (3, 3, c, c), jnp.float32),
        "conv2": 0.1 * jax.random.normal(k2, (3, 3, c, c), jnp.float32),
        "ca_w1": 0.1 * jax.random.normal(k3, (c, cr), jnp.float32),
        "ca_w2": 0.1 * jax.random.normal(k4, (cr, c), jnp.float32),
    }


def init_upblock_params(key, in_dim, out_dim, prompt_dim, n_cab, reduction):
    c_fuse = in_dim + prompt_dim
    keys = jax.random.split(key, n_cab + 3)
    return {
        "fuse": [init_cab_params(keys[i], c_fuse, reduction) for i in range(n_cab)],
        "reduce_w": 0.1 * jax.random.normal(keys[n_cab], (c_fuse, in_dim), jnp.float32),
        "up_w": 0.1 * jax.random.normal(keys[n_cab + 1], (in_dim, out_dim), jnp.float32),
        "ca": init_cab_params(keys[n_cab + 2], out_dim, reduction),
    }


if __name__ == "__main__":
    B, in_dim, out_dim, prompt_dim = 2, 8, 8, 8
    H = W = 16
    n_cab, kernel_size, reduction = 2, 3, 4   # kernel_size=3 (hardcoded in the banded conv)

    root = jax.random.PRNGKey(0)
    kx, kp, ks, kw = jax.random.split(root, 4)
    x = jax.random.normal(kx, (B, in_dim, H, W), jnp.float32)              # NCHW
    prompt_dec = jax.random.normal(kp, (B, prompt_dim, H, W), jnp.float32)
    skip = jax.random.normal(ks, (B, out_dim, 2 * H, 2 * W), jnp.float32)
    params = init_upblock_params(kw, in_dim, out_dim, prompt_dim, n_cab, reduction)

    weights = prepare_upblock_weights(params, H, W)      # host-side, once
    out = jax.jit(upblock_apply)(weights, x, prompt_dec, skip)
    out = jax.block_until_ready(out)
    assert out.shape == (B, out_dim, 2 * H, 2 * W)
    assert bool(jnp.all(jnp.isfinite(out)))
    print("KERNEL_OK")
</pallas_src>

<mosaic_0001>
module attributes {stable_mosaic.version = 11 : i64} {
  func.func @_upblock_kernel(%arg0: i32, %arg1: memref<1x16x128xf32, #tpu.memory_space<vmem>>, %arg2: memref<1x16x128xf32, #tpu.memory_space<vmem>>, %arg3: memref<1x32x256xf32, #tpu.memory_space<vmem>>, %arg4: memref<128x256xf32, #tpu.memory_space<vmem>>, %arg5: memref<128x256xf32, #tpu.memory_space<vmem>>, %arg6: memref<256x256xbf16, #tpu.memory_space<vmem>>, %arg7: memref<256x256xbf16, #tpu.memory_space<vmem>>, %arg8: memref<256x256xbf16, #tpu.memory_space<vmem>>, %arg9: memref<256x256xbf16, #tpu.memory_space<vmem>>, %arg10: memref<256x256xbf16, #tpu.memory_space<vmem>>, %arg11: memref<256x256xbf16, #tpu.memory_space<vmem>>, %arg12: memref<256x4xbf16, #tpu.memory_space<vmem>>, %arg13: memref<4x256xbf16, #tpu.memory_space<vmem>>, %arg14: memref<256x256xbf16, #tpu.memory_space<vmem>>, %arg15: memref<256x256xbf16, #tpu.memory_space<vmem>>, %arg16: memref<256x256xbf16, #tpu.memory_space<vmem>>, %arg17: memref<256x256xbf16, #tpu.memory_space<vmem>>, %arg18: memref<256x256xbf16, #tpu.memory_space<vmem>>, %arg19: memref<256x256xbf16, #tpu.memory_space<vmem>>, %arg20: memref<256x4xbf16, #tpu.memory_space<vmem>>, %arg21: memref<4x256xbf16, #tpu.memory_space<vmem>>, %arg22: memref<256x128xbf16, #tpu.memory_space<vmem>>, %arg23: memref<32x16xbf16, #tpu.memory_space<vmem>>, %arg24: memref<128x256xbf16, #tpu.memory_space<vmem>>, %arg25: memref<256x256xbf16, #tpu.memory_space<vmem>>, %arg26: memref<256x256xbf16, #tpu.memory_space<vmem>>, %arg27: memref<256x256xbf16, #tpu.memory_space<vmem>>, %arg28: memref<256x256xbf16, #tpu.memory_space<vmem>>, %arg29: memref<256x256xbf16, #tpu.memory_space<vmem>>, %arg30: memref<256x256xbf16, #tpu.memory_space<vmem>>, %arg31: memref<256x2xbf16, #tpu.memory_space<vmem>>, %arg32: memref<2x256xbf16, #tpu.memory_space<vmem>>, %arg33: memref<1x32x256xf32, #tpu.memory_space<vmem>>) attributes {dimension_semantics = [#tpu.dimension_semantics<parallel>], iteration_bounds = array<i64: 2>, scalar_prefetch = 0 : i64, scratch_operands = 0 : i64, tpu.core_type = #tpu.core_type<tc>, window_params = [{transform_indices = @transform_0, window_bounds = array<i64: 1, 16, 128>}, {transform_indices = @transform_1, window_bounds = array<i64: 1, 16, 128>}, {transform_indices = @transform_2, window_bounds = array<i64: 1, 32, 256>}, {pipeline_mode = #tpu.pipeline_mode<synchronous>, transform_indices = @transform_3, window_bounds = array<i64: 128, 256>}, {pipeline_mode = #tpu.pipeline_mode<synchronous>, transform_indices = @transform_4, window_bounds = array<i64: 128, 256>}, {pipeline_mode = #tpu.pipeline_mode<synchronous>, transform_indices = @transform_5, window_bounds = array<i64: 256, 256>}, {pipeline_mode = #tpu.pipeline_mode<synchronous>, transform_indices = @transform_6, window_bounds = array<i64: 256, 256>}, {pipeline_mode = #tpu.pipeline_mode<synchronous>, transform_indices = @transform_7, window_bounds = array<i64: 256, 256>}, {pipeline_mode = #tpu.pipeline_mode<synchronous>, transform_indices = @transform_8, window_bounds = array<i64: 256, 256>}, {pipeline_mode = #tpu.pipeline_mode<synchronous>, transform_indices = @transform_9, window_bounds = array<i64: 256, 256>}, {pipeline_mode = #tpu.pipeline_mode<synchronous>, transform_indices = @transform_10, window_bounds = array<i64: 256, 256>}, {pipeline_mode = #tpu.pipeline_mode<synchronous>, transform_indices = @transform_11, window_bounds = array<i64: 256, 4>}, {pipeline_mode = #tpu.pipeline_mode<synchronous>, transform_indices = @transform_12, window_bounds = array<i64: 4, 256>}, {pipeline_mode = #tpu.pipeline_mode<synchronous>, transform_indices = @transform_13, window_bounds = array<i64: 256, 256>}, {pipeline_mode = #tpu.pipeline_mode<synchronous>, transform_indices = @transform_14, window_bounds = array<i64: 256, 256>}, {pipeline_mode = #tpu.pipeline_mode<synchronous>, transform_indices = @transform_15, window_bounds = array<i64: 256, 256>}, {pipeline_mode = #tpu.pipeline_mode<synchronous>, transform_indices = @transform_16, window_bounds = array<i64: 256, 256>}, {pipeline_mode = #tpu.pipeline_mode<synchronous>, transform_indices = @transform_17, window_bounds = array<i64: 256, 256>}, {pipeline_mode = #tpu.pipeline_mode<synchronous>, transform_indices = @transform_18, window_bounds = array<i64: 256, 256>}, {pipeline_mode = #tpu.pipeline_mode<synchronous>, transform_indices = @transform_19, window_bounds = array<i64: 256, 4>}, {pipeline_mode = #tpu.pipeline_mode<synchronous>, transform_indices = @transform_20, window_bounds = array<i64: 4, 256>}, {pipeline_mode = #tpu.pipeline_mode<synchronous>, transform_indices = @transform_21, window_bounds = array<i64: 256, 128>}, {pipeline_mode = #tpu.pipeline_mode<synchronous>, transform_indices = @transform_22, window_bounds = array<i64: 32, 16>}, {pipeline_mode = #tpu.pipeline_mode<synchronous>, transform_indices = @transform_23, window_bounds = array<i64: 128, 256>}, {pipeline_mode = #tpu.pipeline_mode<synchronous>, transform_indices = @transform_24, window_bounds = array<i64: 256, 256>}, {pipeline_mode = #tpu.pipeline_mode<synchronous>, transform_indices = @transform_25, window_bounds = array<i64: 256, 256>}, {pipeline_mode = #tpu.pipeline_mode<synchronous>, transform_indices = @transform_26, window_bounds = array<i64: 256, 256>}, {pipeline_mode = #tpu.pipeline_mode<synchronous>, transform_indices = @transform_27, window_bounds = array<i64: 256, 256>}, {pipeline_mode = #tpu.pipeline_mode<synchronous>, transform_indices = @transform_28, window_bounds = array<i64: 256, 256>}, {pipeline_mode = #tpu.pipeline_mode<synchronous>, transform_indices = @transform_29, window_bounds = array<i64: 256, 256>}, {pipeline_mode = #tpu.pipeline_mode<synchronous>, transform_indices = @transform_30, window_bounds = array<i64: 256, 2>}, {pipeline_mode = #tpu.pipeline_mode<synchronous>, transform_indices = @transform_31, window_bounds = array<i64: 2, 256>}, {transform_indices = @transform_32, window_bounds = array<i64: 1, 32, 256>}]} {
    %c0 = arith.constant 0 : index
    %c0_0 = arith.constant 0 : index
    %c0_1 = arith.constant 0 : index
    %0 = vector.load %arg1[%c0, %c0_0, %c0_1] : memref<1x16x128xf32, #tpu.memory_space<vmem>>, vector<1x16x128xf32>
    %1 = vector.shape_cast %0 : vector<1x16x128xf32> to vector<16x128xf32>
    %c0_2 = arith.constant 0 : index
    %c0_3 = arith.constant 0 : index
    %c0_4 = arith.constant 0 : index
    %2 = vector.load %arg2[%c0_2, %c0_3, %c0_4] : memref<1x16x128xf32, #tpu.memory_space<vmem>>, vector<1x16x128xf32>
    %3 = vector.shape_cast %2 : vector<1x16x128xf32> to vector<16x128xf32>
    %c0_5 = arith.constant 0 : index
    %c0_6 = arith.constant 0 : index
    %4 = vector.load %arg4[%c0_5, %c0_6] : memref<128x256xf32, #tpu.memory_space<vmem>>, vector<128x256xf32>
    %cst = arith.constant dense<0.000000e+00> : vector<16x256xf32>
    %5 = tpu.matmul %1, %4, %cst {dimension_numbers = #tpu.dot_dimension_numbers<[1], [0], [0], [1], [0, 0, 1, 1], [], []>} : vector<16x128xf32>, vector<128x256xf32>, vector<16x256xf32> -> vector<16x256xf32>
    %c0_7 = arith.constant 0 : index
    %c0_8 = arith.constant 0 : index
    %6 = vector.load %arg5[%c0_7, %c0_8] : memref<128x256xf32, #tpu.memory_space<vmem>>, vector<128x256xf32>
    %cst_9 = arith.constant dense<0.000000e+00> : vector<16x256xf32>
    %7 = tpu.matmul %3, %6, %cst_9 {dimension_numbers = #tpu.dot_dimension_numbers<[1], [0], [0], [1], [0, 0, 1, 1], [], []>} : vector<16x128xf32>, vector<128x256xf32>, vector<16x256xf32> -> vector<16x256xf32>
    %8 = arith.addf %5, %7 : vector<16x256xf32>
    %cst_10 = arith.constant 0.000000e+00 : f32
    %9 = vector.broadcast %cst_10 : f32 to vector<1x256xf32>
    %10 = vector.extract_strided_slice %8 {offsets = [0, 0], sizes = [15, 256], strides = [1, 1]} : vector<16x256xf32> to vector<15x256xf32>
    %11 = tpu.concatenate %9, %10 in 0 : vector<1x256xf32>, vector<15x256xf32> -> vector<16x256xf32>
    %12 = vector.extract_strided_slice %8 {offsets = [1, 0], sizes = [15, 256], strides = [1, 1]} : vector<16x256xf32> to vector<15x256xf32>
    %13 = tpu.concatenate %12, %9 in 0 : vector<15x256xf32>, vector<1x256xf32> -> vector<16x256xf32>
    %14 = arith.truncf %11 : vector<16x256xf32> to vector<16x256xbf16>
    %c0_11 = arith.constant 0 : index
    %c0_12 = arith.constant 0 : index
    %15 = vector.load %arg6[%c0_11, %c0_12] : memref<256x256xbf16, #tpu.memory_space<vmem>>, vector<256x256xbf16>
    %cst_13 = arith.constant dense<0.000000e+00> : vector<16x256xf32>
    %16 = tpu.matmul %14, %15, %cst_13 {dimension_numbers = #tpu.dot_dimension_numbers<[1], [0], [0], [1], [0, 0, 1, 1], [], []>} : vector<16x256xbf16>, vector<256x256xbf16>, vector<16x256xf32> -> vector<16x256xf32>
    %17 = arith.truncf %8 : vector<16x256xf32> to vector<16x256xbf16>
    %c0_14 = arith.constant 0 : index
    %c0_15 = arith.constant 0 : index
    %18 = vector.load %arg7[%c0_14, %c0_15] : memref<256x256xbf16, #tpu.memory_space<vmem>>, vector<256x256xbf16>
    %cst_16 = arith.constant dense<0.000000e+00> : vector<16x256xf32>
    %19 = tpu.matmul %17, %18, %cst_16 {dimension_numbers = #tpu.dot_dimension_numbers<[1], [0], [0], [1], [0, 0, 1, 1], [], []>} : vector<16x256xbf16>, vector<256x256xbf16>, vector<16x256xf32> -> vector<16x256xf32>
    %20 = arith.addf %16, %19 : vector<16x256xf32>
    %21 = arith.truncf %13 : vector<16x256xf32> to vector<16x256xbf16>
    %c0_17 = arith.constant 0 : index
    %c0_18 = arith.constant 0 : index
    %22 = vector.load %arg8[%c0_17, %c0_18] : memref<256x256xbf16, #tpu.memory_space<vmem>>, vector<256x256xbf16>
    %cst_19 = arith.constant dense<0.000000e+00> : vector<16x256xf32>
    %23 = tpu.matmul %21, %22, %cst_19 {dimension_numbers = #tpu.dot_dimension_numbers<[1], [0], [0], [1], [0, 0, 1, 1], [], []>} : vector<16x256xbf16>, vector<256x256xbf16>, vector<16x256xf32> -> vector<16x256xf32>
    %24 = arith.addf %20, %23 : vector<16x256xf32>
    %cst_20 = arith.constant 0.000000e+00 : f32
    %25 = vector.broadcast %cst_20 : f32 to vector<16x256xf32>
    %26 = arith.maximumf %24, %25 : vector<16x256xf32>
    %cst_21 = arith.constant 0.000000e+00 : f32
    %27 = vector.broadcast %cst_21 : f32 to vector<1x256xf32>
    %28 = vector.extract_strided_slice %26 {offsets = [0, 0], sizes = [15, 256], strides = [1, 1]} : vector<16x256xf32> to vector<15x256xf32>
    %29 = tpu.concatenate %27, %28 in 0 : vector<1x256xf32>, vector<15x256xf32> -> vector<16x256xf32>
    %30 = vector.extract_strided_slice %26 {offsets = [1, 0], sizes = [15, 256], strides = [1, 1]} : vector<16x256xf32> to vector<15x256xf32>
    %31 = tpu.concatenate %30, %27 in 0 : vector<15x256xf32>, vector<1x256xf32> -> vector<16x256xf32>
    %32 = arith.truncf %29 : vector<16x256xf32> to vector<16x256xbf16>
    %c0_22 = arith.constant 0 : index
    %c0_23 = arith.constant 0 : index
    %33 = vector.load %arg9[%c0_22, %c0_23] : memref<256x256xbf16, #tpu.memory_space<vmem>>, vector<256x256xbf16>
    %cst_24 = arith.constant dense<0.000000e+00> : vector<16x256xf32>
    %34 = tpu.matmul %32, %33, %cst_24 {dimension_numbers = #tpu.dot_dimension_numbers<[1], [0], [0], [1], [0, 0, 1, 1], [], []>} : vector<16x256xbf16>, vector<256x256xbf16>, vector<16x256xf32> -> vector<16x256xf32>
    %35 = arith.truncf %26 : vector<16x256xf32> to vector<16x256xbf16>
    %c0_25 = arith.constant 0 : index
    %c0_26 = arith.constant 0 : index
    %36 = vector.load %arg10[%c0_25, %c0_26] : memref<256x256xbf16, #tpu.memory_space<vmem>>, vector<256x256xbf16>
    %cst_27 = arith.constant dense<0.000000e+00> : vector<16x256xf32>
    %37 = tpu.matmul %35, %36, %cst_27 {dimension_numbers = #tpu.dot_dimension_numbers<[1], [0], [0], [1], [0, 0, 1, 1], [], []>} : vector<16x256xbf16>, vector<256x256xbf16>, vector<16x256xf32> -> vector<16x256xf32>
    %38 = arith.addf %34, %37 : vector<16x256xf32>
    %39 = arith.truncf %31 : vector<16x256xf32> to vector<16x256xbf16>
    %c0_28 = arith.constant 0 : index
    %c0_29 = arith.constant 0 : index
    %40 = vector.load %arg11[%c0_28, %c0_29] : memref<256x256xbf16, #tpu.memory_space<vmem>>, vector<256x256xbf16>
    %cst_30 = arith.constant dense<0.000000e+00> : vector<16x256xf32>
    %41 = tpu.matmul %39, %40, %cst_30 {dimension_numbers = #tpu.dot_dimension_numbers<[1], [0], [0], [1], [0, 0, 1, 1], [], []>} : vector<16x256xbf16>, vector<256x256xbf16>, vector<16x256xf32> -> vector<16x256xf32>
    %42 = arith.addf %38, %41 : vector<16x256xf32>
    %cst_31 = arith.constant dense<0.000000e+00> : vector<256xf32>
    %43 = vector.multi_reduction <add>, %42, %cst_31 [0] : vector<16x256xf32> to vector<256xf32>
    %44 = vector.shape_cast %43 : vector<256xf32> to vector<1x256xf32>
    %cst_32 = arith.constant 1.600000e+01 : f32
    %45 = vector.broadcast %cst_32 : f32 to vector<1x256xf32>
    %46 = arith.divf %44, %45 : vector<1x256xf32>
    %47 = arith.truncf %46 : vector<1x256xf32> to vector<1x256xbf16>
    %c0_33 = arith.constant 0 : index
    %c0_34 = arith.constant 0 : index
    %48 = vector.load %arg12[%c0_33, %c0_34] : memref<256x4xbf16, #tpu.memory_space<vmem>>, vector<256x4xbf16>
    %cst_35 = arith.constant dense<0.000000e+00> : vector<1x4xf32>
    %49 = tpu.matmul %47, %48, %cst_35 {dimension_numbers = #tpu.dot_dimension_numbers<[1], [0], [0], [1], [0, 0, 1, 1], [], []>} : vector<1x256xbf16>, vector<256x4xbf16>, vector<1x4xf32> -> vector<1x4xf32>
    %cst_36 = arith.constant 0.000000e+00 : f32
    %50 = vector.broadcast %cst_36 : f32 to vector<1x4xf32>
    %51 = arith.maximumf %49, %50 : vector<1x4xf32>
    %52 = arith.truncf %51 : vector<1x4xf32> to vector<1x4xbf16>
    %c0_37 = arith.constant 0 : index
    %c0_38 = arith.constant 0 : index
    %53 = vector.load %arg13[%c0_37, %c0_38] : memref<4x256xbf16, #tpu.memory_space<vmem>>, vector<4x256xbf16>
    %cst_39 = arith.constant dense<0.000000e+00> : vector<1x256xf32>
    %54 = tpu.matmul %52, %53, %cst_39 {dimension_numbers = #tpu.dot_dimension_numbers<[1], [0], [0], [1], [0, 0, 1, 1], [], []>} : vector<1x4xbf16>, vector<4x256xbf16>, vector<1x256xf32> -> vector<1x256xf32>
    %55 = arith.negf %54 : vector<1x256xf32>
    %56 = math.exp %55 : vector<1x256xf32>
    %cst_40 = arith.constant 1.000000e+00 : f32
    %57 = vector.broadcast %cst_40 : f32 to vector<1x256xf32>
    %58 = arith.addf %57, %56 : vector<1x256xf32>
    %59 = arith.divf %57, %58 : vector<1x256xf32>
    %60 = vector.broadcast %59 : vector<1x256xf32> to vector<16x256xf32>
    %61 = arith.mulf %42, %60 : vector<16x256xf32>
    %62 = arith.addf %61, %8 : vector<16x256xf32>
    %cst_41 = arith.constant 0.000000e+00 : f32
    %63 = vector.broadcast %cst_41 : f32 to vector<1x256xf32>
    %64 = vector.extract_strided_slice %62 {offsets = [0, 0], sizes = [15, 256], strides = [1, 1]} : vector<16x256xf32> to vector<15x256xf32>
    %65 = tpu.concatenate %63, %64 in 0 : vector<1x256xf32>, vector<15x256xf32> -> vector<16x256xf32>
    %66 = vector.extract_strided_slice %62 {offsets = [1, 0], sizes = [15, 256], strides = [1, 1]} : vector<16x256xf32> to vector<15x256xf32>
    %67 = tpu.concatenate %66, %63 in 0 : vector<15x256xf32>, vector<1x256xf32> -> vector<16x256xf32>
    %68 = arith.truncf %65 : vector<16x256xf32> to vector<16x256xbf16>
    %c0_42 = arith.constant 0 : index
    %c0_43 = arith.constant 0 : index
    %69 = vector.load %arg14[%c0_42, %c0_43] : memref<256x256xbf16, #tpu.memory_space<vmem>>, vector<256x256xbf16>
    %cst_44 = arith.constant dense<0.000000e+00> : vector<16x256xf32>
    %70 = tpu.matmul %68, %69, %cst_44 {dimension_numbers = #tpu.dot_dimension_numbers<[1], [0], [0], [1], [0, 0, 1, 1], [], []>} : vector<16x256xbf16>, vector<256x256xbf16>, vector<16x256xf32> -> vector<16x256xf32>
    %71 = arith.truncf %62 : vector<16x256xf32> to vector<16x256xbf16>
    %c0_45 = arith.constant 0 : index
    %c0_46 = arith.constant 0 : index
    %72 = vector.load %arg15[%c0_45, %c0_46] : memref<256x256xbf16, #tpu.memory_space<vmem>>, vector<256x256xbf16>
    %cst_47 = arith.constant dense<0.000000e+00> : vector<16x256xf32>
    %73 = tpu.matmul %71, %72, %cst_47 {dimension_numbers = #tpu.dot_dimension_numbers<[1], [0], [0], [1], [0, 0, 1, 1], [], []>} : vector<16x256xbf16>, vector<256x256xbf16>, vector<16x256xf32> -> vector<16x256xf32>
    %74 = arith.addf %70, %73 : vector<16x256xf32>
    %75 = arith.truncf %67 : vector<16x256xf32> to vector<16x256xbf16>
    %c0_48 = arith.constant 0 : index
    %c0_49 = arith.constant 0 : index
    %76 = vector.load %arg16[%c0_48, %c0_49] : memref<256x256xbf16, #tpu.memory_space<vmem>>, vector<256x256xbf16>
    %cst_50 = arith.constant dense<0.000000e+00> : vector<16x256xf32>
    %77 = tpu.matmul %75, %76, %cst_50 {dimension_numbers = #tpu.dot_dimension_numbers<[1], [0], [0], [1], [0, 0, 1, 1], [], []>} : vector<16x256xbf16>, vector<256x256xbf16>, vector<16x256xf32> -> vector<16x256xf32>
    %78 = arith.addf %74, %77 : vector<16x256xf32>
    %cst_51 = arith.constant 0.000000e+00 : f32
    %79 = vector.broadcast %cst_51 : f32 to vector<16x256xf32>
    %80 = arith.maximumf %78, %79 : vector<16x256xf32>
    %cst_52 = arith.constant 0.000000e+00 : f32
    %81 = vector.broadcast %cst_52 : f32 to vector<1x256xf32>
    %82 = vector.extract_strided_slice %80 {offsets = [0, 0], sizes = [15, 256], strides = [1, 1]} : vector<16x256xf32> to vector<15x256xf32>
    %83 = tpu.concatenate %81, %82 in 0 : vector<1x256xf32>, vector<15x256xf32> -> vector<16x256xf32>
    %84 = vector.extract_strided_slice %80 {offsets = [1, 0], sizes = [15, 256], strides = [1, 1]} : vector<16x256xf32> to vector<15x256xf32>
    %85 = tpu.concatenate %84, %81 in 0 : vector<15x256xf32>, vector<1x256xf32> -> vector<16x256xf32>
    %86 = arith.truncf %83 : vector<16x256xf32> to vector<16x256xbf16>
    %c0_53 = arith.constant 0 : index
    %c0_54 = arith.constant 0 : index
    %87 = vector.load %arg17[%c0_53, %c0_54] : memref<256x256xbf16, #tpu.memory_space<vmem>>, vector<256x256xbf16>
    %cst_55 = arith.constant dense<0.000000e+00> : vector<16x256xf32>
    %88 = tpu.matmul %86, %87, %cst_55 {dimension_numbers = #tpu.dot_dimension_numbers<[1], [0], [0], [1], [0, 0, 1, 1], [], []>} : vector<16x256xbf16>, vector<256x256xbf16>, vector<16x256xf32> -> vector<16x256xf32>
    %89 = arith.truncf %80 : vector<16x256xf32> to vector<16x256xbf16>
    %c0_56 = arith.constant 0 : index
    %c0_57 = arith.constant 0 : index
    %90 = vector.load %arg18[%c0_56, %c0_57] : memref<256x256xbf16, #tpu.memory_space<vmem>>, vector<256x256xbf16>
    %cst_58 = arith.constant dense<0.000000e+00> : vector<16x256xf32>
    %91 = tpu.matmul %89, %90, %cst_58 {dimension_numbers = #tpu.dot_dimension_numbers<[1], [0], [0], [1], [0, 0, 1, 1], [], []>} : vector<16x256xbf16>, vector<256x256xbf16>, vector<16x256xf32> -> vector<16x256xf32>
    %92 = arith.addf %88, %91 : vector<16x256xf32>
    %93 = arith.truncf %85 : vector<16x256xf32> to vector<16x256xbf16>
    %c0_59 = arith.constant 0 : index
    %c0_60 = arith.constant 0 : index
    %94 = vector.load %arg19[%c0_59, %c0_60] : memref<256x256xbf16, #tpu.memory_space<vmem>>, vector<256x256xbf16>
    %cst_61 = arith.constant dense<0.000000e+00> : vector<16x256xf32>
    %95 = tpu.matmul %93, %94, %cst_61 {dimension_numbers = #tpu.dot_dimension_numbers<[1], [0], [0], [1], [0, 0, 1, 1], [], []>} : vector<16x256xbf16>, vector<256x256xbf16>, vector<16x256xf32> -> vector<16x256xf32>
    %96 = arith.addf %92, %95 : vector<16x256xf32>
    %cst_62 = arith.constant dense<0.000000e+00> : vector<256xf32>
    %97 = vector.multi_reduction <add>, %96, %cst_62 [0] : vector<16x256xf32> to vector<256xf32>
    %98 = vector.shape_cast %97 : vector<256xf32> to vector<1x256xf32>
    %cst_63 = arith.constant 1.600000e+01 : f32
    %99 = vector.broadcast %cst_63 : f32 to vector<1x256xf32>
    %100 = arith.divf %98, %99 : vector<1x256xf32>
    %101 = arith.truncf %100 : vector<1x256xf32> to vector<1x256xbf16>
    %c0_64 = arith.constant 0 : index
    %c0_65 = arith.constant 0 : index
    %102 = vector.load %arg20[%c0_64, %c0_65] : memref<256x4xbf16, #tpu.memory_space<vmem>>, vector<256x4xbf16>
    %cst_66 = arith.constant dense<0.000000e+00> : vector<1x4xf32>
    %103 = tpu.matmul %101, %102, %cst_66 {dimension_numbers = #tpu.dot_dimension_numbers<[1], [0], [0], [1], [0, 0, 1, 1], [], []>} : vector<1x256xbf16>, vector<256x4xbf16>, vector<1x4xf32> -> vector<1x4xf32>
    %cst_67 = arith.constant 0.000000e+00 : f32
    %104 = vector.broadcast %cst_67 : f32 to vector<1x4xf32>
    %105 = arith.maximumf %103, %104 : vector<1x4xf32>
    %106 = arith.truncf %105 : vector<1x4xf32> to vector<1x4xbf16>
    %c0_68 = arith.constant 0 : index
    %c0_69 = arith.constant 0 : index
    %107 = vector.load %arg21[%c0_68, %c0_69] : memref<4x256xbf16, #tpu.memory_space<vmem>>, vector<4x256xbf16>
    %cst_70 = arith.constant dense<0.000000e+00> : vector<1x256xf32>
    %108 = tpu.matmul %106, %107, %cst_70 {dimension_numbers = #tpu.dot_dimension_numbers<[1], [0], [0], [1], [0, 0, 1, 1], [], []>} : vector<1x4xbf16>, vector<4x256xbf16>, vector<1x256xf32> -> vector<1x256xf32>
    %109 = arith.negf %108 : vector<1x256xf32>
    %110 = math.exp %109 : vector<1x256xf32>
    %cst_71 = arith.constant 1.000000e+00 : f32
    %111 = vector.broadcast %cst_71 : f32 to vector<1x256xf32>
    %112 = arith.addf %111, %110 : vector<1x256xf32>
    %113 = arith.divf %111, %112 : vector<1x256xf32>
    %114 = vector.broadcast %113 : vector<1x256xf32> to vector<16x256xf32>
    %115 = arith.mulf %96, %114 : vector<16x256xf32>
    %116 = arith.addf %115, %62 : vector<16x256xf32>
    %117 = arith.truncf %116 : vector<16x256xf32> to vector<16x256xbf16>
    %c0_72 = arith.constant 0 : index
    %c0_73 = arith.constant 0 : index
    %118 = vector.load %arg22[%c0_72, %c0_73] : memref<256x128xbf16, #tpu.memory_space<vmem>>, vector<256x128xbf16>
    %cst_74 = arith.constant dense<0.000000e+00> : vector<16x128xf32>
    %119 = tpu.matmul %117, %118, %cst_74 {dimension_numbers = #tpu.dot_dimension_numbers<[1], [0], [0], [1], [0, 0, 1, 1], [], []>} : vector<16x256xbf16>, vector<256x128xbf16>, vector<16x128xf32> -> vector<16x128xf32>
    %c0_75 = arith.constant 0 : index
    %c0_76 = arith.constant 0 : index
    %120 = vector.load %arg23[%c0_75, %c0_76] : memref<32x16xbf16, #tpu.memory_space<vmem>>, vector<32x16xbf16>
    %121 = arith.truncf %119 : vector<16x128xf32> to vector<16x128xbf16>
    %cst_77 = arith.constant dense<0.000000e+00> : vector<32x128xf32>
    %122 = tpu.matmul %120, %121, %cst_77 {dimension_numbers = #tpu.dot_dimension_numbers<[1], [0], [0], [1], [0, 0, 1, 1], [], []>} : vector<32x16xbf16>, vector<16x128xbf16>, vector<32x128xf32> -> vector<32x128xf32>
    %123 = arith.truncf %122 : vector<32x128xf32> to vector<32x128xbf16>
    %c0_78 = arith.constant 0 : index
    %c0_79 = arith.constant 0 : index
    %124 = vector.load %arg24[%c0_78, %c0_79] : memref<128x256xbf16, #tpu.memory_space<vmem>>, vector<128x256xbf16>
    %cst_80 = arith.constant dense<0.000000e+00> : vector<32x256xf32>
    %125 = tpu.matmul %123, %124, %cst_80 {dimension_numbers = #tpu.dot_dimension_numbers<[1], [0], [0], [1], [0, 0, 1, 1], [], []>} : vector<32x128xbf16>, vector<128x256xbf16>, vector<32x256xf32> -> vector<32x256xf32>
    %c0_81 = arith.constant 0 : index
    %c0_82 = arith.constant 0 : index
    %c0_83 = arith.constant 0 : index
    %126 = vector.load %arg3[%c0_81, %c0_82, %c0_83] : memref<1x32x256xf32, #tpu.memory_space<vmem>>, vector<1x32x256xf32>
    %127 = vector.shape_cast %126 : vector<1x32x256xf32> to vector<32x256xf32>
    %128 = arith.addf %125, %127 : vector<32x256xf32>
    %cst_84 = arith.constant 0.000000e+00 : f32
    %129 = vector.broadcast %cst_84 : f32 to vector<1x256xf32>
    %130 = vector.extract_strided_slice %128 {offsets = [0, 0], sizes = [31, 256], strides = [1, 1]} : vector<32x256xf32> to vector<31x256xf32>
    %131 = tpu.concatenate %129, %130 in 0 : vector<1x256xf32>, vector<31x256xf32> -> vector<32x256xf32>
    %132 = vector.extract_strided_slice %128 {offsets = [1, 0], sizes = [31, 256], strides = [1, 1]} : vector<32x256xf32> to vector<31x256xf32>
    %133 = tpu.concatenate %132, %129 in 0 : vector<31x256xf32>, vector<1x256xf32> -> vector<32x256xf32>
    %134 = arith.truncf %131 : vector<32x256xf32> to vector<32x256xbf16>
    %c0_85 = arith.constant 0 : index
    %c0_86 = arith.constant 0 : index
    %135 = vector.load %arg25[%c0_85, %c0_86] : memref<256x256xbf16, #tpu.memory_space<vmem>>, vector<256x256xbf16>
    %cst_87 = arith.constant dense<0.000000e+00> : vector<32x256xf32>
    %136 = tpu.matmul %134, %135, %cst_87 {dimension_numbers = #tpu.dot_dimension_numbers<[1], [0], [0], [1], [0, 0, 1, 1], [], []>} : vector<32x256xbf16>, vector<256x256xbf16>, vector<32x256xf32> -> vector<32x256xf32>
    %137 = arith.truncf %128 : vector<32x256xf32> to vector<32x256xbf16>
    %c0_88 = arith.constant 0 : index
    %c0_89 = arith.constant 0 : index
    %138 = vector.load %arg26[%c0_88, %c0_89] : memref<256x256xbf16, #tpu.memory_space<vmem>>, vector<256x256xbf16>
    %cst_90 = arith.constant dense<0.000000e+00> : vector<32x256xf32>
    %139 = tpu.matmul %137, %138, %cst_90 {dimension_numbers = #tpu.dot_dimension_numbers<[1], [0], [0], [1], [0, 0, 1, 1], [], []>} : vector<32x256xbf16>, vector<256x256xbf16>, vector<32x256xf32> -> vector<32x256xf32>
    %140 = arith.addf %136, %139 : vector<32x256xf32>
    %141 = arith.truncf %133 : vector<32x256xf32> to vector<32x256xbf16>
    %c0_91 = arith.constant 0 : index
    %c0_92 = arith.constant 0 : index
    %142 = vector.load %arg27[%c0_91, %c0_92] : memref<256x256xbf16, #tpu.memory_space<vmem>>, vector<256x256xbf16>
    %cst_93 = arith.constant dense<0.000000e+00> : vector<32x256xf32>
    %143 = tpu.matmul %141, %142, %cst_93 {dimension_numbers = #tpu.dot_dimension_numbers<[1], [0], [0], [1], [0, 0, 1, 1], [], []>} : vector<32x256xbf16>, vector<256x256xbf16>, vector<32x256xf32> -> vector<32x256xf32>
    %144 = arith.addf %140, %143 : vector<32x256xf32>
    %cst_94 = arith.constant 0.000000e+00 : f32
    %145 = vector.broadcast %cst_94 : f32 to vector<32x256xf32>
    %146 = arith.maximumf %144, %145 : vector<32x256xf32>
    %cst_95 = arith.constant 0.000000e+00 : f32
    %147 = vector.broadcast %cst_95 : f32 to vector<1x256xf32>
    %148 = vector.extract_strided_slice %146 {offsets = [0, 0], sizes = [31, 256], strides = [1, 1]} : vector<32x256xf32> to vector<31x256xf32>
    %149 = tpu.concatenate %147, %148 in 0 : vector<1x256xf32>, vector<31x256xf32> -> vector<32x256xf32>
    %150 = vector.extract_strided_slice %146 {offsets = [1, 0], sizes = [31, 256], strides = [1, 1]} : vector<32x256xf32> to vector<31x256xf32>
    %151 = tpu.concatenate %150, %147 in 0 : vector<31x256xf32>, vector<1x256xf32> -> vector<32x256xf32>
    %152 = arith.truncf %149 : vector<32x256xf32> to vector<32x256xbf16>
    %c0_96 = arith.constant 0 : index
    %c0_97 = arith.constant 0 : index
    %153 = vector.load %arg28[%c0_96, %c0_97] : memref<256x256xbf16, #tpu.memory_space<vmem>>, vector<256x256xbf16>
    %cst_98 = arith.constant dense<0.000000e+00> : vector<32x256xf32>
    %154 = tpu.matmul %152, %153, %cst_98 {dimension_numbers = #tpu.dot_dimension_numbers<[1], [0], [0], [1], [0, 0, 1, 1], [], []>} : vector<32x256xbf16>, vector<256x256xbf16>, vector<32x256xf32> -> vector<32x256xf32>
    %155 = arith.truncf %146 : vector<32x256xf32> to vector<32x256xbf16>
    %c0_99 = arith.constant 0 : index
    %c0_100 = arith.constant 0 : index
    %156 = vector.load %arg29[%c0_99, %c0_100] : memref<256x256xbf16, #tpu.memory_space<vmem>>, vector<256x256xbf16>
    %cst_101 = arith.constant dense<0.000000e+00> : vector<32x256xf32>
    %157 = tpu.matmul %155, %156, %cst_101 {dimension_numbers = #tpu.dot_dimension_numbers<[1], [0], [0], [1], [0, 0, 1, 1], [], []>} : vector<32x256xbf16>, vector<256x256xbf16>, vector<32x256xf32> -> vector<32x256xf32>
    %158 = arith.addf %154, %157 : vector<32x256xf32>
    %159 = arith.truncf %151 : vector<32x256xf32> to vector<32x256xbf16>
    %c0_102 = arith.constant 0 : index
    %c0_103 = arith.constant 0 : index
    %160 = vector.load %arg30[%c0_102, %c0_103] : memref<256x256xbf16, #tpu.memory_space<vmem>>, vector<256x256xbf16>
    %cst_104 = arith.constant dense<0.000000e+00> : vector<32x256xf32>
    %161 = tpu.matmul %159, %160, %cst_104 {dimension_numbers = #tpu.dot_dimension_numbers<[1], [0], [0], [1], [0, 0, 1, 1], [], []>} : vector<32x256xbf16>, vector<256x256xbf16>, vector<32x256xf32> -> vector<32x256xf32>
    %162 = arith.addf %158, %161 : vector<32x256xf32>
    %cst_105 = arith.constant dense<0.000000e+00> : vector<256xf32>
    %163 = vector.multi_reduction <add>, %162, %cst_105 [0] : vector<32x256xf32> to vector<256xf32>
    %164 = vector.shape_cast %163 : vector<256xf32> to vector<1x256xf32>
    %cst_106 = arith.constant 3.200000e+01 : f32
    %165 = vector.broadcast %cst_106 : f32 to vector<1x256xf32>
    %166 = arith.divf %164, %165 : vector<1x256xf32>
    %167 = arith.truncf %166 : vector<1x256xf32> to vector<1x256xbf16>
    %c0_107 = arith.constant 0 : index
    %c0_108 = arith.constant 0 : index
    %168 = vector.load %arg31[%c0_107, %c0_108] : memref<256x2xbf16, #tpu.memory_space<vmem>>, vector<256x2xbf16>
    %cst_109 = arith.constant dense<0.000000e+00> : vector<1x2xf32>
    %169 = tpu.matmul %167, %168, %cst_109 {dimension_numbers = #tpu.dot_dimension_numbers<[1], [0], [0], [1], [0, 0, 1, 1], [], []>} : vector<1x256xbf16>, vector<256x2xbf16>, vector<1x2xf32> -> vector<1x2xf32>
    %cst_110 = arith.constant 0.000000e+00 : f32
    %170 = vector.broadcast %cst_110 : f32 to vector<1x2xf32>
    %171 = arith.maximumf %169, %170 : vector<1x2xf32>
    %172 = arith.truncf %171 : vector<1x2xf32> to vector<1x2xbf16>
    %c0_111 = arith.constant 0 : index
    %c0_112 = arith.constant 0 : index
    %173 = vector.load %arg32[%c0_111, %c0_112] : memref<2x256xbf16, #tpu.memory_space<vmem>>, vector<2x256xbf16>
    %cst_113 = arith.constant dense<0.000000e+00> : vector<1x256xf32>
    %174 = tpu.matmul %172, %173, %cst_113 {dimension_numbers = #tpu.dot_dimension_numbers<[1], [0], [0], [1], [0, 0, 1, 1], [], []>} : vector<1x2xbf16>, vector<2x256xbf16>, vector<1x256xf32> -> vector<1x256xf32>
    %175 = arith.negf %174 : vector<1x256xf32>
    %176 = math.exp %175 : vector<1x256xf32>
    %cst_114 = arith.constant 1.000000e+00 : f32
    %177 = vector.broadcast %cst_114 : f32 to vector<1x256xf32>
    %178 = arith.addf %177, %176 : vector<1x256xf32>
    %179 = arith.divf %177, %178 : vector<1x256xf32>
    %180 = vector.broadcast %179 : vector<1x256xf32> to vector<32x256xf32>
    %181 = arith.mulf %162, %180 : vector<32x256xf32>
    %182 = arith.addf %181, %128 : vector<32x256xf32>
    %c0_115 = arith.constant 0 : index
    %c0_116 = arith.constant 0 : index
    %c0_117 = arith.constant 0 : index
    %183 = vector.load %arg33[%c0_115, %c0_116, %c0_117] : memref<1x32x256xf32, #tpu.memory_space<vmem>>, vector<1x32x256xf32>
    %184 = vector.shape_cast %183 : vector<1x32x256xf32> to vector<32x256xf32>
    %185 = vector.shape_cast %182 : vector<32x256xf32> to vector<1x32x256xf32>
    tpu.vector_store %arg33[%c0_115, %c0_116, %c0_117], %185 {strides = array<i32>} : memref<1x32x256xf32, #tpu.memory_space<vmem>>, vector<1x32x256xf32>,
    return
  }
  func.func @transform_0(%arg0: i32) -> (i32, i32, i32) {
    %c0_i32 = arith.constant 0 : i32
    %c0_i32_0 = arith.constant 0 : i32
    %c0_i32_1 = arith.constant 0 : i32
    return %arg0, %c0_i32, %c0_i32_0 : i32, i32, i32
  }
  func.func @transform_1(%arg0: i32) -> (i32, i32, i32) {
    %c0_i32 = arith.constant 0 : i32
    %c0_i32_0 = arith.constant 0 : i32
    %c0_i32_1 = arith.constant 0 : i32
    return %arg0, %c0_i32, %c0_i32_0 : i32, i32, i32
  }
  func.func @transform_2(%arg0: i32) -> (i32, i32, i32) {
    %c0_i32 = arith.constant 0 : i32
    %c0_i32_0 = arith.constant 0 : i32
    %c0_i32_1 = arith.constant 0 : i32
    return %arg0, %c0_i32, %c0_i32_0 : i32, i32, i32
  }
  func.func @transform_3(%arg0: i32) -> (i32, i32) {
    %c0_i32 = arith.constant 0 : i32
    %c0_i32_0 = arith.constant 0 : i32
    %c0_i32_1 = arith.constant 0 : i32
    return %c0_i32, %c0_i32_0 : i32, i32
  }
  func.func @transform_4(%arg0: i32) -> (i32, i32) {
    %c0_i32 = arith.constant 0 : i32
    %c0_i32_0 = arith.constant 0 : i32
    %c0_i32_1 = arith.constant 0 : i32
    return %c0_i32, %c0_i32_0 : i32, i32
  }
  func.func @transform_5(%arg0: i32) -> (i32, i32) {
    %c0_i32 = arith.constant 0 : i32
    %c0_i32_0 = arith.constant 0 : i32
    %c0_i32_1 = arith.constant 0 : i32
    return %c0_i32, %c0_i32_0 : i32, i32
  }
  func.func @transform_6(%arg0: i32) -> (i32, i32) {
    %c0_i32 = arith.constant 0 : i32
    %c0_i32_0 = arith.constant 0 : i32
    %c0_i32_1 = arith.constant 0 : i32
    return %c0_i32, %c0_i32_0 : i32, i32
  }
  func.func @transform_7(%arg0: i32) -> (i32, i32) {
    %c0_i32 = arith.constant 0 : i32
    %c0_i32_0 = arith.constant 0 : i32
    %c0_i32_1 = arith.constant 0 : i32
    return %c0_i32, %c0_i32_0 : i32, i32
  }
  func.func @transform_8(%arg0: i32) -> (i32, i32) {
    %c0_i32 = arith.constant 0 : i32
    %c0_i32_0 = arith.constant 0 : i32
    %c0_i32_1 = arith.constant 0 : i32
    return %c0_i32, %c0_i32_0 : i32, i32
  }
  func.func @transform_9(%arg0: i32) -> (i32, i32) {
    %c0_i32 = arith.constant 0 : i32
    %c0_i32_0 = arith.constant 0 : i32
    %c0_i32_1 = arith.constant 0 : i32
    return %c0_i32, %c0_i32_0 : i32, i32
  }
  func.func @transform_10(%arg0: i32) -> (i32, i32) {
    %c0_i32 = arith.constant 0 : i32
    %c0_i32_0 = arith.constant 0 : i32
    %c0_i32_1 = arith.constant 0 : i32
    return %c0_i32, %c0_i32_0 : i32, i32
  }
  func.func @transform_11(%arg0: i32) -> (i32, i32) {
    %c0_i32 = arith.constant 0 : i32
    %c0_i32_0 = arith.constant 0 : i32
    %c0_i32_1 = arith.constant 0 : i32
    return %c0_i32, %c0_i32_0 : i32, i32
  }
  func.func @transform_12(%arg0: i32) -> (i32, i32) {
    %c0_i32 = arith.constant 0 : i32
    %c0_i32_0 = arith.constant 0 : i32
    %c0_i32_1 = arith.constant 0 : i32
    return %c0_i32, %c0_i32_0 : i32, i32
  }
  func.func @transform_13(%arg0: i32) -> (i32, i32) {
    %c0_i32 = arith.constant 0 : i32
    %c0_i32_0 = arith.constant 0 : i32
    %c0_i32_1 = arith.constant 0 : i32
    return %c0_i32, %c0_i32_0 : i32, i32
  }
  func.func @transform_14(%arg0: i32) -> (i32, i32) {
    %c0_i32 = arith.constant 0 : i32
    %c0_i32_0 = arith.constant 0 : i32
    %c0_i32_1 = arith.constant 0 : i32
    return %c0_i32, %c0_i32_0 : i32, i32
  }
  func.func @transform_15(%arg0: i32) -> (i32, i32) {
    %c0_i32 = arith.constant 0 : i32
    %c0_i32_0 = arith.constant 0 : i32
    %c0_i32_1 = arith.constant 0 : i32
    return %c0_i32, %c0_i32_0 : i32, i32
  }
  func.func @transform_16(%arg0: i32) -> (i32, i32) {
    %c0_i32 = arith.constant 0 : i32
    %c0_i32_0 = arith.constant 0 : i32
    %c0_i32_1 = arith.constant 0 : i32
    return %c0_i32, %c0_i32_0 : i32, i32
  }
  func.func @transform_17(%arg0: i32) -> (i32, i32) {
    %c0_i32 = arith.constant 0 : i32
    %c0_i32_0 = arith.constant 0 : i32
    %c0_i32_1 = arith.constant 0 : i32
    return %c0_i32, %c0_i32_0 : i32, i32
  }
  func.func @transform_18(%arg0: i32) -> (i32, i32) {
    %c0_i32 = arith.constant 0 : i32
    %c0_i32_0 = arith.constant 0 : i32
    %c0_i32_1 = arith.constant 0 : i32
    return %c0_i32, %c0_i32_0 : i32, i32
  }
  func.func @transform_19(%arg0: i32) -> (i32, i32) {
    %c0_i32 = arith.constant 0 : i32
    %c0_i32_0 = arith.constant 0 : i32
    %c0_i32_1 = arith.constant 0 : i32
    return %c0_i32, %c0_i32_0 : i32, i32
  }
  func.func @transform_20(%arg0: i32) -> (i32, i32) {
    %c0_i32 = arith.constant 0 : i32
    %c0_i32_0 = arith.constant 0 : i32
    %c0_i32_1 = arith.constant 0 : i32
    return %c0_i32, %c0_i32_0 : i32, i32
  }
  func.func @transform_21(%arg0: i32) -> (i32, i32) {
    %c0_i32 = arith.constant 0 : i32
    %c0_i32_0 = arith.constant 0 : i32
    %c0_i32_1 = arith.constant 0 : i32
    return %c0_i32, %c0_i32_0 : i32, i32
  }
  func.func @transform_22(%arg0: i32) -> (i32, i32) {
    %c0_i32 = arith.constant 0 : i32
    %c0_i32_0 = arith.constant 0 : i32
    %c0_i32_1 = arith.constant 0 : i32
    return %c0_i32, %c0_i32_0 : i32, i32
  }
  func.func @transform_23(%arg0: i32) -> (i32, i32) {
    %c0_i32 = arith.constant 0 : i32
    %c0_i32_0 = arith.constant 0 : i32
    %c0_i32_1 = arith.constant 0 : i32
    return %c0_i32, %c0_i32_0 : i32, i32
  }
  func.func @transform_24(%arg0: i32) -> (i32, i32) {
    %c0_i32 = arith.constant 0 : i32
    %c0_i32_0 = arith.constant 0 : i32
    %c0_i32_1 = arith.constant 0 : i32
    return %c0_i32, %c0_i32_0 : i32, i32
  }
  func.func @transform_25(%arg0: i32) -> (i32, i32) {
    %c0_i32 = arith.constant 0 : i32
    %c0_i32_0 = arith.constant 0 : i32
    %c0_i32_1 = arith.constant 0 : i32
    return %c0_i32, %c0_i32_0 : i32, i32
  }
  func.func @transform_26(%arg0: i32) -> (i32, i32) {
    %c0_i32 = arith.constant 0 : i32
    %c0_i32_0 = arith.constant 0 : i32
    %c0_i32_1 = arith.constant 0 : i32
    return %c0_i32, %c0_i32_0 : i32, i32
  }
  func.func @transform_27(%arg0: i32) -> (i32, i32) {
    %c0_i32 = arith.constant 0 : i32
    %c0_i32_0 = arith.constant 0 : i32
    %c0_i32_1 = arith.constant 0 : i32
    return %c0_i32, %c0_i32_0 : i32, i32
  }
  func.func @transform_28(%arg0: i32) -> (i32, i32) {
    %c0_i32 = arith.constant 0 : i32
    %c0_i32_0 = arith.constant 0 : i32
    %c0_i32_1 = arith.constant 0 : i32
    return %c0_i32, %c0_i32_0 : i32, i32
  }
  func.func @transform_29(%arg0: i32) -> (i32, i32) {
    %c0_i32 = arith.constant 0 : i32
    %c0_i32_0 = arith.constant 0 : i32
    %c0_i32_1 = arith.constant 0 : i32
    return %c0_i32, %c0_i32_0 : i32, i32
  }
  func.func @transform_30(%arg0: i32) -> (i32, i32) {
    %c0_i32 = arith.constant 0 : i32
    %c0_i32_0 = arith.constant 0 : i32
    %c0_i32_1 = arith.constant 0 : i32
    return %c0_i32, %c0_i32_0 : i32, i32
  }
  func.func @transform_31(%arg0: i32) -> (i32, i32) {
    %c0_i32 = arith.constant 0 : i32
    %c0_i32_0 = arith.constant 0 : i32
    %c0_i32_1 = arith.constant 0 : i32
    return %c0_i32, %c0_i32_0 : i32, i32
  }
  func.func @transform_32(%arg0: i32) -> (i32, i32, i32) {
    %c0_i32 = arith.constant 0 : i32
    %c0_i32_0 = arith.constant 0 : i32
    %c0_i32_1 = arith.constant 0 : i32
    return %arg0, %c0_i32, %c0_i32_0 : i32, i32, i32
  }
}

</mosaic_0001>

<bundles_post_ra>
// kernel: upblock_apply.1
= control target key start
LH: loop header
LB: loop body
LE: loop exit
PB: predicated region body
PF: predicated region fallthrough
CT: control target
= control target key end

     0   :  { %s11573_s6 = smov 1   ;;  %s11574_s10 = smov 2   ;;  %s13372_s0 = inlined_call_operand.smem [shape: u32[33], index: -1, kind: input, shape index: {}] }
   0x1   :  { %s11627_s5 = sld [smem:[%s13372_s0]]   ;;  %s11575_s14 = smov 3  }
   0x2   :  { %s11632_s9 = sld [smem:[%s13372_s0 + %s11573_s6]]   ;;  %s11576_s18 = smov 4  }
   0x3   :  { %s11637_s13 = sld [smem:[%s13372_s0 + %s11574_s10]]   ;;  %s11577_s22 = smov 5  }
   0x4   :  { %s11642_s17 = sld [smem:[%s13372_s0 + %s11575_s14]]   ;;  %s11578_s26 = smov 6  }
   0x5   :  { %s11647_s21 = sld [smem:[%s13372_s0 + %s11576_s18]]   ;;  %s11579_s30 = smov 7  }
   0x6   :  { %s11652_s25 = sld [smem:[%s13372_s0 + %s11577_s22]]   ;;  %s11580_s4 = smov 8  }
   0x7   :  { %s11657_s29 = sld [smem:[%s13372_s0 + %s11578_s26]]   ;;  %s11581_s10 = smov 9  }
   0x8   :  { %s11662_s3 = sld [smem:[%s13372_s0 + %s11579_s30]]   ;;  %s11582_s15 = smov 10  }
   0x9   :  { %13390 = sst [smem:[#allocation21_spill]] %s11637_s13  ;;  %s11583_s20 = smov 11  }
   0xa   :  { %s11667_s8 = sld [smem:[%s13372_s0 + %s11580_s4]]   ;;  %s11584_s26 = smov 12  }
   0xb   :  { %s11672_s14 = sld [smem:[%s13372_s0 + %s11581_s10]]   ;;  %s11585_s1 = smov 13  }
   0xc   :  { %s11677_s19 = sld [smem:[%s13372_s0 + %s11582_s15]]   ;;  %s11586_s7 = smov 14  }
   0xd   :  { %s11682_s24 = sld [smem:[%s13372_s0 + %s11583_s20]]   ;;  %s11587_s15 = smov 15  }
   0xe   :  { %13391 = sst [smem:[#allocation22_spill]] %s11662_s3  ;;  %s11588_s22 = smov 16  }
   0xf   :  { %s11687_s30 = sld [smem:[%s13372_s0 + %s11584_s26]]   ;;  %s11589_s28 = smov 17  }
  0x10   :  { %13392 = sst [smem:[#allocation23_spill]] %s11667_s8 }
  0x11   :  { %13393 = sst [smem:[#allocation24_spill]] %s11672_s14 }
  0x12   :  { %13394 = sst [smem:[#allocation25_spill]] %s11677_s19 }
  0x13   :  { %13395 = sst [smem:[#allocation26_spill]] %s11682_s24 }
  0x14   :  { %s11692_s6 = sld [smem:[%s13372_s0 + %s11585_s1]]  }
  0x15   :  { %13396 = sst [smem:[#allocation27_spill]] %s11687_s30 }
  0x16   :  { %s11697_s12 = sld [smem:[%s13372_s0 + %s11586_s7]]   ;;  %s11590_s7 = smov 18  }
  0x17   :  { %s11702_s20 = sld [smem:[%s13372_s0 + %s11587_s15]]   ;;  %s11591_s15 = smov 19  }
  0x18   :  { %s11707_s27 = sld [smem:[%s13372_s0 + %s11588_s22]]   ;;  %s11592_s22 = smov 20  }
  0x19   :  { %s11712_s4 = sld [smem:[%s13372_s0 + %s11589_s28]]   ;;  %s11593_s28 = smov 21  }
  0x1a   :  { %13397 = sst [smem:[#allocation28_spill]] %s11692_s6 }
  0x1b   :  { %s11717_s13 = sld [smem:[%s13372_s0 + %s11590_s7]]   ;;  %s11594_s7 = smov 22  }
  0x1c   :  { %13398 = sst [smem:[#allocation29_spill]] %s11697_s12 }
  0x1d   :  { %13399 = sst [smem:[#allocation30_spill]] %s11702_s20 }
  0x1e   :  { %s11722_s20 = sld [smem:[%s13372_s0 + %s11591_s15]]   ;;  %s11595_s15 = smov 23  }
  0x1f   :  { %13400 = sst [smem:[#allocation31_spill]] %s11712_s4 }
  0x20   :  { %s11727_s6 = sld [smem:[%s13372_s0 + %s11592_s22]]   ;;  %s11596_s22 = smov 24  }
  0x21   :  { %s11732_s12 = sld [smem:[%s13372_s0 + %s11593_s28]]   ;;  %s11597_s28 = smov 25  }
  0x22   :  { %s11737_s30 = sld [smem:[%s13372_s0 + %s11594_s7]]   ;;  %s11598_s7 = smov 26  }
  0x24   :  { %13401 = sst [smem:[#allocation32_spill]] %s11722_s20 }
  0x25   :  { %s11742_s20 = sld [smem:[%s13372_s0 + %s11595_s15]]   ;;  %s11599_s15 = smov 27  }
  0x26   :  { %13402 = sst [smem:[#allocation33_spill]] %s11727_s6 }
  0x27   :  { %13403 = sst [smem:[#allocation34_spill]] %s11732_s12 }
  0x28   :  { %13404 = sst [smem:[#allocation35_spill]] %s11737_s30 }
  0x29   :  { %s11747_s6 = sld [smem:[%s13372_s0 + %s11596_s22]]   ;;  %s11600_s22 = smov 28  }
  0x2a   :  { %s11752_s12 = sld [smem:[%s13372_s0 + %s11597_s28]]   ;;  %s11601_s28 = smov 29  }
  0x2b   :  { %13405 = sst [smem:[#allocation36_spill]] %s11742_s20 }
  0x2c   :  { %s11757_s30 = sld [smem:[%s13372_s0 + %s11598_s7]]   ;;  %s11602_s7 = smov 30  }
  0x2d   :  { %s11762_s20 = sld [smem:[%s13372_s0 + %s11599_s15]]   ;;  %s11603_s15 = smov 31  }
  0x2e   :  { %s11767_s24 = sld [smem:[%s13372_s0 + %s11600_s22]]   ;;  %s11604_s22 = smov 32  }
  0x2f   :  { %13406 = sst [smem:[#allocation37_spill]] %s11747_s6 }
  0x30   :  { %s11772_s19 = sld [smem:[%s13372_s0 + %s11601_s28]]  }
  0x31   :  { %s11777_s8 = sld [smem:[%s13372_s0 + %s11602_s7]]  }
  0x32   :  { %s11782_s14 = sld [smem:[%s13372_s0 + %s11603_s15]]  }
  0x33   :  { %s11787_s3 = sld [smem:[%s13372_s0 + %s11604_s22]]  }
  0x34   :  { %70 = vsyncpa [#allocation3], 0 }
  0x35   :  { %71 = vsyncpa [#allocation5], 0 }
  0x36   :  { %72 = vsyncpa [#allocation8], 0 }
  0x37   :  { %73 = vsyncpa [#allocation11], 0 }
  0x38   :  { %74 = vsyncpa [#allocation14], 0  ;;  %s11789_s28 = smov 0  }
  0x39 LB: > { %s13407_s6 = sld [smem:[#allocation37_spill]]  ;;  %s11795_s1 = sadd.s32 4294967295, %s11571_s28   ;;  %s11571_s28 = sphi %s11789_s28, %s80_s28  }
  0x3a   : > { %s13408_s4 = sld [smem:[#allocation31_spill]]  ;;  %p7604_p0 = scmp.ge.s32.totalorder %s11571_s28, 1 }
  0x3b   : > { %13409 = sst [smem:[#allocation38_spill]] %s11571_s28  ;;  %p798_p1 = scmp.lt.s32.totalorder %s11571_s28, 3 }
  0x3c   : > { %p11175_p2 = scmp.eq.s32.totalorder %s11795_s1, 0  ;;  %s11605_s10 = smov [#allocation4]  }
  0x3d   : > { %p11801_p3 = pnand %p7604_p0, %p798_p1  ;;  %s864_s11 = sshll.u32 %s11605_s10, 4  ;;  %s865_s11 = int_to_ptr.vmem [resolvable:$true] %s864_s11 }
  0x3e   : > { %s11606_s16 = smov [#allocation7]  }
  0x3f   : > { %s905_s7 = sshll.u32 %s13407_s6, 4  ;;  %p11147_p4 = pneg %p11801_p3  ;;  %s11810_s7 = int_to_ptr.hbm [resolvable:$true] %s905_s7 }
  0x40   : > { %s862_s0 = sshll.u32 %s13408_s4, 4  ;;  %s11818_s18 = sshll.u32 %s11606_s16, 4  ;;  %s11805_s0 = int_to_ptr.hbm [resolvable:$true] %s862_s0 }
  0x41   : > { %p11814_p5 = pnand %p11175_p2, %p11147_p4  ;;  %13412 = sst [smem:[#allocation39_spill]] %s11818_s18 }
  0x42   : > { %s11275_s23 = sshra.s32 %s11805_s0, 4  ;;  %s11282_s28 = scalar_lea.hbm %s13408_s4, 256  ;;  %s11276_s23 = int_to_ptr.hbm [resolvable:$true] %s11275_s23 }
  0x43   : > { %s11277_s26 = scalar_lea.hbm %s11276_s23, 256  ;;  %p11825_p7 = pneg %p11814_p5 }
  0x44   : > { %p11278_p6 = scmp.ne.s32.totalorder %s11276_s23, %s11277_s26  ;;  %p11283_p10 = scmp.lt.s32.totalorder %s11276_s23, %s13408_s4 }
  0x45   : > { %p11284_p11 = scmp.lt.s32.totalorder %s11282_s28, %s11277_s26 }
  0x46   : > { %p11280_p8 = pnand %p11825_p7, %p11278_p6 }
  0x47   : > { %p11285_p12 = por %p11284_p11, %p11283_p10 }
  0x48   : > { %p11281_p9 = pneg %p11280_p8 }
  0x4a   : > { %p11286_p13 = pnand %p11285_p12, %p11281_p9 }
  0x4c   : > { %11289 = shalt.err (!%p11286_p13)
}
  0x4d   : > { %s11607_s16 = smov 128   ;;  %s11608_s22 = smov 8  }
  0x4e   : > { %11153 = dma.hbm_to_vmem [thread:$0]  (!%p11814_p5), %s11805_s0, 4096, %s865_s11, [#allocation5], %s11607_s16, %s11607_s16, %s11608_s22  }
  0x4f   : > { %s11305_s18 = sshra.s32 %s11810_s7, 4  ;;  %s11312_s28 = scalar_lea.hbm %s13407_s6, 256  ;;  %s11306_s18 = int_to_ptr.hbm [resolvable:$true] %s11305_s18 }
  0x50   : > { %s11307_s23 = scalar_lea.hbm %s11306_s18, 256  ;;  %p11313_p6 = scmp.lt.s32.totalorder %s11306_s18, %s13407_s6 }
  0x51   : > { %p11308_p0 = scmp.ne.s32.totalorder %s11306_s18, %s11307_s23  ;;  %p11314_p8 = scmp.lt.s32.totalorder %s11312_s28, %s11307_s23 }
  0x53   : > { %p11310_p1 = pnand %p11308_p0, %p11825_p7  ;;  %p11315_p9 = por %p11314_p8, %p11313_p6 }
  0x55   : > { %p11311_p4 = pneg %p11310_p1 }
  0x57   : > { %p11316_p10 = pnand %p11315_p9, %p11311_p4 }
  0x59   : > { %11319 = shalt.err (!%p11316_p10)
}
  0x5a   : > { %s13414_s26 = sld [smem:[#allocation39_spill]]  ;;  %s13416_s11 = sshll.u32 %s11757_s30, 4  ;;  %s934_s11 = int_to_ptr.hbm [resolvable:$true] %s13416_s11 }
  0x5b   : > { %s11609_s18 = smov [#allocation10]   ;;  %s961_s28 = sshll.u32 %s11767_s24, 4  ;;  %s11855_s28 = int_to_ptr.hbm [resolvable:$true] %s961_s28 }
  0x5c   : > { %s935_s23 = sshll.u32 %s11609_s18, 4  ;;  %s11335_s4 = sshra.s32 %s934_s11, 4  ;;  %s936_s23 = int_to_ptr.vmem [resolvable:$true] %s935_s23  ;;  %s11336_s4 = int_to_ptr.hbm [resolvable:$true] %s11335_s4 }
  0x5d   : > { %s11337_s6 = scalar_lea.hbm %s11336_s4, 256  ;;  %p11343_p0 = scmp.lt.s32.totalorder %s11336_s4, %s11757_s30 }
  0x5e   : > { %p11338_p11 = scmp.ne.s32.totalorder %s11336_s4, %s11337_s6 }
  0x60   : > { %s13415_s0 = int_to_ptr.vmem [resolvable:$true] %s13414_s26  ;;  %p11340_p12 = pnand %p11338_p11, %p11825_p7 }
  0x61   : > { %11159 = dma.hbm_to_vmem [thread:$0]  (!%p11814_p5), %s11810_s7, 4096, %s13415_s0, [#allocation8], %s11607_s16, %s11607_s16, %s11608_s22  }
  0x62   : > { %p11341_p13 = pneg %p11340_p12  ;;  %s11342_s26 = scalar_lea.hbm %s11757_s30, 256 }
  0x63   : > { %p11344_p1 = scmp.lt.s32.totalorder %s11342_s26, %s11337_s6 }
  0x65   : > { %p11345_p4 = por %p11344_p1, %p11343_p0 }
  0x67   : > { %p11346_p6 = pnand %p11345_p4, %p11341_p13 }
  0x69   : > { %11349 = shalt.err (!%p11346_p6)
}
  0x6a   : > { %11165 = dma.hbm_to_vmem [thread:$0]  (!%p11814_p5), %s934_s11, 4096, %s936_s23, [#allocation11], %s11607_s16, %s11607_s16, %s11608_s22  }
  0x6b   : > { %s848_s7 = sshll.u32 %s11707_s27, 4  ;;  %s11610_s0 = smov [#allocation13]   ;;  %s11867_s7 = int_to_ptr.hbm [resolvable:$true] %s848_s7 }
  0x6c   : > { %s963_s18 = sshll.u32 %s11610_s0, 4  ;;  %s11365_s6 = sshra.s32 %s11855_s28, 4  ;;  %s964_s18 = int_to_ptr.vmem [resolvable:$true] %s963_s18  ;;  %s11366_s6 = int_to_ptr.hbm [resolvable:$true] %s11365_s6 }
  0x6d   : > { %s11367_s4 = scalar_lea.hbm %s11366_s6, 256  ;;  %s11372_s26 = scalar_lea.hbm %s11767_s24, 256 }
  0x6e   : > { %p11368_p8 = scmp.ne.s32.totalorder %s11366_s6, %s11367_s4  ;;  %p11373_p11 = scmp.lt.s32.totalorder %s11366_s6, %s11767_s24 }
  0x6f   : > { %p11374_p12 = scmp.lt.s32.totalorder %s11372_s26, %s11367_s4 }
  0x70   : > { %p11370_p9 = pnand %p11368_p8, %p11825_p7 }
  0x71   : > { %p11375_p13 = por %p11374_p12, %p11373_p11 }
  0x72   : > { %p11371_p10 = pneg %p11370_p9 }
  0x74   : > { %p11376_p0 = pnand %p11375_p13, %p11371_p10 }
  0x76   : > { %11379 = shalt.err (!%p11376_p0)
}
  0x77   : > { %11171 = dma.hbm_to_vmem [thread:$0]  (!%p11814_p5), %s11855_s28, 4096, %s964_s18, [#allocation14], %s11607_s16, %s11607_s16, %s11608_s22  }
  0x78   : > { %s11611_s11 = smov [#allocation2]   ;;  %s876_s0 = sshll.u32 %s11717_s13, 4  ;;  %s11881_s0 = int_to_ptr.hbm [resolvable:$true] %s876_s0 }
  0x79   : > { %s850_s23 = sshll.u32 %s11611_s11, 4  ;;  %s11395_s6 = sshra.s32 %s11867_s7, 4  ;;  %s851_s23 = int_to_ptr.vmem [resolvable:$true] %s850_s23  ;;  %s11396_s6 = int_to_ptr.hbm [resolvable:$true] %s11395_s6 }
  0x7a   : > { %s11397_s4 = scalar_lea.hbm %s11396_s6, 256  ;;  %s11402_s26 = scalar_lea.hbm %s11707_s27, 256 }
  0x7b   : > { %p11398_p1 = scmp.ne.s32.totalorder %s11396_s6, %s11397_s4  ;;  %p11403_p8 = scmp.lt.s32.totalorder %s11396_s6, %s11707_s27 }
  0x7c   : > { %p11404_p9 = scmp.lt.s32.totalorder %s11402_s26, %s11397_s4 }
  0x7d   : > { %p11400_p4 = pnand %p11398_p1, %p11825_p7 }
  0x7e   : > { %p11405_p10 = por %p11404_p9, %p11403_p8 }
  0x7f   : > { %p11401_p6 = pneg %p11400_p4 }
  0x81   : > { %p11406_p11 = pnand %p11405_p10, %p11401_p6 }
  0x83   : > { %11409 = shalt.err (!%p11406_p11)
}
  0x84   : > { %11150 = dma.hbm_to_vmem [thread:$0]  (!%p11814_p5), %s11867_s7, 4096, %s851_s23, [#allocation3], %s11607_s16, %s11607_s16, %s11608_s22  }
  0x85   : > { %s919_s28 = sshll.u32 %s11752_s12, 4  ;;  %s11612_s18 = smov [#allocation6]   ;;  %s11895_s28 = int_to_ptr.hbm [resolvable:$true] %s919_s28 }
  0x86   : > { %s878_s11 = sshll.u32 %s11612_s18, 4  ;;  %s11425_s6 = sshra.s32 %s11881_s0, 4  ;;  %s879_s11 = int_to_ptr.vmem [resolvable:$true] %s878_s11  ;;  %s11426_s6 = int_to_ptr.hbm [resolvable:$true] %s11425_s6 }
  0x87   : > { %s11427_s4 = scalar_lea.hbm %s11426_s6, 256  ;;  %s11432_s26 = scalar_lea.hbm %s11717_s13, 256 }
  0x88   : > { %p11428_p12 = scmp.ne.s32.totalorder %s11426_s6, %s11427_s4  ;;  %p11433_p1 = scmp.lt.s32.totalorder %s11426_s6, %s11717_s13 }
  0x89   : > { %p11434_p4 = scmp.lt.s32.totalorder %s11432_s26, %s11427_s4 }
  0x8a   : > { %p11430_p13 = pnand %p11428_p12, %p11825_p7 }
  0x8b   : > { %p11435_p6 = por %p11434_p4, %p11433_p1 }
  0x8c   : > { %p11431_p0 = pneg %p11430_p13 }
  0x8e   : > { %p11436_p8 = pnand %p11435_p6, %p11431_p0 }
  0x90   : > { %11439 = shalt.err (!%p11436_p8)
}
  0x91   : > { %11156 = dma.hbm_to_vmem [thread:$0]  (!%p11814_p5), %s11881_s0, 4096, %s879_s11, [#allocation5], %s11607_s16, %s11607_s16, %s11608_s22  }
  0x92   : > { %s11613_s7 = smov [#allocation9]   ;;  %s947_s18 = sshll.u32 %s11762_s20, 4  ;;  %s11909_s18 = int_to_ptr.hbm [resolvable:$true] %s947_s18 }
  0x93   : > { %s921_s23 = sshll.u32 %s11613_s7, 4  ;;  %s11455_s6 = sshra.s32 %s11895_s28, 4  ;;  %s922_s23 = int_to_ptr.vmem [resolvable:$true] %s921_s23  ;;  %s11456_s6 = int_to_ptr.hbm [resolvable:$true] %s11455_s6 }
  0x94   : > { %s11457_s4 = scalar_lea.hbm %s11456_s6, 256  ;;  %s11462_s26 = scalar_lea.hbm %s11752_s12, 256 }
  0x95   : > { %p11458_p9 = scmp.ne.s32.totalorder %s11456_s6, %s11457_s4  ;;  %p11463_p12 = scmp.lt.s32.totalorder %s11456_s6, %s11752_s12 }
  0x96   : > { %p11464_p13 = scmp.lt.s32.totalorder %s11462_s26, %s11457_s4 }
  0x97   : > { %p11460_p10 = pnand %p11458_p9, %p11825_p7 }
  0x98   : > { %p11465_p0 = por %p11464_p13, %p11463_p12 }
  0x99   : > { %p11461_p11 = pneg %p11460_p10 }
  0x9b   : > { %p11466_p1 = pnand %p11465_p0, %p11461_p11 }
  0x9d   : > { %11469 = shalt.err (!%p11466_p1)
}
  0x9e   : > { %11162 = dma.hbm_to_vmem [thread:$0]  (!%p11814_p5), %s11895_s28, 4096, %s922_s23, [#allocation8], %s11607_s16, %s11607_s16, %s11608_s22  }
  0x9f   : > { %s975_s0 = sshll.u32 %s11772_s19, 4  ;;  %s11614_s11 = smov [#allocation12]   ;;  %s11923_s0 = int_to_ptr.hbm [resolvable:$true] %s975_s0 }
  0xa0   : > { %s949_s7 = sshll.u32 %s11614_s11, 4  ;;  %s11485_s6 = sshra.s32 %s11909_s18, 4  ;;  %s950_s7 = int_to_ptr.vmem [resolvable:$true] %s949_s7  ;;  %s11486_s6 = int_to_ptr.hbm [resolvable:$true] %s11485_s6 }
  0xa1   : > { %s11487_s4 = scalar_lea.hbm %s11486_s6, 256  ;;  %s11492_s26 = scalar_lea.hbm %s11762_s20, 256 }
  0xa2   : > { %p11488_p4 = scmp.ne.s32.totalorder %s11486_s6, %s11487_s4  ;;  %p11493_p9 = scmp.lt.s32.totalorder %s11486_s6, %s11762_s20 }
  0xa3   : > { %p11494_p10 = scmp.lt.s32.totalorder %s11492_s26, %s11487_s4 }
  0xa4   : > { %p11490_p6 = pnand %p11488_p4, %p11825_p7 }
  0xa5   : > { %p11495_p11 = por %p11494_p10, %p11493_p9 }
  0xa6   : > { %p11491_p8 = pneg %p11490_p6 }
  0xa8   : > { %p11496_p12 = pnand %p11495_p11, %p11491_p8 }
  0xaa   : > { %11499 = shalt.err (!%p11496_p12)
}
  0xab   : > { %11168 = dma.hbm_to_vmem [thread:$0]  (!%p11814_p5), %s11909_s18, 4096, %s950_s7, [#allocation11], %s11607_s16, %s11607_s16, %s11608_s22  }
  0xac   : > { %s11615_s28 = smov [#allocation15]   ;;  %s11515_s11 = sshra.s32 %s11923_s0, 4  ;;  %s11516_s11 = int_to_ptr.hbm [resolvable:$true] %s11515_s11 }
  0xad   : > { %s977_s23 = sshll.u32 %s11615_s28, 4  ;;  %s11517_s6 = scalar_lea.hbm %s11516_s11, 256  ;;  %s978_s23 = int_to_ptr.vmem [resolvable:$true] %s977_s23 }
  0xae   : > { %p11518_p13 = scmp.ne.s32.totalorder %s11516_s11, %s11517_s6  ;;  %s11522_s4 = scalar_lea.hbm %s11772_s19, 256 }
  0xaf   : > { %p11523_p4 = scmp.lt.s32.totalorder %s11516_s11, %s11772_s19  ;;  %p11524_p6 = scmp.lt.s32.totalorder %s11522_s4, %s11517_s6 }
  0xb0   : > { %p11520_p0 = pnand %p11518_p13, %p11825_p7 }
  0xb1   : > { %p11525_p8 = por %p11524_p6, %p11523_p4 }
  0xb2   : > { %p11521_p1 = pneg %p11520_p0 }
  0xb4   : > { %p11526_p9 = pnand %p11525_p8, %p11521_p1 }
  0xb6   : > { %11529 = shalt.err (!%p11526_p9)
}
  0xb7   : > { %11174 = dma.hbm_to_vmem [thread:$0]  (!%p11814_p5), %s11923_s0, 4096, %s978_s23, [#allocation14], %s11607_s16, %s11607_s16, %s11608_s22  }
  0xb8   : > { %1023 = sbr.rel (%p11801_p3) target bundleno = 2914 (0xb62), region = 148 }
  0xbd   : > { %11550 = dma.done.wait (%p11175_p2), [#allocation3], 4096  }
  0xbe   : > { %11552 = vsyncadd (%p11175_p2), [#allocation3], 4294963200 }
  0xbf   : > { %11554 = dma.done.wait (%p11175_p2), [#allocation5], 8192  }
  0xc0   : > { %11556 = vsyncadd (%p11175_p2), [#allocation5], 4294959104 }
  0xc1   : > { %11558 = dma.done.wait (%p11175_p2), [#allocation8], 8192  }
  0xc2   : > { %11560 = vsyncadd (%p11175_p2), [#allocation8], 4294959104 }
  0xc3   : > { %11562 = dma.done.wait (%p11175_p2), [#allocation11], 8192  }
  0xc4   : > { %11564 = vsyncadd (%p11175_p2), [#allocation11], 4294959104 }
  0xc5   : > { %11566 = dma.done.wait (%p11175_p2), [#allocation14], 8192  }
  0xc6   : > { %11568 = vsyncadd (%p11175_p2), [#allocation14], 4294959104  ;;  %v1211_v0 = vld [vmem:[%s11642_s17 + $0xf0] sm:$0xff]  ;;  %v1212_v1 = vld [vmem:[%s11642_s17 + $0xf8] sm:$0xff]  ;;  %p1156_p2 = scmp.lt.s32.totalorder %s11795_s1, 1  ;;  %s13417_s10 = sld [smem:[#allocation22_spill]] }
  0xc7   : > { %v1209_v2 = vld [vmem:[%s11642_s17 + $0xe0] sm:$0xff]  ;;  %1291 = vmatpush.msra.mxu2 %v1211_v0  ;;  %1314 = vmatpush.msra.mxu3 %v1212_v1  ;;  %v1210_v3 = vld [vmem:[%s11642_s17 + $0xe8] sm:$0xff]  ;;  %v1207_v4 = vld [vmem:[%s11642_s17 + $0xd0] sm:$0xff]  ;;  %vm1341_vm0 = vcmask 1040384   ;;  %vm11616_vm2 = vmmov 1   ;;  %vm1354_vm4 = vcmask 1046528  }
  0xc8   : > { %v1208_v5 = vld [vmem:[%s11642_s17 + $0xd8] sm:$0xff]  ;;  %v1243_v6 = vld [vmem:[%s11647_s21 + $0xf0] sm:$0xff]  ;;  %v1241_v8 = vld [vmem:[%s11647_s21 + $0xe0] sm:$0xff]  ;;  %s13440_s1 = smov (!%p1156_p2, %s11795_s1), 1  ;;  %s13422_s16 = sld [smem:[#allocation24_spill]]  ;;  %vm3097_vm7 = vcmask 1041408  }
  0xc9   : > { %v1244_v7 = vld [vmem:[%s11647_s21 + $0xf8] sm:$0xff]  ;;  %1292 = vmatpush.msra.mxu2 %v1209_v2  ;;  %1315 = vmatpush.msra.mxu3 %v1210_v3  ;;  %v1242_v9 = vld [vmem:[%s11647_s21 + $0xe8] sm:$0xff]  ;;  %v1205_v10 = vld [vmem:[%s11642_s17 + $0xc0] sm:$0xff]  ;;  %s10449_s2 = sshll.u32 %s13440_s1, 4  ;;  %s13425_s18 = sld [smem:[#allocation23_spill]]  ;;  %vm3093_vm8 = vcmask 31744  }
  0xca   : > { %1245 = vmatpush.msra.mxu0 %v1243_v6  ;;  %1268 = vmatpush.msra.mxu1 %v1244_v7  ;;  %v1206_v11 = vld [vmem:[%s11642_s17 + $0xc8] sm:$0xff]  ;;  %v1239_v12 = vld [vmem:[%s11647_s21 + $0xd0] sm:$0xff]  ;;  %v1240_v13 = vld [vmem:[%s11647_s21 + $0xd8] sm:$0xff]  ;;  %s12035_s15 = scalar_lea.vmem %s11627_s5, %s10449_s2  ;;  %s12053_s22 = scalar_lea.vmem %s11632_s9, %s10449_s2 }
  0xcb   : > { %1293 = vmatpush.msra.mxu2 %v1207_v4  ;;  %1316 = vmatpush.msra.mxu3 %v1208_v5  ;;  %v1203_v14 = vld [vmem:[%s11642_s17 + $0xb0] sm:$0xff]  ;;  %v1204_v15 = vld [vmem:[%s11642_s17 + $0xb8] sm:$0xff]  ;;  %v1237_v16 = vld [vmem:[%s11647_s21 + $0xc0] sm:$0xff]  ;;  %s13426_s0 = sld [smem:[#allocation25_spill]] }
  0xcc   : > { %1246 = vmatpush.msra.mxu0 %v1241_v8  ;;  %1269 = vmatpush.msra.mxu1 %v1242_v9  ;;  %v1238_v17 = vld [vmem:[%s11647_s21 + $0xc8] sm:$0xff]  ;;  %v1201_v18 = vld [vmem:[%s11642_s17 + $0xa0] sm:$0xff]  ;;  %v1235_v20 = vld [vmem:[%s11647_s21 + $0xb0] sm:$0xff]  ;;  %s13427_s7 = sld [smem:[#allocation26_spill]] }
  0xcd   : > { %1294 = vmatpush.msra.mxu2 %v1205_v10  ;;  %1317 = vmatpush.msra.mxu3 %v1206_v11  ;;  %v1202_v19 = vld [vmem:[%s11642_s17 + $0xa8] sm:$0xff]  ;;  %v1236_v21 = vld [vmem:[%s11647_s21 + $0xb8] sm:$0xff]  ;;  %v1199_v22 = vld [vmem:[%s11642_s17 + $0x90] sm:$0xff]  ;;  %s13428_s26 = sld [smem:[#allocation27_spill]] }
  0xce   : > { %1247 = vmatpush.msra.mxu0 %v1239_v12  ;;  %1270 = vmatpush.msra.mxu1 %v1240_v13  ;;  %v1200_v23 = vld [vmem:[%s11642_s17 + $0x98] sm:$0xff]  ;;  %v1233_v24 = vld [vmem:[%s11647_s21 + $0xa0] sm:$0xff]  ;;  %v1234_v25 = vld [vmem:[%s11647_s21 + $0xa8] sm:$0xff]  ;;  %s13429_s28 = sld [smem:[#allocation33_spill]] }
  0xcf   : > { %1295 = vmatpush.msra.mxu2 %v1203_v14  ;;  %1318 = vmatpush.msra.mxu3 %v1204_v15  ;;  %v1197_v26 = vld [vmem:[%s11642_s17 + $0x80] sm:$0xff]  ;;  %v1198_v27 = vld [vmem:[%s11642_s17 + $0x88] sm:$0xff]  ;;  %v1231_v28 = vld [vmem:[%s11647_s21 + $0x90] sm:$0xff]  ;;  %s13430_s23 = sld [smem:[#allocation29_spill]] }
  0xd0   : > { %1248 = vmatpush.msra.mxu0 %v1237_v16  ;;  %1271 = vmatpush.msra.mxu1 %v1238_v17  ;;  %v1232_v29 = vld [vmem:[%s11647_s21 + $0x98] sm:$0xff]  ;;  %v1195_v30 = vld [vmem:[%s11642_s17 + $0x70] sm:$0xff]  ;;  %v1229_v32 = vld [vmem:[%s11647_s21 + $0x80] sm:$0xff]  ;;  %s13431_s11 = sld [smem:[#allocation28_spill]] }
  0xd1   : > { %1296 = vmatpush.msra.mxu2 %v1201_v18  ;;  %1319 = vmatpush.msra.mxu3 %v1202_v19  ;;  %v1196_v31 = vld [vmem:[%s11642_s17 + $0x78] sm:$0xff]  ;;  %v1230_v33 = vld [vmem:[%s11647_s21 + $0x88] sm:$0xff]  ;;  %v1193_v34 = vld [vmem:[%s11642_s17 + $0x60] sm:$0xff]  ;;  %s13432_s6 = sld [smem:[#allocation30_spill]] }
  0xd2   : > { %1249 = vmatpush.msra.mxu0 %v1235_v20  ;;  %1272 = vmatpush.msra.mxu1 %v1236_v21  ;;  %v1194_v35 = vld [vmem:[%s11642_s17 + $0x68] sm:$0xff]  ;;  %v1227_v36 = vld [vmem:[%s11647_s21 + $0x70] sm:$0xff]  ;;  %v1228_v37 = vld [vmem:[%s11647_s21 + $0x78] sm:$0xff]  ;;  %s13433_s4 = sld [smem:[#allocation32_spill]] }
  0xd3   : > { %1297 = vmatpush.msra.mxu2 %v1199_v22  ;;  %1320 = vmatpush.msra.mxu3 %v1200_v23  ;;  %v1191_v38 = vld [vmem:[%s11642_s17 + $0x50] sm:$0xff]  ;;  %v1192_v39 = vld [vmem:[%s11642_s17 + $0x58] sm:$0xff]  ;;  %v1225_v40 = vld [vmem:[%s11647_s21 + $0x60] sm:$0xff]  ;;  %s13434_s2 = sld [smem:[#allocation34_spill]] }
  0xd4   : > { %1250 = vmatpush.msra.mxu0 %v1233_v24  ;;  %1273 = vmatpush.msra.mxu1 %v1234_v25  ;;  %v1226_v41 = vld [vmem:[%s11647_s21 + $0x68] sm:$0xff]  ;;  %v1189_v42 = vld [vmem:[%s11642_s17 + $0x40] sm:$0xff]  ;;  %v1223_v44 = vld [vmem:[%s11647_s21 + $0x50] sm:$0xff] }
  0xd5   : > { %1298 = vmatpush.msra.mxu2 %v1197_v26  ;;  %1321 = vmatpush.msra.mxu3 %v1198_v27  ;;  %v1190_v43 = vld [vmem:[%s11642_s17 + $0x48] sm:$0xff]  ;;  %v1224_v45 = vld [vmem:[%s11647_s21 + $0x58] sm:$0xff]  ;;  %v1187_v46 = vld [vmem:[%s11642_s17 + $0x30] sm:$0xff] }
  0xd6   : > { %1251 = vmatpush.msra.mxu0 %v1231_v28  ;;  %1274 = vmatpush.msra.mxu1 %v1232_v29  ;;  %v1188_v47 = vld [vmem:[%s11642_s17 + $0x38] sm:$0xff]  ;;  %v1221_v48 = vld [vmem:[%s11647_s21 + $0x40] sm:$0xff]  ;;  %v1222_v49 = vld [vmem:[%s11647_s21 + $0x48] sm:$0xff] }
  0xd7   : > { %1299 = vmatpush.msra.mxu2 %v1195_v30  ;;  %1322 = vmatpush.msra.mxu3 %v1196_v31  ;;  %v1185_v50 = vld [vmem:[%s11642_s17 + $0x20] sm:$0xff]  ;;  %v1186_v51 = vld [vmem:[%s11642_s17 + $0x28] sm:$0xff]  ;;  %v1183_v52 = vld [vmem:[%s11642_s17 + $0x10] sm:$0xff] }
  0xd8   : > { %1252 = vmatpush.msra.mxu0 %v1229_v32  ;;  %1275 = vmatpush.msra.mxu1 %v1230_v33  ;;  %v1184_v53 = vld [vmem:[%s11642_s17 + $0x18] sm:$0xff]  ;;  %v1219_v54 = vld [vmem:[%s11647_s21 + $0x30] sm:$0xff]  ;;  %v1181_v56 = vld [vmem:[%s11642_s17] sm:$0xff] }
  0xd9   : > { %1300 = vmatpush.msra.mxu2 %v1193_v34  ;;  %1323 = vmatpush.msra.mxu3 %v1194_v35  ;;  %v1220_v55 = vld [vmem:[%s11647_s21 + $0x38] sm:$0xff]  ;;  %v1217_v57 = vld [vmem:[%s11647_s21 + $0x20] sm:$0xff]  ;;  %v1218_v58 = vld [vmem:[%s11647_s21 + $0x28] sm:$0xff] }
  0xda   : > { %1253 = vmatpush.msra.mxu0 %v1227_v36  ;;  %1276 = vmatpush.msra.mxu1 %v1228_v37  ;;  %v10499_v59 = vld [vmem:[%s11657_s29 + $0x74] sm:$0xf]  ;;  %v7693_v60 = vld [vmem:[%s11657_s29 + $0x78] sm:$0xf0]  ;;  %v1182_v63 = vld [vmem:[%s11642_s17 + $0x8] sm:$0xff] }
  0xdb   : > { %1301 = vmatpush.msra.mxu2 %v1191_v38  ;;  %1324 = vmatpush.msra.mxu3 %v1192_v39  ;;  %v10515_v61 = vld [vmem:[%s11657_s29 + $0xf4] sm:$0xf]  ;;  %v7757_v62 = vld [vmem:[%s11657_s29 + $0xf8] sm:$0xf0]  ;;  %v1177_v0 = vld [vmem:[%s12035_s15] sm:$0xff]  ;;  %v7696_v7 = vor.u32 %v10499_v59, %v7693_v60 }
  0xdc   : > { %1254 = vmatpush.msra.mxu0 %v1225_v40  ;;  %1277 = vmatpush.msra.mxu1 %v1226_v41  ;;  %v1215_v1 = vld [vmem:[%s11647_s21 + $0x10] sm:$0xff]  ;;  %v1216_v2 = vld [vmem:[%s11647_s21 + $0x18] sm:$0xff]  ;;  %v7760_v8 = vor.u32 %v10515_v61, %v7757_v62  ;;  %v10497_v9 = vld [vmem:[%s11657_s29 + $0x64] sm:$0xf] }
  0xdd   : > { %1302 = vmatpush.msra.mxu2 %v1189_v42  ;;  %1325 = vmatpush.msra.mxu3 %v1190_v43  ;;  %v7691_v3 = vld [vmem:[%s11657_s29 + $0x70] sm:$0xf]  ;;  %v10500_v4 = vld [vmem:[%s11657_s29 + $0x74] sm:$0xf0]  ;;  %v7685_v10 = vld [vmem:[%s11657_s29 + $0x68] sm:$0xf0] }
  0xde   : > { %1255 = vmatpush.msra.mxu0 %v1223_v44  ;;  %1278 = vmatpush.msra.mxu1 %v1224_v45  ;;  %v7755_v5 = vld [vmem:[%s11657_s29 + $0xf0] sm:$0xf]  ;;  %v10516_v6 = vld [vmem:[%s11657_s29 + $0xf4] sm:$0xf0]  ;;  %v10513_v11 = vld [vmem:[%s11657_s29 + $0xe4] sm:$0xf]  ;;  %v7692_v16 = vor.u32 %v10500_v4, %v7691_v3  ;;  %v7688_v22 = vor.u32 %v10497_v9, %v7685_v10 }
  0xdf   : > { %1303 = vmatpush.msra.mxu2 %v1187_v46  ;;  %1326 = vmatpush.msra.mxu3 %v1188_v47  ;;  %v7749_v12 = vld [vmem:[%s11657_s29 + $0xe8] sm:$0xf0]  ;;  %v1213_v13 = vld [vmem:[%s11647_s21] sm:$0xff]  ;;  %v7756_v17 = vor.u32 %v10516_v6, %v7755_v5  ;;  %v10498_v19 = vld [vmem:[%s11657_s29 + $0x64] sm:$0xf0] }
  0xe0   : > { %1256 = vmatpush.msra.mxu0 %v1221_v48  ;;  %1279 = vmatpush.msra.mxu1 %v1222_v49  ;;  %v1214_v14 = vld [vmem:[%s11647_s21 + $0x8] sm:$0xff]  ;;  %v1179_v15 = vld [vmem:[%s12053_s22] sm:$0xff]  ;;  %v7752_v23 = vor.u32 %v10513_v11, %v7749_v12  ;;  %v10495_v24 = vld [vmem:[%s11657_s29 + $0x54] sm:$0xf] }
  0xe1   : > { %1304 = vmatpush.msra.mxu2 %v1185_v50  ;;  %1327 = vmatpush.msra.mxu3 %v1186_v51  ;;  %v7683_v18 = vld [vmem:[%s11657_s29 + $0x60] sm:$0xf]  ;;  %v10514_v21 = vld [vmem:[%s11657_s29 + $0xe4] sm:$0xf0]  ;;  %v7677_v25 = vld [vmem:[%s11657_s29 + $0x58] sm:$0xf0] }
  0xe2   : > { %1257 = vmatpush.msra.mxu0 %v1219_v54  ;;  %1280 = vmatpush.msra.mxu1 %v1220_v55  ;;  %v7747_v20 = vld [vmem:[%s11657_s29 + $0xe0] sm:$0xf]  ;;  %v10511_v26 = vld [vmem:[%s11657_s29 + $0xd4] sm:$0xf]  ;;  %v7741_v27 = vld [vmem:[%s11657_s29 + $0xd8] sm:$0xf0]  ;;  %v7684_v29 = vor.u32 %v10498_v19, %v7683_v18  ;;  %v7680_v35 = vor.u32 %v10495_v24, %v7677_v25 }
  0xe3   : > { %1305 = vmatpush.msra.mxu2 %v1183_v52  ;;  %1328 = vmatpush.msra.mxu3 %v1184_v53  ;;  %v1178_v28 = vld [vmem:[%s12035_s15 + $0x8] sm:$0xff]  ;;  %v7748_v30 = vor.u32 %v10514_v21, %v7747_v20  ;;  %v7675_v31 = vld [vmem:[%s11657_s29 + $0x50] sm:$0xf]  ;;  %v10496_v32 = vld [vmem:[%s11657_s29 + $0x54] sm:$0xf0]  ;;  %v7744_v36 = vor.u32 %v10511_v26, %v7741_v27  ;;  %s13435_s15 = sld [smem:[#allocation36_spill]] }
  0xe4   : > { %1258 = vmatpush.msra.mxu0 %v1217_v57  ;;  %1281 = vmatpush.msra.mxu1 %v1218_v58  ;;  %v7739_v33 = vld [vmem:[%s11657_s29 + $0xd0] sm:$0xf]  ;;  %v10512_v34 = vld [vmem:[%s11657_s29 + $0xd4] sm:$0xf0]  ;;  %v10493_v37 = vld [vmem:[%s11657_s29 + $0x44] sm:$0xf]  ;;  %v7676_v42 = vor.u32 %v10496_v32, %v7675_v31 }
  0xe5   : > { %1306 = vmatpush.msra.mxu2 %v1181_v56  ;;  %1329 = vmatpush.msra.mxu3 %v1182_v63  ;;  %v7669_v38 = vld [vmem:[%s11657_s29 + $0x48] sm:$0xf0]  ;;  %v10509_v39 = vld [vmem:[%s11657_s29 + $0xc4] sm:$0xf]  ;;  %v7740_v43 = vor.u32 %v10512_v34, %v7739_v33  ;;  %v7667_v44 = vld [vmem:[%s11657_s29 + $0x40] sm:$0xf] }
  0xe6   : > { %1307 = vmatmul.f32.vlgmr.msra.gmra.mxu2 %v1177_v0  ;;  %1330 = vmatmul.f32.vlgmr.msra.gmra.mxu3 %v1177_v0  ;;  %v7733_v40 = vld [vmem:[%s11657_s29 + $0xc8] sm:$0xf0]  ;;  %v10494_v45 = vld [vmem:[%s11657_s29 + $0x44] sm:$0xf0]  ;;  %v7731_v46 = vld [vmem:[%s11657_s29 + $0xc0] sm:$0xf]  ;;  %v7672_v48 = vor.u32 %v10493_v37, %v7669_v38 }
  0xe7   : > { %1259 = vmatpush.msra.mxu0 %v1215_v1  ;;  %1282 = vmatpush.msra.mxu1 %v1216_v2  ;;  %v1180_v41 = vld [vmem:[%s12053_s22 + $0x8] sm:$0xff]  ;;  %v7736_v49 = vor.u32 %v10509_v39, %v7733_v40  ;;  %v10491_v50 = vld [vmem:[%s11657_s29 + $0x34] sm:$0xf]  ;;  %v7661_v51 = vld [vmem:[%s11657_s29 + $0x38] sm:$0xf0]  ;;  %v7668_v54 = vor.u32 %v10494_v45, %v7667_v44  ;;  %s13436_s22 = sld [smem:[#allocation35_spill]] }
  0xe8   : > { %1623 = vmatpush.bf16.msrb.mxu2 %v7696_v7  ;;  %1637 = vmatpush.bf16.msrb.mxu3 %v7760_v8  ;;  %v10510_v47 = vld [vmem:[%s11657_s29 + $0xc4] sm:$0xf0]  ;;  %v10507_v52 = vld [vmem:[%s11657_s29 + $0xb4] sm:$0xf]  ;;  %v7725_v53 = vld [vmem:[%s11657_s29 + $0xb8] sm:$0xf0]  ;;  %v7664_v60 = vor.u32 %v10491_v50, %v7661_v51 }
  0xe9   : > { %1260 = vmatpush.msra.mxu0 %v1213_v13  ;;  %1283 = vmatpush.msra.mxu1 %v1214_v14  ;;  %v7732_v55 = vor.u32 %v10510_v47, %v7731_v46  ;;  %v7659_v56 = vld [vmem:[%s11657_s29 + $0x30] sm:$0xf]  ;;  %v10492_v57 = vld [vmem:[%s11657_s29 + $0x34] sm:$0xf0]  ;;  %v7728_v61 = vor.u32 %v10507_v52, %v7725_v53  ;;  %v10489_v62 = vld [vmem:[%s11657_s29 + $0x24] sm:$0xf] }
  0xea   : > { %1261 = vmatmul.f32.vlgmr.msra.gmra.mxu0 %v1179_v15  ;;  %1284 = vmatmul.f32.vlgmr.msra.gmra.mxu1 %v1179_v15  ;;  %v7723_v58 = vld [vmem:[%s11657_s29 + $0xb0] sm:$0xf]  ;;  %v10508_v59 = vld [vmem:[%s11657_s29 + $0xb4] sm:$0xf0]  ;;  %v7653_v63 = vld [vmem:[%s11657_s29 + $0x28] sm:$0xf0]  ;;  %v7660_v2 = vor.u32 %v10492_v57, %v7659_v56 }
  0xeb   : > { %1595 = vmatpush.bf16.msrb.mxu0 %v7692_v16  ;;  %1609 = vmatpush.bf16.msrb.mxu1 %v7756_v17  ;;  %v10505_v0 = vld [vmem:[%s11657_s29 + $0xa4] sm:$0xf]  ;;  %v7717_v1 = vld [vmem:[%s11657_s29 + $0xa8] sm:$0xf0]  ;;  %v7724_v3 = vor.u32 %v10508_v59, %v7723_v58  ;;  %v7651_v4 = vld [vmem:[%s11657_s29 + $0x20] sm:$0xf]  ;;  %v7656_v8 = vor.u32 %v10489_v62, %v7653_v63 }
  0xec   : > { %1624 = vmatpush.bf16.msrb.mxu2 %v7688_v22  ;;  %1638 = vmatpush.bf16.msrb.mxu3 %v7752_v23  ;;  %v10490_v5 = vld [vmem:[%s11657_s29 + $0x24] sm:$0xf0]  ;;  %v7715_v6 = vld [vmem:[%s11657_s29 + $0xa0] sm:$0xf]  ;;  %v7720_v9 = vor.u32 %v10505_v0, %v7717_v1  ;;  %v10487_v10 = vld [vmem:[%s11657_s29 + $0x14] sm:$0xf] }
  0xed   : > { %v10506_v7 = vld [vmem:[%s11657_s29 + $0xa4] sm:$0xf0]  ;;  %v7645_v11 = vld [vmem:[%s11657_s29 + $0x18] sm:$0xf0]  ;;  %v10503_v12 = vld [vmem:[%s11657_s29 + $0x94] sm:$0xf]  ;;  %v7652_v14 = vor.u32 %v10490_v5, %v7651_v4 }
  0xee   : > { %1310 = vmatmul.f32.gmra.mxu2 %v1178_v28  ;;  %1333 = vmatmul.f32.gmra.mxu3 %v1178_v28  ;;  %v7709_v13 = vld [vmem:[%s11657_s29 + $0x98] sm:$0xf0]  ;;  %v7716_v15 = vor.u32 %v10506_v7, %v7715_v6  ;;  %v7643_v16 = vld [vmem:[%s11657_s29 + $0x10] sm:$0xf]  ;;  %v10488_v17 = vld [vmem:[%s11657_s29 + $0x14] sm:$0xf0]  ;;  %v7648_v20 = vor.u32 %v10487_v10, %v7645_v11 }
  0xef   : > { %1596 = vmatpush.bf16.msrb.mxu0 %v7684_v29  ;;  %1610 = vmatpush.bf16.msrb.mxu1 %v7748_v30  ;;  %v7707_v18 = vld [vmem:[%s11657_s29 + $0x90] sm:$0xf]  ;;  %v10504_v19 = vld [vmem:[%s11657_s29 + $0x94] sm:$0xf0]  ;;  %v7712_v21 = vor.u32 %v10503_v12, %v7709_v13  ;;  %v10485_v22 = vld [vmem:[%s11657_s29 + $0x4] sm:$0xf]  ;;  %v7644_v30 = vor.u32 %v10488_v17, %v7643_v16 }
  0xf0   : > { %1625 = vmatpush.bf16.msrb.mxu2 %v7680_v35  ;;  %1639 = vmatpush.bf16.msrb.mxu3 %v7744_v36  ;;  %v7637_v23 = vld [vmem:[%s11657_s29 + $0x8] sm:$0xf0]  ;;  %v10501_v24 = vld [vmem:[%s11657_s29 + $0x84] sm:$0xf]  ;;  %v10467_v26 = vld [vmem:[%s11652_s25 + $0x74] sm:$0xf]  ;;  %v7708_v31 = vor.u32 %v10504_v19, %v7707_v18 }
  0xf1   : > { %v7701_v25 = vld [vmem:[%s11657_s29 + $0x88] sm:$0xf0]  ;;  %v7821_v27 = vld [vmem:[%s11652_s25 + $0x78] sm:$0xf0]  ;;  %v10483_v28 = vld [vmem:[%s11652_s25 + $0xf4] sm:$0xf]  ;;  %v7640_v36 = vor.u32 %v10485_v22, %v7637_v23 }
  0xf2   : > { %1264 = vmatmul.f32.gmra.mxu0 %v1180_v41  ;;  %1287 = vmatmul.f32.gmra.mxu1 %v1180_v41  ;;  %v7885_v29 = vld [vmem:[%s11652_s25 + $0xf8] sm:$0xf0]  ;;  %v7635_v32 = vld [vmem:[%s11657_s29] sm:$0xf]  ;;  %v10486_v33 = vld [vmem:[%s11657_s29 + $0x4] sm:$0xf0]  ;;  %v7704_v37 = vor.u32 %v10501_v24, %v7701_v25 }
  0xf3   : > { %1597 = vmatpush.bf16.msrb.mxu0 %v7676_v42  ;;  %1611 = vmatpush.bf16.msrb.mxu1 %v7740_v43  ;;  %v7699_v34 = vld [vmem:[%s11657_s29 + $0x80] sm:$0xf]  ;;  %v10502_v35 = vld [vmem:[%s11657_s29 + $0x84] sm:$0xf0]  ;;  %v7819_v38 = vld [vmem:[%s11652_s25 + $0x70] sm:$0xf]  ;;  %v7824_v42 = vor.u32 %v10467_v26, %v7821_v27  ;;  %v7888_v43 = vor.u32 %v10483_v28, %v7885_v29 }
  0xf4   : > { %1626 = vmatpush.bf16.msrb.mxu2 %v7672_v48  ;;  %1640 = vmatpush.bf16.msrb.mxu3 %v7736_v49  ;;  %v10468_v39 = vld [vmem:[%s11652_s25 + $0x74] sm:$0xf0]  ;;  %v7883_v40 = vld [vmem:[%s11652_s25 + $0xf0] sm:$0xf]  ;;  %v10465_v44 = vld [vmem:[%s11652_s25 + $0x64] sm:$0xf]  ;;  %v7636_v48 = vor.u32 %v10486_v33, %v7635_v32  ;;  %v7700_v49 = vor.u32 %v10502_v35, %v7699_v34 }
  0xf5   : > { %v10484_v41 = vld [vmem:[%s11652_s25 + $0xf4] sm:$0xf0]  ;;  %v7813_v45 = vld [vmem:[%s11652_s25 + $0x68] sm:$0xf0]  ;;  %v10481_v46 = vld [vmem:[%s11652_s25 + $0xe4] sm:$0xf]  ;;  %v7820_v50 = vor.u32 %v10468_v39, %v7819_v38 }
  0xf6   : > { %v7877_v47 = vld [vmem:[%s11652_s25 + $0xe8] sm:$0xf0]  ;;  %v7884_v51 = vor.u32 %v10484_v41, %v7883_v40  ;;  %v7811_v52 = vld [vmem:[%s11652_s25 + $0x60] sm:$0xf]  ;;  %v10466_v53 = vld [vmem:[%s11652_s25 + $0x64] sm:$0xf0]  ;;  %v7816_v56 = vor.u32 %v10465_v44, %v7813_v45 }
  0xf7   : > { %1598 = vmatpush.bf16.msrb.mxu0 %v7668_v54  ;;  %1612 = vmatpush.bf16.msrb.mxu1 %v7732_v55  ;;  %v7875_v54 = vld [vmem:[%s11652_s25 + $0xe0] sm:$0xf]  ;;  %v10482_v55 = vld [vmem:[%s11652_s25 + $0xe4] sm:$0xf0]  ;;  %v7880_v57 = vor.u32 %v10481_v46, %v7877_v47  ;;  %v10463_v58 = vld [vmem:[%s11652_s25 + $0x54] sm:$0xf]  ;;  %v7812_v62 = vor.u32 %v10466_v53, %v7811_v52 }
  0xf8   : > { %1627 = vmatpush.bf16.msrb.mxu2 %v7664_v60  ;;  %1641 = vmatpush.bf16.msrb.mxu3 %v7728_v61  ;;  %v7805_v59 = vld [vmem:[%s11652_s25 + $0x58] sm:$0xf0]  ;;  %v10479_v60 = vld [vmem:[%s11652_s25 + $0xd4] sm:$0xf]  ;;  %v7876_v63 = vor.u32 %v10482_v55, %v7875_v54  ;;  %v7803_v0 = vld [vmem:[%s11652_s25 + $0x50] sm:$0xf] }
  0xf9   : > { %v7869_v61 = vld [vmem:[%s11652_s25 + $0xd8] sm:$0xf0]  ;;  %v10464_v1 = vld [vmem:[%s11652_s25 + $0x54] sm:$0xf0]  ;;  %v7808_v4 = vor.u32 %v10463_v58, %v7805_v59  ;;  %v10461_v6 = vld [vmem:[%s11652_s25 + $0x44] sm:$0xf] }
  0xfa   : > { %v7872_v5 = vor.u32 %v10479_v60, %v7869_v61  ;;  %v7797_v7 = vld [vmem:[%s11652_s25 + $0x48] sm:$0xf0]  ;;  %v7804_v10 = vor.u32 %v10464_v1, %v7803_v0  ;;  %v7795_v12 = vld [vmem:[%s11652_s25 + $0x40] sm:$0xf]  ;;  %v10462_v13 = vld [vmem:[%s11652_s25 + $0x44] sm:$0xf0] }
  0xfb   : > { %1599 = vmatpush.bf16.msrb.mxu0 %v7660_v2  ;;  %1613 = vmatpush.bf16.msrb.mxu1 %v7724_v3  ;;  %v7867_v2 = vld [vmem:[%s11652_s25 + $0xd0] sm:$0xf]  ;;  %v10480_v3 = vld [vmem:[%s11652_s25 + $0xd4] sm:$0xf0]  ;;  %v7800_v16 = vor.u32 %v10461_v6, %v7797_v7  ;;  %v7796_v18 = vor.u32 %v10462_v13, %v7795_v12  ;;  %v10459_v25 = vld [vmem:[%s11652_s25 + $0x34] sm:$0xf] }
  0xfc   : > { %1628 = vmatpush.bf16.msrb.mxu2 %v7656_v8  ;;  %1642 = vmatpush.bf16.msrb.mxu3 %v7720_v9  ;;  %v10477_v8 = vld [vmem:[%s11652_s25 + $0xc4] sm:$0xf]  ;;  %v7861_v9 = vld [vmem:[%s11652_s25 + $0xc8] sm:$0xf0]  ;;  %v7868_v11 = vor.u32 %v10480_v3, %v7867_v2  ;;  %v7851_v22 = vld [vmem:[%s11652_s25 + $0xb0] sm:$0xf] }
  0xfd   : > { %v7864_v17 = vor.u32 %v10477_v8, %v7861_v9  ;;  %v10476_v24 = vld [vmem:[%s11652_s25 + $0xb4] sm:$0xf0]  ;;  %v7789_v26 = vld [vmem:[%s11652_s25 + $0x38] sm:$0xf0]  ;;  %v10475_v29 = vld [vmem:[%s11652_s25 + $0xb4] sm:$0xf] }
  0xfe   : > { %v7852_v27 = vor.u32 %v10476_v24, %v7851_v22  ;;  %v7792_v28 = vor.u32 %v10459_v25, %v7789_v26  ;;  %v7779_v32 = vld [vmem:[%s11652_s25 + $0x20] sm:$0xf]  ;;  %v10458_v33 = vld [vmem:[%s11652_s25 + $0x24] sm:$0xf0]  ;;  %v7781_v38 = vld [vmem:[%s11652_s25 + $0x28] sm:$0xf0] }
  0xff   : > { %1600 = vmatpush.bf16.msrb.mxu0 %v7652_v14  ;;  %1614 = vmatpush.bf16.msrb.mxu1 %v7716_v15  ;;  %v7859_v14 = vld [vmem:[%s11652_s25 + $0xc0] sm:$0xf]  ;;  %v10478_v15 = vld [vmem:[%s11652_s25 + $0xc4] sm:$0xf0]  ;;  %v7780_v35 = vor.u32 %v10458_v33, %v7779_v32  ;;  %v10473_v41 = vld [vmem:[%s11652_s25 + $0xa4] sm:$0xf] }
 0x100   : > { %1629 = vmatpush.bf16.msrb.mxu2 %v7648_v20  ;;  %1643 = vmatpush.bf16.msrb.mxu3 %v7712_v21  ;;  %v7860_v19 = vor.u32 %v10478_v15, %v7859_v14  ;;  %v7787_v20 = vld [vmem:[%s11652_s25 + $0x30] sm:$0xf]  ;;  %v10460_v21 = vld [vmem:[%s11652_s25 + $0x34] sm:$0xf0]  ;;  %v7843_v34 = vld [vmem:[%s11652_s25 + $0xa0] sm:$0xf] }
 0x101   : > { %v7788_v23 = vor.u32 %v10460_v21, %v7787_v20  ;;  %v7771_v44 = vld [vmem:[%s11652_s25 + $0x10] sm:$0xf]  ;;  %v10456_v45 = vld [vmem:[%s11652_s25 + $0x14] sm:$0xf0]  ;;  %v10471_v53 = vld [vmem:[%s11652_s25 + $0x94] sm:$0xf] }
 0x102   : > { %v7835_v46 = vld [vmem:[%s11652_s25 + $0x90] sm:$0xf]  ;;  %v7772_v47 = vor.u32 %v10456_v45, %v7771_v44  ;;  %v7837_v54 = vld [vmem:[%s11652_s25 + $0x98] sm:$0xf0]  ;;  %v7827_v58 = vld [vmem:[%s11652_s25 + $0x80] sm:$0xf] }
 0x103   : > { %1601 = vmatpush.bf16.msrb.mxu0 %v7644_v30  ;;  %1615 = vmatpush.bf16.msrb.mxu1 %v7708_v31  ;;  %v7853_v30 = vld [vmem:[%s11652_s25 + $0xb8] sm:$0xf0]  ;;  %v7840_v55 = vor.u32 %v10471_v53, %v7837_v54  ;;  %v10470_v60 = vld [vmem:[%s11652_s25 + $0x84] sm:$0xf0]  ;;  %v10453_v61 = vld [vmem:[%s11652_s25 + $0x4] sm:$0xf] }
 0x104   : > { %1630 = vmatpush.bf16.msrb.mxu2 %v7640_v36  ;;  %1644 = vmatpush.bf16.msrb.mxu3 %v7704_v37  ;;  %v7856_v31 = vor.u32 %v10475_v29, %v7853_v30  ;;  %v10474_v36 = vld [vmem:[%s11652_s25 + $0xa4] sm:$0xf0]  ;;  %v10457_v37 = vld [vmem:[%s11652_s25 + $0x24] sm:$0xf]  ;;  %v7829_v2 = vld [vmem:[%s11652_s25 + $0x88] sm:$0xf0] }
 0x105   : > { %v7844_v39 = vor.u32 %v10474_v36, %v7843_v34  ;;  %v7784_v40 = vor.u32 %v10457_v37, %v7781_v38  ;;  %v10469_v1 = vld [vmem:[%s11652_s25 + $0x84] sm:$0xf]  ;;  %v7963_v12 = vld [vmem:[%s13417_s10 + $0x70] sm:$0xf]  ;;  %v10532_v13 = vld [vmem:[%s13417_s10 + $0x74] sm:$0xf0] }
 0x106   : > { %v7832_v3 = vor.u32 %v10469_v1, %v7829_v2  ;;  %v7965_v21 = vld [vmem:[%s13417_s10 + $0x78] sm:$0xf0]  ;;  %v10547_v22 = vld [vmem:[%s13417_s10 + $0xf4] sm:$0xf]  ;;  %v7964_v26 = vor.u32 %v10532_v13, %v7963_v12  ;;  %v10530_v29 = vld [vmem:[%s13417_s10 + $0x64] sm:$0xf0] }
 0x107   : > { %1602 = vmatpush.bf16.msrb.mxu0 %v7636_v48  ;;  %1616 = vmatpush.bf16.msrb.mxu1 %v7700_v49  ;;  %v10472_v48 = vld [vmem:[%s11652_s25 + $0x94] sm:$0xf0]  ;;  %v10455_v49 = vld [vmem:[%s11652_s25 + $0x14] sm:$0xf]  ;;  %v8019_v32 = vld [vmem:[%s13417_s10 + $0xe0] sm:$0xf] }
 0x108   : > { %1839 = vmatpush.bf16.msra.mxu2 %v7824_v42  ;;  %1853 = vmatpush.bf16.msra.mxu3 %v7888_v43  ;;  %v7845_v42 = vld [vmem:[%s11652_s25 + $0xa8] sm:$0xf0]  ;;  %v10546_v33 = vld [vmem:[%s13417_s10 + $0xe4] sm:$0xf0]  ;;  %v10529_v34 = vld [vmem:[%s13417_s10 + $0x64] sm:$0xf] }
 0x109   : > { %v7848_v43 = vor.u32 %v10473_v41, %v7845_v42  ;;  %v10545_v36 = vld [vmem:[%s13417_s10 + $0xe4] sm:$0xf]  ;;  %v8021_v37 = vld [vmem:[%s13417_s10 + $0xe8] sm:$0xf0]  ;;  %v10528_v41 = vld [vmem:[%s13417_s10 + $0x54] sm:$0xf0] }
 0x10a   : > { %v8011_v44 = vld [vmem:[%s13417_s10 + $0xd0] sm:$0xf]  ;;  %v10544_v45 = vld [vmem:[%s13417_s10 + $0xd4] sm:$0xf0]  ;;  %v10526_v53 = vld [vmem:[%s13417_s10 + $0x44] sm:$0xf0] }
 0x10b   : > { %1811 = vmatpush.bf16.msra.mxu0 %v7820_v50  ;;  %1825 = vmatpush.bf16.msra.mxu1 %v7884_v51  ;;  %v7773_v50 = vld [vmem:[%s11652_s25 + $0x18] sm:$0xf0]  ;;  %v7836_v51 = vor.u32 %v10472_v48, %v7835_v46  ;;  %v10527_v46 = vld [vmem:[%s13417_s10 + $0x54] sm:$0xf]  ;;  %v8003_v54 = vld [vmem:[%s13417_s10 + $0xc0] sm:$0xf] }
 0x10c   : > { %1840 = vmatpush.bf16.msra.mxu2 %v7816_v56  ;;  %1854 = vmatpush.bf16.msra.mxu3 %v7880_v57  ;;  %v7776_v52 = vor.u32 %v10455_v49, %v7773_v50  ;;  %v7763_v56 = vld [vmem:[%s11652_s25] sm:$0xf]  ;;  %v10454_v57 = vld [vmem:[%s11652_s25 + $0x4] sm:$0xf0]  ;;  %v10543_v48 = vld [vmem:[%s13417_s10 + $0xd4] sm:$0xf] }
 0x10d   : > { %v7764_v59 = vor.u32 %v10454_v57, %v7763_v56  ;;  %v8013_v49 = vld [vmem:[%s13417_s10 + $0xd8] sm:$0xf0]  ;;  %v7939_v50 = vld [vmem:[%s13417_s10 + $0x40] sm:$0xf]  ;;  %vm12231_vm1 = vmneg %vm1341_vm0 }
 0x10e   : > { %v7940_v2 = vor.u32 %v10526_v53, %v7939_v50  ;;  %v10540_v12 = vld [vmem:[%s13417_s10 + $0xb4] sm:$0xf0]  ;;  %v10523_v13 = vld [vmem:[%s13417_s10 + $0x34] sm:$0xf]  ;;  %vm12248_vm3 = vmpackc.low %vm11616_vm2, %vm12231_vm1 }
 0x10f   : > { %1812 = vmatpush.bf16.msra.mxu0 %v7812_v62  ;;  %1826 = vmatpush.bf16.msra.mxu1 %v7876_v63  ;;  %v7765_v62 = vld [vmem:[%s11652_s25 + $0x8] sm:$0xf0]  ;;  %v7828_v63 = vor.u32 %v10470_v60, %v7827_v58  ;;  %v10525_v60 = vld [vmem:[%s13417_s10 + $0x44] sm:$0xf]  ;;  %v7971_v53 = vld [vmem:[%s13417_s10 + $0x80] sm:$0xf] }
 0x110   : > { %1841 = vmatpush.bf16.msra.mxu2 %v7808_v4  ;;  %1855 = vmatpush.bf16.msra.mxu3 %v7872_v5  ;;  %v7768_v0 = vor.u32 %v10453_v61, %v7765_v62  ;;  %v7941_v61 = vld [vmem:[%s13417_s10 + $0x48] sm:$0xf0]  ;;  %v10541_v62 = vld [vmem:[%s13417_s10 + $0xc4] sm:$0xf]  ;;  %vm12304_vm5 = vmpackc.low %vm1354_vm4, %vm11616_vm2 }
 0x113   : > { %1813 = vmatpush.bf16.msra.mxu0 %v7804_v10  ;;  %1827 = vmatpush.bf16.msra.mxu1 %v7868_v11 }
 0x114   : > { %1842 = vmatpush.bf16.msra.mxu2 %v7800_v16  ;;  %1856 = vmatpush.bf16.msra.mxu3 %v7864_v17  ;;  %v8027_v16 = vld [vmem:[%s13417_s10 + $0xf0] sm:$0xf]  ;;  %v10548_v17 = vld [vmem:[%s13417_s10 + $0xf4] sm:$0xf0] }
 0x117   : > { %1814 = vmatpush.bf16.msra.mxu0 %v7796_v18  ;;  %1828 = vmatpush.bf16.msra.mxu1 %v7860_v19  ;;  %v10531_v18 = vld [vmem:[%s13417_s10 + $0x74] sm:$0xf] }
 0x118   : > { %1843 = vmatpush.bf16.msra.mxu2 %v7792_v28  ;;  %1857 = vmatpush.bf16.msra.mxu3 %v7856_v31  ;;  %v7955_v28 = vld [vmem:[%s13417_s10 + $0x60] sm:$0xf]  ;;  %v7968_v30 = vor.u32 %v10531_v18, %v7965_v21  ;;  %v7997_v18 = vld [vmem:[%s13417_s10 + $0xb8] sm:$0xf0] }
 0x119   : > { %v7956_v38 = vor.u32 %v10530_v29, %v7955_v28 }
 0x11b   : > { %1815 = vmatpush.bf16.msra.mxu0 %v7788_v23  ;;  %1829 = vmatpush.bf16.msra.mxu1 %v7852_v27  ;;  %v8029_v23 = vld [vmem:[%s13417_s10 + $0xf8] sm:$0xf0]  ;;  %v8028_v27 = vor.u32 %v10548_v17, %v8027_v16  ;;  %v10539_v17 = vld [vmem:[%s13417_s10 + $0xb4] sm:$0xf] }
 0x11c   : > { %1844 = vmatpush.bf16.msra.mxu2 %v7784_v40  ;;  %1858 = vmatpush.bf16.msra.mxu3 %v7848_v43  ;;  %v8032_v31 = vor.u32 %v10547_v22, %v8029_v23  ;;  %v7947_v40 = vld [vmem:[%s13417_s10 + $0x50] sm:$0xf]  ;;  %v8024_v43 = vor.u32 %v10545_v36, %v8021_v37  ;;  %v7933_v16 = vld [vmem:[%s13417_s10 + $0x38] sm:$0xf0]  ;;  %v8000_v29 = vor.u32 %v10539_v17, %v7997_v18  ;;  %v10611_v17 = vld [vmem:[%s13422_s16 + $0xf4] sm:$0xf] }
 0x11d   : > { %v7936_v28 = vor.u32 %v10523_v13, %v7933_v16  ;;  %v10612_v16 = vld [vmem:[%s13422_s16 + $0xf4] sm:$0xf0]  ;;  %v8169_v18 = vld [vmem:[%s13422_s16 + $0xf8] sm:$0xf0] }
 0x11f   : > { %1816 = vmatpush.bf16.msra.mxu0 %v7780_v35  ;;  %1830 = vmatpush.bf16.msra.mxu1 %v7844_v39  ;;  %v7957_v35 = vld [vmem:[%s13417_s10 + $0x68] sm:$0xf0]  ;;  %v8020_v39 = vor.u32 %v10546_v33, %v8019_v32  ;;  %v10521_v32 = vld [vmem:[%s13417_s10 + $0x24] sm:$0xf] }
 0x120   : > { %1845 = vmatpush.bf16.msra.mxu2 %v7776_v52  ;;  %1859 = vmatpush.bf16.msra.mxu3 %v7840_v55  ;;  %v7960_v42 = vor.u32 %v10529_v34, %v7957_v35  ;;  %v8012_v52 = vor.u32 %v10544_v45, %v8011_v44  ;;  %v10542_v55 = vld [vmem:[%s13417_s10 + $0xc4] sm:$0xf0]  ;;  %v7925_v33 = vld [vmem:[%s13417_s10 + $0x28] sm:$0xf0]  ;;  %v10537_v34 = vld [vmem:[%s13417_s10 + $0xa4] sm:$0xf] }
 0x121   : > { %v7989_v35 = vld [vmem:[%s13417_s10 + $0xa8] sm:$0xf0]  ;;  %v10519_v44 = vld [vmem:[%s13417_s10 + $0x14] sm:$0xf]  ;;  %v7917_v45 = vld [vmem:[%s13417_s10 + $0x18] sm:$0xf0] }
 0x123   : > { %1817 = vmatpush.bf16.msra.mxu0 %v7772_v47  ;;  %1831 = vmatpush.bf16.msra.mxu1 %v7836_v51  ;;  %v7949_v47 = vld [vmem:[%s13417_s10 + $0x58] sm:$0xf0]  ;;  %v7948_v51 = vor.u32 %v10528_v41, %v7947_v40  ;;  %v7928_v40 = vor.u32 %v10521_v32, %v7925_v33  ;;  %v7992_v41 = vor.u32 %v10537_v34, %v7989_v35  ;;  %v8087_v32 = vld [vmem:[%s13422_s16 + $0x50] sm:$0xf]  ;;  %v10592_v33 = vld [vmem:[%s13422_s16 + $0x54] sm:$0xf0] }
 0x124   : > { %1846 = vmatpush.bf16.msra.mxu2 %v7768_v0  ;;  %1860 = vmatpush.bf16.msra.mxu3 %v7832_v3  ;;  %v7952_v58 = vor.u32 %v10527_v46, %v7949_v47  ;;  %v8004_v3 = vor.u32 %v10542_v55, %v8003_v54  ;;  %v10535_v46 = vld [vmem:[%s13417_s10 + $0x94] sm:$0xf]  ;;  %v7981_v47 = vld [vmem:[%s13417_s10 + $0x98] sm:$0xf0]  ;;  %v10534_v54 = vld [vmem:[%s13417_s10 + $0x84] sm:$0xf0]  ;;  %v8088_v35 = vor.u32 %v10592_v33, %v8087_v32 }
 0x125   : > { %v10591_v34 = vld [vmem:[%s13422_s16 + $0x54] sm:$0xf]  ;;  %v8129_v32 = vld [vmem:[%s13422_s16 + $0xa8] sm:$0xf0] }
 0x127   : > { %1818 = vmatpush.bf16.msra.mxu0 %v7764_v59  ;;  %1832 = vmatpush.bf16.msra.mxu1 %v7828_v63  ;;  %v8016_v59 = vor.u32 %v10543_v48, %v8013_v49  ;;  %v8005_v63 = vld [vmem:[%s13417_s10 + $0xc8] sm:$0xf0]  ;;  %v7907_v49 = vld [vmem:[%s13417_s10] sm:$0xf] }
 0x167   : > { %v1262_v4 = vpop.f32.mrf.mxu0  ;;  %v1285_v5 = vpop.f32.mrf.mxu1 }
 0x169   : > { %v1308_v6 = vpop.f32.mrf.mxu2  ;;  %v1331_v7 = vpop.f32.mrf.mxu3 }
 0x16a   : > { %v12191_v19 = vadd.f32 %v1308_v6, %v1262_v4  ;;  %v12193_v20 = vadd.f32 %v1331_v7, %v1285_v5  ;;  %v7944_v4 = vor.u32 %v10525_v60, %v7941_v61  ;;  %v7931_v6 = vld [vmem:[%s13417_s10 + $0x30] sm:$0xf]  ;;  %v10524_v7 = vld [vmem:[%s13417_s10 + $0x34] sm:$0xf0]  ;;  %v7909_v60 = vld [vmem:[%s13417_s10 + $0x8] sm:$0xf0]  ;;  %v7972_v5 = vor.u32 %v10534_v54, %v7971_v53 }
 0x16b   : > { %v7932_v22 = vor.u32 %v10524_v7, %v7931_v6  ;;  %v10533_v61 = vld [vmem:[%s13417_s10 + $0x84] sm:$0xf]  ;;  %v8153_v54 = vld [vmem:[%s13422_s16 + $0xd8] sm:$0xf0] }
 0x16c   : > { %v1342_v0 = vrot.slane %v12191_v19, 7  ;;  %v1343_v1 = vrot.slane %v12193_v20, 7  ;;  %v1355_v48 = vrot.slane %v12191_v19, 1 }
 0x16f   : > { %v1265_v8 = vpop.f32.mrf.mxu0  ;;  %v1288_v9 = vpop.f32.mrf.mxu1 }
 0x171   : > { %v1311_v10 = vpop.f32.mrf.mxu2  ;;  %v1334_v11 = vpop.f32.mrf.mxu3 }
 0x172   : > { %v12184_v14 = vadd.f32 %v1311_v10, %v1265_v8  ;;  %v12186_v15 = vadd.f32 %v1334_v11, %v1288_v9  ;;  %v8008_v8 = vor.u32 %v10541_v62, %v8005_v63  ;;  %v7995_v11 = vld [vmem:[%s13417_s10 + $0xb0] sm:$0xf]  ;;  %v7973_v62 = vld [vmem:[%s13417_s10 + $0x88] sm:$0xf0] }
 0x173   : > { %v8103_v63 = vld [vmem:[%s13422_s16 + $0x70] sm:$0xf] }
 0x174   : > { %v1401_v24 = vpack.c.bf16 %v12184_v14, %v12191_v19  ;;  %v1402_v25 = vpack.c.bf16 %v12186_v15, %v12193_v20  ;;  %v1344_v56 = vrot.slane %v12184_v14, 7  ;;  %v1346_v57 = vrot.slane %v12186_v15, 7 }
 0x175   : > { %v1356_v55 = vrot.slane %v12184_v14, 1 }
 0x176   : > { %1603 = vmatmul.bf16.vlgmr.msrb.gmra.mxu0 %v1401_v24  ;;  %1617 = vmatmul.bf16.vlgmr.msrb.gmra.mxu1 %v1402_v25  ;;  %v1345_v9 = vsel %vm1341_vm0, %v1342_v0, %v1344_v56  ;;  %v1347_v10 = vsel %vm1341_vm0, %v1343_v1, %v1346_v57  ;;  %v1359_v56 = vrot.slane %v12186_v15, 1  ;;  %v7920_v57 = vor.u32 %v10519_v44, %v7917_v45  ;;  %v10590_v44 = vld [vmem:[%s13422_s16 + $0x44] sm:$0xf0] }
 0x177   : > { %1631 = vmatmul.bf16.vlgmr.msrb.gmra.mxu2 %v1401_v24  ;;  %1645 = vmatmul.bf16.vlgmr.msrb.gmra.mxu3 %v1402_v25  ;;  %v7891_v23 = vpack.c.bf16 %v1345_v9, %v1342_v0  ;;  %v7895_v24 = vpack.c.bf16 %v1347_v10, %v1343_v1  ;;  %v7996_v25 = vor.u32 %v10540_v12, %v7995_v11  ;;  %v10596_v0 = vld [vmem:[%s13422_s16 + $0x74] sm:$0xf0]  ;;  %v10595_v1 = vld [vmem:[%s13422_s16 + $0x74] sm:$0xf]  ;;  %v8095_v9 = vld [vmem:[%s13422_s16 + $0x60] sm:$0xf] }
 0x178   : > { %2061 = vmatpush.bf16.msrb.mxu0 %v7964_v26  ;;  %2075 = vmatpush.bf16.msrb.mxu1 %v8028_v27  ;;  %v7923_v26 = vld [vmem:[%s13417_s10 + $0x20] sm:$0xf]  ;;  %v10522_v27 = vld [vmem:[%s13417_s10 + $0x24] sm:$0xf0]  ;;  %v1357_v6 = vsel %vm1354_vm4, %v1355_v48, %v1356_v55  ;;  %v8167_v10 = vld [vmem:[%s13422_s16 + $0xf0] sm:$0xf]  ;;  %v8104_v12 = vor.u32 %v10596_v0, %v8103_v63 }
 0x179   : > { %2089 = vmatpush.bf16.msrb.mxu2 %v7968_v30  ;;  %2103 = vmatpush.bf16.msrb.mxu3 %v8032_v31  ;;  %v7987_v30 = vld [vmem:[%s13417_s10 + $0xa0] sm:$0xf]  ;;  %v10538_v31 = vld [vmem:[%s13417_s10 + $0xa4] sm:$0xf0]  ;;  %v7924_v36 = vor.u32 %v10522_v27, %v7923_v26  ;;  %v8081_v48 = vld [vmem:[%s13422_s16 + $0x48] sm:$0xf0] }
 0x17a   : > { %v7988_v37 = vor.u32 %v10538_v31, %v7987_v30  ;;  %v10606_v63 = vld [vmem:[%s13422_s16 + $0xc4] sm:$0xf0]  ;;  %v10605_v0 = vld [vmem:[%s13422_s16 + $0xc4] sm:$0xf] }
 0x17c   : > { %2062 = vmatpush.bf16.msrb.mxu0 %v7956_v38  ;;  %2076 = vmatpush.bf16.msrb.mxu1 %v8020_v39  ;;  %v7915_v38 = vld [vmem:[%s13417_s10 + $0x10] sm:$0xf]  ;;  %v10520_v39 = vld [vmem:[%s13417_s10 + $0x14] sm:$0xf0] }
 0x17d   : > { %2090 = vmatpush.bf16.msrb.mxu2 %v7960_v42  ;;  %2104 = vmatpush.bf16.msrb.mxu3 %v8024_v43  ;;  %v7979_v42 = vld [vmem:[%s13417_s10 + $0x90] sm:$0xf]  ;;  %v10536_v43 = vld [vmem:[%s13417_s10 + $0x94] sm:$0xf0]  ;;  %v7916_v50 = vor.u32 %v10520_v39, %v7915_v38  ;;  %v8159_v38 = vld [vmem:[%s13422_s16 + $0xe0] sm:$0xf] }
 0x17e   : > { %v10610_v39 = vld [vmem:[%s13422_s16 + $0xe4] sm:$0xf0] }
 0x180   : > { %2063 = vmatpush.bf16.msrb.mxu0 %v7948_v51  ;;  %2077 = vmatpush.bf16.msrb.mxu1 %v8012_v52  ;;  %v7980_v51 = vor.u32 %v10536_v43, %v7979_v42  ;;  %v10518_v52 = vld [vmem:[%s13417_s10 + $0x4] sm:$0xf0]  ;;  %v8161_v42 = vld [vmem:[%s13422_s16 + $0xe8] sm:$0xf0]  ;;  %v8079_v43 = vld [vmem:[%s13422_s16 + $0x40] sm:$0xf] }
 0x181   : > { %2091 = vmatpush.bf16.msrb.mxu2 %v7952_v58  ;;  %2105 = vmatpush.bf16.msrb.mxu3 %v8016_v59  ;;  %v7984_v58 = vor.u32 %v10535_v46, %v7981_v47  ;;  %v10517_v59 = vld [vmem:[%s13417_s10 + $0x4] sm:$0xf]  ;;  %v8080_v46 = vor.u32 %v10590_v44, %v8079_v43  ;;  %v10563_v43 = vld [vmem:[%s13425_s18 + $0x74] sm:$0xf]  ;;  %v8233_v44 = vld [vmem:[%s13425_s18 + $0x78] sm:$0xf0] }
 0x182   : > { %v7912_v7 = vor.u32 %v10517_v59, %v7909_v60  ;;  %v10589_v47 = vld [vmem:[%s13422_s16 + $0x44] sm:$0xf]  ;;  %v8073_v60 = vld [vmem:[%s13422_s16 + $0x38] sm:$0xf0] }
 0x184   : > { %2064 = vmatpush.bf16.msrb.mxu0 %v7940_v2  ;;  %2078 = vmatpush.bf16.msrb.mxu1 %v8004_v3  ;;  %v8105_v2 = vld [vmem:[%s13422_s16 + $0x78] sm:$0xf0]  ;;  %v1358_v3 = vrot.slane %v12193_v20, 1 }
 0x185   : > { %2092 = vmatpush.bf16.msrb.mxu2 %v7944_v4  ;;  %2106 = vmatpush.bf16.msrb.mxu3 %v8008_v8  ;;  %v7908_v4 = vor.u32 %v10518_v52, %v7907_v49  ;;  %v7976_v8 = vor.u32 %v10533_v61, %v7973_v62  ;;  %v8108_v13 = vor.u32 %v10595_v1, %v8105_v2  ;;  %v10607_v52 = vld [vmem:[%s13422_s16 + $0xd4] sm:$0xf]  ;;  %v8143_v62 = vld [vmem:[%s13422_s16 + $0xc0] sm:$0xf]  ;;  %v8145_v2 = vld [vmem:[%s13422_s16 + $0xc8] sm:$0xf0] }
 0x186   : > { %7892 = vmatmul.msk.bf16.vlgmr.msra.gmra.mxu0 %vm12248_vm3, %v7891_v23  ;;  %7896 = vmatmul.msk.bf16.vlgmr.msra.gmra.mxu1 %vm12248_vm3, %v7895_v24  ;;  %v1360_v11 = vsel %vm1354_vm4, %v1358_v3, %v1359_v56  ;;  %v8084_v49 = vor.u32 %v10589_v47, %v8081_v48  ;;  %v8144_v1 = vor.u32 %v10606_v63, %v8143_v62  ;;  %v8063_v3 = vld [vmem:[%s13422_s16 + $0x20] sm:$0xf]  ;;  %v10600_v47 = vld [vmem:[%s13422_s16 + $0x94] sm:$0xf0]  ;;  %v10599_v48 = vld [vmem:[%s13422_s16 + $0x94] sm:$0xf] }
 0x187   : > { %7900 = vmatmul.msk.bf16.vlgmr.msra.gmra.mxu2 %vm12248_vm3, %v7891_v23  ;;  %7904 = vmatmul.msk.bf16.vlgmr.msra.gmra.mxu3 %vm12248_vm3, %v7895_v24  ;;  %v10593_v23 = vld [vmem:[%s13422_s16 + $0x64] sm:$0xf]  ;;  %v8097_v24 = vld [vmem:[%s13422_s16 + $0x68] sm:$0xf0]  ;;  %v8037_v27 = vpack.c.bf16 %v1359_v56, %v1360_v11  ;;  %v8071_v56 = vld [vmem:[%s13422_s16 + $0x30] sm:$0xf] }
 0x188   : > { %2065 = vmatpush.bf16.msrb.mxu0 %v7932_v22  ;;  %2079 = vmatpush.bf16.msrb.mxu1 %v7996_v25  ;;  %v10594_v22 = vld [vmem:[%s13422_s16 + $0x64] sm:$0xf0]  ;;  %v8034_v25 = vpack.c.bf16 %v1356_v55, %v1357_v6  ;;  %v8100_v31 = vor.u32 %v10593_v23, %v8097_v24  ;;  %v8156_v55 = vor.u32 %v10607_v52, %v8153_v54  ;;  %v10604_v11 = vld [vmem:[%s13422_s16 + $0xb4] sm:$0xf0]  ;;  %v10583_v23 = vld [vmem:[%s13422_s16 + $0x14] sm:$0xf] }
 0x189   : > { %2093 = vmatpush.bf16.msrb.mxu2 %v7936_v28  ;;  %2107 = vmatpush.bf16.msrb.mxu3 %v8000_v29  ;;  %v8168_v28 = vor.u32 %v10612_v16, %v8167_v10  ;;  %v8172_v29 = vor.u32 %v10611_v17, %v8169_v18  ;;  %v8096_v30 = vor.u32 %v10594_v22, %v8095_v9  ;;  %v8135_v10 = vld [vmem:[%s13422_s16 + $0xb0] sm:$0xf]  ;;  %v8137_v16 = vld [vmem:[%s13422_s16 + $0xb8] sm:$0xf0]  ;;  %v10584_v22 = vld [vmem:[%s13422_s16 + $0x14] sm:$0xf0] }
 0x18a   : > { %v8055_v18 = vld [vmem:[%s13422_s16 + $0x10] sm:$0xf]  ;;  %v8223_v52 = vld [vmem:[%s13425_s18 + $0x60] sm:$0xf]  ;;  %v10561_v54 = vld [vmem:[%s13425_s18 + $0x64] sm:$0xf] }
 0x18b   : > { %v8056_v24 = vor.u32 %v10584_v22, %v8055_v18  ;;  %v8113_v62 = vld [vmem:[%s13422_s16 + $0x88] sm:$0xf0]  ;;  %v8295_v63 = vld [vmem:[%s13425_s18 + $0xf0] sm:$0xf] }
 0x18c   : > { %2066 = vmatpush.bf16.msrb.mxu0 %v7924_v36  ;;  %2080 = vmatpush.bf16.msrb.mxu1 %v7988_v37  ;;  %v8089_v36 = vld [vmem:[%s13422_s16 + $0x58] sm:$0xf0]  ;;  %v8289_v18 = vld [vmem:[%s13425_s18 + $0xe8] sm:$0xf0] }
 0x18d   : > { %2094 = vmatpush.bf16.msrb.mxu2 %v7928_v40  ;;  %2108 = vmatpush.bf16.msrb.mxu3 %v7992_v41  ;;  %v8092_v37 = vor.u32 %v10591_v34, %v8089_v36  ;;  %v10609_v40 = vld [vmem:[%s13422_s16 + $0xe4] sm:$0xf]  ;;  %v8160_v41 = vor.u32 %v10610_v39, %v8159_v38  ;;  %v8047_v34 = vld [vmem:[%s13422_s16] sm:$0xf]  ;;  %v8049_v38 = vld [vmem:[%s13422_s16 + $0x8] sm:$0xf0] }
 0x18e   : > { %v8164_v45 = vor.u32 %v10609_v40, %v8161_v42  ;;  %v10581_v36 = vld [vmem:[%s13422_s16 + $0x4] sm:$0xf]  ;;  %v8231_v39 = vld [vmem:[%s13425_s18 + $0x70] sm:$0xf]  ;;  %v10564_v40 = vld [vmem:[%s13425_s18 + $0x74] sm:$0xf0] }
 0x18f   : > { %v8232_v42 = vor.u32 %v10564_v40, %v8231_v39  ;;  %v10556_v39 = vld [vmem:[%s13425_s18 + $0x34] sm:$0xf0]  ;;  %v10555_v40 = vld [vmem:[%s13425_s18 + $0x34] sm:$0xf] }
 0x190   : > { %2067 = vmatpush.bf16.msrb.mxu0 %v7916_v50  ;;  %2081 = vmatpush.bf16.msrb.mxu1 %v7980_v51  ;;  %v8151_v50 = vld [vmem:[%s13422_s16 + $0xd0] sm:$0xf]  ;;  %v10608_v51 = vld [vmem:[%s13422_s16 + $0xd4] sm:$0xf0] }
 0x191   : > { %2095 = vmatpush.bf16.msrb.mxu2 %v7920_v57  ;;  %2109 = vmatpush.bf16.msrb.mxu3 %v7984_v58  ;;  %v8152_v53 = vor.u32 %v10608_v51, %v8151_v50  ;;  %v10588_v57 = vld [vmem:[%s13422_s16 + $0x34] sm:$0xf0]  ;;  %v10587_v58 = vld [vmem:[%s13422_s16 + $0x34] sm:$0xf] }
 0x192   : > { %v8072_v59 = vor.u32 %v10588_v57, %v8071_v56  ;;  %v8076_v61 = vor.u32 %v10587_v58, %v8073_v60  ;;  %v8225_v56 = vld [vmem:[%s13425_s18 + $0x68] sm:$0xf0]  ;;  %v8111_v57 = vld [vmem:[%s13422_s16 + $0x80] sm:$0xf]  ;;  %v10598_v58 = vld [vmem:[%s13422_s16 + $0x84] sm:$0xf0] }
 0x193   : > { %v8112_v60 = vor.u32 %v10598_v58, %v8111_v57  ;;  %v8193_v58 = vld [vmem:[%s13425_s18 + $0x28] sm:$0xf0] }
 0x194   : > { %2068 = vmatpush.bf16.msrb.mxu0 %v7908_v4  ;;  %2082 = vmatpush.bf16.msrb.mxu1 %v7972_v5  ;;  %v10586_v4 = vld [vmem:[%s13422_s16 + $0x24] sm:$0xf0]  ;;  %v8148_v5 = vor.u32 %v10605_v0, %v8145_v2  ;;  %v10579_v2 = vld [vmem:[%s13425_s18 + $0xf4] sm:$0xf] }
 0x195   : > { %2096 = vmatpush.bf16.msrb.mxu2 %v7912_v7  ;;  %2110 = vmatpush.bf16.msrb.mxu3 %v7976_v8  ;;  %v8064_v6 = vor.u32 %v10586_v4, %v8063_v3  ;;  %v10585_v7 = vld [vmem:[%s13422_s16 + $0x24] sm:$0xf]  ;;  %v8065_v8 = vld [vmem:[%s13422_s16 + $0x28] sm:$0xf0]  ;;  %v8297_v3 = vld [vmem:[%s13425_s18 + $0xf8] sm:$0xf0] }
 0x196   : > { %v8068_v9 = vor.u32 %v10585_v7, %v8065_v8  ;;  %v10560_v7 = vld [vmem:[%s13425_s18 + $0x54] sm:$0xf0]  ;;  %v10559_v8 = vld [vmem:[%s13425_s18 + $0x54] sm:$0xf] }
 0x197   : > { %8035 = vmatmul.msk.bf16.vlgmr.msrb.gmra.mxu0 %vm12304_vm5, %v8034_v25  ;;  %8038 = vmatmul.msk.bf16.vlgmr.msrb.gmra.mxu1 %vm12304_vm5, %v8037_v27 }
 0x198   : > { %2381 = vmatpush.bf16.msra.mxu0 %v8104_v12  ;;  %8041 = vmatmul.msk.bf16.vlgmr.msrb.gmra.mxu2 %vm12304_vm5, %v8034_v25  ;;  %v10603_v12 = vld [vmem:[%s13422_s16 + $0xb4] sm:$0xf]  ;;  %v8057_v25 = vld [vmem:[%s13422_s16 + $0x18] sm:$0xf0] }
 0x199   : > { %2409 = vmatpush.bf16.msra.mxu2 %v8108_v13  ;;  %8044 = vmatmul.msk.bf16.vlgmr.msrb.gmra.mxu3 %vm12304_vm5, %v8037_v27  ;;  %v8136_v13 = vor.u32 %v10604_v11, %v8135_v10  ;;  %v8140_v17 = vor.u32 %v10603_v12, %v8137_v16  ;;  %v8060_v27 = vor.u32 %v10583_v23, %v8057_v25  ;;  %v8217_v10 = vld [vmem:[%s13425_s18 + $0x58] sm:$0xf0]  ;;  %v8287_v12 = vld [vmem:[%s13425_s18 + $0xe0] sm:$0xf]  ;;  %v10577_v16 = vld [vmem:[%s13425_s18 + $0xe4] sm:$0xf] }
 0x19a   : > { %2395 = vmatpush.bf16.msra.mxu1 %v8168_v28  ;;  %2423 = vmatpush.bf16.msra.mxu3 %v8172_v29  ;;  %v8127_v28 = vld [vmem:[%s13422_s16 + $0xa0] sm:$0xf]  ;;  %v10602_v29 = vld [vmem:[%s13422_s16 + $0xa4] sm:$0xf0]  ;;  %v8220_v11 = vor.u32 %v10559_v8, %v8217_v10  ;;  %v10569_v10 = vld [vmem:[%s13425_s18 + $0xa4] sm:$0xf] }
 0x19b   : > { %v8207_v25 = vld [vmem:[%s13425_s18 + $0x40] sm:$0xf] }
 0x19c   : > { %2382 = vmatpush.bf16.msra.mxu0 %v8096_v30  ;;  %v10601_v30 = vld [vmem:[%s13422_s16 + $0xa4] sm:$0xf]  ;;  %v8255_v8 = vld [vmem:[%s13425_s18 + $0xa0] sm:$0xf] }
 0x19d   : > { %2410 = vmatpush.bf16.msra.mxu2 %v8100_v31  ;;  %v8128_v31 = vor.u32 %v10602_v29, %v8127_v28  ;;  %v8132_v33 = vor.u32 %v10601_v30, %v8129_v32  ;;  %v10557_v28 = vld [vmem:[%s13425_s18 + $0x44] sm:$0xf]  ;;  %v8209_v30 = vld [vmem:[%s13425_s18 + $0x48] sm:$0xf0]  ;;  %v8279_v32 = vld [vmem:[%s13425_s18 + $0xd0] sm:$0xf] }
 0x19e   : > { %2396 = vmatpush.bf16.msra.mxu1 %v8160_v41  ;;  %2424 = vmatpush.bf16.msra.mxu3 %v8164_v45  ;;  %v8052_v41 = vor.u32 %v10581_v36, %v8049_v38  ;;  %v8119_v45 = vld [vmem:[%s13422_s16 + $0x90] sm:$0xf]  ;;  %v8281_v36 = vld [vmem:[%s13425_s18 + $0xd8] sm:$0xf0] }
 0x19f   : > { %v8120_v50 = vor.u32 %v10600_v47, %v8119_v45  ;;  %v8199_v38 = vld [vmem:[%s13425_s18 + $0x30] sm:$0xf]  ;;  %v10574_v45 = vld [vmem:[%s13425_s18 + $0xc4] sm:$0xf0] }
 0x1a0   : > { %2383 = vmatpush.bf16.msra.mxu0 %v8088_v35  ;;  %v10582_v35 = vld [vmem:[%s13422_s16 + $0x4] sm:$0xf0] }
 0x1a1   : > { %2411 = vmatpush.bf16.msra.mxu2 %v8092_v37  ;;  %v8048_v37 = vor.u32 %v10582_v35, %v8047_v34  ;;  %v10575_v34 = vld [vmem:[%s13425_s18 + $0xd4] sm:$0xf] }
 0x1a2   : > { %2397 = vmatpush.bf16.msra.mxu1 %v8152_v53  ;;  %2425 = vmatpush.bf16.msra.mxu3 %v8156_v55  ;;  %v10562_v53 = vld [vmem:[%s13425_s18 + $0x64] sm:$0xf0] }
 0x1a3   : > { %v8224_v55 = vor.u32 %v10562_v53, %v8223_v52 }
 0x1a4   : > { %2384 = vmatpush.bf16.msra.mxu0 %v8080_v46  ;;  %v8236_v46 = vor.u32 %v10563_v43, %v8233_v44  ;;  %v8271_v44 = vld [vmem:[%s13425_s18 + $0xc0] sm:$0xf] }
 0x1a5   : > { %2412 = vmatpush.bf16.msra.mxu2 %v8084_v49  ;;  %v8121_v49 = vld [vmem:[%s13422_s16 + $0x98] sm:$0xf0] }
 0x1a6   : > { %2398 = vmatpush.bf16.msra.mxu1 %v8144_v1  ;;  %2426 = vmatpush.bf16.msra.mxu3 %v8148_v5  ;;  %v8124_v51 = vor.u32 %v10599_v48, %v8121_v49  ;;  %v10580_v1 = vld [vmem:[%s13425_s18 + $0xf4] sm:$0xf0]  ;;  %v8300_v5 = vor.u32 %v10579_v2, %v8297_v3  ;;  %v8272_v49 = vor.u32 %v10574_v45, %v8271_v44  ;;  %v8183_v2 = vld [vmem:[%s13425_s18 + $0x10] sm:$0xf]  ;;  %v8241_v44 = vld [vmem:[%s13425_s18 + $0x88] sm:$0xf0] }
 0x1a7   : > { %v8296_v4 = vor.u32 %v10580_v1, %v8295_v63  ;;  %v10552_v3 = vld [vmem:[%s13425_s18 + $0x14] sm:$0xf0] }
 0x1a8   : > { %2385 = vmatpush.bf16.msra.mxu0 %v8072_v59  ;;  %v8228_v59 = vor.u32 %v10561_v54, %v8225_v56  ;;  %v8191_v54 = vld [vmem:[%s13425_s18 + $0x20] sm:$0xf]  ;;  %v10553_v56 = vld [vmem:[%s13425_s18 + $0x24] sm:$0xf] }
 0x1a9   : > { %2413 = vmatpush.bf16.msra.mxu2 %v8076_v61  ;;  %v10597_v61 = vld [vmem:[%s13422_s16 + $0x84] sm:$0xf] }
 0x1aa   : > { %2399 = vmatpush.bf16.msra.mxu1 %v8136_v13  ;;  %2427 = vmatpush.bf16.msra.mxu3 %v8140_v17  ;;  %v8116_v0 = vor.u32 %v10597_v61, %v8113_v62  ;;  %v10578_v13 = vld [vmem:[%s13425_s18 + $0xe4] sm:$0xf0]  ;;  %v10572_v61 = vld [vmem:[%s13425_s18 + $0xb4] sm:$0xf0]  ;;  %v10571_v62 = vld [vmem:[%s13425_s18 + $0xb4] sm:$0xf] }
 0x1ab   : > { %v8288_v17 = vor.u32 %v10578_v13, %v8287_v12 }
 0x1ac   : > { %2386 = vmatpush.bf16.msra.mxu0 %v8064_v6  ;;  %v8215_v6 = vld [vmem:[%s13425_s18 + $0x50] sm:$0xf] }
 0x1ad   : > { %2414 = vmatpush.bf16.msra.mxu2 %v8068_v9  ;;  %v8216_v9 = vor.u32 %v10560_v7, %v8215_v6  ;;  %v8185_v6 = vld [vmem:[%s13425_s18 + $0x18] sm:$0xf0] }
 0x1ae   : > { %2400 = vmatpush.bf16.msra.mxu1 %v8128_v31  ;;  %2428 = vmatpush.bf16.msra.mxu3 %v8132_v33  ;;  %v8212_v31 = vor.u32 %v10557_v28, %v8209_v30  ;;  %v10576_v33 = vld [vmem:[%s13425_s18 + $0xd4] sm:$0xf0]  ;;  %v10549_v28 = vld [vmem:[%s13425_s18 + $0x4] sm:$0xf]  ;;  %v8177_v30 = vld [vmem:[%s13425_s18 + $0x8] sm:$0xf0] }
 0x1af   : > { %v8280_v35 = vor.u32 %v10576_v33, %v8279_v32  ;;  %v8247_v32 = vld [vmem:[%s13425_s18 + $0x90] sm:$0xf]  ;;  %v10568_v33 = vld [vmem:[%s13425_s18 + $0x94] sm:$0xf0] }
 0x1b0   : > { %2387 = vmatpush.bf16.msra.mxu0 %v8056_v24  ;;  %v8292_v24 = vor.u32 %v10577_v16, %v8289_v18  ;;  %v8257_v16 = vld [vmem:[%s13425_s18 + $0xa8] sm:$0xf0] }
 0x1b1   : > { %2415 = vmatpush.bf16.msra.mxu2 %v8060_v27  ;;  %v10558_v27 = vld [vmem:[%s13425_s18 + $0x44] sm:$0xf0] }
 0x1b2   : > { %2401 = vmatpush.bf16.msra.mxu1 %v8120_v50  ;;  %2429 = vmatpush.bf16.msra.mxu3 %v8124_v51  ;;  %v8208_v29 = vor.u32 %v10558_v27, %v8207_v25  ;;  %v8273_v50 = vld [vmem:[%s13425_s18 + $0xc8] sm:$0xf0]  ;;  %v8175_v25 = vld [vmem:[%s13425_s18] sm:$0xf]  ;;  %v10550_v27 = vld [vmem:[%s13425_s18 + $0x4] sm:$0xf0] }
 0x1b4   : > { %2388 = vmatpush.bf16.msra.mxu0 %v8048_v37  ;;  %v8284_v37 = vor.u32 %v10575_v34, %v8281_v36  ;;  %v10567_v34 = vld [vmem:[%s13425_s18 + $0x94] sm:$0xf]  ;;  %v8248_v36 = vor.u32 %v10568_v33, %v8247_v32  ;;  %v8439_v32 = vld [vmem:[%s13426_s0 + $0xf0] sm:$0xf]  ;;  %v10644_v33 = vld [vmem:[%s13426_s0 + $0xf4] sm:$0xf0] }
 0x1b5   : > { %2416 = vmatpush.bf16.msra.mxu2 %v8052_v41  ;;  %v8200_v41 = vor.u32 %v10556_v39, %v8199_v38  ;;  %v8239_v38 = vld [vmem:[%s13425_s18 + $0x80] sm:$0xf]  ;;  %v10566_v39 = vld [vmem:[%s13425_s18 + $0x84] sm:$0xf0] }
 0x1b6   : > { %2402 = vmatpush.bf16.msra.mxu1 %v8112_v60  ;;  %2430 = vmatpush.bf16.msra.mxu3 %v8116_v0  ;;  %v8263_v60 = vld [vmem:[%s13425_s18 + $0xb0] sm:$0xf]  ;;  %v8265_v0 = vld [vmem:[%s13425_s18 + $0xb8] sm:$0xf0] }
 0x1b7   : > { %v8264_v63 = vor.u32 %v10572_v61, %v8263_v60  ;;  %v8268_v1 = vor.u32 %v10571_v62, %v8265_v0 }
 0x1b8   : > { %2597 = vmatpush.bf16.msrb.mxu0 %v8232_v42  ;;  %v8201_v42 = vld [vmem:[%s13425_s18 + $0x38] sm:$0xf0] }
 0x1b9   : > { %2625 = vmatpush.bf16.msrb.mxu2 %v8236_v46  ;;  %v8204_v43 = vor.u32 %v10555_v40, %v8201_v42  ;;  %v10573_v46 = vld [vmem:[%s13425_s18 + $0xc4] sm:$0xf]  ;;  %v8240_v42 = vor.u32 %v10566_v39, %v8239_v38  ;;  %v8441_v38 = vld [vmem:[%s13426_s0 + $0xf8] sm:$0xf0]  ;;  %v8359_v39 = vld [vmem:[%s13426_s0 + $0x50] sm:$0xf] }
 0x1ba   : > { %2611 = vmatpush.bf16.msrb.mxu1 %v8296_v4  ;;  %2639 = vmatpush.bf16.msrb.mxu3 %v8300_v5  ;;  %v8276_v53 = vor.u32 %v10573_v46, %v8273_v50  ;;  %v10551_v4 = vld [vmem:[%s13425_s18 + $0x14] sm:$0xf]  ;;  %v8184_v5 = vor.u32 %v10552_v3, %v8183_v2 }
 0x1bb   : > { %v8188_v7 = vor.u32 %v10551_v4, %v8185_v6  ;;  %v10628_v6 = vld [vmem:[%s13426_s0 + $0x74] sm:$0xf0] }
 0x1bc   : > { %2598 = vmatpush.bf16.msrb.mxu0 %v8224_v55  ;;  %v10554_v55 = vld [vmem:[%s13425_s18 + $0x24] sm:$0xf0] }
 0x1bd   : > { %2626 = vmatpush.bf16.msrb.mxu2 %v8228_v59  ;;  %v8192_v57 = vor.u32 %v10554_v55, %v8191_v54  ;;  %v8196_v59 = vor.u32 %v10553_v56, %v8193_v58 }
 0x1be   : > { %2612 = vmatpush.bf16.msrb.mxu1 %v8288_v17  ;;  %2640 = vmatpush.bf16.msrb.mxu3 %v8292_v24  ;;  %v8260_v24 = vor.u32 %v10569_v10, %v8257_v16 }
 0x1c0   : > { %2599 = vmatpush.bf16.msrb.mxu0 %v8216_v9  ;;  %v10570_v9 = vld [vmem:[%s13425_s18 + $0xa4] sm:$0xf0] }
 0x1c1   : > { %2627 = vmatpush.bf16.msrb.mxu2 %v8220_v11  ;;  %v8256_v13 = vor.u32 %v10570_v9, %v8255_v8  ;;  %v8377_v8 = vld [vmem:[%s13426_s0 + $0x78] sm:$0xf0] }
 0x1c2   : > { %2613 = vmatpush.bf16.msrb.mxu1 %v8280_v35  ;;  %2641 = vmatpush.bf16.msrb.mxu3 %v8284_v37  ;;  %v8249_v35 = vld [vmem:[%s13425_s18 + $0x98] sm:$0xf0] }
 0x1c3   : > { %v8252_v37 = vor.u32 %v10567_v34, %v8249_v35 }
 0x1c4   : > { %2600 = vmatpush.bf16.msrb.mxu0 %v8208_v29  ;;  %v8176_v29 = vor.u32 %v10550_v27, %v8175_v25  ;;  %v10626_v25 = vld [vmem:[%s13426_s0 + $0x64] sm:$0xf0]  ;;  %v10625_v27 = vld [vmem:[%s13426_s0 + $0x64] sm:$0xf] }
 0x1c5   : > { %2628 = vmatpush.bf16.msrb.mxu2 %v8212_v31  ;;  %v8180_v31 = vor.u32 %v10549_v28, %v8177_v30  ;;  %v8369_v28 = vld [vmem:[%s13426_s0 + $0x68] sm:$0xf0] }
 0x1c6   : > { %2614 = vmatpush.bf16.msrb.mxu1 %v8272_v49  ;;  %2642 = vmatpush.bf16.msrb.mxu3 %v8276_v53 }
 0x1c8   : > { %2601 = vmatpush.bf16.msrb.mxu0 %v8200_v41 }
 0x1c9   : > { %2629 = vmatpush.bf16.msrb.mxu2 %v8204_v43  ;;  %v10565_v43 = vld [vmem:[%s13425_s18 + $0x84] sm:$0xf] }
 0x1ca   : > { %2615 = vmatpush.bf16.msrb.mxu1 %v8264_v63  ;;  %2643 = vmatpush.bf16.msrb.mxu3 %v8268_v1  ;;  %v8244_v49 = vor.u32 %v10565_v43, %v8241_v44 }
 0x1cc   : > { %2602 = vmatpush.bf16.msrb.mxu0 %v8192_v57 }
 0x1cd   : > { %2630 = vmatpush.bf16.msrb.mxu2 %v8196_v59 }
 0x1ce   : > { %2616 = vmatpush.bf16.msrb.mxu1 %v8256_v13  ;;  %2644 = vmatpush.bf16.msrb.mxu3 %v8260_v24 }
 0x1d0   : > { %2603 = vmatpush.bf16.msrb.mxu0 %v8184_v5 }
 0x1d1   : > { %2631 = vmatpush.bf16.msrb.mxu2 %v8188_v7  ;;  %v10627_v7 = vld [vmem:[%s13426_s0 + $0x74] sm:$0xf] }
 0x1d2   : > { %2617 = vmatpush.bf16.msrb.mxu1 %v8248_v36  ;;  %2645 = vmatpush.bf16.msrb.mxu3 %v8252_v37  ;;  %v8372_v36 = vor.u32 %v10625_v27, %v8369_v28  ;;  %v10643_v37 = vld [vmem:[%s13426_s0 + $0xf4] sm:$0xf]  ;;  %v10618_v28 = vld [vmem:[%s13426_s0 + $0x24] sm:$0xf0] }
 0x1d4   : > { %2604 = vmatpush.bf16.msrb.mxu0 %v8176_v29 }
 0x1d5   : > { %2632 = vmatpush.bf16.msrb.mxu2 %v8180_v31 }
 0x1d6   : > { %2618 = vmatpush.bf16.msrb.mxu1 %v8240_v42  ;;  %2646 = vmatpush.bf16.msrb.mxu3 %v8244_v49  ;;  %v8361_v42 = vld [vmem:[%s13426_s0 + $0x58] sm:$0xf0]  ;;  %v8431_v49 = vld [vmem:[%s13426_s0 + $0xe0] sm:$0xf] }
 0x1f3   : > { %v12388_v22 = vpop.f32.mrf.mxu0  ;;  %v12390_v23 = vpop.f32.mrf.mxu1 }
 0x1f4   : > { %v1619_v56 = vadd.f32 %v12390_v23, %v12388_v22 }
 0x1fa   : > { %v12407_v47 = vpop.f32.mrf.mxu2  ;;  %v12409_v48 = vpop.f32.mrf.mxu3 }
 0x1fb   : > { %v12412_v51 = vpop.f32.mrf.mxu0  ;;  %v12414_v52 = vpop.f32.mrf.mxu1  ;;  %v1647_v0 = vadd.f32 %v12409_v48, %v12407_v47 }
 0x1fc   : > { %v1621_v57 = vadd.f32 %v12414_v52, %v12412_v51  ;;  %v8375_v52 = vld [vmem:[%s13426_s0 + $0x70] sm:$0xf] }
 0x1fd   : > { %v8376_v16 = vor.u32 %v10628_v6, %v8375_v52  ;;  %v8343_v52 = vld [vmem:[%s13426_s0 + $0x30] sm:$0xf]  ;;  %v10619_v6 = vld [vmem:[%s13426_s0 + $0x34] sm:$0xf] }
 0x202   : > { %v1634_v11 = vpop.f32.mrf.mxu2  ;;  %v1648_v12 = vpop.f32.mrf.mxu3 }
 0x203   : > { %v1820_v17 = vpop.f32.mrf.mxu0  ;;  %v1834_v18 = vpop.f32.mrf.mxu1  ;;  %v1649_v4 = vadd.f32 %v1648_v12, %v1634_v11  ;;  %v8380_v11 = vor.u32 %v10627_v7, %v8377_v8  ;;  %v8367_v12 = vld [vmem:[%s13426_s0 + $0x60] sm:$0xf]  ;;  %v8345_v7 = vld [vmem:[%s13426_s0 + $0x38] sm:$0xf0] }
 0x204   : > { %v1821_v58 = vadd.f32 %v1820_v17, %v1619_v56  ;;  %v8368_v35 = vor.u32 %v10626_v25, %v8367_v12  ;;  %v10641_v56 = vld [vmem:[%s13426_s0 + $0xe4] sm:$0xf]  ;;  %v8417_v12 = vld [vmem:[%s13426_s0 + $0xc8] sm:$0xf0]  ;;  %v8335_v25 = vld [vmem:[%s13426_s0 + $0x20] sm:$0xf] }
 0x206   : > { %v1835_v61 = vadd.f32 %v1834_v18, %v1821_v58  ;;  %v8351_v58 = vld [vmem:[%s13426_s0 + $0x40] sm:$0xf] }
 0x20a   : > { %v1848_v40 = vpop.f32.mrf.mxu2  ;;  %v1862_v41 = vpop.f32.mrf.mxu3 }
 0x20b   : > { %v1822_v45 = vpop.f32.mrf.mxu0  ;;  %v1836_v46 = vpop.f32.mrf.mxu1  ;;  %v1849_v51 = vadd.f32 %v1848_v40, %v1647_v0  ;;  %v10624_v40 = vld [vmem:[%s13426_s0 + $0x54] sm:$0xf0] }
 0x20c   : > { %v1823_v59 = vadd.f32 %v1822_v45, %v1621_v57  ;;  %v8440_v45 = vor.u32 %v10644_v33, %v8439_v32  ;;  %v8433_v57 = vld [vmem:[%s13426_s0 + $0xe8] sm:$0xf0] }
 0x20d   : > { %v1863_v48 = vadd.f32 %v1862_v41, %v1849_v51  ;;  %v10623_v41 = vld [vmem:[%s13426_s0 + $0x54] sm:$0xf]  ;;  %v8436_v0 = vor.u32 %v10641_v56, %v8433_v57  ;;  %v10633_v56 = vld [vmem:[%s13426_s0 + $0xa4] sm:$0xf]  ;;  %v8401_v57 = vld [vmem:[%s13426_s0 + $0xa8] sm:$0xf0] }
 0x20e   : > { %v1837_v3 = vadd.f32 %v1836_v46, %v1823_v59  ;;  %v8444_v46 = vor.u32 %v10643_v37, %v8441_v38  ;;  %v10622_v59 = vld [vmem:[%s13426_s0 + $0x44] sm:$0xf0]  ;;  %v8409_v37 = vld [vmem:[%s13426_s0 + $0xb8] sm:$0xf0]  ;;  %v8336_v38 = vor.u32 %v10618_v28, %v8335_v25 }
 0x212   : > { %v1850_v50 = vpop.f32.mrf.mxu2  ;;  %v1864_v53 = vpop.f32.mrf.mxu3 }
 0x213   : > { %v1851_v9 = vadd.f32 %v1850_v50, %v1649_v4  ;;  %v10642_v50 = vld [vmem:[%s13426_s0 + $0xe4] sm:$0xf0]  ;;  %v8425_v4 = vld [vmem:[%s13426_s0 + $0xd8] sm:$0xf0] }
 0x214   : > { %v2070_v54 = vpop.f32.mrf.mxu0  ;;  %v2084_v55 = vpop.f32.mrf.mxu1 }
 0x215   : > { %v2085_v60 = vadd.f32 %v2084_v55, %v2070_v54  ;;  %v1865_v29 = vadd.f32 %v1864_v53, %v1851_v9  ;;  %v8360_v54 = vor.u32 %v10624_v40, %v8359_v39  ;;  %v8364_v55 = vor.u32 %v10623_v41, %v8361_v42  ;;  %v8327_v41 = vld [vmem:[%s13426_s0 + $0x10] sm:$0xf]  ;;  %v10616_v42 = vld [vmem:[%s13426_s0 + $0x14] sm:$0xf0] }
 0x217   : > { %v2117_v22 = vadd.f32 %v2085_v60, %v1835_v61  ;;  %v10621_v60 = vld [vmem:[%s13426_s0 + $0x44] sm:$0xf]  ;;  %v8353_v61 = vld [vmem:[%s13426_s0 + $0x48] sm:$0xf0] }
 0x219   : > { %v12454_v13 = vmax.f32 %v2117_v22, 0.0  ;;  %v10640_v22 = vld [vmem:[%s13426_s0 + $0xd4] sm:$0xf0] }
 0x21b   : > { %v2098_v62 = vpop.f32.mrf.mxu2  ;;  %v2129_v51 = vrot.slane %v12454_v13, 7 }
 0x21c   : > { %v2112_v63 = vpop.f32.mrf.mxu3  ;;  %v2072_v1 = vpop.f32.mrf.mxu0 }
 0x21d   : > { %v2086_v2 = vpop.f32.mrf.mxu1  ;;  %v2113_v10 = vadd.f32 %v2112_v63, %v2098_v62  ;;  %v8432_v63 = vor.u32 %v10642_v50, %v8431_v49 }
 0x21e   : > { %v2087_v23 = vadd.f32 %v2086_v2, %v2072_v1  ;;  %v8423_v1 = vld [vmem:[%s13426_s0 + $0xd0] sm:$0xf]  ;;  %v8352_v2 = vor.u32 %v10622_v59, %v8351_v58  ;;  %v8328_v58 = vor.u32 %v10616_v42, %v8327_v41 }
 0x21f   : > { %v2118_v30 = vadd.f32 %v2113_v10, %v1863_v48  ;;  %v8424_v8 = vor.u32 %v10640_v22, %v8423_v1  ;;  %v8415_v48 = vld [vmem:[%s13426_s0 + $0xc0] sm:$0xf]  ;;  %v10632_v22 = vld [vmem:[%s13426_s0 + $0x94] sm:$0xf0] }
 0x220   : > { %v2119_v5 = vadd.f32 %v2087_v23, %v1837_v3  ;;  %v8356_v3 = vor.u32 %v10621_v60, %v8353_v61  ;;  %v10639_v23 = vld [vmem:[%s13426_s0 + $0xd4] sm:$0xf]  ;;  %v8319_v60 = vld [vmem:[%s13426_s0] sm:$0xf]  ;;  %v10614_v61 = vld [vmem:[%s13426_s0 + $0x4] sm:$0xf0] }
 0x221   : > { %v12472_v43 = vmax.f32 %v2118_v30, 0.0  ;;  %v8428_v9 = vor.u32 %v10639_v23, %v8425_v4  ;;  %v8337_v30 = vld [vmem:[%s13426_s0 + $0x28] sm:$0xf0]  ;;  %v10631_v23 = vld [vmem:[%s13426_s0 + $0x94] sm:$0xf] }
 0x222   : > { %v12456_v47 = vmax.f32 %v2119_v5, 0.0  ;;  %v10620_v5 = vld [vmem:[%s13426_s0 + $0x34] sm:$0xf0]  ;;  %v8393_v4 = vld [vmem:[%s13426_s0 + $0x98] sm:$0xf0] }
 0x223   : > { %v2100_v17 = vpop.f32.mrf.mxu2 }
 0x224   : > { %v2114_v18 = vpop.f32.mrf.mxu3  ;;  %v2187_v24 = vpack.c.bf16 %v12456_v47, %v12454_v13  ;;  %v2131_v62 = vrot.slane %v12456_v47, 7 }
 0x225   : > { %v2115_v31 = vadd.f32 %v2114_v18, %v2100_v17  ;;  %v8344_v18 = vor.u32 %v10620_v5, %v8343_v52  ;;  %v8320_v52 = vor.u32 %v10614_v61, %v8319_v60 }
 0x226   : > { %2389 = vmatmul.bf16.vlgmr.msra.gmra.mxu0 %v2187_v24  ;;  %2417 = vmatmul.bf16.vlgmr.msra.gmra.mxu2 %v2187_v24  ;;  %v2132_v10 = vsel %vm1341_vm0, %v2129_v51, %v2131_v62  ;;  %v8348_v24 = vor.u32 %v10619_v6, %v8345_v7  ;;  %v10613_v62 = vld [vmem:[%s13426_s0 + $0x4] sm:$0xf]  ;;  %v8396_v7 = vor.u32 %v10631_v23, %v8393_v4 }
 0x227   : > { %v2120_v34 = vadd.f32 %v2115_v31, %v1865_v29  ;;  %2847 = vmatpush.bf16.msra.mxu0 %v8376_v16  ;;  %2875 = vmatpush.bf16.msra.mxu2 %v8380_v11  ;;  %v10638_v16 = vld [vmem:[%s13426_s0 + $0xc4] sm:$0xf0]  ;;  %v10637_v11 = vld [vmem:[%s13426_s0 + $0xc4] sm:$0xf]  ;;  %v8303_v27 = vpack.c.bf16 %v2132_v10, %v2129_v51  ;;  %v2130_v31 = vrot.slane %v12472_v43, 7  ;;  %v2141_v51 = vrot.slane %v12454_v13, 1 }
 0x228   : > { %v10617_v29 = vld [vmem:[%s13426_s0 + $0x24] sm:$0xf]  ;;  %v8416_v32 = vor.u32 %v10638_v16, %v8415_v48  ;;  %v8420_v33 = vor.u32 %v10637_v11, %v8417_v12  ;;  %v8385_v48 = vld [vmem:[%s13426_s0 + $0x88] sm:$0xf0]  ;;  %v2144_v11 = vrot.slane %v12472_v43, 1 }
 0x229   : > { %v12474_v44 = vmax.f32 %v2120_v34, 0.0  ;;  %v8407_v34 = vld [vmem:[%s13426_s0 + $0xb0] sm:$0xf]  ;;  %v8340_v39 = vor.u32 %v10617_v29, %v8337_v30  ;;  %v10629_v10 = vld [vmem:[%s13426_s0 + $0x84] sm:$0xf]  ;;  %v10660_v30 = vld [vmem:[%s13427_s7 + $0x78] sm:$0xff] }
 0x22a   : > { %v10651_v29 = vld [vmem:[%s13427_s7 + $0x30] sm:$0xff] }
 0x22b   : > { %2848 = vmatpush.bf16.msra.mxu0 %v8368_v35  ;;  %2876 = vmatpush.bf16.msra.mxu2 %v8372_v36  ;;  %v2188_v53 = vpack.c.bf16 %v12474_v44, %v12472_v43  ;;  %v2133_v17 = vrot.slane %v12474_v44, 7  ;;  %v10636_v35 = vld [vmem:[%s13426_s0 + $0xb4] sm:$0xf0]  ;;  %v10635_v36 = vld [vmem:[%s13426_s0 + $0xb4] sm:$0xf]  ;;  %v2145_v16 = vrot.slane %v12474_v44, 1 }
 0x22c   : > { %v8408_v49 = vor.u32 %v10636_v35, %v8407_v34  ;;  %v8412_v50 = vor.u32 %v10635_v36, %v8409_v37  ;;  %v10659_v35 = vld [vmem:[%s13427_s7 + $0x70] sm:$0xff]  ;;  %v10649_v37 = vld [vmem:[%s13427_s7 + $0x20] sm:$0xff] }
 0x22d   : > { %2403 = vmatmul.bf16.vlgmr.msra.gmra.mxu1 %v2188_v53  ;;  %2431 = vmatmul.bf16.vlgmr.msra.gmra.mxu3 %v2188_v53  ;;  %v2134_v40 = vsel %vm1341_vm0, %v2130_v31, %v2133_v17  ;;  %v8399_v53 = vld [vmem:[%s13426_s0 + $0xa0] sm:$0xf]  ;;  %v8388_v17 = vor.u32 %v10629_v10, %v8385_v48  ;;  %v2146_v44 = vsel %vm1354_vm4, %v2144_v11, %v2145_v16 }
 0x22e   : > { %2861 = vmatpush.bf16.msra.mxu1 %v8440_v45  ;;  %2889 = vmatpush.bf16.msra.mxu3 %v8444_v46  ;;  %v10615_v45 = vld [vmem:[%s13426_s0 + $0x14] sm:$0xf]  ;;  %v8329_v46 = vld [vmem:[%s13426_s0 + $0x18] sm:$0xf0] }
 0x22f   : > { %2849 = vmatpush.bf16.msra.mxu0 %v8360_v54  ;;  %2877 = vmatpush.bf16.msra.mxu2 %v8364_v55  ;;  %v8307_v54 = vpack.c.bf16 %v2134_v40, %v2130_v31  ;;  %v10634_v55 = vld [vmem:[%s13426_s0 + $0xa4] sm:$0xf0]  ;;  %v8332_v59 = vor.u32 %v10615_v45, %v8329_v46  ;;  %v10648_v40 = vld [vmem:[%s13427_s7 + $0x18] sm:$0xff]  ;;  %v10657_v45 = vld [vmem:[%s13427_s7 + $0x60] sm:$0xff] }
 0x230   : > { %v8400_v1 = vor.u32 %v10634_v55, %v8399_v53  ;;  %v10647_v46 = vld [vmem:[%s13427_s7 + $0x10] sm:$0xff] }
 0x232   : > { %2862 = vmatpush.bf16.msra.mxu1 %v8432_v63  ;;  %2890 = vmatpush.bf16.msra.mxu3 %v8436_v0  ;;  %v8321_v63 = vld [vmem:[%s13426_s0 + $0x8] sm:$0xf0]  ;;  %v2142_v0 = vrot.slane %v12456_v47, 1 }
 0x233   : > { %2850 = vmatpush.bf16.msra.mxu0 %v8352_v2  ;;  %2878 = vmatpush.bf16.msra.mxu2 %v8356_v3  ;;  %v8404_v2 = vor.u32 %v10633_v56, %v8401_v57  ;;  %v8391_v3 = vld [vmem:[%s13426_s0 + $0x90] sm:$0xf]  ;;  %v8324_v5 = vor.u32 %v10613_v62, %v8321_v63  ;;  %v11617_v62 = vmov 16.0   ;;  %v10653_v63 = vld [vmem:[%s13427_s7 + $0x40] sm:$0xff] }
 0x234   : > { %v2143_v47 = vsel %vm1354_vm4, %v2141_v51, %v2142_v0  ;;  %v8392_v6 = vor.u32 %v10632_v22, %v8391_v3  ;;  %v10655_v56 = vld [vmem:[%s13427_s7 + $0x50] sm:$0xff]  ;;  %11247 = vrcp.f32 %v11617_v62  ;;  %v4918_v62 = vld [vmem:[%s13429_s28] sm:$0xf]  ;;  %s13437_s28 = sld [smem:[#allocation21_spill]] }
 0x235   : > { %v8446_v13 = vpack.c.bf16 %v2142_v0, %v2143_v47 }
 0x236   : > { %2863 = vmatpush.bf16.msra.mxu1 %v8424_v8  ;;  %2891 = vmatpush.bf16.msra.mxu3 %v8428_v9  ;;  %v8383_v8 = vld [vmem:[%s13426_s0 + $0x80] sm:$0xf]  ;;  %v10630_v9 = vld [vmem:[%s13426_s0 + $0x84] sm:$0xf0] }
 0x237   : > { %8304 = vmatmul.msk.bf16.vlgmr.msrb.gmra.mxu0 %vm12248_vm3, %v8303_v27  ;;  %8312 = vmatmul.msk.bf16.vlgmr.msrb.gmra.mxu2 %vm12248_vm3, %v8303_v27  ;;  %v8384_v12 = vor.u32 %v10630_v9, %v8383_v8 }
 0x238   : > { %2851 = vmatpush.bf16.msra.mxu0 %v8344_v18  ;;  %2879 = vmatpush.bf16.msra.mxu2 %v8348_v24  ;;  %v8449_v18 = vpack.c.bf16 %v2145_v16, %v2146_v44  ;;  %v10652_v24 = vld [vmem:[%s13427_s7 + $0x38] sm:$0xff] }
 0x23a   : > { %2864 = vmatpush.bf16.msra.mxu1 %v8416_v32  ;;  %2892 = vmatpush.bf16.msra.mxu3 %v8420_v33  ;;  %v10650_v32 = vld [vmem:[%s13427_s7 + $0x28] sm:$0xff] }
 0x23c   : > { %2852 = vmatpush.bf16.msra.mxu0 %v8336_v38  ;;  %2880 = vmatpush.bf16.msra.mxu2 %v8340_v39  ;;  %v10658_v38 = vld [vmem:[%s13427_s7 + $0x68] sm:$0xff] }
 0x23d   : > { %8308 = vmatmul.msk.bf16.vlgmr.msrb.gmra.mxu1 %vm12248_vm3, %v8307_v54  ;;  %8316 = vmatmul.msk.bf16.vlgmr.msrb.gmra.mxu3 %vm12248_vm3, %v8307_v54  ;;  %v10646_v54 = vld [vmem:[%s13427_s7 + $0x8] sm:$0xff] }
 0x23e   : > { %2865 = vmatpush.bf16.msra.mxu1 %v8408_v49  ;;  %2893 = vmatpush.bf16.msra.mxu3 %v8412_v50  ;;  %v10656_v50 = vld [vmem:[%s13427_s7 + $0x58] sm:$0xff] }
 0x240   : > { %2853 = vmatpush.bf16.msra.mxu0 %v8328_v58  ;;  %2881 = vmatpush.bf16.msra.mxu2 %v8332_v59  ;;  %v10645_v58 = vld [vmem:[%s13427_s7] sm:$0xff]  ;;  %v10654_v59 = vld [vmem:[%s13427_s7 + $0x48] sm:$0xff] }
 0x242   : > { %2866 = vmatpush.bf16.msra.mxu1 %v8400_v1  ;;  %2894 = vmatpush.bf16.msra.mxu3 %v8404_v2  ;;  %v11248_v2 = vpop.eup %11247 }
 0x243   : > { %vm2926_vm6 = vweird.f32 %v11248_v2 }
 0x244   : > { %2854 = vmatpush.bf16.msra.mxu0 %v8320_v52  ;;  %2882 = vmatpush.bf16.msra.mxu2 %v8324_v5 }
 0x246   : > { %2867 = vmatpush.bf16.msra.mxu1 %v8392_v6  ;;  %2895 = vmatpush.bf16.msra.mxu3 %v8396_v7  ;;  %v2922_v6 = vmul.f32 16.0, %v11248_v2 }
 0x247   : > { %8447 = vmatmul.msk.bf16.vlgmr.msra.gmra.mxu0 %vm12304_vm5, %v8446_v13  ;;  %8453 = vmatmul.msk.bf16.vlgmr.msra.gmra.mxu2 %vm12304_vm5, %v8446_v13 }
 0x248   : > { %3060 = vmatpush.bf16.msrb.mxu0 %v10652_v24  ;;  %v2923_v11 = vsub.f32 1.0, %v2922_v6 }
 0x24a   : > { %2868 = vmatpush.bf16.msra.mxu1 %v8384_v12  ;;  %2896 = vmatpush.bf16.msra.mxu3 %v8388_v17 }
 0x24c   : > { %3061 = vmatpush.bf16.msrb.mxu0 %v10651_v29 }
 0x24d   : > { %8450 = vmatmul.msk.bf16.vlgmr.msra.gmra.mxu1 %vm12304_vm5, %v8449_v18  ;;  %8456 = vmatmul.msk.bf16.vlgmr.msra.gmra.mxu3 %vm12304_vm5, %v8449_v18 }
 0x24e   : > { %3073 = vmatpush.bf16.msrb.mxu1 %v10660_v30 }
 0x250   : > { %3062 = vmatpush.bf16.msrb.mxu0 %v10650_v32  ;;  %v2924_v32 = vmul.f32 %v11248_v2, %v2923_v11  ;;  %v10705_v11 = vld [vmem:[%s13430_s23 + $0x64] sm:$0xf] }
 0x252   : > { %3074 = vmatpush.bf16.msrb.mxu1 %v10659_v35 }
 0x254   : > { %3063 = vmatpush.bf16.msrb.mxu0 %v10649_v37 }
 0x256   : > { %3075 = vmatpush.bf16.msrb.mxu1 %v10658_v38 }
 0x258   : > { %3064 = vmatpush.bf16.msrb.mxu0 %v10648_v40 }
 0x25a   : > { %3076 = vmatpush.bf16.msrb.mxu1 %v10657_v45 }
 0x25c   : > { %3065 = vmatpush.bf16.msrb.mxu0 %v10647_v46 }
 0x25e   : > { %3077 = vmatpush.bf16.msrb.mxu1 %v10656_v50 }
 0x260   : > { %3066 = vmatpush.bf16.msrb.mxu0 %v10646_v54 }
 0x262   : > { %3078 = vmatpush.bf16.msrb.mxu1 %v10655_v56 }
 0x264   : > { %3067 = vmatpush.bf16.msrb.mxu0 %v10645_v58 }
 0x266   : > { %3079 = vmatpush.bf16.msrb.mxu1 %v10654_v59 }
 0x26a   : > { %3080 = vmatpush.bf16.msrb.mxu1 %v10653_v63  ;;  %v8583_v63 = vld [vmem:[%s13430_s23 + $0x70] sm:$0xf] }
 0x2a3   : > { %v2390_v43 = vpop.f32.mrf.mxu0 }
 0x2a9   : > { %v12555_v25 = vpop.f32.mrf.mxu2 }
 0x2aa   : > { %v2404_v27 = vpop.f32.mrf.mxu1 }
 0x2ab   : > { %v2392_v28 = vpop.f32.mrf.mxu0  ;;  %v2405_v3 = vadd.f32 %v2404_v27, %v2390_v43 }
 0x2b0   : > { %v2432_v31 = vpop.f32.mrf.mxu3 }
 0x2b1   : > { %v2420_v33 = vpop.f32.mrf.mxu2  ;;  %v2433_v10 = vadd.f32 %v2432_v31, %v12555_v25 }
 0x2b2   : > { %v2406_v34 = vpop.f32.mrf.mxu1 }
 0x2b3   : > { %v2407_v22 = vadd.f32 %v2406_v34, %v2392_v28 }
 0x2b4   : > { %v2606_v36 = vpop.f32.mrf.mxu0 }
 0x2b5   : > { %v2607_v4 = vadd.f32 %v2606_v36, %v2405_v3  ;;  %v2925_v36 = vadd.f32 %v11248_v2, %v2924_v32  ;;  %v10724_v3 = vld [vmem:[%s13430_s23 + $0xf4] sm:$0xf0] }
 0x2b8   : > { %v2434_v39 = vpop.f32.mrf.mxu3 }
 0x2b9   : > { %v2435_v48 = vadd.f32 %v2434_v39, %v2420_v33 }
 0x2ba   : > { %v2620_v41 = vpop.f32.mrf.mxu1  ;;  %v2634_v42 = vpop.f32.mrf.mxu2 }
 0x2bb   : > { %v2621_v7 = vadd.f32 %v2620_v41, %v2607_v4  ;;  %v2635_v12 = vadd.f32 %v2634_v42, %v2433_v10  ;;  %v12585_v41 = vsel %vm2926_vm6, %v11248_v2, %v2925_v36 }
 0x2bc   : > { %v2608_v49 = vpop.f32.mrf.mxu0 }
 0x2bd   : > { %v2609_v51 = vadd.f32 %v2608_v49, %v2407_v22  ;;  %v10707_v22 = vld [vmem:[%s13430_s23 + $0x74] sm:$0xf] }
 0x2c0   : > { %v2648_v53 = vpop.f32.mrf.mxu3 }
 0x2c1   : > { %v2649_v27 = vadd.f32 %v2648_v53, %v2635_v12  ;;  %v8577_v12 = vld [vmem:[%s13430_s23 + $0x68] sm:$0xf0] }
 0x2c2   : > { %v2622_v55 = vpop.f32.mrf.mxu1  ;;  %v2636_v57 = vpop.f32.mrf.mxu2 }
 0x2c3   : > { %v2623_v8 = vadd.f32 %v2622_v55, %v2609_v51  ;;  %v2637_v17 = vadd.f32 %v2636_v57, %v2435_v48  ;;  %v3088_v57 = vld [vmem:[%s13428_s26] sm:$0xf]  ;;  %s10451_s26 = sshll.u32 %s13440_s1, 6 }
 0x2c4   : > { %v2856_v60 = vpop.f32.mrf.mxu0  ;;  %3090 = vst [vmem:[#allocation1] ss:$4 sm:$0xff] %v3088_v57  ;;  %v8551_v57 = vld [vmem:[%s13430_s23 + $0x30] sm:$0xf]  ;;  %s12992_s0 = scalar_lea.vmem %s13437_s28, %s10451_s26 }
 0x2c8   : > { %v2650_v61 = vpop.f32.mrf.mxu3 }
 0x2c9   : > { %v2651_v28 = vadd.f32 %v2650_v61, %v2637_v17  ;;  %v10721_v17 = vld [vmem:[%s13430_s23 + $0xe4] sm:$0xf] }
 0x2ca   : > { %v2870_v0 = vpop.f32.mrf.mxu1  ;;  %v2884_v1 = vpop.f32.mrf.mxu2 }
 0x2cb   : > { %v2871_v52 = vadd.f32 %v2870_v0, %v2856_v60  ;;  %v3091_v58 = vld.sshfl [vmem:[#allocation1] sm:$0xff pattern:$0x73625140]  ;;  %v3092_v60 = vld.sshfl [vmem:[#allocation1 + $0x8] sm:$0xff pattern:$0x73625140] }
 0x2cc   : > { %v2858_v5 = vpop.f32.mrf.mxu0  ;;  %v3098_v59 = vsel %vm3097_vm7, %v3091_v58, 0  ;;  %v3100_v61 = vsel %vm3097_vm7, %v3092_v60, 0  ;;  %4920 = vst [vmem:[#allocation1] ss:$4 sm:$0xff] %v4918_v62  ;;  %v10708_v0 = vld [vmem:[%s13430_s23 + $0x74] sm:$0xf0] }
 0x2cd   : > { %v12573_v16 = vadd.f32 %v2871_v52, %v2621_v7  ;;  %3109 = vmatpush.bf16.msrb.mxu2 %v3098_v59  ;;  %3122 = vmatpush.bf16.msrb.mxu3 %v3100_v61  ;;  %v8584_v2 = vor.u32 %v10708_v0, %v8583_v63  ;;  %v10723_v52 = vld [vmem:[%s13430_s23 + $0xf4] sm:$0xf]  ;;  %v10706_v7 = vld [vmem:[%s13430_s23 + $0x64] sm:$0xf0]  ;;  %v10700_v58 = vld [vmem:[%s13430_s23 + $0x34] sm:$0xf0] }
 0x2ce   : > { %v8615_v59 = vld [vmem:[%s13430_s23 + $0xb0] sm:$0xf]  ;;  %v10716_v61 = vld [vmem:[%s13430_s23 + $0xb4] sm:$0xf0]  ;;  %v10699_v62 = vld [vmem:[%s13430_s23 + $0x34] sm:$0xf] }
 0x2cf   : > { %v8553_v63 = vld [vmem:[%s13430_s23 + $0x38] sm:$0xf0]  ;;  %v10715_v0 = vld [vmem:[%s13430_s23 + $0xb4] sm:$0xf] }
 0x2d0   : > { %v2898_v23 = vpop.f32.mrf.mxu3 }
 0x2d1   : > { %v2899_v44 = vadd.f32 %v2898_v23, %v2884_v1  ;;  %v8647_v1 = vld [vmem:[%s13430_s23 + $0xf0] sm:$0xf]  ;;  %v8585_v23 = vld [vmem:[%s13430_s23 + $0x78] sm:$0xf0]  ;;  %3432 = vmatpush.bf16.msra.mxu2 %v8584_v2  ;;  %v8552_v2 = vor.u32 %v10700_v58, %v8551_v57  ;;  %v10709_v57 = vld [vmem:[%s13430_s23 + $0x84] sm:$0xf] }
 0x2d2   : > { %v2872_v47 = vpop.f32.mrf.mxu1  ;;  %v2886_v43 = vpop.f32.mrf.mxu2  ;;  %v8648_v4 = vor.u32 %v10724_v3, %v8647_v1  ;;  %v8588_v51 = vor.u32 %v10707_v22, %v8585_v23  ;;  %v8617_v1 = vld [vmem:[%s13430_s23 + $0xb8] sm:$0xf0]  ;;  %v8616_v3 = vor.u32 %v10716_v61, %v8615_v59  ;;  %v8556_v22 = vor.u32 %v10699_v62, %v8553_v63  ;;  %v8593_v58 = vld [vmem:[%s13430_s23 + $0x88] sm:$0xf0]  ;;  %v8711_v59 = vld [vmem:[%s13431_s11 + $0x70] sm:$0xf] }
 0x2d3   : > { %v2873_v9 = vadd.f32 %v2872_v47, %v2858_v5  ;;  %v12579_v25 = vadd.f32 %v2899_v44, %v2649_v27  ;;  %v8649_v5 = vld [vmem:[%s13430_s23 + $0xf8] sm:$0xf0]  ;;  %v8575_v47 = vld [vmem:[%s13430_s23 + $0x60] sm:$0xf]  ;;  %v8580_v44 = vor.u32 %v10705_v11, %v8577_v12  ;;  %v8620_v23 = vor.u32 %v10715_v0, %v8617_v1  ;;  %v10714_v11 = vld [vmem:[%s13430_s23 + $0xa4] sm:$0xf0] }
 0x2d4   : > { %v8652_v6 = vor.u32 %v10723_v52, %v8649_v5  ;;  %3446 = vmatpush.bf16.msra.mxu3 %v8648_v4  ;;  %3460 = vmatpush.bf16.msra.mxu0 %v8588_v51  ;;  %v8576_v10 = vor.u32 %v10706_v7, %v8575_v47  ;;  %v10697_v12 = vld [vmem:[%s13430_s23 + $0x24] sm:$0xf]  ;;  %v10676_v61 = vld [vmem:[%s13431_s11 + $0x74] sm:$0xf0]  ;;  %v8775_v62 = vld [vmem:[%s13431_s11 + $0xf0] sm:$0xf] }
 0x2d5   : > { %v12575_v13 = vadd.f32 %v2873_v9, %v2623_v8  ;;  %v8639_v8 = vld [vmem:[%s13430_s23 + $0xe0] sm:$0xf]  ;;  %v10722_v9 = vld [vmem:[%s13430_s23 + $0xe4] sm:$0xf0]  ;;  %v10692_v63 = vld [vmem:[%s13431_s11 + $0xf4] sm:$0xf0]  ;;  %v8712_v0 = vor.u32 %v10676_v61, %v8711_v59 }
 0x2d6   : > { %v8640_v48 = vor.u32 %v10722_v9, %v8639_v8  ;;  %3474 = vmatpush.bf16.msra.mxu1 %v8652_v6  ;;  %3433 = vmatpush.bf16.msra.mxu2 %v8576_v10  ;;  %v8543_v8 = vld [vmem:[%s13430_s23 + $0x20] sm:$0xf]  ;;  %v10698_v9 = vld [vmem:[%s13430_s23 + $0x24] sm:$0xf0]  ;;  %v8776_v1 = vor.u32 %v10692_v63, %v8775_v62  ;;  %v10684_v59 = vld [vmem:[%s13431_s11 + $0xb4] sm:$0xf0] }
 0x2d7   : > { %v2907_v18 = vadd.f32 %v12575_v13, %v12573_v16  ;;  %v8607_v10 = vld [vmem:[%s13430_s23 + $0xa0] sm:$0xf]  ;;  %v8681_v61 = vld [vmem:[%s13431_s11 + $0x38] sm:$0xf0] }
 0x2d8   : > { %v2900_v24 = vpop.f32.mrf.mxu3  ;;  %3447 = vmatpush.bf16.msra.mxu3 %v8640_v48  ;;  %3461 = vmatpush.bf16.msra.mxu0 %v8580_v44  ;;  %v8544_v48 = vor.u32 %v10698_v9, %v8543_v8  ;;  %v8608_v44 = vor.u32 %v10714_v11, %v8607_v10  ;;  %v10673_v8 = vld [vmem:[%s13431_s11 + $0x64] sm:$0xf]  ;;  %v8705_v10 = vld [vmem:[%s13431_s11 + $0x68] sm:$0xf0] }
 0x2d9   : > { %v2908_v29 = vrot.slane %v2907_v18, 4  ;;  %v2901_v30 = vadd.f32 %v2900_v24, %v2886_v43  ;;  %v8567_v43 = vld [vmem:[%s13430_s23 + $0x50] sm:$0xf]  ;;  %v10704_v24 = vld [vmem:[%s13430_s23 + $0x54] sm:$0xf0] }
 0x2da   : > { %v8568_v32 = vor.u32 %v10704_v24, %v8567_v43  ;;  %v10713_v43 = vld [vmem:[%s13430_s23 + $0xa4] sm:$0xf]  ;;  %v8609_v24 = vld [vmem:[%s13430_s23 + $0xa8] sm:$0xf0] }
 0x2db   : > { %v2909_v31 = vadd.f32 %v2908_v29, %v2907_v18  ;;  %v12581_v33 = vadd.f32 %v2901_v30, %v2651_v28  ;;  %v8641_v18 = vld [vmem:[%s13430_s23 + $0xe8] sm:$0xf0]  ;;  %v8631_v28 = vld [vmem:[%s13430_s23 + $0xd0] sm:$0xf]  ;;  %v10720_v29 = vld [vmem:[%s13430_s23 + $0xd4] sm:$0xf0] }
 0x2dc   : > { %v8644_v27 = vor.u32 %v10721_v17, %v8641_v18  ;;  %v10703_v30 = vld [vmem:[%s13430_s23 + $0x54] sm:$0xf]  ;;  %v8632_v36 = vor.u32 %v10720_v29, %v8631_v28  ;;  %3434 = vmatpush.bf16.msra.mxu2 %v8568_v32  ;;  %v8545_v17 = vld [vmem:[%s13430_s23 + $0x28] sm:$0xf0]  ;;  %v8535_v28 = vld [vmem:[%s13430_s23 + $0x10] sm:$0xf] }
 0x2dd   : > { %v2910_v34 = vrot.slane %v2909_v31, 2  ;;  %v2914_v35 = vadd.f32 %v12581_v33, %v12579_v25  ;;  %v8548_v18 = vor.u32 %v10697_v12, %v8545_v17  ;;  %v10696_v29 = vld [vmem:[%s13430_s23 + $0x14] sm:$0xf0]  ;;  %v8769_v11 = vld [vmem:[%s13431_s11 + $0xe8] sm:$0xf0]  ;;  %v8708_v12 = vor.u32 %v10673_v8, %v8705_v10 }
 0x2de   : > { %3475 = vmatpush.bf16.msra.mxu1 %v8644_v27  ;;  %3448 = vmatpush.bf16.msra.mxu3 %v8632_v36  ;;  %v8612_v27 = vor.u32 %v10713_v43, %v8609_v24  ;;  %v8536_v32 = vor.u32 %v10696_v29, %v8535_v28  ;;  %v8759_v43 = vld [vmem:[%s13431_s11 + $0xd0] sm:$0xf]  ;;  %v10671_v28 = vld [vmem:[%s13431_s11 + $0x54] sm:$0xf]  ;;  %v8697_v29 = vld [vmem:[%s13431_s11 + $0x58] sm:$0xf0] }
 0x2df   : > { %v2911_v37 = vadd.f32 %v2910_v34, %v2909_v31  ;;  %v2915_v38 = vrot.slane %v2914_v35, 4  ;;  %v8569_v31 = vld [vmem:[%s13430_s23 + $0x58] sm:$0xf0]  ;;  %v10719_v34 = vld [vmem:[%s13430_s23 + $0xd4] sm:$0xf] }
 0x2e0   : > { %v8737_v8 = vld [vmem:[%s13431_s11 + $0xa8] sm:$0xf0]  ;;  %v8663_v10 = vld [vmem:[%s13431_s11 + $0x10] sm:$0xf] }
 0x2e1   : > { %v2912_v39 = vrot.slane %v2911_v37, 1  ;;  %v2916_v40 = vadd.f32 %v2915_v38, %v2914_v35  ;;  %v8633_v35 = vld [vmem:[%s13430_s23 + $0xd8] sm:$0xf0]  ;;  %v8559_v38 = vld [vmem:[%s13430_s23 + $0x40] sm:$0xf] }
 0x2e3   : > { %v2917_v42 = vrot.slane %v2916_v40, 2  ;;  %v2913_v45 = vadd.f32 %v2912_v39, %v2911_v37  ;;  %v8572_v37 = vor.u32 %v10703_v30, %v8569_v31  ;;  %v10702_v39 = vld [vmem:[%s13430_s23 + $0x44] sm:$0xf0]  ;;  %v8599_v30 = vld [vmem:[%s13430_s23 + $0x90] sm:$0xf] }
 0x2e4   : > { %v10712_v31 = vld [vmem:[%s13430_s23 + $0x94] sm:$0xf0] }
 0x2e5   : > { %v2918_v46 = vadd.f32 %v2917_v42, %v2916_v40  ;;  %v2928_v49 = vmul.f32 %v12585_v41, %v2913_v45  ;;  %v8623_v40 = vld [vmem:[%s13430_s23 + $0xc0] sm:$0xf]  ;;  %v8636_v42 = vor.u32 %v10719_v34, %v8633_v35  ;;  %v10718_v45 = vld [vmem:[%s13430_s23 + $0xc4] sm:$0xf0]  ;;  %3462 = vmatpush.bf16.msra.mxu0 %v8572_v37  ;;  %v10695_v34 = vld [vmem:[%s13430_s23 + $0x14] sm:$0xf]  ;;  %v8600_v36 = vor.u32 %v10712_v31, %v8599_v30 }
 0x2e6   : > { %v8537_v35 = vld [vmem:[%s13430_s23 + $0x18] sm:$0xf0]  ;;  %v10687_v31 = vld [vmem:[%s13431_s11 + $0xd4] sm:$0xf] }
 0x2e7   : > { %v2919_v50 = vrot.slane %v2918_v46, 1  ;;  %v2930_v53 = vpack.c.bf16 %v2928_v49, %v2928_v49  ;;  %v8561_v49 = vld [vmem:[%s13430_s23 + $0x48] sm:$0xf0]  ;;  %3476 = vmatpush.bf16.msra.mxu1 %v8636_v42  ;;  %v8540_v37 = vor.u32 %v10695_v34, %v8537_v35  ;;  %v8527_v42 = vld [vmem:[%s13430_s23] sm:$0xf] }
 0x2e8   : > { %v8761_v34 = vld [vmem:[%s13431_s11 + $0xd8] sm:$0xf0] }
 0x2e9   : > { %3068 = vmatmul.bf16.vlgmr.msrb.gmra.mxu0 %v2930_v53  ;;  %v2920_v54 = vadd.f32 %v2919_v50, %v2918_v46  ;;  %v10701_v46 = vld [vmem:[%s13430_s23 + $0x44] sm:$0xf]  ;;  %v8625_v53 = vld [vmem:[%s13430_s23 + $0xc8] sm:$0xf0]  ;;  %v8764_v35 = vor.u32 %v10687_v31, %v8761_v34 }
 0x2ea   : > { %v10717_v50 = vld [vmem:[%s13430_s23 + $0xc4] sm:$0xf] }
 0x2eb   : > { %v2929_v55 = vmul.f32 %v12585_v41, %v2920_v54  ;;  %v8560_v54 = vor.u32 %v10702_v39, %v8559_v38  ;;  %v8628_v60 = vor.u32 %v10717_v50, %v8625_v53  ;;  %v10711_v38 = vld [vmem:[%s13430_s23 + $0x94] sm:$0xf]  ;;  %v8601_v39 = vld [vmem:[%s13430_s23 + $0x98] sm:$0xf0]  ;;  %v10710_v50 = vld [vmem:[%s13430_s23 + $0x84] sm:$0xf0] }
 0x2ec   : > { %v10693_v53 = vld [vmem:[%s13430_s23 + $0x4] sm:$0xf] }
 0x2ed   : > { %v2931_v56 = vpack.c.bf16 %v2929_v55, %v2929_v55  ;;  %v8624_v55 = vor.u32 %v10718_v45, %v8623_v40  ;;  %3435 = vmatpush.bf16.msra.mxu2 %v8560_v54  ;;  %3477 = vmatpush.bf16.msra.mxu1 %v8628_v60  ;;  %v8604_v40 = vor.u32 %v10711_v38, %v8601_v39  ;;  %v10694_v45 = vld [vmem:[%s13430_s23 + $0x4] sm:$0xf0]  ;;  %v8529_v54 = vld [vmem:[%s13430_s23 + $0x8] sm:$0xf0]  ;;  %v8751_v38 = vld [vmem:[%s13431_s11 + $0xc0] sm:$0xf] }
 0x2ee   : > { %v8596_v60 = vor.u32 %v10709_v57, %v8593_v58  ;;  %v8743_v57 = vld [vmem:[%s13431_s11 + $0xb0] sm:$0xf] }
 0x2ef   : > { %3081 = vmatmul.bf16.vlgmr.msrb.gmra.mxu1 %v2931_v56  ;;  %v8564_v56 = vor.u32 %v10701_v46, %v8561_v49  ;;  %3449 = vmatpush.bf16.msra.mxu3 %v8624_v55  ;;  %v8591_v46 = vld [vmem:[%s13430_s23 + $0x80] sm:$0xf]  ;;  %v8528_v49 = vor.u32 %v10694_v45, %v8527_v42  ;;  %v10669_v42 = vld [vmem:[%s13431_s11 + $0x44] sm:$0xf]  ;;  %v8689_v45 = vld [vmem:[%s13431_s11 + $0x48] sm:$0xf0]  ;;  %v8744_v62 = vor.u32 %v10684_v59, %v8743_v57 }
 0x2f0   : > { %v8592_v55 = vor.u32 %v10710_v50, %v8591_v46  ;;  %v10685_v50 = vld [vmem:[%s13431_s11 + $0xc4] sm:$0xf] }
 0x2f1   : > { %3463 = vmatpush.bf16.msra.mxu0 %v8564_v56  ;;  %3436 = vmatpush.bf16.msra.mxu2 %v8552_v2  ;;  %v8532_v56 = vor.u32 %v10693_v53, %v8529_v54  ;;  %v10675_v2 = vld [vmem:[%s13431_s11 + $0x74] sm:$0xf]  ;;  %v8753_v53 = vld [vmem:[%s13431_s11 + $0xc8] sm:$0xf0] }
 0x2f2   : > { %3478 = vmatpush.bf16.msra.mxu1 %v8620_v23  ;;  %v8756_v54 = vor.u32 %v10685_v50, %v8753_v53  ;;  %v8721_v50 = vld [vmem:[%s13431_s11 + $0x88] sm:$0xf0] }
 0x2f3   : > { %3450 = vmatpush.bf16.msra.mxu3 %v8616_v3  ;;  %v8713_v3 = vld [vmem:[%s13431_s11 + $0x78] sm:$0xf0] }
 0x2f4   : > { %v8716_v23 = vor.u32 %v10675_v2, %v8713_v3  ;;  %v8671_v3 = vld [vmem:[%s13431_s11 + $0x20] sm:$0xf] }
 0x2f5   : > { %3464 = vmatpush.bf16.msra.mxu0 %v8556_v22  ;;  %3437 = vmatpush.bf16.msra.mxu2 %v8544_v48  ;;  %v10691_v22 = vld [vmem:[%s13431_s11 + $0xf4] sm:$0xf]  ;;  %v10689_v48 = vld [vmem:[%s13431_s11 + $0xe4] sm:$0xf] }
 0x2f6   : > { %3479 = vmatpush.bf16.msra.mxu1 %v8612_v27  ;;  %v8772_v17 = vor.u32 %v10689_v48, %v8769_v11  ;;  %v10688_v27 = vld [vmem:[%s13431_s11 + $0xd4] sm:$0xf0]  ;;  %v8727_v11 = vld [vmem:[%s13431_s11 + $0x90] sm:$0xf] }
 0x2f7   : > { %3451 = vmatpush.bf16.msra.mxu3 %v8608_v44  ;;  %v8695_v44 = vld [vmem:[%s13431_s11 + $0x50] sm:$0xf]  ;;  %v8760_v30 = vor.u32 %v10688_v27, %v8759_v43  ;;  %v10664_v48 = vld [vmem:[%s13431_s11 + $0x14] sm:$0xf0] }
 0x2f9   : > { %3465 = vmatpush.bf16.msra.mxu0 %v8548_v18  ;;  %3438 = vmatpush.bf16.msra.mxu2 %v8536_v32  ;;  %v10672_v18 = vld [vmem:[%s13431_s11 + $0x54] sm:$0xf0]  ;;  %v8700_v32 = vor.u32 %v10671_v28, %v8697_v29  ;;  %v10679_v28 = vld [vmem:[%s13431_s11 + $0x94] sm:$0xf]  ;;  %v8729_v29 = vld [vmem:[%s13431_s11 + $0x98] sm:$0xf0] }
 0x2fa   : > { %3480 = vmatpush.bf16.msra.mxu1 %v8604_v40  ;;  %v8696_v24 = vor.u32 %v10672_v18, %v8695_v44  ;;  %v10686_v40 = vld [vmem:[%s13431_s11 + $0xc4] sm:$0xf0]  ;;  %v8665_v44 = vld [vmem:[%s13431_s11 + $0x18] sm:$0xf0]  ;;  %v8732_v34 = vor.u32 %v10679_v28, %v8729_v29  ;;  %v10756_v28 = vld [vmem:[%s13432_s6 + $0xf4] sm:$0xf0] }
 0x2fb   : > { %3452 = vmatpush.bf16.msra.mxu3 %v8600_v36  ;;  %v8687_v36 = vld [vmem:[%s13431_s11 + $0x40] sm:$0xf]  ;;  %v8752_v46 = vor.u32 %v10686_v40, %v8751_v38  ;;  %v10661_v40 = vld [vmem:[%s13431_s11 + $0x4] sm:$0xf]  ;;  %v10739_v29 = vld [vmem:[%s13432_s6 + $0x74] sm:$0xf] }
 0x2fd   : > { %3466 = vmatpush.bf16.msra.mxu0 %v8540_v37  ;;  %3439 = vmatpush.bf16.msra.mxu2 %v8528_v49  ;;  %v10670_v37 = vld [vmem:[%s13431_s11 + $0x44] sm:$0xf0]  ;;  %v8692_v49 = vor.u32 %v10669_v42, %v8689_v45  ;;  %v8657_v42 = vld [vmem:[%s13431_s11 + $0x8] sm:$0xf0] }
 0x2fe   : > { %3481 = vmatpush.bf16.msra.mxu1 %v8596_v60  ;;  %v8688_v39 = vor.u32 %v10670_v37, %v8687_v36  ;;  %v10667_v60 = vld [vmem:[%s13431_s11 + $0x34] sm:$0xf]  ;;  %v10662_v36 = vld [vmem:[%s13431_s11 + $0x4] sm:$0xf0]  ;;  %v8719_v37 = vld [vmem:[%s13431_s11 + $0x80] sm:$0xf] }
 0x2ff   : > { %3453 = vmatpush.bf16.msra.mxu3 %v8592_v55  ;;  %v8679_v55 = vld [vmem:[%s13431_s11 + $0x30] sm:$0xf]  ;;  %v8684_v63 = vor.u32 %v10667_v60, %v8681_v61 }
 0x301   : > { %3467 = vmatpush.bf16.msra.mxu0 %v8532_v56  ;;  %v10668_v56 = vld [vmem:[%s13431_s11 + $0x34] sm:$0xf0] }
 0x302   : > { %v8680_v58 = vor.u32 %v10668_v56, %v8679_v55 }
 0x305   : > { %3676 = vmatpush.bf16.msrb.mxu0 %v8716_v23  ;;  %v8735_v23 = vld [vmem:[%s13431_s11 + $0xa0] sm:$0xf] }
 0x309   : > { %3677 = vmatpush.bf16.msrb.mxu0 %v8708_v12  ;;  %v10680_v12 = vld [vmem:[%s13431_s11 + $0x94] sm:$0xf0] }
 0x30a   : > { %v8728_v27 = vor.u32 %v10680_v12, %v8727_v11 }
 0x30d   : > { %3678 = vmatpush.bf16.msrb.mxu0 %v8700_v32 }
 0x311   : > { %3679 = vmatpush.bf16.msrb.mxu0 %v8692_v49  ;;  %v10677_v49 = vld [vmem:[%s13431_s11 + $0x84] sm:$0xf] }
 0x312   : > { %v8724_v53 = vor.u32 %v10677_v49, %v8721_v50 }
 0x315   : > { %3680 = vmatpush.bf16.msrb.mxu0 %v8684_v63 }
 0x366   : > { %v3069_v4 = vpop.f32.mrf.mxu0 }
 0x36c   : > { %v3082_v51 = vpop.f32.mrf.mxu1 }
 0x36d   : > { %v3083_v52 = vadd.f32 %v3082_v51, %v3069_v4  ;;  %v8777_v4 = vld [vmem:[%s13431_s11 + $0xf8] sm:$0xf0]  ;;  %v8703_v51 = vld [vmem:[%s13431_s11 + $0x60] sm:$0xf] }
 0x36e   : > { %v3071_v5 = vpop.f32.mrf.mxu0 }
 0x36f   : > { %v3086_v47 = vmax.f32 %v3083_v52, 0.0  ;;  %v10674_v52 = vld [vmem:[%s13431_s11 + $0x64] sm:$0xf0]  ;;  %v8780_v5 = vor.u32 %v10691_v22, %v8777_v4 }
 0x370   : > { %v10666_v22 = vld [vmem:[%s13431_s11 + $0x24] sm:$0xf0] }
 0x371   : > { %v3087_v6 = vpack.c.bf16 %v3086_v47, %v3086_v47  ;;  %v8704_v47 = vor.u32 %v10674_v52, %v8703_v51  ;;  %3690 = vmatpush.bf16.msrb.mxu1 %v8780_v5  ;;  %v8672_v4 = vor.u32 %v10666_v22, %v8671_v3  ;;  %v10682_v51 = vld [vmem:[%s13431_s11 + $0xa4] sm:$0xf0]  ;;  %v10665_v52 = vld [vmem:[%s13431_s11 + $0x24] sm:$0xf]  ;;  %v8673_v5 = vld [vmem:[%s13431_s11 + $0x28] sm:$0xf0] }
 0x373   : > { %8521 = vmatmul.msk.bf16.vlgmr.msrb.gmra.mxu2 %vm3093_vm8, %v3087_v6  ;;  %8522 = vmatmul.msk.bf16.vlgmr.msrb.gmra.mxu3 %vm3093_vm8, %v3087_v6  ;;  %v8767_v6 = vld [vmem:[%s13431_s11 + $0xe0] sm:$0xf] }
 0x374   : > { %v3084_v7 = vpop.f32.mrf.mxu1  ;;  %3648 = vmatpush.bf16.msrb.mxu2 %v8712_v0  ;;  %3662 = vmatpush.bf16.msrb.mxu3 %v8776_v1  ;;  %v10683_v0 = vld [vmem:[%s13431_s11 + $0xb4] sm:$0xf]  ;;  %v8745_v1 = vld [vmem:[%s13431_s11 + $0xb8] sm:$0xf0] }
 0x375   : > { %v10690_v7 = vld [vmem:[%s13431_s11 + $0xe4] sm:$0xf0]  ;;  %3691 = vmatpush.bf16.msrb.mxu1 %v8772_v17  ;;  %v8748_v2 = vor.u32 %v10683_v0, %v8745_v1  ;;  %v10663_v17 = vld [vmem:[%s13431_s11 + $0x14] sm:$0xf] }
 0x376   : > { %v8768_v9 = vor.u32 %v10690_v7, %v8767_v6  ;;  %v8676_v6 = vor.u32 %v10665_v52, %v8673_v5  ;;  %v10681_v7 = vld [vmem:[%s13431_s11 + $0xa4] sm:$0xf]  ;;  %v8668_v31 = vor.u32 %v10663_v17, %v8665_v44  ;;  %v8855_v44 = vld [vmem:[%s13432_s6 + $0x70] sm:$0xf] }
 0x378   : > { %3649 = vmatpush.bf16.msrb.mxu2 %v8704_v47  ;;  %3663 = vmatpush.bf16.msrb.mxu3 %v8768_v9  ;;  %v8736_v47 = vor.u32 %v10682_v51, %v8735_v23  ;;  %v8740_v9 = vor.u32 %v10681_v7, %v8737_v8 }
 0x379   : > { %3692 = vmatpush.bf16.msrb.mxu1 %v8764_v35  ;;  %3681 = vmatpush.bf16.msrb.mxu0 %v8676_v6  ;;  %v8655_v35 = vld [vmem:[%s13431_s11] sm:$0xf] }
 0x37a   : > { %v8656_v38 = vor.u32 %v10662_v36, %v8655_v35  ;;  %v10738_v36 = vld [vmem:[%s13432_s6 + $0x64] sm:$0xf0] }
 0x37c   : > { %3650 = vmatpush.bf16.msrb.mxu2 %v8696_v24  ;;  %3664 = vmatpush.bf16.msrb.mxu3 %v8760_v30  ;;  %v8664_v24 = vor.u32 %v10664_v48, %v8663_v10 }
 0x37d   : > { %3693 = vmatpush.bf16.msrb.mxu1 %v8756_v54  ;;  %3682 = vmatpush.bf16.msrb.mxu0 %v8668_v31  ;;  %v8921_v31 = vld [vmem:[%s13432_s6 + $0xf8] sm:$0xf0] }
 0x380   : > { %3651 = vmatpush.bf16.msrb.mxu2 %v8688_v39  ;;  %3665 = vmatpush.bf16.msrb.mxu3 %v8752_v46  ;;  %v10678_v39 = vld [vmem:[%s13431_s11 + $0x84] sm:$0xf0]  ;;  %v8660_v46 = vor.u32 %v10661_v40, %v8657_v42  ;;  %v10737_v42 = vld [vmem:[%s13432_s6 + $0x64] sm:$0xf] }
 0x381   : > { %3694 = vmatpush.bf16.msrb.mxu1 %v8748_v2  ;;  %v8720_v45 = vor.u32 %v10678_v39, %v8719_v37  ;;  %v10754_v40 = vld [vmem:[%s13432_s6 + $0xe4] sm:$0xf0] }
 0x382   : > { %3683 = vmatpush.bf16.msrb.mxu0 %v8660_v46  ;;  %v8913_v46 = vld [vmem:[%s13432_s6 + $0xe8] sm:$0xf0] }
 0x384   : > { %3652 = vmatpush.bf16.msrb.mxu2 %v8680_v58  ;;  %3666 = vmatpush.bf16.msrb.mxu3 %v8744_v62 }
 0x385   : > { %3695 = vmatpush.bf16.msrb.mxu1 %v8740_v9 }
 0x388   : > { %3653 = vmatpush.bf16.msrb.mxu2 %v8672_v4  ;;  %3667 = vmatpush.bf16.msrb.mxu3 %v8736_v47 }
 0x389   : > { %3696 = vmatpush.bf16.msrb.mxu1 %v8732_v34 }
 0x38c   : > { %3654 = vmatpush.bf16.msrb.mxu2 %v8664_v24  ;;  %3668 = vmatpush.bf16.msrb.mxu3 %v8728_v27  ;;  %v8919_v27 = vld [vmem:[%s13432_s6 + $0xf0] sm:$0xf] }
 0x38d   : > { %3697 = vmatpush.bf16.msrb.mxu1 %v8724_v53  ;;  %v8920_v35 = vor.u32 %v10756_v28, %v8919_v27  ;;  %v8839_v53 = vld [vmem:[%s13432_s6 + $0x50] sm:$0xf]  ;;  %v10731_v27 = vld [vmem:[%s13432_s6 + $0x34] sm:$0xf] }
 0x390   : > { %3655 = vmatpush.bf16.msrb.mxu2 %v8656_v38  ;;  %3669 = vmatpush.bf16.msrb.mxu3 %v8720_v45  ;;  %v10753_v45 = vld [vmem:[%s13432_s6 + $0xe4] sm:$0xf] }
 0x3f6   : > { %v3111_v18 = vpop.f32.mrf.mxu2  ;;  %v3124_v43 = vpop.f32.mrf.mxu3 }
 0x3f7   : > { %v8523_v30 = vmul.f32 -1.442695, %v3111_v18  ;;  %v8524_v32 = vmul.f32 -1.442695, %v3124_v43  ;;  %v10740_v18 = vld [vmem:[%s13432_s6 + $0x74] sm:$0xf0] }
 0x3f8   : > { %v8856_v34 = vor.u32 %v10740_v18, %v8855_v44 }
 0x3f9   : > { %11249 = vpow2.f32 %v8523_v30 }
 0x3fa   : > { %11251 = vpow2.f32 %v8524_v32  ;;  %v10755_v32 = vld [vmem:[%s13432_s6 + $0xf4] sm:$0xf] }
 0x3fb   : > { %v8924_v39 = vor.u32 %v10755_v32, %v8921_v31  ;;  %v8889_v32 = vld [vmem:[%s13432_s6 + $0xb8] sm:$0xf0] }
 0x3fe   : > { %v3113_v54 = vpop.f32.mrf.mxu2  ;;  %v3126_v55 = vpop.f32.mrf.mxu3 }
 0x3ff   : > { %v11250_v56 = vpop.eup %11249  ;;  %v10736_v54 = vld [vmem:[%s13432_s6 + $0x54] sm:$0xf0] }
 0x400   : > { %v11252_v57 = vpop.eup %11251  ;;  %v3134_v58 = vadd.f32 1.0, %v11250_v56  ;;  %v8916_v56 = vor.u32 %v10753_v45, %v8913_v46  ;;  %v8881_v45 = vld [vmem:[%s13432_s6 + $0xa8] sm:$0xf0] }
 0x401   : > { %v3135_v59 = vadd.f32 1.0, %v11252_v57  ;;  %v8903_v57 = vld [vmem:[%s13432_s6 + $0xd0] sm:$0xf] }
 0x402   : > { %11253 = vrcp.f32 %v3134_v58  ;;  %v3147_v1 = vand.u32 2147483648, %v3134_v58  ;;  %v3145_v22 = vand.u32 2147483647, %v3134_v58  ;;  %vm3141_vm11 = vweird.f32 %v3134_v58 }
 0x403   : > { %11255 = vrcp.f32 %v3135_v59  ;;  %v3162_v23 = vand.u32 2147483648, %v3135_v59  ;;  %v3160_v51 = vand.u32 2147483647, %v3135_v59  ;;  %vm3156_vm13 = vweird.f32 %v3135_v59 }
 0x404   : > { %v3148_v5 = vor.u32 1.1754944e-38, %v3147_v1  ;;  %vm3146_vm14 = vcmp.eq.f32.partialorder %v3145_v22, 8.507059e+37  ;;  %v10750_v22 = vld [vmem:[%s13432_s6 + $0xc4] sm:$0xf0] }
 0x405   : > { %v3163_v7 = vor.u32 1.1754944e-38, %v3162_v23  ;;  %vm3161_vm1 = vcmp.eq.f32.partialorder %v3160_v51, 8.507059e+37  ;;  %v10733_v51 = vld [vmem:[%s13432_s6 + $0x44] sm:$0xf] }
 0x408   : > { %v11254_v60 = vpop.eup %11253 }
 0x409   : > { %v11256_v61 = vpop.eup %11255  ;;  %v3137_v62 = vmul.f32 %v11254_v60, %v3134_v58  ;;  %vm3142_vm9 = vweird.f32 %v11254_v60  ;;  %v10752_v58 = vld [vmem:[%s13432_s6 + $0xd4] sm:$0xf0] }
 0x40a   : > { %v3152_v63 = vmul.f32 %v11256_v61, %v3135_v59  ;;  %vm3157_vm10 = vweird.f32 %v11256_v61  ;;  %vm3143_vm12 = vmor %vm3141_vm11, %vm3142_vm9  ;;  %v10735_v59 = vld [vmem:[%s13432_s6 + $0x54] sm:$0xf]  ;;  %v8904_v1 = vor.u32 %v10752_v58, %v8903_v57  ;;  %v10744_v57 = vld [vmem:[%s13432_s6 + $0x94] sm:$0xf0] }
 0x40b   : > { %v3138_v0 = vsub.f32 1.0, %v3137_v62  ;;  %vm3158_vm15 = vmor %vm3156_vm13, %vm3157_vm10  ;;  %v8905_v62 = vld [vmem:[%s13432_s6 + $0xd8] sm:$0xf0]  ;;  %v10727_v58 = vld [vmem:[%s13432_s6 + $0x14] sm:$0xf]  ;;  %vm5177_vm13 = vcmask 130048  }
 0x40c   : > { %v3153_v2 = vsub.f32 1.0, %v3152_v63  ;;  %v8831_v63 = vld [vmem:[%s13432_s6 + $0x40] sm:$0xf] }
 0x40d   : > { %v3139_v3 = vmul.f32 %v11254_v60, %v3138_v0  ;;  %v8840_v0 = vor.u32 %v10736_v54, %v8839_v53  ;;  %v10728_v53 = vld [vmem:[%s13432_s6 + $0x14] sm:$0xf0] }
 0x40e   : > { %v3154_v4 = vmul.f32 %v11256_v61, %v3153_v2  ;;  %v10734_v2 = vld [vmem:[%s13432_s6 + $0x44] sm:$0xf0] }
 0x40f   : > { %v3140_v52 = vadd.f32 %v11254_v60, %v3139_v3  ;;  %v8895_v3 = vld [vmem:[%s13432_s6 + $0xc0] sm:$0xf] }
 0x410   : > { %v3155_v47 = vadd.f32 %v11256_v61, %v3154_v4 }
 0x411   : > { %v3144_v6 = vsel %vm3143_vm12, %v11254_v60, %v3140_v52  ;;  %v8841_v60 = vld [vmem:[%s13432_s6 + $0x58] sm:$0xf0]  ;;  %v8833_v52 = vld [vmem:[%s13432_s6 + $0x48] sm:$0xf0] }
 0x412   : > { %v3149_v8 = vsel %vm3146_vm14, %v3148_v5, %v3144_v6  ;;  %v3159_v9 = vsel %vm3158_vm15, %v11256_v61, %v3155_v47  ;;  %v10751_v61 = vld [vmem:[%s13432_s6 + $0xd4] sm:$0xf]  ;;  %v8844_v23 = vor.u32 %v10735_v59, %v8841_v60  ;;  %v10749_v6 = vld [vmem:[%s13432_s6 + $0xc4] sm:$0xf]  ;;  %v8809_v59 = vld [vmem:[%s13432_s6 + $0x18] sm:$0xf0] }
 0x413   : > { %v3166_v10 = vperm.slane %v3149_v8, 0  ;;  %v3164_v48 = vsel %vm3161_vm1, %v3163_v7, %v3159_v9  ;;  %v8908_v4 = vor.u32 %v10751_v61, %v8905_v62  ;;  %v8897_v7 = vld [vmem:[%s13432_s6 + $0xc8] sm:$0xf0]  ;;  %v10743_v60 = vld [vmem:[%s13432_s6 + $0x94] sm:$0xf] }
 0x414   : > { %v3167_v11 = vperm.slane %v3164_v48, 0  ;;  %v8896_v48 = vor.u32 %v10750_v22, %v8895_v3  ;;  %v8900_v44 = vor.u32 %v10749_v6, %v8897_v7  ;;  %v8873_v61 = vld [vmem:[%s13432_s6 + $0x98] sm:$0xf0]  ;;  %v8799_v62 = vld [vmem:[%s13432_s6] sm:$0xf] }
 0x415   : > { %v3168_v12 = vmul.f32 %v3166_v10, %v12573_v16  ;;  %v3170_v17 = vmul.f32 %v3166_v10, %v12575_v13  ;;  %v8857_v13 = vld [vmem:[%s13432_s6 + $0x78] sm:$0xf0]  ;;  %v8832_v10 = vor.u32 %v10734_v2, %v8831_v63  ;;  %v10726_v63 = vld [vmem:[%s13432_s6 + $0x4] sm:$0xf0]  ;;  %v8863_v2 = vld [vmem:[%s13432_s6 + $0x80] sm:$0xf] }
 0x416   : > { %v3169_v43 = vmul.f32 %v3167_v11, %v12579_v25  ;;  %v3171_v24 = vmul.f32 %v3167_v11, %v12581_v33  ;;  %v8860_v38 = vor.u32 %v10739_v29, %v8857_v13  ;;  %v8823_v11 = vld [vmem:[%s13432_s6 + $0x30] sm:$0xf]  ;;  %v8825_v29 = vld [vmem:[%s13432_s6 + $0x38] sm:$0xf0]  ;;  %v10747_v13 = vld [vmem:[%s13432_s6 + $0xb4] sm:$0xf] }
 0x417   : > { %v12733_v30 = vadd.f32 %v3168_v12, %v12191_v19  ;;  %v12736_v16 = vadd.f32 %v3170_v17, %v12184_v14  ;;  %v8847_v14 = vld [vmem:[%s13432_s6 + $0x60] sm:$0xf]  ;;  %v10732_v12 = vld [vmem:[%s13432_s6 + $0x34] sm:$0xf0]  ;;  %v8836_v17 = vor.u32 %v10733_v51, %v8833_v52  ;;  %v10742_v3 = vld [vmem:[%s13432_s6 + $0x84] sm:$0xf0] }
 0x418   : > { %v12742_v25 = vadd.f32 %v3169_v43, %v12193_v20  ;;  %v12745_v33 = vadd.f32 %v3171_v24, %v12186_v15  ;;  %v8911_v20 = vld [vmem:[%s13432_s6 + $0xe0] sm:$0xf]  ;;  %v8849_v15 = vld [vmem:[%s13432_s6 + $0x68] sm:$0xf0]  ;;  %v8848_v49 = vor.u32 %v10738_v36, %v8847_v14  ;;  %v8887_v43 = vld [vmem:[%s13432_s6 + $0xb0] sm:$0xf] }
 0x419   : > { %v3238_v19 = vpack.c.bf16 %v12736_v16, %v12733_v30  ;;  %v8912_v50 = vor.u32 %v10754_v40, %v8911_v20  ;;  %v8852_v55 = vor.u32 %v10737_v42, %v8849_v15  ;;  %v3180_v5 = vrot.slane %v12733_v30, 7  ;;  %v10748_v24 = vld [vmem:[%s13432_s6 + $0xb4] sm:$0xf0]  ;;  %v10730_v14 = vld [vmem:[%s13432_s6 + $0x24] sm:$0xf0] }
 0x41a   : > { %v3239_v37 = vpack.c.bf16 %v12745_v33, %v12742_v25  ;;  %v3182_v47 = vrot.slane %v12736_v16, 7  ;;  %v3181_v8 = vrot.slane %v12742_v25, 7  ;;  %v3184_v9 = vrot.slane %v12745_v33, 7  ;;  %v10746_v20 = vld [vmem:[%s13432_s6 + $0xa4] sm:$0xf0] }
 0x41b   : > { %3440 = vmatmul.bf16.vlgmr.msra.gmra.mxu2 %v3238_v19  ;;  %3468 = vmatmul.bf16.vlgmr.msra.gmra.mxu0 %v3238_v19  ;;  %v8824_v19 = vor.u32 %v10732_v12, %v8823_v11  ;;  %v10729_v40 = vld [vmem:[%s13432_s6 + $0x24] sm:$0xf]  ;;  %v8817_v42 = vld [vmem:[%s13432_s6 + $0x28] sm:$0xf0]  ;;  %v3195_v7 = vrot.slane %v12742_v25, 1  ;;  %v8800_v12 = vor.u32 %v10726_v63, %v8799_v62 }
 0x41c   : > { %3454 = vmatmul.bf16.vlgmr.msra.gmra.mxu3 %v3239_v37  ;;  %3482 = vmatmul.bf16.vlgmr.msra.gmra.mxu1 %v3239_v37  ;;  %v3183_v18 = vsel %vm1341_vm0, %v3180_v5, %v3182_v47  ;;  %v3185_v28 = vsel %vm1341_vm0, %v3181_v8, %v3184_v9  ;;  %v8828_v37 = vor.u32 %v10731_v27, %v8825_v29  ;;  %v10745_v15 = vld [vmem:[%s13432_s6 + $0xa4] sm:$0xf]  ;;  %v8801_v51 = vld [vmem:[%s13432_s6 + $0x8] sm:$0xf0]  ;;  %v3193_v47 = vrot.slane %v12736_v16, 1 }
 0x41d   : > { %3898 = vmatpush.bf16.msra.mxu2 %v8856_v34  ;;  %3912 = vmatpush.bf16.msra.mxu3 %v8920_v35  ;;  %v8783_v31 = vpack.c.bf16 %v3183_v18, %v3180_v5  ;;  %v8888_v34 = vor.u32 %v10748_v24, %v8887_v43  ;;  %v8815_v35 = vld [vmem:[%s13432_s6 + $0x20] sm:$0xf]  ;;  %v8787_v36 = vpack.c.bf16 %v3185_v28, %v3181_v8  ;;  %v10725_v22 = vld [vmem:[%s13432_s6 + $0x4] sm:$0xf]  ;;  %v3192_v5 = vrot.slane %v12733_v30, 1 }
 0x41e   : > { %3926 = vmatpush.bf16.msra.mxu0 %v8860_v38  ;;  %3940 = vmatpush.bf16.msra.mxu1 %v8924_v39  ;;  %v8892_v38 = vor.u32 %v10747_v13, %v8889_v32  ;;  %v8879_v39 = vld [vmem:[%s13432_s6 + $0xa0] sm:$0xf]  ;;  %v8816_v46 = vor.u32 %v10730_v14, %v8815_v35  ;;  %v8820_v54 = vor.u32 %v10729_v40, %v8817_v42  ;;  %v10741_v52 = vld [vmem:[%s13432_s6 + $0x84] sm:$0xf]  ;;  %v8865_v6 = vld [vmem:[%s13432_s6 + $0x88] sm:$0xf0] }
 0x41f   : > { %v3196_v8 = vrot.slane %v12745_v33, 1  ;;  %v9059_v9 = vld [vmem:[#allocation4 + $0xf0] sm:$0xf]  ;;  %v9061_v11 = vld [vmem:[#allocation4 + $0xf8] sm:$0xf0]  ;;  %v8868_v18 = vor.u32 %v10741_v52, %v8865_v6  ;;  %v3194_v43 = vsel %vm1354_vm4, %v3192_v5, %v3193_v47 }
 0x420   : > { %v9051_v24 = vld [vmem:[#allocation4 + $0xe0] sm:$0xf]  ;;  %v8995_v27 = vld [vmem:[#allocation4 + $0x70] sm:$0xf]  ;;  %v10804_v32 = vld [vmem:[#allocation4 + $0x74] sm:$0xf0] }
 0x421   : > { %3899 = vmatpush.bf16.msra.mxu2 %v8848_v49  ;;  %3913 = vmatpush.bf16.msra.mxu3 %v8912_v50  ;;  %v8880_v49 = vor.u32 %v10746_v20, %v8879_v39  ;;  %v8807_v50 = vld [vmem:[%s13432_s6 + $0x10] sm:$0xf]  ;;  %v3197_v28 = vsel %vm1354_vm4, %v3195_v7, %v3196_v8  ;;  %v10817_v35 = vld [vmem:[#allocation4 + $0xe4] sm:$0xf]  ;;  %v9053_v14 = vld [vmem:[#allocation4 + $0xe8] sm:$0xf0] }
 0x422   : > { %3927 = vmatpush.bf16.msra.mxu0 %v8852_v55  ;;  %3941 = vmatpush.bf16.msra.mxu1 %v8916_v56  ;;  %v8884_v55 = vor.u32 %v10745_v15, %v8881_v45  ;;  %v8871_v56 = vld [vmem:[%s13432_s6 + $0x90] sm:$0xf]  ;;  %v9056_v40 = vor.u32 %v10817_v35, %v9053_v14  ;;  %v9043_v42 = vld [vmem:[#allocation4 + $0xd0] sm:$0xf]  ;;  %v10816_v15 = vld [vmem:[#allocation4 + $0xd4] sm:$0xf0] }
 0x423   : > { %v10815_v45 = vld [vmem:[#allocation4 + $0xd4] sm:$0xf]  ;;  %v10813_v62 = vld [vmem:[#allocation4 + $0xc4] sm:$0xf]  ;;  %v9037_v63 = vld [vmem:[#allocation4 + $0xc8] sm:$0xf0] }
 0x424   : > { %v10812_v52 = vld [vmem:[#allocation4 + $0xb4] sm:$0xf0]  ;;  %v10811_v5 = vld [vmem:[#allocation4 + $0xb4] sm:$0xf]  ;;  %v9029_v6 = vld [vmem:[#allocation4 + $0xb8] sm:$0xf0] }
 0x425   : > { %3900 = vmatpush.bf16.msra.mxu2 %v8840_v0  ;;  %3914 = vmatpush.bf16.msra.mxu3 %v8904_v1  ;;  %v8808_v0 = vor.u32 %v10728_v53, %v8807_v50  ;;  %v8872_v1 = vor.u32 %v10744_v57, %v8871_v56  ;;  %v8987_v53 = vld [vmem:[#allocation4 + $0x60] sm:$0xf]  ;;  %v8989_v57 = vld [vmem:[#allocation4 + $0x68] sm:$0xf0]  ;;  %v9032_v7 = vor.u32 %v10811_v5, %v9029_v6  ;;  %v10808_v35 = vld [vmem:[#allocation4 + $0x94] sm:$0xf0] }
 0x426   : > { %3928 = vmatpush.bf16.msra.mxu0 %v8844_v23  ;;  %3942 = vmatpush.bf16.msra.mxu1 %v8908_v4  ;;  %v8812_v23 = vor.u32 %v10727_v58, %v8809_v59  ;;  %v8876_v4 = vor.u32 %v10743_v60, %v8873_v61  ;;  %v9035_v58 = vld [vmem:[#allocation4 + $0xc0] sm:$0xf]  ;;  %v10814_v59 = vld [vmem:[#allocation4 + $0xc4] sm:$0xf0]  ;;  %v10807_v14 = vld [vmem:[#allocation4 + $0x94] sm:$0xf] }
 0x427   : > { %v9036_v61 = vor.u32 %v10814_v59, %v9035_v58  ;;  %v10787_v58 = vld [vmem:[#allocation2 + $0xf4] sm:$0xf]  ;;  %v9189_v59 = vld [vmem:[#allocation2 + $0xf8] sm:$0xf0]  ;;  %v8939_v5 = vld [vmem:[#allocation4] sm:$0xf] }
 0x429   : > { %3901 = vmatpush.bf16.msra.mxu2 %v8832_v10  ;;  %3915 = vmatpush.bf16.msra.mxu3 %v8896_v48  ;;  %v10820_v10 = vld [vmem:[#allocation4 + $0xf4] sm:$0xf0]  ;;  %v10819_v48 = vld [vmem:[#allocation4 + $0xf4] sm:$0xf] }
 0x42a   : > { %3929 = vmatpush.bf16.msra.mxu0 %v8836_v17  ;;  %3943 = vmatpush.bf16.msra.mxu1 %v8900_v44  ;;  %v8864_v17 = vor.u32 %v10742_v3, %v8863_v2  ;;  %v8804_v44 = vor.u32 %v10725_v22, %v8801_v51  ;;  %v9060_v29 = vor.u32 %v10820_v10, %v9059_v9  ;;  %v10800_v2 = vld [vmem:[#allocation4 + $0x54] sm:$0xf0]  ;;  %v10799_v3 = vld [vmem:[#allocation4 + $0x54] sm:$0xf]  ;;  %v9027_v51 = vld [vmem:[#allocation4 + $0xb0] sm:$0xf] }
 0x42b   : > { %8784 = vmatmul.msk.bf16.vlgmr.msrb.gmra.mxu2 %vm12248_vm3, %v8783_v31  ;;  %8792 = vmatmul.msk.bf16.vlgmr.msrb.gmra.mxu0 %vm12248_vm3, %v8783_v31  ;;  %v9064_v13 = vor.u32 %v10819_v48, %v9061_v11  ;;  %v10803_v31 = vld [vmem:[#allocation4 + $0x74] sm:$0xf]  ;;  %v10798_v9 = vld [vmem:[#allocation4 + $0x44] sm:$0xf0]  ;;  %v10797_v10 = vld [vmem:[#allocation4 + $0x44] sm:$0xf] }
 0x42c   : > { %8788 = vmatmul.msk.bf16.vlgmr.msrb.gmra.mxu3 %vm12248_vm3, %v8787_v36  ;;  %8796 = vmatmul.msk.bf16.vlgmr.msrb.gmra.mxu1 %vm12248_vm3, %v8787_v36  ;;  %v8926_v36 = vpack.c.bf16 %v3193_v47, %v3194_v43  ;;  %v9028_v47 = vor.u32 %v10812_v52, %v9027_v51  ;;  %v8973_v11 = vld [vmem:[#allocation4 + $0x48] sm:$0xf0]  ;;  %v10809_v43 = vld [vmem:[#allocation4 + $0xa4] sm:$0xf] }
 0x42d   : > { %3902 = vmatpush.bf16.msra.mxu2 %v8824_v19  ;;  %3916 = vmatpush.bf16.msra.mxu3 %v8888_v34  ;;  %v8997_v19 = vld [vmem:[#allocation4 + $0x78] sm:$0xf0]  ;;  %v10818_v34 = vld [vmem:[#allocation4 + $0xe4] sm:$0xf0]  ;;  %v9181_v52 = vld [vmem:[#allocation2 + $0xe8] sm:$0xf0] }
 0x42e   : > { %3930 = vmatpush.bf16.msra.mxu0 %v8828_v37  ;;  %3944 = vmatpush.bf16.msra.mxu1 %v8892_v38  ;;  %v8929_v37 = vpack.c.bf16 %v3196_v8, %v3197_v28  ;;  %v8996_v38 = vor.u32 %v10804_v32, %v8995_v27  ;;  %v9000_v39 = vor.u32 %v10803_v31, %v8997_v19  ;;  %v8971_v8 = vld [vmem:[#allocation4 + $0x40] sm:$0xf]  ;;  %v8963_v28 = vld [vmem:[#allocation4 + $0x30] sm:$0xf]  ;;  %v8965_v31 = vld [vmem:[#allocation4 + $0x38] sm:$0xf0] }
 0x42f   : > { %v9052_v20 = vor.u32 %v10818_v34, %v9051_v24  ;;  %v8972_v48 = vor.u32 %v10798_v9, %v8971_v8  ;;  %v9021_v24 = vld [vmem:[#allocation4 + $0xa8] sm:$0xf0]  ;;  %v9011_v34 = vld [vmem:[#allocation4 + $0x90] sm:$0xf]  ;;  %v10789_v8 = vld [vmem:[#allocation4 + $0x4] sm:$0xf] }
 0x430   : > { %v9024_v27 = vor.u32 %v10809_v43, %v9021_v24  ;;  %v8941_v9 = vld [vmem:[#allocation4 + $0x8] sm:$0xf0]  ;;  %v9171_v43 = vld [vmem:[#allocation2 + $0xd0] sm:$0xf]  ;;  %v10784_v24 = vld [vmem:[#allocation2 + $0xd4] sm:$0xf0] }
 0x431   : > { %3903 = vmatpush.bf16.msra.mxu2 %v8816_v46  ;;  %3917 = vmatpush.bf16.msra.mxu3 %v8880_v49  ;;  %v9044_v46 = vor.u32 %v10816_v15, %v9043_v42  ;;  %v9045_v49 = vld [vmem:[#allocation4 + $0xd8] sm:$0xf0]  ;;  %v8957_v15 = vld [vmem:[#allocation4 + $0x28] sm:$0xf0] }
 0x432   : > { %3931 = vmatpush.bf16.msra.mxu0 %v8820_v54  ;;  %3945 = vmatpush.bf16.msra.mxu1 %v8884_v55  ;;  %v9048_v50 = vor.u32 %v10815_v45, %v9045_v49  ;;  %v10802_v54 = vld [vmem:[#allocation4 + $0x64] sm:$0xf0]  ;;  %v10801_v55 = vld [vmem:[#allocation4 + $0x64] sm:$0xf]  ;;  %v9003_v45 = vld [vmem:[#allocation4 + $0x80] sm:$0xf] }
 0x433   : > { %v8988_v56 = vor.u32 %v10802_v54, %v8987_v53  ;;  %v8992_v60 = vor.u32 %v10801_v55, %v8989_v57  ;;  %v10805_v53 = vld [vmem:[#allocation4 + $0x84] sm:$0xf]  ;;  %v9005_v54 = vld [vmem:[#allocation4 + $0x88] sm:$0xf0]  ;;  %v9187_v55 = vld [vmem:[#allocation2 + $0xf0] sm:$0xf] }
 0x434   : > { %v10788_v57 = vld [vmem:[#allocation2 + $0xf4] sm:$0xf0] }
 0x435   : > { %3904 = vmatpush.bf16.msra.mxu2 %v8808_v0  ;;  %3918 = vmatpush.bf16.msra.mxu3 %v8872_v1  ;;  %v9040_v0 = vor.u32 %v10813_v62, %v9037_v63  ;;  %v8979_v1 = vld [vmem:[#allocation4 + $0x50] sm:$0xf]  ;;  %v10792_v63 = vld [vmem:[#allocation4 + $0x14] sm:$0xf0] }
 0x436   : > { %3932 = vmatpush.bf16.msra.mxu0 %v8812_v23  ;;  %3946 = vmatpush.bf16.msra.mxu1 %v8876_v4  ;;  %v8980_v22 = vor.u32 %v10800_v2, %v8979_v1  ;;  %v8981_v23 = vld [vmem:[#allocation4 + $0x58] sm:$0xf0]  ;;  %v8947_v62 = vld [vmem:[#allocation4 + $0x10] sm:$0xf] }
 0x437   : > { %v8984_v4 = vor.u32 %v10799_v3, %v8981_v23  ;;  %v8948_v1 = vor.u32 %v10792_v63, %v8947_v62  ;;  %v8949_v2 = vld [vmem:[#allocation4 + $0x18] sm:$0xf0]  ;;  %v10786_v23 = vld [vmem:[#allocation2 + $0xe4] sm:$0xf0]  ;;  %v9099_v63 = vld [vmem:[#allocation2 + $0x40] sm:$0xf] }
 0x439   : > { %3905 = vmatpush.bf16.msra.mxu2 %v8800_v12  ;;  %3919 = vmatpush.bf16.msra.mxu3 %v8864_v17  ;;  %v9019_v12 = vld [vmem:[#allocation4 + $0xa0] sm:$0xf]  ;;  %v10810_v17 = vld [vmem:[#allocation4 + $0xa4] sm:$0xf0] }
 0x43a   : > { %3933 = vmatpush.bf16.msra.mxu0 %v8804_v44  ;;  %3947 = vmatpush.bf16.msra.mxu1 %v8868_v18  ;;  %v8976_v44 = vor.u32 %v10797_v10, %v8973_v11  ;;  %v9020_v18 = vor.u32 %v10810_v17, %v9019_v12  ;;  %v9123_v10 = vld [vmem:[#allocation2 + $0x70] sm:$0xf]  ;;  %v10772_v11 = vld [vmem:[#allocation2 + $0x74] sm:$0xf0]  ;;  %v10771_v12 = vld [vmem:[#allocation2 + $0x74] sm:$0xf] }
 0x43b   : > { %v9125_v17 = vld [vmem:[#allocation2 + $0x78] sm:$0xf0] }
 0x43c   : > { %8927 = vmatmul.msk.bf16.vlgmr.msra.gmra.mxu2 %vm12304_vm5, %v8926_v36  ;;  %8930 = vmatmul.msk.bf16.vlgmr.msra.gmra.mxu3 %vm12304_vm5, %v8929_v37 }
 0x43d   : > { %4232 = vmatpush.bf16.msrb.mxu3 %v9060_v29  ;;  %8933 = vmatmul.msk.bf16.vlgmr.msra.gmra.mxu0 %vm12304_vm5, %v8926_v36  ;;  %v10796_v29 = vld [vmem:[#allocation4 + $0x34] sm:$0xf0]  ;;  %v9012_v36 = vor.u32 %v10808_v35, %v9011_v34 }
 0x43e   : > { %4260 = vmatpush.bf16.msrb.mxu1 %v9064_v13  ;;  %4218 = vmatpush.bf16.msrb.mxu2 %v8996_v38  ;;  %v10795_v13 = vld [vmem:[#allocation4 + $0x34] sm:$0xf]  ;;  %v8964_v32 = vor.u32 %v10796_v29, %v8963_v28  ;;  %v9172_v28 = vor.u32 %v10784_v24, %v9171_v43  ;;  %v9173_v29 = vld [vmem:[#allocation2 + $0xd8] sm:$0xf0] }
 0x43f   : > { %8936 = vmatmul.msk.bf16.vlgmr.msra.gmra.mxu1 %vm12304_vm5, %v8929_v37  ;;  %4246 = vmatpush.bf16.msrb.mxu0 %v9000_v39  ;;  %v8968_v19 = vor.u32 %v10795_v13, %v8965_v31  ;;  %v9013_v37 = vld [vmem:[#allocation4 + $0x98] sm:$0xf0]  ;;  %v8955_v39 = vld [vmem:[#allocation4 + $0x20] sm:$0xf]  ;;  %v10770_v31 = vld [vmem:[#allocation2 + $0x64] sm:$0xf0] }
 0x440   : > { %v9016_v38 = vor.u32 %v10807_v14, %v9013_v37  ;;  %v9117_v14 = vld [vmem:[#allocation2 + $0x68] sm:$0xf0] }
 0x441   : > { %4233 = vmatpush.bf16.msrb.mxu3 %v9052_v20  ;;  %v10794_v20 = vld [vmem:[#allocation4 + $0x24] sm:$0xf0] }
 0x442   : > { %4261 = vmatpush.bf16.msrb.mxu1 %v9056_v40  ;;  %4219 = vmatpush.bf16.msrb.mxu2 %v8988_v56  ;;  %v10793_v40 = vld [vmem:[#allocation4 + $0x24] sm:$0xf]  ;;  %v8956_v42 = vor.u32 %v10794_v20, %v8955_v39  ;;  %v9008_v56 = vor.u32 %v10805_v53, %v9005_v54  ;;  %v10782_v39 = vld [vmem:[#allocation2 + $0xc4] sm:$0xf0]  ;;  %v9109_v53 = vld [vmem:[#allocation2 + $0x58] sm:$0xf0] }
 0x443   : > { %4247 = vmatpush.bf16.msrb.mxu0 %v8992_v60  ;;  %v8960_v49 = vor.u32 %v10793_v40, %v8957_v15  ;;  %v9188_v60 = vor.u32 %v10788_v57, %v9187_v55  ;;  %v10781_v20 = vld [vmem:[#allocation2 + $0xc4] sm:$0xf]  ;;  %v9155_v55 = vld [vmem:[#allocation2 + $0xb0] sm:$0xf]  ;;  %v10779_v57 = vld [vmem:[#allocation2 + $0xb4] sm:$0xf] }
 0x445   : > { %4234 = vmatpush.bf16.msrb.mxu3 %v9044_v46  ;;  %v10806_v46 = vld [vmem:[#allocation4 + $0x84] sm:$0xf0] }
 0x446   : > { %4262 = vmatpush.bf16.msrb.mxu1 %v9048_v50  ;;  %4220 = vmatpush.bf16.msrb.mxu2 %v8980_v22  ;;  %v9004_v50 = vor.u32 %v10806_v46, %v9003_v45  ;;  %v9179_v22 = vld [vmem:[#allocation2 + $0xe0] sm:$0xf]  ;;  %v9107_v45 = vld [vmem:[#allocation2 + $0x50] sm:$0xf]  ;;  %v10768_v46 = vld [vmem:[#allocation2 + $0x54] sm:$0xf0] }
 0x447   : > { %4248 = vmatpush.bf16.msrb.mxu0 %v8984_v4  ;;  %v10785_v4 = vld [vmem:[#allocation2 + $0xe4] sm:$0xf]  ;;  %v9180_v51 = vor.u32 %v10786_v23, %v9179_v22  ;;  %v9101_v22 = vld [vmem:[#allocation2 + $0x48] sm:$0xf0] }
 0x448   : > { %v9184_v6 = vor.u32 %v10785_v4, %v9181_v52  ;;  %v10778_v52 = vld [vmem:[#allocation2 + $0xa4] sm:$0xf0] }
 0x449   : > { %4235 = vmatpush.bf16.msrb.mxu3 %v9036_v61  ;;  %v9192_v61 = vor.u32 %v10787_v58, %v9189_v59 }
 0x44a   : > { %4263 = vmatpush.bf16.msrb.mxu1 %v9040_v0  ;;  %4221 = vmatpush.bf16.msrb.mxu2 %v8972_v48  ;;  %v10791_v0 = vld [vmem:[#allocation4 + $0x14] sm:$0xf]  ;;  %v8944_v48 = vor.u32 %v10789_v8, %v8941_v9  ;;  %v9091_v8 = vld [vmem:[#allocation2 + $0x30] sm:$0xf]  ;;  %v10764_v9 = vld [vmem:[#allocation2 + $0x34] sm:$0xf0] }
 0x44b   : > { %4249 = vmatpush.bf16.msrb.mxu0 %v8976_v44  ;;  %v8952_v3 = vor.u32 %v10791_v0, %v8949_v2  ;;  %v9124_v44 = vor.u32 %v10772_v11, %v9123_v10  ;;  %v10766_v0 = vld [vmem:[#allocation2 + $0x44] sm:$0xf0]  ;;  %v10763_v10 = vld [vmem:[#allocation2 + $0x34] sm:$0xf]  ;;  %v9093_v11 = vld [vmem:[#allocation2 + $0x38] sm:$0xf0] }
 0x44d   : > { %4236 = vmatpush.bf16.msrb.mxu3 %v9028_v47  ;;  %v10790_v47 = vld [vmem:[#allocation4 + $0x4] sm:$0xf0] }
 0x44e   : > { %4264 = vmatpush.bf16.msrb.mxu1 %v9032_v7  ;;  %4222 = vmatpush.bf16.msrb.mxu2 %v8964_v32  ;;  %v8940_v7 = vor.u32 %v10790_v47, %v8939_v5  ;;  %v9115_v32 = vld [vmem:[#allocation2 + $0x60] sm:$0xf]  ;;  %v10777_v5 = vld [vmem:[#allocation2 + $0xa4] sm:$0xf] }
 0x44f   : > { %4250 = vmatpush.bf16.msrb.mxu0 %v8968_v19  ;;  %v10769_v19 = vld [vmem:[#allocation2 + $0x64] sm:$0xf]  ;;  %v9116_v35 = vor.u32 %v10770_v31, %v9115_v32  ;;  %v10762_v32 = vld [vmem:[#allocation2 + $0x24] sm:$0xf0] }
 0x450   : > { %v9120_v37 = vor.u32 %v10769_v19, %v9117_v14  ;;  %v10761_v31 = vld [vmem:[#allocation2 + $0x24] sm:$0xf]  ;;  %v9085_v14 = vld [vmem:[#allocation2 + $0x28] sm:$0xf0] }
 0x451   : > { %4237 = vmatpush.bf16.msrb.mxu3 %v9020_v18  ;;  %v9128_v18 = vor.u32 %v10771_v12, %v9125_v17  ;;  %v9096_v12 = vor.u32 %v10763_v10, %v9093_v11  ;;  %v9139_v17 = vld [vmem:[#allocation2 + $0x90] sm:$0xf] }
 0x452   : > { %4265 = vmatpush.bf16.msrb.mxu1 %v9024_v27  ;;  %4223 = vmatpush.bf16.msrb.mxu2 %v8956_v42  ;;  %v10783_v27 = vld [vmem:[#allocation2 + $0xd4] sm:$0xf]  ;;  %v9165_v42 = vld [vmem:[#allocation2 + $0xc8] sm:$0xf0] }
 0x453   : > { %4251 = vmatpush.bf16.msrb.mxu0 %v8960_v49  ;;  %v9176_v13 = vor.u32 %v10783_v27, %v9173_v29  ;;  %v9168_v15 = vor.u32 %v10781_v20, %v9165_v42  ;;  %v10767_v49 = vld [vmem:[#allocation2 + $0x54] sm:$0xf]  ;;  %v9141_v27 = vld [vmem:[#allocation2 + $0x98] sm:$0xf0]  ;;  %v10774_v20 = vld [vmem:[#allocation2 + $0x84] sm:$0xf0] }
 0x454   : > { %v9112_v54 = vor.u32 %v10767_v49, %v9109_v53  ;;  %v10760_v49 = vld [vmem:[#allocation2 + $0x14] sm:$0xf0]  ;;  %v9077_v53 = vld [vmem:[#allocation2 + $0x18] sm:$0xf0] }
 0x455   : > { %4238 = vmatpush.bf16.msrb.mxu3 %v9012_v36 }
 0x456   : > { %4266 = vmatpush.bf16.msrb.mxu1 %v9016_v38  ;;  %4224 = vmatpush.bf16.msrb.mxu2 %v8948_v1  ;;  %v9163_v38 = vld [vmem:[#allocation2 + $0xc0] sm:$0xf]  ;;  %v10765_v1 = vld [vmem:[#allocation2 + $0x44] sm:$0xf] }
 0x457   : > { %4252 = vmatpush.bf16.msrb.mxu0 %v8952_v3  ;;  %v9164_v40 = vor.u32 %v10782_v39, %v9163_v38  ;;  %v9100_v3 = vor.u32 %v10766_v0, %v9099_v63  ;;  %v9104_v4 = vor.u32 %v10765_v1, %v9101_v22  ;;  %v9088_v38 = vor.u32 %v10761_v31, %v9085_v14  ;;  %v9131_v39 = vld [vmem:[#allocation2 + $0x80] sm:$0xf]  ;;  %v10757_v0 = vld [vmem:[#allocation2 + $0x4] sm:$0xf]  ;;  %v9069_v1 = vld [vmem:[#allocation2 + $0x8] sm:$0xf0] }
 0x458   : > { %v9132_v42 = vor.u32 %v10774_v20, %v9131_v39  ;;  %v9072_v22 = vor.u32 %v10757_v0, %v9069_v1  ;;  %v10851_v31 = vld [vmem:[#allocation6 + $0xf4] sm:$0xf]  ;;  %v9317_v1 = vld [vmem:[#allocation6 + $0xd8] sm:$0xf0] }
 0x459   : > { %4239 = vmatpush.bf16.msrb.mxu3 %v9004_v50  ;;  %v9108_v50 = vor.u32 %v10768_v46, %v9107_v45  ;;  %v9075_v46 = vld [vmem:[#allocation2 + $0x10] sm:$0xf]  ;;  %v10847_v0 = vld [vmem:[#allocation6 + $0xd4] sm:$0xf] }
 0x45a   : > { %4267 = vmatpush.bf16.msrb.mxu1 %v9008_v56  ;;  %4225 = vmatpush.bf16.msrb.mxu2 %v8940_v7  ;;  %v10780_v56 = vld [vmem:[#allocation2 + $0xb4] sm:$0xf0] }
 0x45b   : > { %4253 = vmatpush.bf16.msrb.mxu0 %v8944_v48  ;;  %v9156_v59 = vor.u32 %v10780_v56, %v9155_v55  ;;  %v9092_v48 = vor.u32 %v10764_v9, %v9091_v8 }
 0x45d   : > { %4448 = vmatpush.bf16.msra.mxu3 %v9188_v60  ;;  %v9157_v60 = vld [vmem:[#allocation2 + $0xb8] sm:$0xf0] }
 0x45e   : > { %4476 = vmatpush.bf16.msra.mxu1 %v9192_v61  ;;  %4434 = vmatpush.bf16.msra.mxu2 %v9124_v44  ;;  %v9160_v62 = vor.u32 %v10779_v57, %v9157_v60  ;;  %v10776_v44 = vld [vmem:[#allocation2 + $0x94] sm:$0xf0]  ;;  %v10758_v60 = vld [vmem:[#allocation2 + $0x4] sm:$0xf0] }
 0x45f   : > { %4462 = vmatpush.bf16.msra.mxu0 %v9128_v18  ;;  %v10775_v18 = vld [vmem:[#allocation2 + $0x94] sm:$0xf]  ;;  %v9140_v24 = vor.u32 %v10776_v44, %v9139_v17 }
 0x460   : > { %v9144_v29 = vor.u32 %v10775_v18, %v9141_v27 }
 0x461   : > { %4449 = vmatpush.bf16.msra.mxu3 %v9180_v51  ;;  %v9147_v51 = vld [vmem:[#allocation2 + $0xa0] sm:$0xf] }
 0x462   : > { %4477 = vmatpush.bf16.msra.mxu1 %v9184_v6  ;;  %4435 = vmatpush.bf16.msra.mxu2 %v9116_v35  ;;  %v9148_v47 = vor.u32 %v10778_v52, %v9147_v51  ;;  %v9149_v6 = vld [vmem:[#allocation2 + $0xa8] sm:$0xf0] }
 0x463   : > { %4463 = vmatpush.bf16.msra.mxu0 %v9120_v37  ;;  %v9152_v7 = vor.u32 %v10777_v5, %v9149_v6 }
 0x465   : > { %4450 = vmatpush.bf16.msra.mxu3 %v9172_v28 }
 0x466   : > { %4478 = vmatpush.bf16.msra.mxu1 %v9176_v13  ;;  %4436 = vmatpush.bf16.msra.mxu2 %v9108_v50  ;;  %v9083_v13 = vld [vmem:[#allocation2 + $0x20] sm:$0xf]  ;;  %v10759_v50 = vld [vmem:[#allocation2 + $0x14] sm:$0xf] }
 0x467   : > { %4464 = vmatpush.bf16.msra.mxu0 %v9112_v54  ;;  %v9084_v35 = vor.u32 %v10762_v32, %v9083_v13  ;;  %v9076_v54 = vor.u32 %v10760_v49, %v9075_v46  ;;  %v9080_v55 = vor.u32 %v10759_v50, %v9077_v53  ;;  %v9331_v32 = vld [vmem:[#allocation6 + $0xf0] sm:$0xf]  ;;  %v9325_v46 = vld [vmem:[#allocation6 + $0xe8] sm:$0xf0]  ;;  %v10836_v53 = vld [vmem:[#allocation6 + $0x74] sm:$0xf0] }
 0x468   : > { %v9267_v50 = vld [vmem:[#allocation6 + $0x70] sm:$0xf] }
 0x469   : > { %4451 = vmatpush.bf16.msra.mxu3 %v9164_v40  ;;  %v10773_v40 = vld [vmem:[#allocation2 + $0x84] sm:$0xf] }
 0x46a   : > { %4479 = vmatpush.bf16.msra.mxu1 %v9168_v15  ;;  %4437 = vmatpush.bf16.msra.mxu2 %v9100_v3  ;;  %v9133_v15 = vld [vmem:[#allocation2 + $0x88] sm:$0xf0] }
 0x46b   : > { %4465 = vmatpush.bf16.msra.mxu0 %v9104_v4  ;;  %v9136_v45 = vor.u32 %v10773_v40, %v9133_v15  ;;  %v9323_v40 = vld [vmem:[#allocation6 + $0xe0] sm:$0xf]  ;;  %v10850_v15 = vld [vmem:[#allocation6 + $0xe4] sm:$0xf0] }
 0x46d   : > { %4452 = vmatpush.bf16.msra.mxu3 %v9156_v59  ;;  %v9067_v59 = vld [vmem:[#allocation2] sm:$0xf] }
 0x46e   : > { %4480 = vmatpush.bf16.msra.mxu1 %v9160_v62  ;;  %4438 = vmatpush.bf16.msra.mxu2 %v9092_v48  ;;  %v9068_v63 = vor.u32 %v10758_v60, %v9067_v59  ;;  %v9324_v59 = vor.u32 %v10850_v15, %v9323_v40  ;;  %v9291_v40 = vld [vmem:[#allocation6 + $0xa0] sm:$0xf]  ;;  %v10842_v15 = vld [vmem:[#allocation6 + $0xa4] sm:$0xf0] }
 0x46f   : > { %4466 = vmatpush.bf16.msra.mxu0 %v9096_v12 }
 0x471   : > { %4453 = vmatpush.bf16.msra.mxu3 %v9148_v47 }
 0x472   : > { %4481 = vmatpush.bf16.msra.mxu1 %v9152_v7  ;;  %4439 = vmatpush.bf16.msra.mxu2 %v9084_v35 }
 0x473   : > { %4467 = vmatpush.bf16.msra.mxu0 %v9088_v38 }
 0x475   : > { %4454 = vmatpush.bf16.msra.mxu3 %v9140_v24 }
 0x476   : > { %4482 = vmatpush.bf16.msra.mxu1 %v9144_v29  ;;  %4440 = vmatpush.bf16.msra.mxu2 %v9076_v54  ;;  %v10835_v54 = vld [vmem:[#allocation6 + $0x74] sm:$0xf] }
 0x477   : > { %4468 = vmatpush.bf16.msra.mxu0 %v9080_v55  ;;  %v9269_v55 = vld [vmem:[#allocation6 + $0x78] sm:$0xf0] }
 0x479   : > { %4455 = vmatpush.bf16.msra.mxu3 %v9132_v42 }
 0x47a   : > { %4483 = vmatpush.bf16.msra.mxu1 %v9136_v45  ;;  %4441 = vmatpush.bf16.msra.mxu2 %v9068_v63  ;;  %v10849_v45 = vld [vmem:[#allocation6 + $0xe4] sm:$0xf]  ;;  %v10848_v63 = vld [vmem:[#allocation6 + $0xd4] sm:$0xf0] }
 0x47b   : > { %4469 = vmatpush.bf16.msra.mxu0 %v9072_v22  ;;  %v9328_v60 = vor.u32 %v10849_v45, %v9325_v46  ;;  %v9268_v22 = vor.u32 %v10836_v53, %v9267_v50  ;;  %v10841_v45 = vld [vmem:[#allocation6 + $0xa4] sm:$0xf]  ;;  %v9293_v46 = vld [vmem:[#allocation6 + $0xa8] sm:$0xf0] }
 0x498   : > { %v12835_v34 = vpop.f32.mrf.mxu0 }
 0x499   : > { %v12837_v36 = vpop.f32.mrf.mxu1 }
 0x49a   : > { %v3484_v47 = vadd.f32 %v12837_v36, %v12835_v34 }
 0x49e   : > { %v12839_v58 = vpop.f32.mrf.mxu2 }
 0x49f   : > { %v12841_v61 = vpop.f32.mrf.mxu3 }
 0x4a0   : > { %v12843_v2 = vpop.f32.mrf.mxu0  ;;  %v3456_v11 = vadd.f32 %v12841_v61, %v12839_v58 }
 0x4a1   : > { %v12845_v23 = vpop.f32.mrf.mxu1 }
 0x4a2   : > { %v3486_v6 = vadd.f32 %v12845_v23, %v12843_v2  ;;  %v10852_v2 = vld [vmem:[#allocation6 + $0xf4] sm:$0xf0] }
 0x4a6   : > { %v3443_v43 = vpop.f32.mrf.mxu2 }
 0x4a7   : > { %v3457_v28 = vpop.f32.mrf.mxu3 }
 0x4a8   : > { %v3685_v19 = vpop.f32.mrf.mxu0  ;;  %v3458_v17 = vadd.f32 %v3457_v28, %v3443_v43  ;;  %v9332_v43 = vor.u32 %v10852_v2, %v9331_v32  ;;  %v10844_v32 = vld [vmem:[#allocation6 + $0xb4] sm:$0xf0]  ;;  %v10843_v2 = vld [vmem:[#allocation6 + $0xb4] sm:$0xf] }
 0x4a9   : > { %v3699_v37 = vpop.f32.mrf.mxu1  ;;  %v3686_v7 = vadd.f32 %v3685_v19, %v3484_v47  ;;  %v9333_v19 = vld [vmem:[#allocation6 + $0xf8] sm:$0xf0]  ;;  %v9261_v47 = vld [vmem:[#allocation6 + $0x68] sm:$0xf0] }
 0x4aa   : > { %v9336_v20 = vor.u32 %v10851_v31, %v9333_v19 }
 0x4ab   : > { %v3700_v12 = vadd.f32 %v3699_v37, %v3686_v7  ;;  %v9320_v7 = vor.u32 %v10847_v0, %v9317_v1  ;;  %v9296_v0 = vor.u32 %v10841_v45, %v9293_v46  ;;  %v9283_v1 = vld [vmem:[#allocation6 + $0x90] sm:$0xf]  ;;  %v10867_v46 = vld [vmem:[%s13433_s4 + $0x70] sm:$0xff] }
 0x4ae   : > { %v3657_v56 = vpop.f32.mrf.mxu2 }
 0x4af   : > { %v3671_v57 = vpop.f32.mrf.mxu3  ;;  %v3658_v44 = vadd.f32 %v3657_v56, %v3456_v11 }
 0x4b0   : > { %v3687_v62 = vpop.f32.mrf.mxu0 }
 0x4b1   : > { %v3701_v3 = vpop.f32.mrf.mxu1  ;;  %v3688_v8 = vadd.f32 %v3687_v62, %v3486_v6  ;;  %v3672_v35 = vadd.f32 %v3671_v57, %v3658_v44  ;;  %v9315_v62 = vld [vmem:[#allocation6 + $0xd0] sm:$0xf] }
 0x4b2   : > { %v9316_v6 = vor.u32 %v10848_v63, %v9315_v62  ;;  %v9251_v44 = vld [vmem:[#allocation6 + $0x50] sm:$0xf]  ;;  %v9292_v63 = vor.u32 %v10842_v15, %v9291_v40 }
 0x4b3   : > { %v3702_v27 = vadd.f32 %v3701_v3, %v3688_v8  ;;  %v9307_v8 = vld [vmem:[#allocation6 + $0xc0] sm:$0xf]  ;;  %v10868_v40 = vld [vmem:[%s13433_s4 + $0x78] sm:$0xff] }
 0x4b6   : > { %v3659_v4 = vpop.f32.mrf.mxu2 }
 0x4b7   : > { %v3673_v51 = vpop.f32.mrf.mxu3  ;;  %v3660_v34 = vadd.f32 %v3659_v4, %v3458_v17  ;;  %v9272_v4 = vor.u32 %v10835_v54, %v9269_v55  ;;  %v9235_v54 = vld [vmem:[#allocation6 + $0x30] sm:$0xf]  ;;  %v10828_v55 = vld [vmem:[#allocation6 + $0x34] sm:$0xf0] }
 0x4b9   : > { %v3674_v28 = vadd.f32 %v3673_v51, %v3660_v34  ;;  %v9259_v51 = vld [vmem:[#allocation6 + $0x60] sm:$0xf] }
 0x4ba   : > { %v3935_v52 = vpop.f32.mrf.mxu0 }
 0x4bc   : > { %v3949_v5 = vpop.f32.mrf.mxu1 }
 0x4bd   : > { %v3950_v9 = vadd.f32 %v3949_v5, %v3935_v52  ;;  %v10834_v52 = vld [vmem:[#allocation6 + $0x64] sm:$0xf0]  ;;  %v10833_v5 = vld [vmem:[#allocation6 + $0x64] sm:$0xf] }
 0x4be   : > { %v9264_v17 = vor.u32 %v10833_v5, %v9261_v47  ;;  %v9227_v5 = vld [vmem:[#allocation6 + $0x20] sm:$0xf] }
 0x4bf   : > { %v3907_v10 = vpop.f32.mrf.mxu2  ;;  %v3921_v48 = vpop.f32.mrf.mxu3  ;;  %v3955_v29 = vadd.f32 %v3950_v9, %v3700_v12  ;;  %v10846_v9 = vld [vmem:[#allocation6 + $0xc4] sm:$0xf0]  ;;  %v9260_v12 = vor.u32 %v10834_v52, %v9259_v51  ;;  %v9236_v51 = vor.u32 %v10828_v55, %v9235_v54 }
 0x4c0   : > { %v3922_v36 = vadd.f32 %v3921_v48, %v3907_v10  ;;  %v10845_v10 = vld [vmem:[#allocation6 + $0xc4] sm:$0xf]  ;;  %v9309_v48 = vld [vmem:[#allocation6 + $0xc8] sm:$0xf0] }
 0x4c1   : > { %v12853_v14 = vmax.f32 %v3955_v29, 0.0  ;;  %v9312_v34 = vor.u32 %v10845_v10, %v9309_v48  ;;  %v9275_v48 = vld [vmem:[#allocation6 + $0x80] sm:$0xf] }
 0x4c2   : > { %v3937_v18 = vpop.f32.mrf.mxu0  ;;  %v3954_v37 = vadd.f32 %v3922_v36, %v3672_v35  ;;  %v9299_v36 = vld [vmem:[#allocation6 + $0xb0] sm:$0xf] }
 0x4c3   : > { %v3967_v29 = vrot.slane %v12853_v14, 7 }
 0x4c4   : > { %v3951_v24 = vpop.f32.mrf.mxu1  ;;  %v12859_v56 = vmax.f32 %v3954_v37, 0.0 }
 0x4c5   : > { %v3952_v13 = vadd.f32 %v3951_v24, %v3937_v18  ;;  %v10832_v18 = vld [vmem:[#allocation6 + $0x54] sm:$0xf0]  ;;  %v10831_v24 = vld [vmem:[#allocation6 + $0x54] sm:$0xf] }
 0x4c6   : > { %v9252_v19 = vor.u32 %v10832_v18, %v9251_v44 }
 0x4c7   : > { %v3957_v23 = vadd.f32 %v3952_v13, %v3702_v27  ;;  %v3909_v58 = vpop.f32.mrf.mxu2  ;;  %v3923_v61 = vpop.f32.mrf.mxu3  ;;  %v9253_v27 = vld [vmem:[#allocation6 + $0x58] sm:$0xf0]  ;;  %v9308_v13 = vor.u32 %v10846_v9, %v9307_v8  ;;  %v9229_v8 = vld [vmem:[#allocation6 + $0x28] sm:$0xf0] }
 0x4c8   : > { %v3924_v39 = vadd.f32 %v3923_v61, %v3909_v58  ;;  %v9256_v35 = vor.u32 %v10831_v24, %v9253_v27  ;;  %v9243_v58 = vld [vmem:[#allocation6 + $0x40] sm:$0xf]  ;;  %v10830_v61 = vld [vmem:[#allocation6 + $0x44] sm:$0xf0]  ;;  %v9219_v27 = vld [vmem:[#allocation6 + $0x10] sm:$0xf] }
 0x4c9   : > { %v12855_v38 = vmax.f32 %v3957_v23, 0.0  ;;  %v9301_v23 = vld [vmem:[#allocation6 + $0xb8] sm:$0xf0]  ;;  %v9244_v50 = vor.u32 %v10830_v61, %v9243_v58  ;;  %v10821_v58 = vld [vmem:[#allocation6 + $0x4] sm:$0xf] }
 0x4ca   : > { %v3956_v49 = vadd.f32 %v3924_v39, %v3674_v28  ;;  %v9245_v28 = vld [vmem:[#allocation6 + $0x48] sm:$0xf0]  ;;  %v9300_v39 = vor.u32 %v10844_v32, %v9299_v36  ;;  %v3981_v36 = vrot.slane %v12853_v14, 1 }
 0x4cb   : > { %v4025_v42 = vpack.c.bf16 %v12855_v38, %v12853_v14  ;;  %v3970_v11 = vrot.slane %v12855_v38, 7  ;;  %v3982_v44 = vrot.slane %v12855_v38, 1  ;;  %v9213_v61 = vld [vmem:[#allocation6 + $0x8] sm:$0xf0] }
 0x4cc   : > { %v12861_v57 = vmax.f32 %v3956_v49, 0.0  ;;  %v3966_v49 = vrot.slane %v12859_v56, 7 }
 0x4cd   : > { %4240 = vmatmul.bf16.vlgmr.msrb.gmra.mxu3 %v4025_v42  ;;  %4268 = vmatmul.bf16.vlgmr.msrb.gmra.mxu1 %v4025_v42  ;;  %v3971_v31 = vsel %vm1341_vm0, %v3967_v29, %v3970_v11  ;;  %v10838_v11 = vld [vmem:[#allocation6 + $0x84] sm:$0xf0] }
 0x4ce   : > { %4698 = vmatpush.bf16.msrb.mxu3 %v9332_v43  ;;  %4726 = vmatpush.bf16.msrb.mxu1 %v9336_v20  ;;  %v4024_v3 = vpack.c.bf16 %v12861_v57, %v12859_v56  ;;  %v10829_v43 = vld [vmem:[#allocation6 + $0x44] sm:$0xf]  ;;  %v3968_v37 = vrot.slane %v12861_v57, 7  ;;  %v9304_v20 = vor.u32 %v10843_v2, %v9301_v23  ;;  %v9199_v42 = vpack.c.bf16 %v3971_v31, %v3967_v29  ;;  %v10824_v29 = vld [vmem:[#allocation6 + $0x14] sm:$0xf0] }
 0x4cf   : > { %v9248_v53 = vor.u32 %v10829_v43, %v9245_v28  ;;  %v9276_v32 = vor.u32 %v10838_v11, %v9275_v48  ;;  %v3983_v23 = vsel %vm1354_vm4, %v3981_v36, %v3982_v44  ;;  %v9220_v31 = vor.u32 %v10824_v29, %v9219_v27  ;;  %v10854_v48 = vld [vmem:[%s13433_s4 + $0x8] sm:$0xff] }
 0x4d0   : > { %4226 = vmatmul.bf16.vlgmr.msrb.gmra.mxu2 %v4024_v3  ;;  %4254 = vmatmul.bf16.vlgmr.msrb.gmra.mxu0 %v4024_v3  ;;  %v3969_v62 = vsel %vm1341_vm0, %v3966_v49, %v3968_v37  ;;  %v10840_v3 = vld [vmem:[#allocation6 + $0x94] sm:$0xf0]  ;;  %v3979_v43 = vrot.slane %v12861_v57, 1  ;;  %v9341_v14 = vpack.c.bf16 %v3982_v44, %v3983_v23  ;;  %v3978_v28 = vrot.slane %v12859_v56, 1 }
 0x4d1   : > { %4684 = vmatpush.bf16.msrb.mxu2 %v9268_v22  ;;  %4712 = vmatpush.bf16.msrb.mxu0 %v9272_v4  ;;  %v10839_v22 = vld [vmem:[#allocation6 + $0x94] sm:$0xf]  ;;  %v9285_v4 = vld [vmem:[#allocation6 + $0x98] sm:$0xf0]  ;;  %v9195_v47 = vpack.c.bf16 %v3969_v62, %v3966_v49  ;;  %v9284_v9 = vor.u32 %v10840_v3, %v9283_v1 }
 0x4d2   : > { %4699 = vmatpush.bf16.msrb.mxu3 %v9324_v59  ;;  %4727 = vmatpush.bf16.msrb.mxu1 %v9328_v60  ;;  %v10827_v59 = vld [vmem:[#allocation6 + $0x34] sm:$0xf]  ;;  %v9237_v60 = vld [vmem:[#allocation6 + $0x38] sm:$0xf0]  ;;  %v9288_v10 = vor.u32 %v10839_v22, %v9285_v4  ;;  %v3980_v57 = vsel %vm1354_vm4, %v3978_v28, %v3979_v43 }
 0x4d3   : > { %v9240_v52 = vor.u32 %v10827_v59, %v9237_v60  ;;  %v10860_v49 = vld [vmem:[%s13433_s4 + $0x38] sm:$0xff]  ;;  %v10859_v59 = vld [vmem:[%s13433_s4 + $0x30] sm:$0xff]  ;;  %v10865_v62 = vld [vmem:[%s13433_s4 + $0x60] sm:$0xff] }
 0x4d4   : > { %v10864_v1 = vld [vmem:[%s13433_s4 + $0x58] sm:$0xff]  ;;  %v10857_v4 = vld [vmem:[%s13433_s4 + $0x20] sm:$0xff] }
 0x4d5   : > { %4685 = vmatpush.bf16.msrb.mxu2 %v9260_v12  ;;  %4713 = vmatpush.bf16.msrb.mxu0 %v9264_v17  ;;  %v10837_v12 = vld [vmem:[#allocation6 + $0x84] sm:$0xf]  ;;  %v9277_v17 = vld [vmem:[#allocation6 + $0x88] sm:$0xf0] }
 0x4d6   : > { %4700 = vmatpush.bf16.msrb.mxu3 %v9316_v6  ;;  %4728 = vmatpush.bf16.msrb.mxu1 %v9320_v7  ;;  %v10826_v6 = vld [vmem:[#allocation6 + $0x24] sm:$0xf0]  ;;  %v10825_v7 = vld [vmem:[#allocation6 + $0x24] sm:$0xf]  ;;  %v9280_v2 = vor.u32 %v10837_v12, %v9277_v17  ;;  %v10853_v17 = vld [vmem:[%s13433_s4] sm:$0xff] }
 0x4d7   : > { %v9228_v18 = vor.u32 %v10826_v6, %v9227_v5  ;;  %v9232_v24 = vor.u32 %v10825_v7, %v9229_v8  ;;  %v10856_v5 = vld [vmem:[%s13433_s4 + $0x18] sm:$0xff]  ;;  %v10862_v6 = vld [vmem:[%s13433_s4 + $0x48] sm:$0xff]  ;;  %v10855_v8 = vld [vmem:[%s13433_s4 + $0x10] sm:$0xff] }
 0x4d9   : > { %4686 = vmatpush.bf16.msrb.mxu2 %v9252_v19  ;;  %4714 = vmatpush.bf16.msrb.mxu0 %v9256_v35  ;;  %v9211_v19 = vld [vmem:[#allocation6] sm:$0xf]  ;;  %v10822_v35 = vld [vmem:[#allocation6 + $0x4] sm:$0xf0] }
 0x4da   : > { %4701 = vmatpush.bf16.msrb.mxu3 %v9308_v13  ;;  %4729 = vmatpush.bf16.msrb.mxu1 %v9312_v34  ;;  %v10823_v13 = vld [vmem:[#allocation6 + $0x14] sm:$0xf]  ;;  %v9221_v34 = vld [vmem:[#allocation6 + $0x18] sm:$0xf0]  ;;  %v9212_v37 = vor.u32 %v10822_v35, %v9211_v19 }
 0x4db   : > { %v9224_v38 = vor.u32 %v10823_v13, %v9221_v34 }
 0x4dd   : > { %9200 = vmatmul.msk.bf16.vlgmr.msra.gmra.mxu3 %vm12248_vm3, %v9199_v42  ;;  %9208 = vmatmul.msk.bf16.vlgmr.msra.gmra.mxu1 %vm12248_vm3, %v9199_v42 }
 0x4de   : > { %4702 = vmatpush.bf16.msrb.mxu3 %v9300_v39  ;;  %4730 = vmatpush.bf16.msrb.mxu1 %v9304_v20  ;;  %v9216_v39 = vor.u32 %v10821_v58, %v9213_v61  ;;  %v9338_v20 = vpack.c.bf16 %v3979_v43, %v3980_v57 }
 0x4df   : > { %4687 = vmatpush.bf16.msrb.mxu2 %v9244_v50  ;;  %4715 = vmatpush.bf16.msrb.mxu0 %v9248_v53  ;;  %v10866_v53 = vld [vmem:[%s13433_s4 + $0x68] sm:$0xff] }
 0x4e0   : > { %9196 = vmatmul.msk.bf16.vlgmr.msra.gmra.mxu2 %vm12248_vm3, %v9195_v47  ;;  %9204 = vmatmul.msk.bf16.vlgmr.msra.gmra.mxu0 %vm12248_vm3, %v9195_v47 }
 0x4e2   : > { %4703 = vmatpush.bf16.msrb.mxu3 %v9292_v63  ;;  %4731 = vmatpush.bf16.msrb.mxu1 %v9296_v0  ;;  %v10858_v63 = vld [vmem:[%s13433_s4 + $0x28] sm:$0xff] }
 0x4e3   : > { %4688 = vmatpush.bf16.msrb.mxu2 %v9236_v51  ;;  %4716 = vmatpush.bf16.msrb.mxu0 %v9240_v52  ;;  %v10863_v51 = vld [vmem:[%s13433_s4 + $0x50] sm:$0xff] }
 0x4e6   : > { %4704 = vmatpush.bf16.msrb.mxu3 %v9284_v9  ;;  %4732 = vmatpush.bf16.msrb.mxu1 %v9288_v10  ;;  %v10861_v10 = vld [vmem:[%s13433_s4 + $0x40] sm:$0xff] }
 0x4e7   : > { %4689 = vmatpush.bf16.msrb.mxu2 %v9228_v18  ;;  %4717 = vmatpush.bf16.msrb.mxu0 %v9232_v24 }
 0x4ea   : > { %4705 = vmatpush.bf16.msrb.mxu3 %v9276_v32  ;;  %4733 = vmatpush.bf16.msrb.mxu1 %v9280_v2 }
 0x4eb   : > { %4690 = vmatpush.bf16.msrb.mxu2 %v9220_v31  ;;  %4718 = vmatpush.bf16.msrb.mxu0 %v9224_v38 }
 0x4ed   : > { %9342 = vmatmul.msk.bf16.vlgmr.msrb.gmra.mxu3 %vm12304_vm5, %v9341_v14  ;;  %9348 = vmatmul.msk.bf16.vlgmr.msrb.gmra.mxu1 %vm12304_vm5, %v9341_v14 }
 0x4ee   : > { %4903 = vmatpush.bf16.msra.mxu3 %v10868_v40 }
 0x4ef   : > { %4691 = vmatpush.bf16.msrb.mxu2 %v9212_v37  ;;  %4719 = vmatpush.bf16.msrb.mxu0 %v9216_v39 }
 0x4f2   : > { %9339 = vmatmul.msk.bf16.vlgmr.msrb.gmra.mxu2 %vm12304_vm5, %v9338_v20  ;;  %9345 = vmatmul.msk.bf16.vlgmr.msrb.gmra.mxu0 %vm12304_vm5, %v9338_v20 }
 0x4f3   : > { %4904 = vmatpush.bf16.msra.mxu3 %v10867_v46  ;;  %4890 = vmatpush.bf16.msra.mxu2 %v10860_v49 }
 0x4f7   : > { %4905 = vmatpush.bf16.msra.mxu3 %v10866_v53  ;;  %4891 = vmatpush.bf16.msra.mxu2 %v10859_v59 }
 0x4fb   : > { %4906 = vmatpush.bf16.msra.mxu3 %v10865_v62  ;;  %4892 = vmatpush.bf16.msra.mxu2 %v10858_v63 }
 0x4ff   : > { %4907 = vmatpush.bf16.msra.mxu3 %v10864_v1  ;;  %4893 = vmatpush.bf16.msra.mxu2 %v10857_v4 }
 0x503   : > { %4908 = vmatpush.bf16.msra.mxu3 %v10863_v51  ;;  %4894 = vmatpush.bf16.msra.mxu2 %v10856_v5  ;;  %v4922_v5 = vld.sshfl [vmem:[#allocation1 + $0x8] sm:$0xff pattern:$0x73625140] }
 0x507   : > { %4909 = vmatpush.bf16.msra.mxu3 %v10862_v6  ;;  %4895 = vmatpush.bf16.msra.mxu2 %v10855_v8  ;;  %v4928_v6 = vsel %vm3097_vm7, %v4922_v5, 0 }
 0x508   : > { %4950 = vmatpush.bf16.msra.mxu1 %v4928_v6 }
 0x50b   : > { %4910 = vmatpush.bf16.msra.mxu3 %v10861_v10  ;;  %4896 = vmatpush.bf16.msra.mxu2 %v10854_v48 }
 0x50f   : > { %4897 = vmatpush.bf16.msra.mxu2 %v10853_v17  ;;  %v10876_v17 = vld [vmem:[%s13434_s2 + $0x38] sm:$0xff] }
 0x54a   : > { %v4269_v56 = vpop.f32.mrf.mxu1 }
 0x54d   : > { %v4255_v15 = vpop.f32.mrf.mxu0 }
 0x54e   : > { %v4270_v18 = vadd.f32 %v4269_v56, %v4255_v15 }
 0x550   : > { %v4241_v42 = vpop.f32.mrf.mxu3 }
 0x552   : > { %v4271_v45 = vpop.f32.mrf.mxu1 }
 0x553   : > { %v4227_v50 = vpop.f32.mrf.mxu2 }
 0x554   : > { %v4242_v32 = vadd.f32 %v4241_v42, %v4227_v50 }
 0x555   : > { %v4257_v55 = vpop.f32.mrf.mxu0 }
 0x556   : > { %v4272_v24 = vadd.f32 %v4271_v45, %v4257_v55 }
 0x558   : > { %v4243_v54 = vpop.f32.mrf.mxu3 }
 0x55a   : > { %v4485_v60 = vpop.f32.mrf.mxu1 }
 0x55b   : > { %v4229_v0 = vpop.f32.mrf.mxu2 }
 0x55c   : > { %v4244_v31 = vadd.f32 %v4243_v54, %v4229_v0 }
 0x55d   : > { %v4471_v22 = vpop.f32.mrf.mxu0 }
 0x55e   : > { %v4472_v29 = vadd.f32 %v4471_v22, %v4270_v18  ;;  %v10875_v18 = vld [vmem:[%s13434_s2 + $0x30] sm:$0xff] }
 0x560   : > { %v4457_v3 = vpop.f32.mrf.mxu3  ;;  %v4486_v38 = vadd.f32 %v4485_v60, %v4472_v29  ;;  %v10882_v29 = vld [vmem:[%s13434_s2 + $0x68] sm:$0xff] }
 0x562   : > { %v4487_v52 = vpop.f32.mrf.mxu1 }
 0x563   : > { %v4443_v47 = vpop.f32.mrf.mxu2 }
 0x564   : > { %v4444_v58 = vadd.f32 %v4443_v47, %v4242_v32  ;;  %v10880_v32 = vld [vmem:[%s13434_s2 + $0x58] sm:$0xff] }
 0x565   : > { %v4473_v7 = vpop.f32.mrf.mxu0 }
 0x566   : > { %v4474_v13 = vadd.f32 %v4473_v7, %v4272_v24  ;;  %v4458_v20 = vadd.f32 %v4457_v3, %v4444_v58  ;;  %v7300_v7 = vld [vmem:[%s11782_s14] sm:$0x3]  ;;  %v10883_v24 = vld [vmem:[%s13434_s2 + $0x70] sm:$0xff] }
 0x568   : > { %v4459_v9 = vpop.f32.mrf.mxu3  ;;  %v4488_v19 = vadd.f32 %v4487_v52, %v4474_v13  ;;  %v4921_v52 = vld.sshfl [vmem:[#allocation1] sm:$0xff pattern:$0x73625140] }
 0x569   : > { %v4926_v47 = vsel %vm3097_vm7, %v4921_v52, 0  ;;  %7302 = vst [vmem:[#allocation1] ss:$9 sm:$0xff] %v7300_v7  ;;  %v10873_v13 = vld [vmem:[%s13434_s2 + $0x20] sm:$0xff] }
 0x56a   : > { %v4735_v11 = vpop.f32.mrf.mxu1  ;;  %4937 = vmatpush.bf16.msra.mxu0 %v4926_v47 }
 0x56b   : > { %v4445_v12 = vpop.f32.mrf.mxu2 }
 0x56c   : > { %v4446_v61 = vadd.f32 %v4445_v12, %v4244_v31  ;;  %v10870_v31 = vld [vmem:[%s13434_s2 + $0x8] sm:$0xff] }
 0x56e   : > { %v4460_v56 = vadd.f32 %v4459_v9, %v4446_v61  ;;  %5134 = vmatpush.bf16.msrb.mxu0 %v10876_v17 }
 0x56f   : > { %v4721_v44 = vpop.f32.mrf.mxu0 }
 0x570   : > { %v4707_v27 = vpop.f32.mrf.mxu3  ;;  %v4736_v36 = vadd.f32 %v4735_v11, %v4721_v44  ;;  %v10884_v44 = vld [vmem:[%s13434_s2 + $0x78] sm:$0xff] }
 0x571   : > { %5148 = vmatpush.bf16.msrb.mxu1 %v10884_v44 }
 0x572   : > { %v4737_v2 = vpop.f32.mrf.mxu1  ;;  %v12909_v43 = vadd.f32 %v4736_v36, %v4486_v38  ;;  %5135 = vmatpush.bf16.msrb.mxu0 %v10875_v18  ;;  %v10872_v36 = vld [vmem:[%s13434_s2 + $0x18] sm:$0xff]  ;;  %v10878_v38 = vld [vmem:[%s13434_s2 + $0x48] sm:$0xff] }
 0x575   : > { %v4693_v34 = vpop.f32.mrf.mxu2  ;;  %5149 = vmatpush.bf16.msrb.mxu1 %v10883_v24 }
 0x576   : > { %v4708_v28 = vadd.f32 %v4707_v27, %v4693_v34  ;;  %v10874_v27 = vld [vmem:[%s13434_s2 + $0x28] sm:$0xff]  ;;  %v10881_v34 = vld [vmem:[%s13434_s2 + $0x60] sm:$0xff] }
 0x577   : > { %v4723_v23 = vpop.f32.mrf.mxu0  ;;  %5136 = vmatpush.bf16.msrb.mxu0 %v10874_v27  ;;  %v10900_v27 = vld [vmem:[%s13435_s15 + $0x64] sm:$0xf0] }
 0x578   : > { %v4738_v35 = vadd.f32 %v4737_v2, %v4723_v23  ;;  %v4709_v39 = vpop.f32.mrf.mxu3  ;;  %v12915_v15 = vadd.f32 %v4708_v28, %v4458_v20  ;;  %v10871_v2 = vld [vmem:[%s13434_s2 + $0x10] sm:$0xff] }
 0x579   : > { %5150 = vmatpush.bf16.msrb.mxu1 %v10882_v29  ;;  %v10879_v23 = vld [vmem:[%s13434_s2 + $0x50] sm:$0xff]  ;;  %v10898_v29 = vld [vmem:[%s13435_s15 + $0x54] sm:$0xf0] }
 0x57a   : > { %v12911_v14 = vadd.f32 %v4738_v35, %v4488_v19  ;;  %v10869_v19 = vld [vmem:[%s13434_s2] sm:$0xff] }
 0x57b   : > { %5137 = vmatpush.bf16.msrb.mxu0 %v10873_v13  ;;  %v10877_v35 = vld [vmem:[%s13434_s2 + $0x40] sm:$0xff] }
 0x57c   : > { %v4751_v37 = vadd.f32 %v12911_v14, %v12909_v43 }
 0x57d   : > { %v4695_v57 = vpop.f32.mrf.mxu2  ;;  %5151 = vmatpush.bf16.msrb.mxu1 %v10881_v34  ;;  %v10901_v34 = vld [vmem:[%s13435_s15 + $0x74] sm:$0xf] }
 0x57e   : > { %v4752_v40 = vrot.slane %v4751_v37, 4  ;;  %v4710_v42 = vadd.f32 %v4709_v39, %v4695_v57 }
 0x57f   : > { %5138 = vmatpush.bf16.msrb.mxu0 %v10872_v36  ;;  %v9551_v36 = vld [vmem:[%s13435_s15 + $0x78] sm:$0xf0] }
 0x580   : > { %v4753_v45 = vadd.f32 %v4752_v40, %v4751_v37  ;;  %v12917_v46 = vadd.f32 %v4710_v42, %v4460_v56 }
 0x581   : > { %5152 = vmatpush.bf16.msrb.mxu1 %v10880_v32 }
 0x582   : > { %v4754_v49 = vrot.slane %v4753_v45, 2  ;;  %v4744_v50 = vadd.f32 %v12917_v46, %v12915_v15 }
 0x583   : > { %5139 = vmatpush.bf16.msrb.mxu0 %v10871_v2 }
 0x584   : > { %v4755_v53 = vadd.f32 %v4754_v49, %v4753_v45  ;;  %v4745_v54 = vrot.slane %v4744_v50, 4 }
 0x585   : > { %5153 = vmatpush.bf16.msrb.mxu1 %v10879_v23  ;;  %v9525_v23 = vld [vmem:[%s13435_s15 + $0x40] sm:$0xf] }
 0x586   : > { %v4756_v55 = vrot.slane %v4755_v53, 1  ;;  %v4746_v59 = vadd.f32 %v4745_v54, %v4744_v50 }
 0x587   : > { %5140 = vmatpush.bf16.msrb.mxu0 %v10870_v31  ;;  %v10896_v31 = vld [vmem:[%s13435_s15 + $0x44] sm:$0xf0] }
 0x588   : > { %v4757_v60 = vadd.f32 %v4756_v55, %v4755_v53  ;;  %v4747_v62 = vrot.slane %v4746_v59, 2 }
 0x589   : > { %5154 = vmatpush.bf16.msrb.mxu1 %v10878_v38 }
 0x58a   : > { %v4748_v63 = vadd.f32 %v4747_v62, %v4746_v59  ;;  %v4759_v0 = vmul.f32 %v4757_v60, %v12585_v41 }
 0x58b   : > { %5141 = vmatpush.bf16.msrb.mxu0 %v10869_v19 }
 0x58c   : > { %v4749_v1 = vrot.slane %v4748_v63, 1  ;;  %v4761_v3 = vpack.c.bf16 %v4759_v0, %v4759_v0 }
 0x58d   : > { %5155 = vmatpush.bf16.msrb.mxu1 %v10877_v35  ;;  %v9554_v35 = vor.u32 %v10901_v34, %v9551_v36 }
 0x58e   : > { %v4750_v22 = vadd.f32 %v4749_v1, %v4748_v63  ;;  %4911 = vmatmul.bf16.vlgmr.msra.gmra.mxu3 %v4761_v3 }
 0x590   : > { %v4758_v4 = vmul.f32 %v4750_v22, %v12585_v41 }
 0x592   : > { %v4760_v51 = vpack.c.bf16 %v4758_v4, %v4758_v4 }
 0x594   : > { %4898 = vmatmul.bf16.vlgmr.msra.gmra.mxu2 %v4760_v51 }
 0x611   : > { %v4912_v8 = vpop.f32.mrf.mxu3 }
 0x617   : > { %v4899_v9 = vpop.f32.mrf.mxu2 }
 0x618   : > { %v4913_v41 = vadd.f32 %v4912_v8, %v4899_v9 }
 0x619   : > { %v4914_v10 = vpop.f32.mrf.mxu3 }
 0x61a   : > { %v4916_v48 = vmax.f32 %v4913_v41, 0.0 }
 0x61c   : > { %v4917_v11 = vpack.c.bf16 %v4916_v48, %v4916_v48 }
 0x61e   : > { %9413 = vmatmul.msk.bf16.vlgmr.msra.gmra.mxu0 %vm3093_vm8, %v4917_v11  ;;  %9414 = vmatmul.msk.bf16.vlgmr.msra.gmra.mxu1 %vm3093_vm8, %v4917_v11 }
 0x61f   : > { %v4901_v12 = vpop.f32.mrf.mxu2 }
 0x69b   : > { %v4939_v58 = vpop.f32.mrf.mxu0  ;;  %v4952_v61 = vpop.f32.mrf.mxu1 }
 0x69c   : > { %v9415_v28 = vmul.f32 -1.442695, %v4939_v58  ;;  %v9416_v37 = vmul.f32 -1.442695, %v4952_v61  ;;  %v10899_v61 = vld [vmem:[%s13435_s15 + $0x64] sm:$0xf] }
 0x69e   : > { %11257 = vpow2.f32 %v9415_v28  ;;  %v9543_v28 = vld [vmem:[%s13435_s15 + $0x68] sm:$0xf0] }
 0x69f   : > { %11259 = vpow2.f32 %v9416_v37  ;;  %v9526_v37 = vor.u32 %v10896_v31, %v9525_v23  ;;  %v10963_v23 = vld [vmem:[#allocation9 + $0xe4] sm:$0xf] }
 0x6a3   : > { %v4941_v39 = vpop.f32.mrf.mxu0  ;;  %v4954_v57 = vpop.f32.mrf.mxu1 }
 0x6a4   : > { %v11258_v20 = vpop.eup %11257  ;;  %v10885_v39 = vld [vmem:[%s13436_s22] sm:$0xff]  ;;  %v9517_v57 = vld [vmem:[%s13435_s15 + $0x30] sm:$0xf] }
 0x6a5   : > { %v11260_v56 = vpop.eup %11259  ;;  %v4962_v40 = vadd.f32 1.0, %v11258_v20  ;;  %v10894_v20 = vld [vmem:[%s13435_s15 + $0x34] sm:$0xf0] }
 0x6a6   : > { %v4963_v42 = vadd.f32 1.0, %v11260_v56  ;;  %v9546_v56 = vor.u32 %v10899_v61, %v9543_v28  ;;  %v9661_v28 = vld [vmem:[#allocation9 + $0xd0] sm:$0xf] }
 0x6a7   : > { %11261 = vrcp.f32 %v4962_v40  ;;  %v4975_v55 = vand.u32 2147483648, %v4962_v40  ;;  %v4973_v62 = vand.u32 2147483647, %v4962_v40  ;;  %vm4969_vm7 = vweird.f32 %v4962_v40 }
 0x6a8   : > { %11263 = vrcp.f32 %v4963_v42  ;;  %v4990_v63 = vand.u32 2147483648, %v4963_v42  ;;  %v4988_v1 = vand.u32 2147483647, %v4963_v42  ;;  %vm4984_vm9 = vweird.f32 %v4963_v42 }
 0x6a9   : > { %v4976_v22 = vor.u32 1.1754944e-38, %v4975_v55  ;;  %vm4974_vm10 = vcmp.eq.f32.partialorder %v4973_v62, 8.507059e+37  ;;  %v10893_v55 = vld [vmem:[%s13435_s15 + $0x34] sm:$0xf]  ;;  %v10886_v62 = vld [vmem:[%s13436_s22 + $0x8] sm:$0xff] }
 0x6aa   : > { %v4991_v52 = vor.u32 1.1754944e-38, %v4990_v63  ;;  %vm4989_vm12 = vcmp.eq.f32.partialorder %v4988_v1, 8.507059e+37  ;;  %v9509_v63 = vld [vmem:[%s13435_s15 + $0x20] sm:$0xf]  ;;  %v10891_v1 = vld [vmem:[%s13435_s15 + $0x24] sm:$0xf] }
 0x6ad   : > { %v11262_v45 = vpop.eup %11261 }
 0x6ae   : > { %v11264_v49 = vpop.eup %11263  ;;  %v4965_v50 = vmul.f32 %v11262_v45, %v4962_v40  ;;  %vm4970_vm2 = vweird.f32 %v11262_v45  ;;  %v10897_v40 = vld [vmem:[%s13435_s15 + $0x54] sm:$0xf] }
 0x6af   : > { %v4980_v53 = vmul.f32 %v11264_v49, %v4963_v42  ;;  %vm4985_vm6 = vweird.f32 %v11264_v49  ;;  %vm4971_vm8 = vmor %vm4969_vm7, %vm4970_vm2  ;;  %v9535_v42 = vld [vmem:[%s13435_s15 + $0x58] sm:$0xf0] }
 0x6b0   : > { %v4966_v54 = vsub.f32 1.0, %v4965_v50  ;;  %vm4986_vm11 = vmor %vm4984_vm9, %vm4985_vm6  ;;  %v10895_v50 = vld [vmem:[%s13435_s15 + $0x44] sm:$0xf] }
 0x6b1   : > { %v4981_v59 = vsub.f32 1.0, %v4980_v53  ;;  %v9527_v53 = vld [vmem:[%s13435_s15 + $0x48] sm:$0xf0] }
 0x6b2   : > { %v4967_v60 = vmul.f32 %v11262_v45, %v4966_v54  ;;  %v9530_v54 = vor.u32 %v10895_v50, %v9527_v53  ;;  %v10944_v50 = vld [vmem:[#allocation9 + $0x44] sm:$0xf0] }
 0x6b3   : > { %v4982_v0 = vmul.f32 %v11264_v49, %v4981_v59  ;;  %v9519_v59 = vld [vmem:[%s13435_s15 + $0x38] sm:$0xf0] }
 0x6b4   : > { %v4968_v3 = vadd.f32 %v11262_v45, %v4967_v60  ;;  %v9522_v60 = vor.u32 %v10893_v55, %v9519_v59  ;;  %v10960_v55 = vld [vmem:[#allocation9 + $0xc4] sm:$0xf0]  ;;  %v10943_v59 = vld [vmem:[#allocation9 + $0x44] sm:$0xf] }
 0x6b5   : > { %v4983_v4 = vadd.f32 %v11264_v49, %v4982_v0  ;;  %v10892_v0 = vld [vmem:[%s13435_s15 + $0x24] sm:$0xf0] }
 0x6b6   : > { %v4972_v51 = vsel %vm4971_vm8, %v11262_v45, %v4968_v3  ;;  %v9518_v45 = vor.u32 %v10894_v20, %v9517_v57  ;;  %v9510_v3 = vor.u32 %v10892_v0, %v9509_v63  ;;  %v9599_v20 = vld [vmem:[#allocation9 + $0x58] sm:$0xf0]  ;;  %v10959_v63 = vld [vmem:[#allocation9 + $0xc4] sm:$0xf]  ;;  %v9655_v0 = vld [vmem:[#allocation9 + $0xc8] sm:$0xf0] }
 0x6b7   : > { %v4977_v5 = vsel %vm4974_vm10, %v4976_v22, %v4972_v51  ;;  %v4987_v47 = vsel %vm4986_vm11, %v11264_v49, %v4983_v4  ;;  %v9538_v49 = vor.u32 %v10897_v40, %v9535_v42  ;;  %v9511_v22 = vld [vmem:[%s13435_s15 + $0x28] sm:$0xf0]  ;;  %v9501_v51 = vld [vmem:[%s13435_s15 + $0x10] sm:$0xf]  ;;  %v9663_v40 = vld [vmem:[#allocation9 + $0xd8] sm:$0xf0] }
 0x6b8   : > { %v4992_v6 = vsel %vm4989_vm12, %v4991_v52, %v4987_v47  ;;  %v4994_v7 = vperm.slane %v4977_v5, 0  ;;  %v9514_v4 = vor.u32 %v10891_v1, %v9511_v22  ;;  %v10890_v52 = vld [vmem:[%s13435_s15 + $0x14] sm:$0xf0]  ;;  %v10889_v5 = vld [vmem:[%s13435_s15 + $0x14] sm:$0xf] }
 0x6b9   : > { %v4995_v8 = vperm.slane %v4992_v6, 0  ;;  %v9502_v47 = vor.u32 %v10890_v52, %v9501_v51  ;;  %v9503_v6 = vld [vmem:[%s13435_s15 + $0x18] sm:$0xf0]  ;;  %v9581_v1 = vld [vmem:[#allocation9 + $0x30] sm:$0xf] }
 0x6ba   : > { %v4996_v9 = vmul.f32 %v4994_v7, %v12915_v15  ;;  %v4998_v41 = vmul.f32 %v4994_v7, %v12917_v46  ;;  %v9506_v7 = vor.u32 %v10889_v5, %v9503_v6  ;;  %v9645_v52 = vld [vmem:[#allocation9 + $0xb0] sm:$0xf]  ;;  %v10958_v6 = vld [vmem:[#allocation9 + $0xb4] sm:$0xf0] }
 0x6bb   : > { %v4997_v10 = vmul.f32 %v4995_v8, %v12909_v43  ;;  %v4999_v48 = vmul.f32 %v4995_v8, %v12911_v14  ;;  %v9549_v14 = vld [vmem:[%s13435_s15 + $0x70] sm:$0xf]  ;;  %v9493_v8 = vld [vmem:[%s13435_s15] sm:$0xf] }
 0x6bc   : > { %v5000_v11 = vadd.f32 %v4996_v9, %v12733_v30  ;;  %v5002_v12 = vadd.f32 %v4998_v41, %v12736_v16  ;;  %v10902_v30 = vld [vmem:[%s13435_s15 + $0x74] sm:$0xf0]  ;;  %v9541_v16 = vld [vmem:[%s13435_s15 + $0x60] sm:$0xf]  ;;  %v10888_v9 = vld [vmem:[%s13435_s15 + $0x4] sm:$0xf0] }
 0x6bd   : > { %v5001_v17 = vadd.f32 %v4997_v10, %v12742_v25  ;;  %v5003_v44 = vadd.f32 %v4999_v48, %v12745_v33  ;;  %v9550_v24 = vor.u32 %v10902_v30, %v9549_v14  ;;  %v9542_v25 = vor.u32 %v10900_v27, %v9541_v16  ;;  %v9533_v33 = vld [vmem:[%s13435_s15 + $0x50] sm:$0xf]  ;;  %v10887_v41 = vld [vmem:[%s13435_s15 + $0x4] sm:$0xf]  ;;  %v9495_v48 = vld [vmem:[%s13435_s15 + $0x8] sm:$0xf0] }
 0x6be   : > { %v5004_v18 = vpack.c.bf16 %v5002_v12, %v5000_v11  ;;  %v9534_v32 = vor.u32 %v10898_v29, %v9533_v33  ;;  %v9494_v10 = vor.u32 %v10888_v9, %v9493_v8  ;;  %v9498_v11 = vor.u32 %v10887_v41, %v9495_v48  ;;  %v9613_v12 = vld [vmem:[#allocation9 + $0x70] sm:$0xf]  ;;  %v9679_v16 = vld [vmem:[#allocation9 + $0xf8] sm:$0xf0]  ;;  %v9605_v27 = vld [vmem:[#allocation9 + $0x60] sm:$0xf] }
 0x6bf   : > { %v5005_v15 = vpack.c.bf16 %v5003_v44, %v5001_v17  ;;  %5309 = vmatpush.bf16.msrb.mxu3 %v9550_v24  ;;  %v10950_v17 = vld [vmem:[#allocation9 + $0x74] sm:$0xf0]  ;;  %v9677_v44 = vld [vmem:[#allocation9 + $0xf0] sm:$0xf]  ;;  %v10965_v24 = vld [vmem:[#allocation9 + $0xf4] sm:$0xf]  ;;  %v9646_v48 = vor.u32 %v10958_v6, %v9645_v52 }
 0x6c0   : > { %5142 = vmatmul.bf16.vlgmr.msrb.gmra.mxu0 %v5004_v18  ;;  %v9614_v18 = vor.u32 %v10950_v17, %v9613_v12  ;;  %v10948_v33 = vld [vmem:[#allocation9 + $0x64] sm:$0xf0]  ;;  %v9669_v29 = vld [vmem:[#allocation9 + $0xe0] sm:$0xf]  ;;  %v9583_v8 = vld [vmem:[#allocation9 + $0x38] sm:$0xf0] }
 0x6c1   : > { %5156 = vmatmul.bf16.vlgmr.msrb.gmra.mxu1 %v5005_v15  ;;  %v10966_v15 = vld [vmem:[#allocation9 + $0xf4] sm:$0xf0]  ;;  %v9606_v34 = vor.u32 %v10948_v33, %v9605_v27  ;;  %v10957_v41 = vld [vmem:[#allocation9 + $0xb4] sm:$0xf]  ;;  %v9575_v27 = vld [vmem:[#allocation9 + $0x28] sm:$0xf0] }
 0x6c2   : > { %v9678_v14 = vor.u32 %v10966_v15, %v9677_v44  ;;  %5635 = vmatpush.bf16.msra.mxu0 %v9614_v18  ;;  %v9573_v15 = vld [vmem:[#allocation9 + $0x20] sm:$0xf]  ;;  %v9639_v33 = vld [vmem:[#allocation9 + $0xa8] sm:$0xf0] }
 0x6c3   : > { %5310 = vmatpush.bf16.msrb.mxu3 %v9542_v25  ;;  %v9682_v25 = vor.u32 %v10965_v24, %v9679_v16  ;;  %v10939_v24 = vld [vmem:[#allocation9 + $0x24] sm:$0xf]  ;;  %v9797_v6 = vld [vmem:[#allocation7 + $0xe0] sm:$0xf] }
 0x6c4   : > { %5654 = vmatpush.bf16.msra.mxu1 %v9678_v14 }
 0x6c6   : > { %5636 = vmatpush.bf16.msra.mxu0 %v9606_v34  ;;  %v9565_v34 = vld [vmem:[#allocation9 + $0x10] sm:$0xf] }
 0x6c7   : > { %5311 = vmatpush.bf16.msrb.mxu3 %v9534_v32  ;;  %v10947_v32 = vld [vmem:[#allocation9 + $0x64] sm:$0xf] }
 0x6cb   : > { %5312 = vmatpush.bf16.msrb.mxu3 %v9526_v37  ;;  %v10962_v37 = vld [vmem:[#allocation9 + $0xd4] sm:$0xf0] }
 0x6cc   : > { %v9662_v42 = vor.u32 %v10962_v37, %v9661_v28  ;;  %v9557_v37 = vld [vmem:[#allocation9] sm:$0xf] }
 0x6cf   : > { %5313 = vmatpush.bf16.msrb.mxu3 %v9518_v45 }
 0x6d3   : > { %5314 = vmatpush.bf16.msrb.mxu3 %v9510_v3  ;;  %v10942_v3 = vld [vmem:[#allocation9 + $0x34] sm:$0xf0] }
 0x6d4   : > { %v9582_v9 = vor.u32 %v10942_v3, %v9581_v1  ;;  %v9743_v1 = vld [vmem:[#allocation7 + $0x78] sm:$0xf0] }
 0x6d7   : > { %5315 = vmatpush.bf16.msrb.mxu3 %v9502_v47  ;;  %v9658_v47 = vor.u32 %v10959_v63, %v9655_v0  ;;  %v10934_v63 = vld [vmem:[#allocation7 + $0xf4] sm:$0xf0]  ;;  %v10917_v0 = vld [vmem:[#allocation7 + $0x74] sm:$0xf] }
 0x6db   : > { %5316 = vmatpush.bf16.msrb.mxu3 %v9494_v10  ;;  %v9647_v10 = vld [vmem:[#allocation9 + $0xb8] sm:$0xf0] }
 0x6dc   : > { %v9650_v12 = vor.u32 %v10957_v41, %v9647_v10  ;;  %v9735_v10 = vld [vmem:[#allocation7 + $0x68] sm:$0xf0] }
 0x73d   : > { %v5143_v43 = vpop.f32.mrf.mxu0 }
 0x73e   : > { %v5157_v46 = vpop.f32.mrf.mxu1 }
 0x73f   : > { %v5158_v38 = vadd.f32 %v5157_v46, %v5143_v43  ;;  %v10949_v43 = vld [vmem:[#allocation9 + $0x74] sm:$0xf]  ;;  %v9615_v46 = vld [vmem:[#allocation9 + $0x78] sm:$0xf0] }
 0x740   : > { %v9618_v30 = vor.u32 %v10949_v43, %v9615_v46  ;;  %v10940_v43 = vld [vmem:[#allocation9 + $0x24] sm:$0xf0]  ;;  %v9637_v46 = vld [vmem:[#allocation9 + $0xa0] sm:$0xf] }
 0x741   : > { %v9574_v14 = vor.u32 %v10940_v43, %v9573_v15  ;;  %v9789_v15 = vld [vmem:[#allocation7 + $0xd0] sm:$0xf] }
 0x742   : > { %5673 = vmatpush.bf16.msra.mxu3 %v9618_v30  ;;  %v10956_v30 = vld [vmem:[#allocation9 + $0xa4] sm:$0xf0] }
 0x743   : > { %v9638_v16 = vor.u32 %v10956_v30, %v9637_v46  ;;  %v10930_v46 = vld [vmem:[#allocation7 + $0xd4] sm:$0xf0]  ;;  %v9727_v30 = vld [vmem:[#allocation7 + $0x58] sm:$0xf0] }
 0x745   : > { %v5145_v13 = vpop.f32.mrf.mxu0 }
 0x746   : > { %v5159_v2 = vpop.f32.mrf.mxu1 }
 0x747   : > { %v5160_v19 = vadd.f32 %v5159_v2, %v5145_v13  ;;  %v10964_v13 = vld [vmem:[#allocation9 + $0xe4] sm:$0xf0]  ;;  %v9607_v2 = vld [vmem:[#allocation9 + $0x68] sm:$0xf0] }
 0x748   : > { %v9670_v36 = vor.u32 %v10964_v13, %v9669_v29  ;;  %v9578_v29 = vor.u32 %v10939_v24, %v9575_v27  ;;  %v9790_v24 = vor.u32 %v10930_v46, %v9789_v15  ;;  %v10929_v27 = vld [vmem:[#allocation7 + $0xd4] sm:$0xf]  ;;  %v9749_v15 = vld [vmem:[#allocation7 + $0x80] sm:$0xf]  ;;  %v5221_v46 = vld [vmem:[%s12992_s0] sm:$0xff] }
 0x749   : > { %v5166_v58 = vpack.c.bf16 %v5160_v19, %v5158_v38  ;;  %v9610_v38 = vor.u32 %v10947_v32, %v9607_v2  ;;  %v9671_v19 = vld [vmem:[#allocation9 + $0xe8] sm:$0xf0]  ;;  %v9629_v32 = vld [vmem:[#allocation9 + $0x90] sm:$0xf] }
 0x74a   : > { %v9674_v61 = vor.u32 %v10963_v23, %v9671_v19  ;;  %5655 = vmatpush.bf16.msra.mxu1 %v9670_v36  ;;  %v10938_v36 = vld [vmem:[#allocation9 + $0x14] sm:$0xf0] }
 0x74b   : > { %5191 = vmatpush.bf16.msrb.mxu2 %v5166_v58  ;;  %v10946_v58 = vld [vmem:[#allocation9 + $0x54] sm:$0xf0]  ;;  %5674 = vmatpush.bf16.msra.mxu3 %v9610_v38  ;;  %v9566_v2 = vor.u32 %v10938_v36, %v9565_v34  ;;  %v9567_v38 = vld [vmem:[#allocation9 + $0x18] sm:$0xf0]  ;;  %v9781_v34 = vld [vmem:[#allocation7 + $0xc0] sm:$0xf] }
 0x74c   : > { %v10954_v23 = vld [vmem:[#allocation9 + $0x94] sm:$0xf0] }
 0x74d   : > { %v9630_v19 = vor.u32 %v10954_v23, %v9629_v32  ;;  %v10928_v32 = vld [vmem:[#allocation7 + $0xc4] sm:$0xf0] }
 0x74e   : > { %9489 = vmatmul.msk.bf16.vlgmr.msrb.gmra.mxu2 %vm5177_vm13, %v10885_v39  ;;  %v10945_v39 = vld [vmem:[#allocation9 + $0x54] sm:$0xf]  ;;  %5656 = vmatpush.bf16.msra.mxu1 %v9662_v42  ;;  %v9782_v23 = vor.u32 %v10928_v32, %v9781_v34  ;;  %v10919_v34 = vld [vmem:[#allocation7 + $0x84] sm:$0xf] }
 0x74f   : > { %5328 = vmatpush.bf16.msra.mxu2 %v9554_v35  ;;  %v9597_v35 = vld [vmem:[#allocation9 + $0x50] sm:$0xf]  ;;  %v9602_v45 = vor.u32 %v10945_v39, %v9599_v20  ;;  %v10936_v39 = vld [vmem:[#allocation9 + $0x4] sm:$0xf0]  ;;  %v9621_v20 = vld [vmem:[#allocation9 + $0x80] sm:$0xf] }
 0x750   : > { %v9598_v57 = vor.u32 %v10946_v58, %v9597_v35  ;;  %v10953_v58 = vld [vmem:[#allocation9 + $0x94] sm:$0xf] }
 0x751   : > { %5675 = vmatpush.bf16.msra.mxu3 %v9602_v45  ;;  %v9559_v45 = vld [vmem:[#allocation9 + $0x8] sm:$0xf0] }
 0x752   : > { %5637 = vmatpush.bf16.msra.mxu0 %v9598_v57  ;;  %v9558_v57 = vor.u32 %v10936_v39, %v9557_v37  ;;  %v9773_v37 = vld [vmem:[#allocation7 + $0xb0] sm:$0xf] }
 0x753   : > { %5329 = vmatpush.bf16.msra.mxu2 %v9546_v56  ;;  %v10961_v56 = vld [vmem:[#allocation9 + $0xd4] sm:$0xf] }
 0x754   : > { %v9666_v53 = vor.u32 %v10961_v56, %v9663_v40  ;;  %v10952_v56 = vld [vmem:[#allocation9 + $0x84] sm:$0xf0]  ;;  %v10935_v40 = vld [vmem:[#allocation9 + $0x4] sm:$0xf] }
 0x755   : > { %v9622_v42 = vor.u32 %v10952_v56, %v9621_v20  ;;  %v10909_v20 = vld [vmem:[#allocation7 + $0x34] sm:$0xf]  ;;  %v9711_v56 = vld [vmem:[#allocation7 + $0x38] sm:$0xf0] }
 0x757   : > { %5330 = vmatpush.bf16.msra.mxu2 %v9538_v49  ;;  %v9589_v49 = vld [vmem:[#allocation9 + $0x40] sm:$0xf] }
 0x75b   : > { %5331 = vmatpush.bf16.msra.mxu2 %v9530_v54  ;;  %v9653_v54 = vld [vmem:[#allocation9 + $0xc0] sm:$0xf] }
 0x75e   : > { %9490 = vmatmul.msk.bf16.gmra.mxu2 %vm5177_vm13, %v10886_v62  ;;  %v9590_v62 = vor.u32 %v10944_v50, %v9589_v49  ;;  %v10951_v49 = vld [vmem:[#allocation9 + $0x84] sm:$0xf]  ;;  %v9623_v50 = vld [vmem:[#allocation9 + $0x88] sm:$0xf0] }
 0x75f   : > { %5332 = vmatpush.bf16.msra.mxu2 %v9522_v60  ;;  %v9591_v60 = vld [vmem:[#allocation9 + $0x48] sm:$0xf0] }
 0x760   : > { %v9594_v51 = vor.u32 %v10943_v59, %v9591_v60  ;;  %5638 = vmatpush.bf16.msra.mxu0 %v9590_v62  ;;  %v10918_v59 = vld [vmem:[#allocation7 + $0x74] sm:$0xf0]  ;;  %v9805_v60 = vld [vmem:[#allocation7 + $0xf0] sm:$0xf] }
 0x761   : > { %v9806_v3 = vor.u32 %v10934_v63, %v9805_v60 }
 0x762   : > { %5676 = vmatpush.bf16.msra.mxu3 %v9594_v51  ;;  %v9807_v51 = vld [vmem:[#allocation7 + $0xf8] sm:$0xf0] }
 0x763   : > { %5333 = vmatpush.bf16.msra.mxu2 %v9514_v4  ;;  %v9654_v4 = vor.u32 %v10960_v55, %v9653_v54  ;;  %v9626_v54 = vor.u32 %v10951_v49, %v9623_v50  ;;  %v9741_v55 = vld [vmem:[#allocation7 + $0x70] sm:$0xf]  ;;  %v9775_v49 = vld [vmem:[#allocation7 + $0xb8] sm:$0xf0]  ;;  %v9701_v50 = vld [vmem:[#allocation7 + $0x20] sm:$0xf] }
 0x764   : > { %5639 = vmatpush.bf16.msra.mxu0 %v9582_v9  ;;  %v9742_v62 = vor.u32 %v10918_v59, %v9741_v55  ;;  %v10915_v9 = vld [vmem:[#allocation7 + $0x64] sm:$0xf]  ;;  %v9765_v55 = vld [vmem:[#allocation7 + $0xa0] sm:$0xf]  ;;  %v10924_v59 = vld [vmem:[#allocation7 + $0xa4] sm:$0xf0] }
 0x765   : > { %5657 = vmatpush.bf16.msra.mxu1 %v9654_v4  ;;  %v10933_v4 = vld [vmem:[#allocation7 + $0xf4] sm:$0xf] }
 0x766   : > { %v9810_v52 = vor.u32 %v10933_v4, %v9807_v51  ;;  %v9767_v51 = vld [vmem:[#allocation7 + $0xa8] sm:$0xf0] }
 0x767   : > { %5334 = vmatpush.bf16.msra.mxu2 %v9506_v7  ;;  %v10941_v7 = vld [vmem:[#allocation9 + $0x34] sm:$0xf] }
 0x768   : > { %5640 = vmatpush.bf16.msra.mxu0 %v9574_v14  ;;  %v10913_v14 = vld [vmem:[#allocation7 + $0x54] sm:$0xf] }
 0x769   : > { %5658 = vmatpush.bf16.msra.mxu1 %v9646_v48  ;;  %v10931_v48 = vld [vmem:[#allocation7 + $0xe4] sm:$0xf] }
 0x76b   : > { %5335 = vmatpush.bf16.msra.mxu2 %v9498_v11  ;;  %v9586_v11 = vor.u32 %v10941_v7, %v9583_v8  ;;  %v10932_v8 = vld [vmem:[#allocation7 + $0xe4] sm:$0xf0] }
 0x76c   : > { %5641 = vmatpush.bf16.msra.mxu0 %v9566_v2  ;;  %v9798_v41 = vor.u32 %v10932_v8, %v9797_v6  ;;  %v10911_v2 = vld [vmem:[#allocation7 + $0x44] sm:$0xf]  ;;  %v9757_v6 = vld [vmem:[#allocation7 + $0x90] sm:$0xf]  ;;  %v10905_v8 = vld [vmem:[#allocation7 + $0x14] sm:$0xf] }
 0x76d   : > { %5677 = vmatpush.bf16.msra.mxu3 %v9586_v11  ;;  %5659 = vmatpush.bf16.msra.mxu1 %v9638_v16  ;;  %v9799_v11 = vld [vmem:[#allocation7 + $0xe8] sm:$0xf0]  ;;  %v9730_v16 = vor.u32 %v10913_v14, %v9727_v30  ;;  %v5224_v30 = vld [vmem:[%s12992_s0 + $0x18] sm:$0xff] }
 0x76e   : > { %v5223_v14 = vld [vmem:[%s12992_s0 + $0x10] sm:$0xff] }
 0x76f   : > { %5692 = vmatpush.bf16.msrb.mxu2 %v9682_v25  ;;  %v10955_v25 = vld [vmem:[#allocation9 + $0xa4] sm:$0xf] }
 0x770   : > { %v9642_v13 = vor.u32 %v10955_v25, %v9639_v33  ;;  %5642 = vmatpush.bf16.msra.mxu0 %v9558_v57  ;;  %v9791_v25 = vld [vmem:[#allocation7 + $0xd8] sm:$0xf0]  ;;  %v10926_v57 = vld [vmem:[#allocation7 + $0xb4] sm:$0xf0] }
 0x771   : > { %5678 = vmatpush.bf16.msra.mxu3 %v9578_v29  ;;  %5660 = vmatpush.bf16.msra.mxu1 %v9630_v19  ;;  %v9794_v33 = vor.u32 %v10929_v27, %v9791_v25  ;;  %v9717_v29 = vld [vmem:[#allocation7 + $0x40] sm:$0xf]  ;;  %v9783_v19 = vld [vmem:[#allocation7 + $0xc8] sm:$0xf0]  ;;  %v10903_v27 = vld [vmem:[#allocation7 + $0x4] sm:$0xf] }
 0x773   : > { %5693 = vmatpush.bf16.msrb.mxu2 %v9674_v61  ;;  %v9631_v61 = vld [vmem:[#allocation9 + $0x98] sm:$0xf0] }
 0x774   : > { %v9634_v28 = vor.u32 %v10953_v58, %v9631_v61  ;;  %5871 = vmatpush.bf16.msrb.mxu0 %v9742_v62  ;;  %v9709_v61 = vld [vmem:[#allocation7 + $0x30] sm:$0xf] }
 0x775   : > { %5661 = vmatpush.bf16.msra.mxu1 %v9622_v42  ;;  %v9714_v42 = vor.u32 %v10909_v20, %v9711_v56  ;;  %v10981_v20 = vld [vmem:[#allocation10 + $0x74] sm:$0xf] }
 0x777   : > { %5694 = vmatpush.bf16.msrb.mxu2 %v9666_v53  ;;  %v9562_v53 = vor.u32 %v10935_v40, %v9559_v45  ;;  %v9774_v40 = vor.u32 %v10926_v57, %v9773_v37  ;;  %v10925_v45 = vld [vmem:[#allocation7 + $0xb4] sm:$0xf]  ;;  %v10998_v57 = vld [vmem:[#allocation10 + $0xf4] sm:$0xf0] }
 0x779   : > { %5890 = vmatpush.bf16.msrb.mxu1 %v9806_v3  ;;  %v9703_v3 = vld [vmem:[#allocation7 + $0x28] sm:$0xf0] }
 0x77b   : > { %5695 = vmatpush.bf16.msrb.mxu2 %v9658_v47  ;;  %v10916_v47 = vld [vmem:[#allocation7 + $0x64] sm:$0xf0] }
 0x77d   : > { %5891 = vmatpush.bf16.msrb.mxu1 %v9798_v41  ;;  %v9695_v41 = vld [vmem:[#allocation7 + $0x18] sm:$0xf0] }
 0x77f   : > { %5696 = vmatpush.bf16.msrb.mxu2 %v9650_v12  ;;  %v9738_v12 = vor.u32 %v10915_v9, %v9735_v10 }
 0x781   : > { %5892 = vmatpush.bf16.msrb.mxu1 %v9790_v24  ;;  %v5222_v24 = vld [vmem:[%s12992_s0 + $0x8] sm:$0xff] }
 0x783   : > { %5697 = vmatpush.bf16.msrb.mxu2 %v9642_v13  ;;  %v10912_v13 = vld [vmem:[#allocation7 + $0x44] sm:$0xf0] }
 0x784   : > { %v9718_v36 = vor.u32 %v10912_v13, %v9717_v29  ;;  %v9687_v13 = vld [vmem:[#allocation7 + $0x8] sm:$0xf0] }
 0x785   : > { %5893 = vmatpush.bf16.msrb.mxu1 %v9782_v23 }
 0x787   : > { %5698 = vmatpush.bf16.msrb.mxu2 %v9634_v28  ;;  %v10910_v28 = vld [vmem:[#allocation7 + $0x34] sm:$0xf0] }
 0x788   : > { %v9710_v39 = vor.u32 %v10910_v28, %v9709_v61  ;;  %v9885_v61 = vld [vmem:[#allocation10 + $0x70] sm:$0xf]  ;;  %v10982_v28 = vld [vmem:[#allocation10 + $0x74] sm:$0xf0] }
 0x789   : > { %5894 = vmatpush.bf16.msrb.mxu1 %v9774_v40  ;;  %v9886_v37 = vor.u32 %v10982_v28, %v9885_v61  ;;  %v9887_v40 = vld [vmem:[#allocation10 + $0x78] sm:$0xf0] }
 0x78b   : > { %5699 = vmatpush.bf16.msrb.mxu2 %v9626_v54  ;;  %v10908_v54 = vld [vmem:[#allocation7 + $0x24] sm:$0xf0] }
 0x78c   : > { %v9702_v63 = vor.u32 %v10908_v54, %v9701_v50  ;;  %v10980_v54 = vld [vmem:[#allocation10 + $0x64] sm:$0xf0] }
 0x7d1   : > { %v5193_v31 = vpop.f32.mrf.mxu2 }
 0x7d9   : > { %v5195_v22 = vpop.f32.mrf.mxu2 }
 0x7da   : > { %v5203_v5 = vpack.c.bf16 %v5195_v22, %v5193_v31  ;;  %v10937_v31 = vld [vmem:[#allocation9 + $0x14] sm:$0xf]  ;;  %v9746_v22 = vor.u32 %v10917_v0, %v9743_v1  ;;  %v9766_v0 = vor.u32 %v10924_v59, %v9765_v55  ;;  %v10907_v1 = vld [vmem:[#allocation7 + $0x24] sm:$0xf]  ;;  %v9941_v55 = vld [vmem:[#allocation10 + $0xe0] sm:$0xf] }
 0x7db   : > { %v9570_v35 = vor.u32 %v10937_v31, %v9567_v38  ;;  %v9719_v31 = vld [vmem:[#allocation7 + $0x48] sm:$0xf0]  ;;  %v10927_v38 = vld [vmem:[#allocation7 + $0xc4] sm:$0xf]  ;;  %v9706_v4 = vor.u32 %v10907_v1, %v9703_v3 }
 0x7dc   : > { %5317 = vmatmul.bf16.vlgmr.msrb.gmra.mxu3 %v5203_v5  ;;  %5336 = vmatmul.bf16.vlgmr.msra.gmra.mxu2 %v5203_v5  ;;  %v9733_v5 = vld [vmem:[#allocation7 + $0x60] sm:$0xf]  ;;  %v9786_v58 = vor.u32 %v10927_v38, %v9783_v19  ;;  %v9690_v19 = vor.u32 %v10903_v27, %v9687_v13  ;;  %v9879_v1 = vld [vmem:[#allocation10 + $0x68] sm:$0xf0] }
 0x7dd   : > { %5679 = vmatpush.bf16.msra.mxu3 %v9570_v35  ;;  %5928 = vmatpush.bf16.msra.mxu2 %v9810_v52  ;;  %v9734_v7 = vor.u32 %v10916_v47, %v9733_v5  ;;  %v9722_v35 = vor.u32 %v10911_v2, %v9719_v31  ;;  %v9693_v52 = vld [vmem:[#allocation7 + $0x10] sm:$0xf]  ;;  %v10906_v5 = vld [vmem:[#allocation7 + $0x14] sm:$0xf0] }
 0x7de   : > { %v9694_v9 = vor.u32 %v10906_v5, %v9693_v52  ;;  %5895 = vmatpush.bf16.msrb.mxu1 %v9766_v0  ;;  %v10979_v0 = vld [vmem:[#allocation10 + $0x64] sm:$0xf] }
 0x7df   : > { %5872 = vmatpush.bf16.msrb.mxu0 %v9734_v7  ;;  %v10922_v7 = vld [vmem:[#allocation7 + $0x94] sm:$0xf0]  ;;  %v9882_v52 = vor.u32 %v10979_v0, %v9879_v1  ;;  %v10988_v0 = vld [vmem:[#allocation10 + $0xa4] sm:$0xf0] }
 0x7e0   : > { %v9758_v10 = vor.u32 %v10922_v7, %v9757_v6  ;;  %v9933_v6 = vld [vmem:[#allocation10 + $0xd0] sm:$0xf]  ;;  %v10994_v7 = vld [vmem:[#allocation10 + $0xd4] sm:$0xf0] }
 0x7e1   : > { %v5198_v17 = vpop.f32.mrf.mxu2  ;;  %5680 = vmatpush.bf16.msra.mxu3 %v9562_v53  ;;  %v9778_v53 = vor.u32 %v10925_v45, %v9775_v49  ;;  %v9951_v45 = vld [vmem:[#allocation10 + $0xf8] sm:$0xf0]  ;;  %v9890_v49 = vor.u32 %v10981_v20, %v9887_v40  ;;  %v10974_v20 = vld [vmem:[#allocation10 + $0x34] sm:$0xf0] }
 0x7e2   : > { %5896 = vmatpush.bf16.msrb.mxu1 %v9758_v10 }
 0x7e5   : > { %5909 = vmatpush.bf16.msrb.mxu3 %v9746_v22  ;;  %v10923_v22 = vld [vmem:[#allocation7 + $0xa4] sm:$0xf] }
 0x7e6   : > { %v9770_v47 = vor.u32 %v10923_v22, %v9767_v51  ;;  %v10995_v22 = vld [vmem:[#allocation10 + $0xe4] sm:$0xf]  ;;  %v9869_v51 = vld [vmem:[#allocation10 + $0x50] sm:$0xf] }
 0x7e9   : > { %v5200_v44 = vpop.f32.mrf.mxu2  ;;  %5910 = vmatpush.bf16.msrb.mxu3 %v9738_v12  ;;  %v9685_v12 = vld [vmem:[#allocation7] sm:$0xf] }
 0x7ea   : > { %v5204_v18 = vpack.c.bf16 %v5200_v44, %v5198_v17  ;;  %v9802_v17 = vor.u32 %v10931_v48, %v9799_v11  ;;  %v9725_v44 = vld [vmem:[#allocation7 + $0x50] sm:$0xf]  ;;  %v10921_v48 = vld [vmem:[#allocation7 + $0x94] sm:$0xf]  ;;  %v9759_v11 = vld [vmem:[#allocation7 + $0x98] sm:$0xf0] }
 0x7ec   : > { %5322 = vmatmul.bf16.gmra.mxu3 %v5204_v18  ;;  %5341 = vmatmul.bf16.gmra.mxu2 %v5204_v18  ;;  %v10914_v18 = vld [vmem:[#allocation7 + $0x54] sm:$0xf0] }
 0x7ed   : > { %v9726_v43 = vor.u32 %v10914_v18, %v9725_v44  ;;  %5929 = vmatpush.bf16.msra.mxu2 %v9802_v17  ;;  %5911 = vmatpush.bf16.msrb.mxu3 %v9730_v16  ;;  %v9698_v17 = vor.u32 %v10905_v8, %v9695_v41  ;;  %v9762_v44 = vor.u32 %v10921_v48, %v9759_v11  ;;  %v10904_v18 = vld [vmem:[#allocation7 + $0x4] sm:$0xf0]  ;;  %v5225_v8 = vld [vmem:[%s12992_s0 + $0x20] sm:$0xff]  ;;  %v5226_v41 = vld [vmem:[%s12992_s0 + $0x28] sm:$0xff] }
 0x7ee   : > { %v9686_v16 = vor.u32 %v10904_v18, %v9685_v12  ;;  %v9934_v48 = vor.u32 %v10994_v7, %v9933_v6  ;;  %v9871_v11 = vld [vmem:[#allocation10 + $0x58] sm:$0xf0]  ;;  %v10993_v12 = vld [vmem:[#allocation10 + $0xd4] sm:$0xf]  ;;  %v9901_v6 = vld [vmem:[#allocation10 + $0x90] sm:$0xf] }
 0x7ef   : > { %5873 = vmatpush.bf16.msrb.mxu0 %v9726_v43  ;;  %v10920_v43 = vld [vmem:[#allocation7 + $0x84] sm:$0xf0]  ;;  %v10986_v7 = vld [vmem:[#allocation10 + $0x94] sm:$0xf0] }
 0x7f0   : > { %v9750_v29 = vor.u32 %v10920_v43, %v9749_v15  ;;  %v9861_v15 = vld [vmem:[#allocation10 + $0x40] sm:$0xf]  ;;  %v10976_v43 = vld [vmem:[#allocation10 + $0x44] sm:$0xf0] }
 0x7f1   : > { %5930 = vmatpush.bf16.msra.mxu2 %v9794_v33  ;;  %5912 = vmatpush.bf16.msrb.mxu3 %v9722_v35 }
 0x7f2   : > { %5897 = vmatpush.bf16.msrb.mxu1 %v9750_v29  ;;  %v9862_v29 = vor.u32 %v10976_v43, %v9861_v15  ;;  %v9829_v15 = vld [vmem:[#allocation10] sm:$0xf]  ;;  %v10968_v43 = vld [vmem:[#allocation10 + $0x4] sm:$0xf0] }
 0x7f3   : > { %5874 = vmatpush.bf16.msrb.mxu0 %v9718_v36  ;;  %v9751_v36 = vld [vmem:[#allocation7 + $0x88] sm:$0xf0] }
 0x7f4   : > { %v9754_v35 = vor.u32 %v10919_v34, %v9751_v36  ;;  %v9863_v34 = vld [vmem:[#allocation10 + $0x48] sm:$0xf0]  ;;  %v10991_v36 = vld [vmem:[#allocation10 + $0xc4] sm:$0xf] }
 0x7f5   : > { %5931 = vmatpush.bf16.msra.mxu2 %v9786_v58  ;;  %5913 = vmatpush.bf16.msrb.mxu3 %v9714_v42  ;;  %v10997_v42 = vld [vmem:[#allocation10 + $0xf4] sm:$0xf] }
 0x7f6   : > { %v9954_v50 = vor.u32 %v10997_v42, %v9951_v45  ;;  %v10990_v42 = vld [vmem:[#allocation10 + $0xb4] sm:$0xf0]  ;;  %v10973_v45 = vld [vmem:[#allocation10 + $0x34] sm:$0xf] }
 0x7f7   : > { %5875 = vmatpush.bf16.msrb.mxu0 %v9710_v39  ;;  %v9949_v39 = vld [vmem:[#allocation10 + $0xf0] sm:$0xf] }
 0x7f8   : > { %v9950_v56 = vor.u32 %v10998_v57, %v9949_v39  ;;  %v9853_v57 = vld [vmem:[#allocation10 + $0x30] sm:$0xf] }
 0x7f9   : > { %5932 = vmatpush.bf16.msra.mxu2 %v9778_v53  ;;  %5914 = vmatpush.bf16.msrb.mxu3 %v9706_v4  ;;  %v9877_v53 = vld [vmem:[#allocation10 + $0x60] sm:$0xf]  ;;  %v9943_v4 = vld [vmem:[#allocation10 + $0xe8] sm:$0xf0]  ;;  %v9854_v40 = vor.u32 %v10974_v20, %v9853_v57 }
 0x7fa   : > { %v9946_v5 = vor.u32 %v10995_v22, %v9943_v4  ;;  %v10971_v22 = vld [vmem:[#allocation10 + $0x24] sm:$0xf]  ;;  %v9847_v4 = vld [vmem:[#allocation10 + $0x28] sm:$0xf0] }
 0x7fb   : > { %5876 = vmatpush.bf16.msrb.mxu0 %v9702_v63  ;;  %v10996_v63 = vld [vmem:[#allocation10 + $0xe4] sm:$0xf0] }
 0x7fc   : > { %v9942_v3 = vor.u32 %v10996_v63, %v9941_v55  ;;  %v9845_v55 = vld [vmem:[#allocation10 + $0x20] sm:$0xf] }
 0x7fd   : > { %5933 = vmatpush.bf16.msra.mxu2 %v9770_v47  ;;  %5915 = vmatpush.bf16.msrb.mxu3 %v9698_v17  ;;  %v10978_v47 = vld [vmem:[#allocation10 + $0x54] sm:$0xf0]  ;;  %v9935_v17 = vld [vmem:[#allocation10 + $0xd8] sm:$0xf0]  ;;  %v9909_v63 = vld [vmem:[#allocation10 + $0xa0] sm:$0xf] }
 0x7fe   : > { %v9870_v10 = vor.u32 %v10978_v47, %v9869_v51  ;;  %v9938_v18 = vor.u32 %v10993_v12, %v9935_v17  ;;  %v10987_v51 = vld [vmem:[#allocation10 + $0xa4] sm:$0xf]  ;;  %v10970_v47 = vld [vmem:[#allocation10 + $0x14] sm:$0xf0]  ;;  %v9902_v17 = vor.u32 %v10986_v7, %v9901_v6 }
 0x7ff   : > { %5877 = vmatpush.bf16.msrb.mxu0 %v9694_v9  ;;  %v10977_v9 = vld [vmem:[#allocation10 + $0x54] sm:$0xf] }
 0x801   : > { %5934 = vmatpush.bf16.msra.mxu2 %v9762_v44  ;;  %5916 = vmatpush.bf16.msrb.mxu3 %v9690_v19  ;;  %v9874_v44 = vor.u32 %v10977_v9, %v9871_v11  ;;  %v9839_v11 = vld [vmem:[#allocation10 + $0x18] sm:$0xf0] }
 0x803   : > { %5878 = vmatpush.bf16.msrb.mxu0 %v9686_v16  ;;  %v10975_v16 = vld [vmem:[#allocation10 + $0x44] sm:$0xf] }
 0x805   : > { %5935 = vmatpush.bf16.msra.mxu2 %v9754_v35 }
 0x85f   : > { %v5318_v60 = vpop.f32.mrf.mxu3  ;;  %v5337_v62 = vpop.f32.mrf.mxu2 }
 0x860   : > { %v12998_v32 = vadd.f32 %v5318_v60, %v5221_v46  ;;  %v13004_v31 = vadd.f32 %v5337_v62, %v5222_v24  ;;  %v9878_v62 = vor.u32 %v10980_v54, %v9877_v53  ;;  %v9925_v46 = vld [vmem:[#allocation10 + $0xc0] sm:$0xf]  ;;  %v10992_v24 = vld [vmem:[#allocation10 + $0xc4] sm:$0xf0]  ;;  %v10989_v53 = vld [vmem:[#allocation10 + $0xb4] sm:$0xf] }
 0x861   : > { %v9926_v13 = vor.u32 %v10992_v24, %v9925_v46  ;;  %v9919_v54 = vld [vmem:[#allocation10 + $0xb8] sm:$0xf0]  ;;  %v9893_v46 = vld [vmem:[#allocation10 + $0x80] sm:$0xf] }
 0x862   : > { %v5356_v24 = vrot.slane %v13004_v31, 7 }
 0x867   : > { %v5320_v25 = vpop.f32.mrf.mxu3  ;;  %v5339_v33 = vpop.f32.mrf.mxu2 }
 0x868   : > { %v13000_v2 = vadd.f32 %v5320_v25, %v5223_v14  ;;  %v13002_v23 = vadd.f32 %v5339_v33, %v5224_v30  ;;  %v5227_v14 = vld [vmem:[%s12992_s0 + $0x30] sm:$0xff]  ;;  %v5228_v30 = vld [vmem:[%s12992_s0 + $0x38] sm:$0xff]  ;;  %s1175_s0 = scalar_lea.vmem %s11787_s3, %s10451_s26 }
 0x86a   : > { %v5439_v38 = vpack.c.bf16 %v13000_v2, %v12998_v32  ;;  %v5440_v58 = vpack.c.bf16 %v13002_v23, %v13004_v31  ;;  %v5359_v9 = vrot.slane %v13002_v23, 7 }
 0x86c   : > { %5643 = vmatmul.bf16.vlgmr.msra.gmra.mxu0 %v5439_v38  ;;  %5681 = vmatmul.bf16.vlgmr.msra.gmra.mxu3 %v5439_v38  ;;  %v9927_v38 = vld [vmem:[#allocation10 + $0xc8] sm:$0xf0] }
 0x86d   : > { %5662 = vmatmul.bf16.vlgmr.msra.gmra.mxu1 %v5440_v58  ;;  %5700 = vmatmul.bf16.vlgmr.msrb.gmra.mxu2 %v5440_v58  ;;  %v9930_v39 = vor.u32 %v10991_v36, %v9927_v38  ;;  %v9831_v36 = vld [vmem:[#allocation10 + $0x8] sm:$0xf0]  ;;  %v10983_v38 = vld [vmem:[#allocation10 + $0x84] sm:$0xf] }
 0x86e   : > { %6143 = vmatpush.bf16.msra.mxu0 %v9886_v37  ;;  %6162 = vmatpush.bf16.msra.mxu1 %v9950_v56  ;;  %v9866_v37 = vor.u32 %v10975_v16, %v9863_v34  ;;  %v9917_v56 = vld [vmem:[#allocation10 + $0xb0] sm:$0xf] }
 0x86f   : > { %v5323_v59 = vpop.f32.mrf.mxu3  ;;  %v5342_v60 = vpop.f32.mrf.mxu2  ;;  %6181 = vmatpush.bf16.msra.mxu3 %v9890_v49  ;;  %6200 = vmatpush.bf16.msrb.mxu2 %v9954_v50  ;;  %v9855_v49 = vld [vmem:[#allocation10 + $0x38] sm:$0xf0]  ;;  %v9918_v50 = vor.u32 %v10990_v42, %v9917_v56 }
 0x870   : > { %v13014_v27 = vadd.f32 %v5323_v59, %v5225_v8  ;;  %v13016_v19 = vadd.f32 %v5342_v60, %v5226_v41  ;;  %v9858_v59 = vor.u32 %v10973_v45, %v9855_v49  ;;  %v9922_v60 = vor.u32 %v10989_v53, %v9919_v54 }
 0x871   : > { %v5357_v8 = vrot.slane %v13000_v2, 7  ;;  %v9850_v41 = vor.u32 %v10971_v22, %v9847_v4  ;;  %v5382_v22 = vrot.slane %v13004_v31, 1 }
 0x872   : > { %6144 = vmatpush.bf16.msra.mxu0 %v9878_v62  ;;  %6163 = vmatpush.bf16.msra.mxu1 %v9942_v3  ;;  %v10972_v62 = vld [vmem:[#allocation10 + $0x24] sm:$0xf0]  ;;  %v9910_v3 = vor.u32 %v10988_v0, %v9909_v63  ;;  %v5361_v42 = vrot.slane %v13014_v27, 7  ;;  %v5363_v45 = vrot.slane %v13016_v19, 7  ;;  %v5380_v63 = vrot.slane %v13000_v2, 1 }
 0x873   : > { %6182 = vmatpush.bf16.msra.mxu3 %v9882_v52  ;;  %6201 = vmatpush.bf16.msrb.mxu2 %v9946_v5  ;;  %v9846_v1 = vor.u32 %v10972_v62, %v9845_v55  ;;  %v9911_v52 = vld [vmem:[#allocation10 + $0xa8] sm:$0xf0]  ;;  %v9837_v5 = vld [vmem:[#allocation10 + $0x10] sm:$0xf]  ;;  %v5387_v62 = vrot.slane %v13016_v19, 1  ;;  %v5383_v0 = vrot.slane %v13002_v23, 1 }
 0x874   : > { %v9838_v12 = vor.u32 %v10970_v47, %v9837_v5  ;;  %v5362_v53 = vsel %vm1341_vm0, %v5357_v8, %v5361_v42  ;;  %v5364_v55 = vsel %vm1341_vm0, %v5359_v9, %v5363_v45 }
 0x875   : > { %v5388_v4 = vsel %vm1354_vm4, %v5383_v0, %v5387_v62  ;;  %v5384_v5 = vsel %vm1354_vm4, %v5382_v22, %v5383_v0  ;;  %v11041_v0 = vld [vmem:[#allocation13 + $0x54] sm:$0xf] }
 0x876   : > { %6145 = vmatpush.bf16.msra.mxu0 %v9870_v10  ;;  %6164 = vmatpush.bf16.msra.mxu1 %v9934_v48  ;;  %v9914_v10 = vor.u32 %v10987_v51, %v9911_v52  ;;  %v10969_v48 = vld [vmem:[#allocation10 + $0x14] sm:$0xf]  ;;  %v5948_v47 = vpack.c.bf16 %v5388_v4, %v5384_v5  ;;  %v10083_v5 = vld [vmem:[#allocation13 + $0xe8] sm:$0xf0] }
 0x877   : > { %v5325_v25 = vpop.f32.mrf.mxu3  ;;  %v5344_v33 = vpop.f32.mrf.mxu2  ;;  %6183 = vmatpush.bf16.msra.mxu3 %v9874_v44  ;;  %6202 = vmatpush.bf16.msrb.mxu2 %v9938_v18  ;;  %v10985_v44 = vld [vmem:[#allocation10 + $0x94] sm:$0xf]  ;;  %v9903_v18 = vld [vmem:[#allocation10 + $0x98] sm:$0xf0]  ;;  %v9842_v16 = vor.u32 %v10969_v48, %v9839_v11 }
 0x878   : > { %v13018_v35 = vadd.f32 %v5325_v25, %v5227_v14  ;;  %v13020_v58 = vadd.f32 %v5344_v33, %v5228_v30  ;;  %v10984_v14 = vld [vmem:[#allocation10 + $0x84] sm:$0xf0]  ;;  %v5355_v30 = vrot.slane %v12998_v32, 7  ;;  %v9906_v25 = vor.u32 %v10985_v44, %v9903_v18  ;;  %v10967_v33 = vld [vmem:[#allocation10 + $0x4] sm:$0xf] }
 0x879   : > { %v9894_v34 = vor.u32 %v10984_v14, %v9893_v46 }
 0x87a   : > { %v5441_v61 = vpack.c.bf16 %v13018_v35, %v13014_v27  ;;  %v5442_v28 = vpack.c.bf16 %v13020_v58, %v13016_v19  ;;  %6146 = vmatpush.bf16.msra.mxu0 %v9862_v29  ;;  %6165 = vmatpush.bf16.msra.mxu1 %v9926_v13  ;;  %v5358_v29 = vsel %vm1341_vm0, %v5355_v30, %v5357_v8  ;;  %v5365_v56 = vrot.slane %v13018_v35, 7 }
 0x87b   : > { %6184 = vmatpush.bf16.msra.mxu3 %v9866_v37  ;;  %6203 = vmatpush.bf16.msrb.mxu2 %v9930_v39  ;;  %v9830_v13 = vor.u32 %v10968_v43, %v9829_v15  ;;  %v9813_v37 = vpack.c.bf16 %v5358_v29, %v5355_v30  ;;  %v9834_v39 = vor.u32 %v10967_v33, %v9831_v36  ;;  %v5389_v6 = vrot.slane %v13018_v35, 1  ;;  %v11046_v33 = vld [vmem:[#allocation13 + $0x74] sm:$0xf0]  ;;  %v11045_v29 = vld [vmem:[#allocation13 + $0x74] sm:$0xf] }
 0x87c   : > { %5648 = vmatmul.bf16.gmra.mxu0 %v5441_v61  ;;  %5686 = vmatmul.bf16.gmra.mxu3 %v5441_v61  ;;  %v9895_v61 = vld [vmem:[#allocation10 + $0x88] sm:$0xf0]  ;;  %v5366_v49 = vsel %vm1341_vm0, %v5361_v42, %v5365_v56  ;;  %v5391_v7 = vrot.slane %v13020_v58, 1  ;;  %v11043_v56 = vld [vmem:[#allocation13 + $0x64] sm:$0xf] }
 0x87d   : > { %5667 = vmatmul.bf16.gmra.mxu1 %v5442_v28  ;;  %5705 = vmatmul.bf16.gmra.mxu2 %v5442_v28  ;;  %v5360_v28 = vsel %vm1341_vm0, %v5356_v24, %v5359_v9  ;;  %v9898_v57 = vor.u32 %v10983_v38, %v9895_v61  ;;  %v5405_v54 = vpack.c.bf16 %v5366_v49, %v5362_v53  ;;  %v10019_v42 = vld [vmem:[#allocation13 + $0x68] sm:$0xf0]  ;;  %v10089_v49 = vld [vmem:[#allocation13 + $0xf0] sm:$0xf]  ;;  %v11061_v53 = vld [vmem:[#allocation13 + $0xf4] sm:$0xf] }
 0x87e   : > { %6147 = vmatpush.bf16.msra.mxu0 %v9854_v40  ;;  %6166 = vmatpush.bf16.msra.mxu1 %v9918_v50  ;;  %v9817_v20 = vpack.c.bf16 %v5360_v28, %v5356_v24  ;;  %v5367_v40 = vrot.slane %v13020_v58, 7  ;;  %v5392_v9 = vsel %vm1354_vm4, %v5387_v62, %v5391_v7 }
 0x87f   : > { %6185 = vmatpush.bf16.msra.mxu3 %v9858_v59  ;;  %6204 = vmatpush.bf16.msrb.mxu2 %v9922_v60  ;;  %v5385_v60 = vrot.slane %v13014_v27, 1 }
 0x880   : > { %v5368_v50 = vsel %vm1341_vm0, %v5363_v45, %v5367_v40  ;;  %v10022_v45 = vor.u32 %v11043_v56, %v10019_v42  ;;  %v9995_v42 = vld [vmem:[#allocation13 + $0x38] sm:$0xf0] }
 0x881   : > { %v5406_v59 = vpack.c.bf16 %v5368_v50, %v5364_v55  ;;  %v5390_v8 = vsel %vm1354_vm4, %v5385_v60, %v5389_v6  ;;  %v11062_v50 = vld [vmem:[#allocation13 + $0xf4] sm:$0xf0]  ;;  %v10091_v55 = vld [vmem:[#allocation13 + $0xf8] sm:$0xf0] }
 0x882   : > { %6148 = vmatpush.bf16.msra.mxu0 %v9846_v1  ;;  %6167 = vmatpush.bf16.msra.mxu1 %v9910_v3  ;;  %v5379_v1 = vrot.slane %v12998_v32, 1  ;;  %v5386_v3 = vsel %vm1354_vm4, %v5380_v63, %v5385_v60  ;;  %v11042_v60 = vld [vmem:[#allocation13 + $0x54] sm:$0xf0]  ;;  %v10094_v62 = vor.u32 %v11061_v53, %v10091_v55  ;;  %v11055_v53 = vld [vmem:[#allocation13 + $0xc4] sm:$0xf] }
 0x883   : > { %6186 = vmatpush.bf16.msra.mxu3 %v9850_v41  ;;  %6205 = vmatpush.bf16.msrb.mxu2 %v9914_v10  ;;  %v9956_v41 = vpack.c.bf16 %v5389_v6, %v5390_v8  ;;  %v9959_v10 = vpack.c.bf16 %v5391_v7, %v5392_v9 }
 0x884   : > { %v5381_v51 = vsel %vm1354_vm4, %v5379_v1, %v5380_v63  ;;  %v10011_v1 = vld [vmem:[#allocation13 + $0x58] sm:$0xf0] }
 0x885   : > { %v5947_v52 = vpack.c.bf16 %v5386_v3, %v5381_v51  ;;  %v10081_v3 = vld [vmem:[#allocation13 + $0xe0] sm:$0xf]  ;;  %v10014_v4 = vor.u32 %v11041_v0, %v10011_v1  ;;  %v11060_v51 = vld [vmem:[#allocation13 + $0xe4] sm:$0xf0]  ;;  %v11035_v0 = vld [vmem:[#allocation13 + $0x24] sm:$0xf] }
 0x886   : > { %6149 = vmatpush.bf16.msra.mxu0 %v9838_v12  ;;  %6168 = vmatpush.bf16.msra.mxu1 %v9902_v17  ;;  %v10082_v6 = vor.u32 %v11060_v51, %v10081_v3 }
 0x887   : > { %6187 = vmatpush.bf16.msra.mxu3 %v9842_v16  ;;  %6206 = vmatpush.bf16.msrb.mxu2 %v9906_v25  ;;  %v10025_v25 = vld [vmem:[#allocation13 + $0x70] sm:$0xf] }
 0x88a   : > { %6150 = vmatpush.bf16.msra.mxu0 %v9830_v13  ;;  %6169 = vmatpush.bf16.msra.mxu1 %v9894_v34  ;;  %v10026_v13 = vor.u32 %v11046_v33, %v10025_v25  ;;  %v10027_v34 = vld [vmem:[#allocation13 + $0x78] sm:$0xf0]  ;;  %v10073_v33 = vld [vmem:[#allocation13 + $0xd0] sm:$0xf] }
 0x88b   : > { %6188 = vmatpush.bf16.msra.mxu3 %v9834_v39  ;;  %6207 = vmatpush.bf16.msrb.mxu2 %v9898_v57  ;;  %v10030_v36 = vor.u32 %v11045_v29, %v10027_v34  ;;  %v10017_v57 = vld [vmem:[#allocation13 + $0x60] sm:$0xf]  ;;  %v11058_v29 = vld [vmem:[#allocation13 + $0xd4] sm:$0xf0] }
 0x88c   : > { %9814 = vmatmul.msk.bf16.vlgmr.msrb.gmra.mxu0 %vm12248_vm3, %v9813_v37  ;;  %9822 = vmatmul.msk.bf16.vlgmr.msrb.gmra.mxu3 %vm12248_vm3, %v9813_v37 }
 0x88d   : > { %9818 = vmatmul.msk.bf16.vlgmr.msrb.gmra.mxu1 %vm12248_vm3, %v9817_v20  ;;  %9826 = vmatmul.msk.bf16.vlgmr.msra.gmra.mxu2 %vm12248_vm3, %v9817_v20  ;;  %v11044_v20 = vld [vmem:[#allocation13 + $0x64] sm:$0xf0] }
 0x88e   : > { %6523 = vmatpush.bf16.msrb.mxu0 %v10026_v13  ;;  %v10018_v40 = vor.u32 %v11044_v20, %v10017_v57  ;;  %v11057_v13 = vld [vmem:[#allocation13 + $0xd4] sm:$0xf]  ;;  %v11038_v57 = vld [vmem:[#allocation13 + $0x34] sm:$0xf0] }
 0x88f   : > { %6561 = vmatpush.bf16.msrb.mxu3 %v10030_v36  ;;  %6580 = vmatpush.bf16.msra.mxu2 %v10094_v62  ;;  %v10074_v36 = vor.u32 %v11058_v29, %v10073_v33  ;;  %v9985_v62 = vld [vmem:[#allocation13 + $0x20] sm:$0xf]  ;;  %v11033_v33 = vld [vmem:[#allocation13 + $0x14] sm:$0xf] }
 0x892   : > { %6524 = vmatpush.bf16.msrb.mxu0 %v10018_v40  ;;  %v11037_v40 = vld [vmem:[#allocation13 + $0x34] sm:$0xf] }
 0x893   : > { %6562 = vmatpush.bf16.msrb.mxu3 %v10022_v45  ;;  %v10065_v45 = vld [vmem:[#allocation13 + $0xc0] sm:$0xf] }
 0x897   : > { %6563 = vmatpush.bf16.msrb.mxu3 %v10014_v4  ;;  %v9987_v4 = vld [vmem:[#allocation13 + $0x28] sm:$0xf0] }
 0x89c   : > { %5884 = vmatmul.bf16.gmra.mxu0 %v5405_v54  ;;  %5922 = vmatmul.bf16.gmra.mxu3 %v5405_v54  ;;  %v10090_v54 = vor.u32 %v11062_v50, %v10089_v49  ;;  %v9998_v49 = vor.u32 %v11037_v40, %v9995_v42  ;;  %v11056_v50 = vld [vmem:[#allocation13 + $0xc4] sm:$0xf0] }
 0x89d   : > { %5903 = vmatmul.bf16.gmra.mxu1 %v5406_v59  ;;  %5941 = vmatmul.bf16.gmra.mxu2 %v5406_v59  ;;  %v10009_v59 = vld [vmem:[#allocation13 + $0x50] sm:$0xf]  ;;  %v10066_v55 = vor.u32 %v11056_v50, %v10065_v45  ;;  %v9969_v45 = vld [vmem:[#allocation13] sm:$0xf]  ;;  %v11031_v50 = vld [vmem:[#allocation13 + $0x4] sm:$0xf] }
 0x89e   : > { %v10010_v63 = vor.u32 %v11042_v60, %v10009_v59  ;;  %6542 = vmatpush.bf16.msrb.mxu1 %v10090_v54  ;;  %v10067_v54 = vld [vmem:[#allocation13 + $0xc8] sm:$0xf0] }
 0x89f   : > { %v10070_v59 = vor.u32 %v11055_v53, %v10067_v54 }
 0x8a0   : > { %6525 = vmatpush.bf16.msrb.mxu0 %v10010_v63  ;;  %v11036_v63 = vld [vmem:[#allocation13 + $0x24] sm:$0xf0] }
 0x8a1   : > { %v9986_v3 = vor.u32 %v11036_v63, %v9985_v62  ;;  %v10041_v63 = vld [vmem:[#allocation13 + $0x90] sm:$0xf] }
 0x8a2   : > { %6543 = vmatpush.bf16.msrb.mxu1 %v10082_v6  ;;  %v11054_v6 = vld [vmem:[#allocation13 + $0xb4] sm:$0xf0] }
 0x8a6   : > { %6544 = vmatpush.bf16.msrb.mxu1 %v10074_v36  ;;  %v10049_v36 = vld [vmem:[#allocation13 + $0xa0] sm:$0xf] }
 0x8aa   : > { %6545 = vmatpush.bf16.msrb.mxu1 %v10066_v55  ;;  %v9971_v55 = vld [vmem:[#allocation13 + $0x8] sm:$0xf0] }
 0x8ab   : > { %v9974_v62 = vor.u32 %v11031_v50, %v9971_v55  ;;  %v10147_v50 = vld [vmem:[#allocation12 + $0x68] sm:$0xf0] }
 0x8ac   : > { %6151 = vmatmul.bf16.vlgmr.msra.gmra.mxu0 %v5947_v52  ;;  %6189 = vmatmul.bf16.vlgmr.msra.gmra.mxu3 %v5947_v52  ;;  %v11059_v52 = vld [vmem:[#allocation13 + $0xe4] sm:$0xf] }
 0x8ad   : > { %6170 = vmatmul.bf16.vlgmr.msra.gmra.mxu1 %v5948_v47  ;;  %6208 = vmatmul.bf16.vlgmr.msrb.gmra.mxu2 %v5948_v47  ;;  %v10086_v7 = vor.u32 %v11059_v52, %v10083_v5  ;;  %v9990_v52 = vor.u32 %v11035_v0, %v9987_v4  ;;  %v10057_v5 = vld [vmem:[#allocation13 + $0xb0] sm:$0xf]  ;;  %v11050_v0 = vld [vmem:[#allocation13 + $0x94] sm:$0xf0] }
 0x8af   : > { %6581 = vmatpush.bf16.msra.mxu2 %v10086_v7  ;;  %v11053_v7 = vld [vmem:[#allocation13 + $0xb4] sm:$0xf] }
 0x8bc   : > { %9957 = vmatmul.msk.bf16.gmra.mxu0 %vm12304_vm5, %v9956_v41  ;;  %9963 = vmatmul.msk.bf16.gmra.mxu3 %vm12304_vm5, %v9956_v41  ;;  %v10001_v41 = vld [vmem:[#allocation13 + $0x40] sm:$0xf] }
 0x8bd   : > { %9960 = vmatmul.msk.bf16.gmra.mxu1 %vm12304_vm5, %v9959_v10  ;;  %9966 = vmatmul.msk.bf16.gmra.mxu2 %vm12304_vm5, %v9959_v10  ;;  %v11040_v10 = vld [vmem:[#allocation13 + $0x44] sm:$0xf0] }
 0x8e9   : > { %v5644_v48 = vpop.f32.mrf.mxu0 }
 0x8ea   : > { %v5663_v11 = vpop.f32.mrf.mxu1 }
 0x8eb   : > { %v13070_v12 = vadd.f32 %v5663_v11, %v5644_v48  ;;  %v11039_v48 = vld [vmem:[#allocation13 + $0x44] sm:$0xf]  ;;  %v10002_v11 = vor.u32 %v11040_v10, %v10001_v41  ;;  %v10058_v10 = vor.u32 %v11054_v6, %v10057_v5  ;;  %v10043_v5 = vld [vmem:[#allocation13 + $0x98] sm:$0xf0] }
 0x8ed   : > { %6526 = vmatpush.bf16.msrb.mxu0 %v10002_v11  ;;  %6546 = vmatpush.bf16.msrb.mxu1 %v10058_v10  ;;  %v11014_v10 = vld [vmem:[#allocation12 + $0x74] sm:$0xf0] }
 0x8ef   : > { %v5682_v17 = vpop.f32.mrf.mxu3 }
 0x8f0   : > { %v5701_v44 = vpop.f32.mrf.mxu2 }
 0x8f1   : > { %v13072_v18 = vadd.f32 %v5701_v44, %v5682_v17  ;;  %v13074_v15 = vpop.f32.mrf.mxu0  ;;  %v10003_v17 = vld [vmem:[#allocation13 + $0x48] sm:$0xf0] }
 0x8f2   : > { %v13076_v43 = vpop.f32.mrf.mxu1  ;;  %v10006_v44 = vor.u32 %v11039_v48, %v10003_v17  ;;  %v10059_v48 = vld [vmem:[#allocation13 + $0xb8] sm:$0xf0]  ;;  %v9977_v17 = vld [vmem:[#allocation13 + $0x10] sm:$0xf] }
 0x8f3   : > { %v10062_v11 = vor.u32 %v11053_v7, %v10059_v48  ;;  %v10153_v7 = vld [vmem:[#allocation12 + $0x70] sm:$0xf]  ;;  %v11013_v48 = vld [vmem:[#allocation12 + $0x74] sm:$0xf] }
 0x8f4   : > { %6564 = vmatpush.bf16.msrb.mxu3 %v10006_v44  ;;  %v11034_v44 = vld [vmem:[#allocation13 + $0x14] sm:$0xf0] }
 0x8f5   : > { %v9978_v29 = vor.u32 %v11034_v44, %v9977_v17  ;;  %v10155_v17 = vld [vmem:[#allocation12 + $0x78] sm:$0xf0]  ;;  %v10033_v44 = vld [vmem:[#allocation13 + $0x80] sm:$0xf] }
 0x8f7   : > { %v13078_v46 = vpop.f32.mrf.mxu3 }
 0x8f8   : > { %v13080_v14 = vpop.f32.mrf.mxu2  ;;  %6565 = vmatpush.bf16.msrb.mxu3 %v9998_v49  ;;  %v11032_v49 = vld [vmem:[#allocation13 + $0x4] sm:$0xf0] }
 0x8f9   : > { %v5649_v30 = vpop.f32.mrf.mxu0  ;;  %v9970_v54 = vor.u32 %v11032_v49, %v9969_v45 }
 0x8fa   : > { %v5668_v24 = vpop.f32.mrf.mxu1 }
 0x8fb   : > { %v13082_v16 = vadd.f32 %v5668_v24, %v5649_v30 }
 0x8fc   : > { %6566 = vmatpush.bf16.msrb.mxu3 %v9990_v52  ;;  %v10042_v52 = vor.u32 %v11050_v0, %v10041_v63  ;;  %v11030_v63 = vld [vmem:[#allocation12 + $0xf4] sm:$0xf0]  ;;  %v11029_v0 = vld [vmem:[#allocation12 + $0xf4] sm:$0xf] }
 0x8ff   : > { %v5687_v38 = vpop.f32.mrf.mxu3 }
 0x900   : > { %v5706_v61 = vpop.f32.mrf.mxu2 }
 0x901   : > { %v13084_v28 = vadd.f32 %v5706_v61, %v5687_v38  ;;  %v13086_v37 = vpop.f32.mrf.mxu0  ;;  %v10075_v38 = vld [vmem:[#allocation13 + $0xd8] sm:$0xf0]  ;;  %v9993_v61 = vld [vmem:[#allocation13 + $0x30] sm:$0xf] }
 0x902   : > { %v13088_v39 = vpop.f32.mrf.mxu1  ;;  %v10078_v20 = vor.u32 %v11057_v13, %v10075_v38  ;;  %v9994_v56 = vor.u32 %v11038_v57, %v9993_v61  ;;  %v9979_v13 = vld [vmem:[#allocation13 + $0x18] sm:$0xf0]  ;;  %v11052_v38 = vld [vmem:[#allocation13 + $0xa4] sm:$0xf0] }
 0x903   : > { %v9982_v61 = vor.u32 %v11033_v33, %v9979_v13  ;;  %v10050_v57 = vor.u32 %v11052_v38, %v10049_v36  ;;  %v11048_v33 = vld [vmem:[#allocation13 + $0x84] sm:$0xf0]  ;;  %v11047_v36 = vld [vmem:[#allocation13 + $0x84] sm:$0xf]  ;;  %v10035_v38 = vld [vmem:[#allocation13 + $0x88] sm:$0xf0] }
 0x904   : > { %6582 = vmatpush.bf16.msra.mxu2 %v10078_v20  ;;  %6527 = vmatpush.bf16.msrb.mxu0 %v9994_v56  ;;  %v11051_v20 = vld [vmem:[#allocation13 + $0xa4] sm:$0xf]  ;;  %v10051_v56 = vld [vmem:[#allocation13 + $0xa8] sm:$0xf0]  ;;  %v10034_v13 = vor.u32 %v11048_v33, %v10033_v44  ;;  %v10209_v44 = vld [vmem:[#allocation12 + $0xe0] sm:$0xf]  ;;  %v5666_v33 = vadd.f32 %v13076_v43, %v13074_v15 }
 0x905   : > { %v10054_v40 = vor.u32 %v11051_v20, %v10051_v56  ;;  %6567 = vmatpush.bf16.msrb.mxu3 %v9982_v61  ;;  %6547 = vmatpush.bf16.msrb.mxu1 %v10050_v57  ;;  %v10038_v61 = vor.u32 %v11047_v36, %v10035_v38  ;;  %v10145_v20 = vld [vmem:[#allocation12 + $0x60] sm:$0xf]  ;;  %v11012_v56 = vld [vmem:[#allocation12 + $0x64] sm:$0xf0]  ;;  %v11027_v36 = vld [vmem:[#allocation12 + $0xe4] sm:$0xf] }
 0x906   : > { %v10146_v49 = vor.u32 %v11012_v56, %v10145_v20  ;;  %v10211_v38 = vld [vmem:[#allocation12 + $0xe8] sm:$0xf0] }
 0x907   : > { %v13090_v22 = vpop.f32.mrf.mxu3  ;;  %v10214_v56 = vor.u32 %v11027_v36, %v10211_v38  ;;  %v11005_v36 = vld [vmem:[#allocation12 + $0x34] sm:$0xf]  ;;  %v10123_v38 = vld [vmem:[#allocation12 + $0x38] sm:$0xf0] }
 0x908   : > { %v13092_v47 = vpop.f32.mrf.mxu2  ;;  %6583 = vmatpush.bf16.msra.mxu2 %v10070_v59  ;;  %6528 = vmatpush.bf16.msrb.mxu0 %v9986_v3  ;;  %v11049_v3 = vld [vmem:[#allocation13 + $0x94] sm:$0xf] }
 0x909   : > { %v13094_v8 = vpop.f32.mrf.mxu0  ;;  %6568 = vmatpush.bf16.msrb.mxu3 %v9974_v62  ;;  %v10046_v6 = vor.u32 %v11049_v3, %v10043_v5  ;;  %6548 = vmatpush.bf16.msrb.mxu1 %v10042_v52  ;;  %v10217_v62 = vld [vmem:[#allocation12 + $0xf0] sm:$0xf]  ;;  %v10219_v5 = vld [vmem:[#allocation12 + $0xf8] sm:$0xf0] }
 0x90a   : > { %v13096_v9 = vpop.f32.mrf.mxu1  ;;  %v10218_v52 = vor.u32 %v11030_v63, %v10217_v62  ;;  %v11008_v62 = vld [vmem:[#allocation12 + $0x44] sm:$0xf0]  ;;  %v11007_v63 = vld [vmem:[#allocation12 + $0x44] sm:$0xf] }
 0x90c   : > { %6584 = vmatpush.bf16.msra.mxu2 %v10062_v11  ;;  %6529 = vmatpush.bf16.msrb.mxu0 %v9978_v29  ;;  %v10154_v11 = vor.u32 %v11014_v10, %v10153_v7  ;;  %v10158_v29 = vor.u32 %v11013_v48, %v10155_v17  ;;  %v11010_v7 = vld [vmem:[#allocation12 + $0x54] sm:$0xf0]  ;;  %v10222_v10 = vor.u32 %v11029_v0, %v10219_v5  ;;  %v10139_v17 = vld [vmem:[#allocation12 + $0x58] sm:$0xf0]  ;;  %v10131_v0 = vld [vmem:[#allocation12 + $0x48] sm:$0xf0] }
 0x90d   : > { %6549 = vmatpush.bf16.msrb.mxu1 %v10034_v13  ;;  %v11028_v13 = vld [vmem:[#allocation12 + $0xe4] sm:$0xf0] }
 0x90e   : > { %6797 = vmatpush.bf16.msra.mxu3 %v10158_v29  ;;  %v10210_v20 = vor.u32 %v11028_v13, %v10209_v44  ;;  %v11006_v44 = vld [vmem:[#allocation12 + $0x34] sm:$0xf0] }
 0x90f   : > { %v13098_v30 = vpop.f32.mrf.mxu3 }
 0x910   : > { %v13100_v24 = vpop.f32.mrf.mxu2  ;;  %6585 = vmatpush.bf16.msra.mxu2 %v10054_v40  ;;  %6530 = vmatpush.bf16.msrb.mxu0 %v9970_v54  ;;  %v11011_v40 = vld [vmem:[#allocation12 + $0x64] sm:$0xf] }
 0x911   : > { %v13102_v25 = vpop.f32.mrf.mxu0  ;;  %v10150_v55 = vor.u32 %v11011_v40, %v10147_v50  ;;  %6778 = vmatpush.bf16.msra.mxu1 %v10218_v52  ;;  %v10201_v52 = vld [vmem:[#allocation12 + $0xd0] sm:$0xf] }
 0x912   : > { %v13104_v34 = vpop.f32.mrf.mxu1  ;;  %v5883_v40 = vadd.f32 %v13102_v25, %v5666_v33  ;;  %v5704_v25 = vadd.f32 %v13080_v14, %v13078_v46  ;;  %v11024_v14 = vld [vmem:[#allocation12 + $0xc4] sm:$0xf0] }
 0x913   : > { %6798 = vmatpush.bf16.msra.mxu3 %v10150_v55  ;;  %v10129_v55 = vld [vmem:[#allocation12 + $0x40] sm:$0xf] }
 0x914   : > { %6586 = vmatpush.bf16.msra.mxu2 %v10046_v6  ;;  %6759 = vmatpush.bf16.msra.mxu0 %v10154_v11  ;;  %v10137_v6 = vld [vmem:[#allocation12 + $0x50] sm:$0xf]  ;;  %v11009_v11 = vld [vmem:[#allocation12 + $0x54] sm:$0xf]  ;;  %v10130_v43 = vor.u32 %v11008_v62, %v10129_v55  ;;  %v11004_v62 = vld [vmem:[#allocation12 + $0x24] sm:$0xf0] }
 0x915   : > { %v10138_v48 = vor.u32 %v11010_v7, %v10137_v6  ;;  %v10142_v29 = vor.u32 %v11009_v11, %v10139_v17  ;;  %6779 = vmatpush.bf16.msra.mxu1 %v10210_v20  ;;  %v11026_v6 = vld [vmem:[#allocation12 + $0xd4] sm:$0xf0]  ;;  %v11025_v7 = vld [vmem:[#allocation12 + $0xd4] sm:$0xf]  ;;  %v10203_v11 = vld [vmem:[#allocation12 + $0xd8] sm:$0xf0] }
 0x916   : > { %v10121_v17 = vld [vmem:[#allocation12 + $0x30] sm:$0xf] }
 0x917   : > { %v13106_v60 = vpop.f32.mrf.mxu3  ;;  %6799 = vmatpush.bf16.msra.mxu3 %v10142_v29  ;;  %v10206_v29 = vor.u32 %v11025_v7, %v10203_v11  ;;  %v10122_v13 = vor.u32 %v11006_v44, %v10121_v17  ;;  %v11002_v17 = vld [vmem:[#allocation12 + $0x14] sm:$0xf0] }
 0x918   : > { %v13108_v1 = vpop.f32.mrf.mxu2  ;;  %6587 = vmatpush.bf16.msra.mxu2 %v10038_v61  ;;  %6760 = vmatpush.bf16.msra.mxu0 %v10146_v49  ;;  %v5881_v61 = vadd.f32 %v13094_v8, %v13070_v12  ;;  %v10134_v8 = vor.u32 %v11007_v63, %v10131_v0  ;;  %v5921_v46 = vadd.f32 %v13106_v60, %v5704_v25  ;;  %v11003_v63 = vld [vmem:[#allocation12 + $0x24] sm:$0xf]  ;;  %v10115_v0 = vld [vmem:[#allocation12 + $0x28] sm:$0xf0] }
 0x919   : > { %v13110_v51 = vpop.f32.mrf.mxu0 }
 0x91a   : > { %v13112_v41 = vpop.f32.mrf.mxu1  ;;  %v5900_v5 = vadd.f32 %v13096_v9, %v5881_v61  ;;  %v10193_v61 = vld [vmem:[#allocation12 + $0xc0] sm:$0xf]  ;;  %v5886_v60 = vadd.f32 %v13110_v51, %v13082_v16 }
 0x91b   : > { %6800 = vmatpush.bf16.msra.mxu3 %v10134_v8 }
 0x91c   : > { %6816 = vmatpush.bf16.msrb.mxu2 %v10222_v10  ;;  %6761 = vmatpush.bf16.msra.mxu0 %v10138_v48  ;;  %v10202_v48 = vor.u32 %v11026_v6, %v10201_v52  ;;  %v10185_v52 = vld [vmem:[#allocation12 + $0xb0] sm:$0xf]  ;;  %v5940_v6 = vadd.f32 %v13108_v1, %v5921_v46  ;;  %v11001_v1 = vld [vmem:[#allocation12 + $0x14] sm:$0xf] }
 0x91e   : > { %6780 = vmatpush.bf16.msra.mxu1 %v10202_v48  ;;  %v10105_v48 = vld [vmem:[#allocation12 + $0x10] sm:$0xf] }
 0x91f   : > { %v13114_v42 = vpop.f32.mrf.mxu3 }
 0x920   : > { %v13116_v53 = vpop.f32.mrf.mxu2  ;;  %6817 = vmatpush.bf16.msrb.mxu2 %v10214_v56  ;;  %6762 = vmatpush.bf16.msra.mxu0 %v10130_v43 }
 0x921   : > { %v13118_v59 = vpop.f32.mrf.mxu0 }
 0x922   : > { %v13120_v4 = vpop.f32.mrf.mxu1 }
 0x924   : > { %6818 = vmatpush.bf16.msrb.mxu2 %v10206_v29  ;;  %6763 = vmatpush.bf16.msra.mxu0 %v10122_v13  ;;  %v10177_v29 = vld [vmem:[#allocation12 + $0xa0] sm:$0xf]  ;;  %v11020_v13 = vld [vmem:[#allocation12 + $0xa4] sm:$0xf0] }
 0x927   : > { %v13122_v57 = vpop.f32.mrf.mxu3 }
 0x928   : > { %v13124_v45 = vpop.f32.mrf.mxu2 }
 0x929   : > { %v6152_v54 = vpop.f32.mrf.mxu0 }
 0x92a   : > { %v6171_v3 = vpop.f32.mrf.mxu1 }
 0x92b   : > { %v6172_v49 = vadd.f32 %v6171_v3, %v6152_v54  ;;  %v5919_v54 = vadd.f32 %v13098_v30, %v13072_v18  ;;  %v5902_v3 = vadd.f32 %v13104_v34, %v5883_v40  ;;  %v10126_v18 = vor.u32 %v11005_v36, %v10123_v38  ;;  %v11023_v30 = vld [vmem:[#allocation12 + $0xc4] sm:$0xf]  ;;  %v10195_v34 = vld [vmem:[#allocation12 + $0xc8] sm:$0xf0] }
 0x92c   : > { %v10194_v40 = vor.u32 %v11024_v14, %v10193_v61  ;;  %v10198_v55 = vor.u32 %v11023_v30, %v10195_v34  ;;  %v5671_v36 = vadd.f32 %v13088_v39, %v13086_v37  ;;  %v5905_v38 = vadd.f32 %v13112_v41, %v5886_v60  ;;  %v11019_v14 = vld [vmem:[#allocation12 + $0xa4] sm:$0xf]  ;;  %v10179_v30 = vld [vmem:[#allocation12 + $0xa8] sm:$0xf0] }
 0x92d   : > { %v6219_v9 = vadd.f32 %v6172_v49, %v5900_v5  ;;  %v10113_v49 = vld [vmem:[#allocation12 + $0x20] sm:$0xf]  ;;  %v5938_v5 = vadd.f32 %v13100_v24, %v5919_v54  ;;  %6801 = vmatpush.bf16.msra.mxu3 %v10126_v18  ;;  %v10118_v54 = vor.u32 %v11003_v63, %v10115_v0  ;;  %v10107_v18 = vld [vmem:[#allocation12 + $0x18] sm:$0xf0]  ;;  %v5924_v34 = vadd.f32 %v13114_v42, %v13084_v28  ;;  %v13158_v41 = vld [vmem:[#allocation12 + $0x4] sm:$0xf] }
 0x92e   : > { %v10114_v43 = vor.u32 %v11004_v62, %v10113_v49  ;;  %6781 = vmatpush.bf16.msra.mxu1 %v10194_v40  ;;  %6819 = vmatpush.bf16.msrb.mxu2 %v10198_v55  ;;  %v11000_v40 = vld [vmem:[#allocation12 + $0x4] sm:$0xf0]  ;;  %v5888_v55 = vadd.f32 %v13118_v59, %v5671_v36  ;;  %v10169_v62 = vld [vmem:[#allocation12 + $0x90] sm:$0xf]  ;;  %v10110_v28 = vor.u32 %v11001_v1, %v10107_v18  ;;  %v10099_v63 = vld [vmem:[#allocation12 + $0x8] sm:$0xf0] }
 0x92f   : > { %v6190_v50 = vpop.f32.mrf.mxu3  ;;  %v10182_v42 = vor.u32 %v11019_v14, %v10179_v30  ;;  %v11017_v0 = vld [vmem:[#allocation12 + $0x94] sm:$0xf]  ;;  %v10102_v1 = vor.u32 %v13158_v41, %v10099_v63  ;;  %v10163_v18 = vld [vmem:[#allocation12 + $0x88] sm:$0xf0]  ;;  %v10361_v14 = vld [vmem:[#allocation15 + $0xf0] sm:$0xf] }
 0x930   : > { %v6209_v15 = vpop.f32.mrf.mxu2  ;;  %6764 = vmatpush.bf16.msra.mxu0 %v10114_v43  ;;  %v11018_v43 = vld [vmem:[#allocation12 + $0x94] sm:$0xf0] }
 0x931   : > { %v6154_v12 = vpop.f32.mrf.mxu0  ;;  %v6210_v20 = vadd.f32 %v6209_v15, %v6190_v50  ;;  %v11022_v15 = vld [vmem:[#allocation12 + $0xb4] sm:$0xf0]  ;;  %6802 = vmatpush.bf16.msra.mxu3 %v10118_v54 }
 0x932   : > { %v6173_v10 = vpop.f32.mrf.mxu1  ;;  %v10186_v25 = vor.u32 %v11022_v15, %v10185_v52  ;;  %v10297_v52 = vld [vmem:[#allocation15 + $0x70] sm:$0xf]  ;;  %v10171_v15 = vld [vmem:[#allocation12 + $0x98] sm:$0xf0] }
 0x933   : > { %v6174_v33 = vadd.f32 %v6173_v10, %v6154_v12  ;;  %v13141_v12 = vmax.f32 %v6219_v9, 0.0  ;;  %v10187_v10 = vld [vmem:[#allocation12 + $0xb8] sm:$0xf0]  ;;  %v6220_v11 = vadd.f32 %v6210_v20, %v5938_v5  ;;  %v10178_v20 = vor.u32 %v11020_v13, %v10177_v29  ;;  %v10289_v29 = vld [vmem:[#allocation15 + $0x60] sm:$0xf] }
 0x934   : > { %6782 = vmatpush.bf16.msra.mxu1 %v10186_v25 }
 0x935   : > { %v6221_v56 = vadd.f32 %v6174_v33, %v5902_v3  ;;  %v11021_v3 = vld [vmem:[#allocation12 + $0xb4] sm:$0xf]  ;;  %v10106_v33 = vor.u32 %v11002_v17, %v10105_v48  ;;  %v13154_v49 = vmax.f32 %v6220_v11, 0.0  ;;  %v10299_v11 = vld [vmem:[#allocation15 + $0x78] sm:$0xf0]  ;;  %6803 = vmatpush.bf16.msra.mxu3 %v10110_v28 }
 0x936   : > { %v10190_v9 = vor.u32 %v11021_v3, %v10187_v10  ;;  %v10170_v3 = vor.u32 %v11018_v43, %v10169_v62  ;;  %v11077_v48 = vld [vmem:[#allocation15 + $0x74] sm:$0xf]  ;;  %v10363_v43 = vld [vmem:[#allocation15 + $0xf8] sm:$0xf0]  ;;  %v10281_v28 = vld [vmem:[#allocation15 + $0x50] sm:$0xf] }
 0x937   : > { %v13143_v8 = vmax.f32 %v6221_v56, 0.0  ;;  %v6192_v50 = vpop.f32.mrf.mxu3  ;;  %v10097_v56 = vld [vmem:[#allocation12] sm:$0xf]  ;;  %6765 = vmatpush.bf16.msra.mxu0 %v10106_v33  ;;  %v11093_v62 = vld [vmem:[#allocation15 + $0xf4] sm:$0xf] }
 0x938   : > { %v6211_v7 = vpop.f32.mrf.mxu2  ;;  %6820 = vmatpush.bf16.msrb.mxu2 %v10190_v9  ;;  %6783 = vmatpush.bf16.msra.mxu1 %v10178_v20  ;;  %v11016_v9 = vld [vmem:[#allocation12 + $0x84] sm:$0xf0] }
 0x939   : > { %v6327_v24 = vpack.c.bf16 %v13143_v8, %v13141_v12  ;;  %v6212_v16 = vadd.f32 %v6211_v7, %v6192_v50  ;;  %v6157_v51 = vpop.f32.mrf.mxu0  ;;  %v10098_v50 = vor.u32 %v11000_v40, %v10097_v56  ;;  %v5709_v7 = vadd.f32 %v13092_v47, %v13090_v22  ;;  %v11075_v56 = vld [vmem:[#allocation15 + $0x64] sm:$0xf]  ;;  %v10291_v40 = vld [vmem:[#allocation15 + $0x68] sm:$0xf0]  ;;  %6804 = vmatpush.bf16.msra.mxu3 %v10102_v1 }
 0x93a   : > { %v6176_v44 = vpop.f32.mrf.mxu1  ;;  %v6267_v22 = vrot.slane %v13141_v12, 1 }
 0x93b   : > { %v6222_v61 = vadd.f32 %v6212_v16, %v5940_v6  ;;  %v6177_v46 = vadd.f32 %v6176_v44, %v6157_v51  ;;  %6531 = vmatmul.bf16.vlgmr.msrb.gmra.mxu0 %v6327_v24  ;;  %6569 = vmatmul.bf16.vlgmr.msrb.gmra.mxu3 %v6327_v24  ;;  %v11078_v6 = vld [vmem:[#allocation15 + $0x74] sm:$0xf0]  ;;  %v5943_v24 = vadd.f32 %v13116_v53, %v5924_v34  ;;  %v6268_v51 = vrot.slane %v13143_v8, 1  ;;  %v10161_v44 = vld [vmem:[#allocation12 + $0x80] sm:$0xf] }
 0x93c   : > { %v10298_v10 = vor.u32 %v11078_v6, %v10297_v52  ;;  %v5907_v16 = vadd.f32 %v13120_v4, %v5888_v55  ;;  %6821 = vmatpush.bf16.msrb.mxu2 %v10182_v42  ;;  %v10174_v53 = vor.u32 %v11017_v0, %v10171_v15  ;;  %v11076_v4 = vld [vmem:[#allocation15 + $0x64] sm:$0xf0]  ;;  %v5926_v13 = vadd.f32 %v13122_v57, %v5709_v7  ;;  %v11094_v55 = vld [vmem:[#allocation15 + $0xf4] sm:$0xf0]  ;;  %v10353_v52 = vld [vmem:[#allocation15 + $0xe0] sm:$0xf] }
 0x93d   : > { %v13156_v37 = vmax.f32 %v6222_v61, 0.0  ;;  %v6223_v39 = vadd.f32 %v6177_v46, %v5905_v38  ;;  %6766 = vmatpush.bf16.msra.mxu0 %v10098_v50  ;;  %v10302_v61 = vor.u32 %v11077_v48, %v10299_v11  ;;  %v11015_v46 = vld [vmem:[#allocation12 + $0x84] sm:$0xf]  ;;  %6784 = vmatpush.bf16.msra.mxu1 %v10170_v3  ;;  %v10162_v34 = vor.u32 %v11016_v9, %v10161_v44  ;;  %v11074_v0 = vld [vmem:[#allocation15 + $0x54] sm:$0xf0] }
 0x93e   : > { %v10290_v20 = vor.u32 %v11076_v4, %v10289_v29  ;;  %v6269_v57 = vsel %vm1354_vm4, %v6267_v22, %v6268_v51  ;;  %v10362_v41 = vor.u32 %v11094_v55, %v10361_v14  ;;  %v10166_v63 = vor.u32 %v11015_v46, %v10163_v18  ;;  %v11092_v7 = vld [vmem:[#allocation15 + $0xe4] sm:$0xf0]  ;;  %v11091_v22 = vld [vmem:[#allocation15 + $0xe4] sm:$0xf]  ;;  %v10275_v46 = vld [vmem:[#allocation15 + $0x48] sm:$0xf0] }
 0x93f   : > { %v6328_v59 = vpack.c.bf16 %v13156_v37, %v13154_v49  ;;  %v13162_v5 = vmax.f32 %v6223_v39, 0.0  ;;  %v6195_v60 = vpop.f32.mrf.mxu3  ;;  %7069 = vmatpush.bf16.msrb.mxu3 %v10302_v61  ;;  %v10294_v6 = vor.u32 %v11075_v56, %v10291_v40  ;;  %v6270_v3 = vrot.slane %v13154_v49, 1  ;;  %v11072_v4 = vld [vmem:[#allocation15 + $0x44] sm:$0xf0]  ;;  %v11071_v61 = vld [vmem:[#allocation15 + $0x44] sm:$0xf] }
 0x940   : > { %v6214_v25 = vpop.f32.mrf.mxu2  ;;  %6822 = vmatpush.bf16.msrb.mxu2 %v10174_v53  ;;  %v10366_v11 = vor.u32 %v11093_v62, %v10363_v43  ;;  %v10282_v44 = vor.u32 %v11074_v0, %v10281_v28  ;;  %v10354_v9 = vor.u32 %v11092_v7, %v10353_v52  ;;  %v10265_v40 = vld [vmem:[#allocation15 + $0x30] sm:$0xf]  ;;  %v11088_v62 = vld [vmem:[#allocation15 + $0xc4] sm:$0xf0]  ;;  %v11069_v28 = vld [vmem:[#allocation15 + $0x34] sm:$0xf] }
 0x941   : > { %v6273_v54 = vrot.slane %v13162_v5, 1  ;;  %6550 = vmatmul.bf16.vlgmr.msrb.gmra.mxu1 %v6328_v59  ;;  %6588 = vmatmul.bf16.vlgmr.msra.gmra.mxu2 %v6328_v59  ;;  %v6159_v17 = vpop.f32.mrf.mxu0  ;;  %v6215_v47 = vadd.f32 %v6214_v25, %v6195_v60  ;;  %v6271_v60 = vrot.slane %v13156_v37, 1  ;;  %v5945_v25 = vadd.f32 %v13124_v45, %v5926_v13  ;;  %v10345_v13 = vld [vmem:[#allocation15 + $0xd0] sm:$0xf]  ;;  %v11087_v0 = vld [vmem:[#allocation15 + $0xc4] sm:$0xf] }
 0x942   : > { %v6178_v33 = vpop.f32.mrf.mxu1  ;;  %7031 = vmatpush.bf16.msrb.mxu0 %v10298_v10  ;;  %6785 = vmatpush.bf16.msra.mxu1 %v10162_v34  ;;  %v10347_v34 = vld [vmem:[#allocation15 + $0xd8] sm:$0xf0]  ;;  %v10339_v52 = vld [vmem:[#allocation15 + $0xc8] sm:$0xf0]  ;;  %v10257_v7 = vld [vmem:[#allocation15 + $0x20] sm:$0xf] }
 0x943   : > { %v6274_v36 = vsel %vm1354_vm4, %v6268_v51, %v6273_v54  ;;  %v6179_v38 = vadd.f32 %v6178_v33, %v6159_v17  ;;  %v6224_v30 = vadd.f32 %v6215_v47, %v5943_v24  ;;  %v11073_v24 = vld [vmem:[#allocation15 + $0x54] sm:$0xf]  ;;  %v10355_v47 = vld [vmem:[#allocation15 + $0xe8] sm:$0xf0]  ;;  %v10273_v33 = vld [vmem:[#allocation15 + $0x40] sm:$0xf]  ;;  %v6272_v1 = vsel %vm1354_vm4, %v6270_v3, %v6271_v60  ;;  %7070 = vmatpush.bf16.msrb.mxu3 %v10294_v6 }
 0x944   : > { %v13179_v59 = vpack.c.bf16 %v6274_v36, %v6269_v57  ;;  %6823 = vmatpush.bf16.msrb.mxu2 %v10166_v63  ;;  %v11090_v36 = vld [vmem:[#allocation15 + $0xd4] sm:$0xf0]  ;;  %v10278_v57 = vor.u32 %v11071_v61, %v10275_v46  ;;  %v10267_v63 = vld [vmem:[#allocation15 + $0x38] sm:$0xf0]  ;;  %v11068_v3 = vld [vmem:[#allocation15 + $0x24] sm:$0xf0] }
 0x945   : > { %v6225_v39 = vadd.f32 %v6179_v38, %v5907_v16  ;;  %v13177_v42 = vmax.f32 %v6224_v30, 0.0  ;;  %v10283_v16 = vld [vmem:[#allocation15 + $0x58] sm:$0xf0]  ;;  %v10358_v38 = vor.u32 %v11091_v22, %v10355_v47  ;;  %v11089_v30 = vld [vmem:[#allocation15 + $0xd4] sm:$0xf]  ;;  %v10346_v56 = vor.u32 %v11090_v36, %v10345_v13 }
 0x946   : > { %7032 = vmatpush.bf16.msrb.mxu0 %v10290_v20  ;;  %7050 = vmatpush.bf16.msrb.mxu1 %v10362_v41  ;;  %v10286_v29 = vor.u32 %v11073_v24, %v10283_v16  ;;  %v10274_v20 = vor.u32 %v11072_v4, %v10273_v33  ;;  %v10337_v41 = vld [vmem:[#allocation15 + $0xc0] sm:$0xf]  ;;  %v10350_v43 = vor.u32 %v11089_v30, %v10347_v34  ;;  %v6243_v24 = vrot.slane %v13141_v12, 7  ;;  %v10249_v33 = vld [vmem:[#allocation15 + $0x10] sm:$0xf] }
 0x947   : > { %v13182_v50 = vmax.f32 %v6225_v39, 0.0  ;;  %v6197_v15 = vpop.f32.mrf.mxu3  ;;  %v6275_v10 = vrot.slane %v13177_v42, 1  ;;  %v11070_v39 = vld [vmem:[#allocation15 + $0x34] sm:$0xf0]  ;;  %v10338_v6 = vor.u32 %v11088_v62, %v10337_v41  ;;  %v10342_v16 = vor.u32 %v11087_v0, %v10339_v52  ;;  %v11084_v12 = vld [vmem:[#allocation15 + $0xa4] sm:$0xf0] }
 0x948   : > { %v6216_v48 = vpop.f32.mrf.mxu2  ;;  %7088 = vmatpush.bf16.msra.mxu2 %v10366_v11  ;;  %7071 = vmatpush.bf16.msrb.mxu3 %v10286_v29  ;;  %v11086_v11 = vld [vmem:[#allocation15 + $0xb4] sm:$0xf0]  ;;  %v10258_v47 = vor.u32 %v11068_v3, %v10257_v7  ;;  %v10321_v29 = vld [vmem:[#allocation15 + $0xa0] sm:$0xf]  ;;  %v6247_v4 = vrot.slane %v13156_v37, 7  ;;  %v6244_v34 = vrot.slane %v13154_v49, 7 }
 0x949   : > { %v6217_v51 = vadd.f32 %v6216_v48, %v6197_v15  ;;  %v6329_v17 = vpack.c.bf16 %v13182_v50, %v13162_v5  ;;  %v6276_v45 = vsel %vm1354_vm4, %v6271_v60, %v6275_v10  ;;  %v6245_v60 = vrot.slane %v13143_v8, 7  ;;  %v10329_v48 = vld [vmem:[#allocation15 + $0xb0] sm:$0xf]  ;;  %v11065_v36 = vld [vmem:[#allocation15 + $0x14] sm:$0xf] }
 0x94a   : > { %v13193_v18 = vpack.c.bf16 %v6276_v45, %v6272_v1  ;;  %7033 = vmatpush.bf16.msrb.mxu0 %v10282_v44  ;;  %7051 = vmatpush.bf16.msrb.mxu1 %v10354_v9  ;;  %v10266_v15 = vor.u32 %v11070_v39, %v10265_v40  ;;  %v11085_v44 = vld [vmem:[#allocation15 + $0xb4] sm:$0xf]  ;;  %v10331_v9 = vld [vmem:[#allocation15 + $0xb8] sm:$0xf0]  ;;  %v10330_v45 = vor.u32 %v11086_v11, %v10329_v48  ;;  %v11083_v46 = vld [vmem:[#allocation15 + $0xa4] sm:$0xf] }
 0x94b   : > { %v6226_v53 = vadd.f32 %v6217_v51, %v5945_v25  ;;  %6536 = vmatmul.bf16.gmra.mxu0 %v6329_v17  ;;  %6574 = vmatmul.bf16.gmra.mxu3 %v6329_v17  ;;  %v10270_v25 = vor.u32 %v11069_v28, %v10267_v63  ;;  %v11067_v51 = vld [vmem:[#allocation15 + $0x24] sm:$0xf]  ;;  %v10259_v17 = vld [vmem:[#allocation15 + $0x28] sm:$0xf0]  ;;  %v6246_v22 = vsel %vm1341_vm0, %v6243_v24, %v6245_v60  ;;  %v10241_v40 = vld [vmem:[#allocation15] sm:$0xf] }
 0x94c   : > { %7089 = vmatpush.bf16.msra.mxu2 %v10358_v38  ;;  %7072 = vmatpush.bf16.msrb.mxu3 %v10278_v57  ;;  %v10262_v1 = vor.u32 %v11067_v51, %v10259_v17  ;;  %v10334_v13 = vor.u32 %v11085_v44, %v10331_v9  ;;  %v10251_v38 = vld [vmem:[#allocation15 + $0x18] sm:$0xf0]  ;;  %v10225_v61 = vpack.c.bf16 %v6246_v22, %v6243_v24  ;;  %v10323_v30 = vld [vmem:[#allocation15 + $0xa8] sm:$0xf0]  ;;  %v11064_v37 = vld [vmem:[#allocation15 + $0x4] sm:$0xf0] }
 0x94d   : > { %v13195_v14 = vmax.f32 %v6226_v53, 0.0  ;;  %v11066_v53 = vld [vmem:[#allocation15 + $0x14] sm:$0xf0]  ;;  %v10313_v57 = vld [vmem:[#allocation15 + $0x90] sm:$0xf]  ;;  %v6248_v41 = vsel %vm1341_vm0, %v6244_v34, %v6247_v4  ;;  %v10326_v49 = vor.u32 %v11083_v46, %v10323_v30  ;;  %v10242_v0 = vor.u32 %v11064_v37, %v10241_v40 }
 0x94e   : > { %7034 = vmatpush.bf16.msrb.mxu0 %v10274_v20  ;;  %7052 = vmatpush.bf16.msrb.mxu1 %v10346_v56  ;;  %v10250_v20 = vor.u32 %v11066_v53, %v10249_v33  ;;  %v10322_v56 = vor.u32 %v11084_v12, %v10321_v29  ;;  %v11082_v39 = vld [vmem:[#allocation15 + $0x94] sm:$0xf0]  ;;  %v11063_v62 = vld [vmem:[#allocation15 + $0x4] sm:$0xf]  ;;  %v11081_v28 = vld [vmem:[#allocation15 + $0x94] sm:$0xf] }
 0x94f   : > { %v6330_v55 = vpack.c.bf16 %v13195_v14, %v13177_v42  ;;  %v10315_v63 = vld [vmem:[#allocation15 + $0x98] sm:$0xf0]  ;;  %v10314_v52 = vor.u32 %v11082_v39, %v10313_v57  ;;  %v10305_v7 = vld [vmem:[#allocation15 + $0x80] sm:$0xf]  ;;  %v11079_v48 = vld [vmem:[#allocation15 + $0x84] sm:$0xf] }
 0x950   : > { %7090 = vmatpush.bf16.msra.mxu2 %v10350_v43  ;;  %7073 = vmatpush.bf16.msrb.mxu3 %v10270_v25  ;;  %v10243_v43 = vld [vmem:[#allocation15 + $0x8] sm:$0xf0]  ;;  %v11080_v25 = vld [vmem:[#allocation15 + $0x84] sm:$0xf0]  ;;  %v10318_v3 = vor.u32 %v11081_v28, %v10315_v63  ;;  %v6253_v24 = vrot.slane %v13182_v50, 7  ;;  %v6249_v51 = vrot.slane %v13162_v5, 7 }
 0x951   : > { %6555 = vmatmul.bf16.gmra.mxu1 %v6330_v55  ;;  %6593 = vmatmul.bf16.gmra.mxu2 %v6330_v55  ;;  %v10254_v55 = vor.u32 %v11065_v36, %v10251_v38  ;;  %v10307_v11 = vld [vmem:[#allocation15 + $0x88] sm:$0xf0]  ;;  %v6255_v9 = vrot.slane %v13195_v14, 7  ;;  %v6277_v8 = vrot.slane %v13182_v50, 1  ;;  %v6279_v53 = vrot.slane %v13195_v14, 1 }
 0x952   : > { %7035 = vmatpush.bf16.msrb.mxu0 %v10266_v15  ;;  %7053 = vmatpush.bf16.msrb.mxu1 %v10338_v6  ;;  %v10229_v15 = vpack.c.bf16 %v6248_v41, %v6244_v34  ;;  %v10246_v6 = vor.u32 %v11063_v62, %v10243_v43  ;;  %v10310_v17 = vor.u32 %v11079_v48, %v10307_v11  ;;  %v11101_v48 = vld [vmem:[%s11777_s8 + $0x30] sm:$0xff] }
 0x953   : > { %v6254_v44 = vsel %vm1341_vm0, %v6249_v51, %v6253_v24  ;;  %v6250_v21 = vsel %vm1341_vm0, %v6245_v60, %v6249_v51  ;;  %v6278_v60 = vsel %vm1354_vm4, %v6273_v54, %v6277_v8  ;;  %v11110_v51 = vld [vmem:[%s11777_s8 + $0x78] sm:$0xff] }
 0x954   : > { %7091 = vmatpush.bf16.msra.mxu2 %v10342_v16  ;;  %7074 = vmatpush.bf16.msrb.mxu3 %v10262_v1  ;;  %v10306_v16 = vor.u32 %v11080_v25, %v10305_v7  ;;  %v6293_v22 = vpack.c.bf16 %v6254_v44, %v6250_v21  ;;  %v10368_v29 = vpack.c.bf16 %v6277_v8, %v6278_v60  ;;  %v11102_v25 = vld [vmem:[%s11777_s8 + $0x38] sm:$0xff] }
 0x955   : > { %v11098_v60 = vld [vmem:[%s11777_s8 + $0x18] sm:$0xff] }
 0x956   : > { %7036 = vmatpush.bf16.msrb.mxu0 %v10258_v47  ;;  %7054 = vmatpush.bf16.msrb.mxu1 %v10330_v45  ;;  %v6251_v47 = vrot.slane %v13177_v42, 7 }
 0x958   : > { %7092 = vmatpush.bf16.msra.mxu2 %v10334_v13  ;;  %7075 = vmatpush.bf16.msrb.mxu3 %v10254_v55  ;;  %v6256_v45 = vsel %vm1341_vm0, %v6251_v47, %v6255_v9  ;;  %v6252_v33 = vsel %vm1341_vm0, %v6247_v4, %v6251_v47  ;;  %v11100_v9 = vld [vmem:[%s11777_s8 + $0x28] sm:$0xff] }
 0x959   : > { %v6294_v1 = vpack.c.bf16 %v6256_v45, %v6252_v33  ;;  %v11099_v45 = vld [vmem:[%s11777_s8 + $0x20] sm:$0xff] }
 0x95a   : > { %7037 = vmatpush.bf16.msrb.mxu0 %v10250_v20  ;;  %7055 = vmatpush.bf16.msrb.mxu1 %v10322_v56 }
 0x95b   : > { %10226 = vmatmul.msk.bf16.vlgmr.msra.gmra.mxu0 %vm12248_vm3, %v10225_v61  ;;  %10234 = vmatmul.msk.bf16.vlgmr.msra.gmra.mxu3 %vm12248_vm3, %v10225_v61 }
 0x95c   : > { %7093 = vmatpush.bf16.msra.mxu2 %v10326_v49  ;;  %7076 = vmatpush.bf16.msrb.mxu3 %v10246_v6 }
 0x95e   : > { %7038 = vmatpush.bf16.msrb.mxu0 %v10242_v0  ;;  %7056 = vmatpush.bf16.msrb.mxu1 %v10314_v52 }
 0x960   : > { %7094 = vmatpush.bf16.msra.mxu2 %v10318_v3 }
 0x961   : > { %10230 = vmatmul.msk.bf16.vlgmr.msra.gmra.mxu1 %vm12248_vm3, %v10229_v15  ;;  %10238 = vmatmul.msk.bf16.vlgmr.msrb.gmra.mxu2 %vm12248_vm3, %v10229_v15 }
 0x962   : > { %7057 = vmatpush.bf16.msrb.mxu1 %v10306_v16  ;;  %7272 = vmatpush.bf16.msra.mxu0 %v11102_v25 }
 0x964   : > { %7095 = vmatpush.bf16.msra.mxu2 %v10310_v17 }
 0x966   : > { %7273 = vmatpush.bf16.msra.mxu0 %v11101_v48  ;;  %7285 = vmatpush.bf16.msra.mxu1 %v11110_v51 }
 0x96a   : > { %7274 = vmatpush.bf16.msra.mxu0 %v11100_v9 }
 0x96b   : > { %6772 = vmatmul.bf16.gmra.mxu0 %v6293_v22  ;;  %6810 = vmatmul.bf16.gmra.mxu3 %v6293_v22  ;;  %v11109_v22 = vld [vmem:[%s11777_s8 + $0x70] sm:$0xff] }
 0x96c   : > { %7286 = vmatpush.bf16.msra.mxu1 %v11109_v22  ;;  %v11104_v22 = vld [vmem:[%s11777_s8 + $0x48] sm:$0xff] }
 0x96e   : > { %7275 = vmatpush.bf16.msra.mxu0 %v11099_v45 }
 0x971   : > { %6791 = vmatmul.bf16.gmra.mxu1 %v6294_v1  ;;  %6829 = vmatmul.bf16.gmra.mxu2 %v6294_v1  ;;  %v11108_v1 = vld [vmem:[%s11777_s8 + $0x68] sm:$0xff] }
 0x972   : > { %7287 = vmatpush.bf16.msra.mxu1 %v11108_v1  ;;  %7276 = vmatpush.bf16.msra.mxu0 %v11098_v60 }
 0x97b   : > { %7039 = vmatmul.bf16.vlgmr.msrb.gmra.mxu0 %v13179_v59  ;;  %7077 = vmatmul.bf16.vlgmr.msrb.gmra.mxu3 %v13179_v59  ;;  %v6280_v59 = vsel %vm1354_vm4, %v6275_v10, %v6279_v53  ;;  %vm7305_vm4 = vcmask 15360  }
 0x981   : > { %7058 = vmatmul.bf16.vlgmr.msrb.gmra.mxu1 %v13193_v18  ;;  %7096 = vmatmul.bf16.vlgmr.msra.gmra.mxu2 %v13193_v18  ;;  %v10371_v18 = vpack.c.bf16 %v6279_v53, %v6280_v59  ;;  %v11097_v59 = vld [vmem:[%s11777_s8 + $0x10] sm:$0xff] }
 0x982   : > { %7277 = vmatpush.bf16.msra.mxu0 %v11097_v59 }
 0x98b   : > { %10369 = vmatmul.msk.bf16.gmra.mxu0 %vm12304_vm5, %v10368_v29  ;;  %10375 = vmatmul.msk.bf16.gmra.mxu3 %vm12304_vm5, %v10368_v29  ;;  %v11107_v29 = vld [vmem:[%s11777_s8 + $0x60] sm:$0xff] }
 0x98c   : > { %7288 = vmatpush.bf16.msra.mxu1 %v11107_v29 }
 0x991   : > { %10372 = vmatmul.msk.bf16.gmra.mxu1 %vm12304_vm5, %v10371_v18  ;;  %10378 = vmatmul.msk.bf16.gmra.mxu2 %vm12304_vm5, %v10371_v18 }
 0x9b8   : > { %v6532_v5 = vpop.f32.mrf.mxu0 }
 0x9be   : > { %v6551_v54 = vpop.f32.mrf.mxu1  ;;  %v6570_v14 = vpop.f32.mrf.mxu3 }
 0x9bf   : > { %v13245_v50 = vadd.f32 %v6551_v54, %v6532_v5  ;;  %v11106_v54 = vld [vmem:[%s11777_s8 + $0x58] sm:$0xff] }
 0x9c0   : > { %v6534_v12 = vpop.f32.mrf.mxu0  ;;  %7289 = vmatpush.bf16.msra.mxu1 %v11106_v54 }
 0x9c4   : > { %v6589_v4 = vpop.f32.mrf.mxu2 }
 0x9c5   : > { %v13247_v13 = vadd.f32 %v6589_v4, %v6570_v14  ;;  %v11096_v14 = vld [vmem:[%s11777_s8 + $0x8] sm:$0xff] }
 0x9c6   : > { %v6553_v36 = vpop.f32.mrf.mxu1  ;;  %v6572_v10 = vpop.f32.mrf.mxu3  ;;  %7278 = vmatpush.bf16.msra.mxu0 %v11096_v14 }
 0x9c7   : > { %v13249_v42 = vadd.f32 %v6553_v36, %v6534_v12  ;;  %v11618_v12 = vmov 32.0   ;;  %v11105_v36 = vld [vmem:[%s11777_s8 + $0x50] sm:$0xff] }
 0x9c8   : > { %v6537_v38 = vpop.f32.mrf.mxu0  ;;  %11265 = vrcp.f32 %v11618_v12  ;;  %7290 = vmatpush.bf16.msra.mxu1 %v11105_v36 }
 0x9cc   : > { %v6591_v61 = vpop.f32.mrf.mxu2  ;;  %7291 = vmatpush.bf16.msra.mxu1 %v11104_v22 }
 0x9cd   : > { %v13251_v46 = vadd.f32 %v6591_v61, %v6572_v10 }
 0x9ce   : > { %v6556_v30 = vpop.f32.mrf.mxu1  ;;  %v6575_v34 = vpop.f32.mrf.mxu3 }
 0x9cf   : > { %v13253_v26 = vadd.f32 %v6556_v30, %v6537_v38  ;;  %v11095_v30 = vld [vmem:[%s11777_s8] sm:$0xff]  ;;  %v11266_v45 = vpop.eup %11265 }
 0x9d0   : > { %v13255_v20 = vpop.f32.mrf.mxu0  ;;  %7279 = vmatpush.bf16.msra.mxu0 %v11095_v30  ;;  %vm7138_vm3 = vweird.f32 %v11266_v45 }
 0x9d4   : > { %v6594_v56 = vpop.f32.mrf.mxu2 }
 0x9d5   : > { %v13257_v40 = vadd.f32 %v6594_v56, %v6575_v34 }
 0x9d6   : > { %v13259_v55 = vpop.f32.mrf.mxu1  ;;  %v13261_v37 = vpop.f32.mrf.mxu3 }
 0x9d7   : > { %v6559_v51 = vadd.f32 %v13259_v55, %v13255_v20 }
 0x9d8   : > { %v6768_v57 = vpop.f32.mrf.mxu0 }
 0x9d9   : > { %v6769_v61 = vadd.f32 %v6768_v57, %v13245_v50  ;;  %v7303_v50 = vld [vmem:[#allocation1] sm:$0xff] }
 0x9dc   : > { %v13263_v39 = vpop.f32.mrf.mxu2 }
 0x9de   : > { %v13265_v41 = vpop.f32.mrf.mxu1  ;;  %v13267_v49 = vpop.f32.mrf.mxu3 }
 0x9df   : > { %v6788_v1 = vadd.f32 %v13265_v41, %v6769_v61  ;;  %v6807_v20 = vadd.f32 %v13267_v49, %v13247_v13 }
 0x9e0   : > { %v6770_v62 = vpop.f32.mrf.mxu0 }
 0x9e1   : > { %v6771_v10 = vadd.f32 %v6770_v62, %v13249_v42 }
 0x9e4   : > { %v13269_v43 = vpop.f32.mrf.mxu2 }
 0x9e5   : > { %v6826_v29 = vadd.f32 %v13269_v43, %v6807_v20 }
 0x9e6   : > { %v6789_v28 = vpop.f32.mrf.mxu1  ;;  %v13271_v63 = vpop.f32.mrf.mxu3 }
 0x9e7   : > { %v6790_v34 = vadd.f32 %v6789_v28, %v6771_v10  ;;  %v6809_v57 = vadd.f32 %v13271_v63, %v13251_v46 }
 0x9e8   : > { %v6773_v0 = vpop.f32.mrf.mxu0 }
 0x9e9   : > { %v6774_v56 = vadd.f32 %v6773_v0, %v13253_v26  ;;  %v7309_v0 = vsel %vm1341_vm0, %v7303_v50, 0 }
 0x9ea   : > { %7320 = vmatpush.bf16.msra.mxu3 %v7309_v0  ;;  %v7304_v0 = vld [vmem:[#allocation1 + $0x9] sm:$0xff] }
 0x9eb   : > { %v7311_v20 = vsel %vm1341_vm0, %v7304_v0, 0 }
 0x9ec   : > { %v13273_v52 = vpop.f32.mrf.mxu2  ;;  %7333 = vmatpush.bf16.msrb.mxu0 %v7311_v20 }
 0x9ee   : > { %v6792_v15 = vpop.f32.mrf.mxu1  ;;  %v13275_v6 = vpop.f32.mrf.mxu3 }
 0x9ef   : > { %v6793_v42 = vadd.f32 %v6792_v15, %v6774_v56  ;;  %v6828_v15 = vadd.f32 %v13273_v52, %v6809_v57  ;;  %v6812_v46 = vadd.f32 %v13275_v6, %v13257_v40  ;;  %v6597_v52 = vadd.f32 %v13263_v39, %v13261_v37 }
 0x9f0   : > { %v6775_v7 = vpop.f32.mrf.mxu0 }
 0x9f1   : > { %v6776_v28 = vadd.f32 %v6775_v7, %v6559_v51 }
 0x9f4   : > { %v13278_v3 = vpop.f32.mrf.mxu2 }
 0x9f5   : > { %v6831_v40 = vadd.f32 %v13278_v3, %v6812_v46 }
 0x9f6   : > { %v13281_v11 = vpop.f32.mrf.mxu1  ;;  %v13283_v24 = vpop.f32.mrf.mxu3 }
 0x9f7   : > { %v6795_v63 = vadd.f32 %v13281_v11, %v6776_v28 }
 0x9f8   : > { %v7040_v16 = vpop.f32.mrf.mxu0 }
 0x9fc   : > { %v13286_v17 = vpop.f32.mrf.mxu2 }
 0x9fe   : > { %v7059_v44 = vpop.f32.mrf.mxu1  ;;  %v13289_v21 = vpop.f32.mrf.mxu3 }
 0x9ff   : > { %v7060_v25 = vadd.f32 %v7059_v44, %v7040_v16 }
 0xa00   : > { %v7042_v47 = vpop.f32.mrf.mxu0 }
 0xa01   : > { %v13315_v55 = vadd.f32 %v7060_v25, %v6788_v1 }
 0xa04   : > { %v7097_v33 = vpop.f32.mrf.mxu2 }
 0xa05   : > { %v7098_v13 = vadd.f32 %v7097_v33, %v13289_v21  ;;  %v6814_v21 = vadd.f32 %v13283_v24, %v6597_v52 }
 0xa06   : > { %v7061_v8 = vpop.f32.mrf.mxu1  ;;  %v7080_v53 = vpop.f32.mrf.mxu3 }
 0xa07   : > { %v7062_v38 = vadd.f32 %v7061_v8, %v7042_v47  ;;  %v7134_v47 = vmul.f32 32.0, %v11266_v45  ;;  %v11103_v8 = vld [vmem:[%s11777_s8 + $0x40] sm:$0xff]  ;;  %v13337_v33 = vadd.f32 %v7098_v13, %v6826_v29  ;;  %v6833_v3 = vadd.f32 %v13286_v17, %v6814_v21 }
 0xa08   : > { %v7045_v18 = vpop.f32.mrf.mxu0  ;;  %7292 = vmatpush.bf16.msra.mxu1 %v11103_v8 }
 0xa09   : > { %v13308_v62 = vadd.f32 %v7062_v38, %v6790_v34 }
 0xa0b   : > { %v7115_v49 = vadd.f32 %v13308_v62, %v13315_v55 }
 0xa0c   : > { %v7099_v5 = vpop.f32.mrf.mxu2 }
 0xa0d   : > { %v7100_v16 = vadd.f32 %v7099_v5, %v7080_v53 }
 0xa0e   : > { %v7064_v4 = vpop.f32.mrf.mxu1  ;;  %v7083_v9 = vpop.f32.mrf.mxu3 }
 0xa0f   : > { %v7065_v48 = vadd.f32 %v7064_v4, %v7045_v18  ;;  %v13331_v6 = vadd.f32 %v7100_v16, %v6828_v15  ;;  %v7135_v18 = vsub.f32 1.0, %v7134_v47 }
 0xa10   : > { %v7047_v7 = vpop.f32.mrf.mxu0 }
 0xa11   : > { %v13317_v41 = vadd.f32 %v7065_v48, %v6793_v42  ;;  %v7124_v54 = vadd.f32 %v13331_v6, %v13337_v33  ;;  %v7136_v4 = vmul.f32 %v11266_v45, %v7135_v18 }
 0xa13   : > { %v7116_v11 = vadd.f32 %v7115_v49, %v13317_v41  ;;  %v7137_v30 = vadd.f32 %v11266_v45, %v7136_v4 }
 0xa14   : > { %v7102_v26 = vpop.f32.mrf.mxu2 }
 0xa15   : > { %v7103_v60 = vadd.f32 %v7102_v26, %v7083_v9  ;;  %v7139_v48 = vsel %vm7138_vm3, %v11266_v45, %v7137_v30 }
 0xa16   : > { %v7066_v44 = vpop.f32.mrf.mxu1  ;;  %v7085_v39 = vpop.f32.mrf.mxu3 }
 0xa17   : > { %v7067_v53 = vadd.f32 %v7066_v44, %v7047_v7  ;;  %v13339_v5 = vadd.f32 %v7103_v60, %v6831_v40 }
 0xa19   : > { %v13334_v59 = vadd.f32 %v7067_v53, %v6795_v63  ;;  %v7125_v36 = vadd.f32 %v7124_v54, %v13339_v5 }
 0xa1b   : > { %v7117_v37 = vadd.f32 %v7116_v11, %v13334_v59 }
 0xa1c   : > { %v7104_v43 = vpop.f32.mrf.mxu2 }
 0xa1d   : > { %v7118_v14 = vrot.slane %v7117_v37, 4  ;;  %v7105_v12 = vadd.f32 %v7104_v43, %v7085_v39 }
 0xa1f   : > { %v7119_v10 = vadd.f32 %v7118_v14, %v7117_v37  ;;  %v13346_v24 = vadd.f32 %v7105_v12, %v6833_v3 }
 0xa21   : > { %v7120_v38 = vrot.slane %v7119_v10, 2  ;;  %v7126_v61 = vadd.f32 %v7125_v36, %v13346_v24 }
 0xa23   : > { %v7121_v34 = vadd.f32 %v7120_v38, %v7119_v10  ;;  %v7127_v56 = vrot.slane %v7126_v61, 4 }
 0xa25   : > { %v7122_v25 = vrot.slane %v7121_v34, 1  ;;  %v7128_v17 = vadd.f32 %v7127_v56, %v7126_v61 }
 0xa27   : > { %v7123_v51 = vadd.f32 %v7122_v25, %v7121_v34  ;;  %v7129_v9 = vrot.slane %v7128_v17, 2 }
 0xa29   : > { %v7130_v22 = vadd.f32 %v7129_v9, %v7128_v17  ;;  %v7140_v1 = vmul.f32 %v7139_v48, %v7123_v51 }
 0xa2b   : > { %v7131_v42 = vrot.slane %v7130_v22, 1  ;;  %v7142_v50 = vpack.c.bf16 %v7140_v1, %v7140_v1 }
 0xa2d   : > { %v7132_v57 = vadd.f32 %v7131_v42, %v7130_v22  ;;  %7280 = vmatmul.bf16.vlgmr.msra.gmra.mxu0 %v7142_v50 }
 0xa2f   : > { %v7141_v28 = vmul.f32 %v7139_v48, %v7132_v57 }
 0xa31   : > { %v7143_v26 = vpack.c.bf16 %v7141_v28, %v7141_v28 }
 0xa33   : > { %7293 = vmatmul.bf16.vlgmr.msra.gmra.mxu1 %v7143_v26 }
 0xaaa   : > { %v7281_v16 = vpop.f32.mrf.mxu0 }
 0xab0   : > { %v7294_v15 = vpop.f32.mrf.mxu1 }
 0xab1   : > { %v7295_v46 = vadd.f32 %v7294_v15, %v7281_v16 }
 0xab2   : > { %v7283_v63 = vpop.f32.mrf.mxu0 }
 0xab3   : > { %v7298_v45 = vmax.f32 %v7295_v46, 0.0 }
 0xab5   : > { %v7299_v7 = vpack.c.bf16 %v7298_v45, %v7298_v45 }
 0xab7   : > { %10443 = vmatmul.msk.bf16.vlgmr.msra.gmra.mxu3 %vm7305_vm4, %v7299_v7  ;;  %10444 = vmatmul.msk.bf16.vlgmr.msrb.gmra.mxu0 %vm7305_vm4, %v7299_v7 }
 0xab8   : > { %v7296_v44 = vpop.f32.mrf.mxu1 }
 0xb34   : > { %v7335_v47 = vpop.f32.mrf.mxu0 }
 0xb35   : > { %v10446_v8 = vmul.f32 -1.442695, %v7335_v47 }
 0xb37   : > { %11267 = vpow2.f32 %v10446_v8 }
 0xb3a   : > { %v7322_v13 = vpop.f32.mrf.mxu3 }
 0xb3b   : > { %v10445_v49 = vmul.f32 -1.442695, %v7322_v13 }
 0xb3c   : > { %v7337_v60 = vpop.f32.mrf.mxu0 }
 0xb3d   : > { %v11268_v53 = vpop.eup %11267  ;;  %11269 = vpow2.f32 %v10445_v49 }
 0xb3e   : > { %v7346_v52 = vadd.f32 1.0, %v11268_v53 }
 0xb40   : > { %11271 = vrcp.f32 %v7346_v52  ;;  %v7373_v39 = vand.u32 2147483648, %v7346_v52  ;;  %v7371_v3 = vand.u32 2147483647, %v7346_v52  ;;  %vm7367_vm5 = vweird.f32 %v7346_v52 }
 0xb42   : > { %v7324_v29 = vpop.f32.mrf.mxu3  ;;  %v7374_v4 = vor.u32 1.1754944e-38, %v7373_v39  ;;  %vm7372_vm15 = vcmp.eq.f32.partialorder %v7371_v3, 8.507059e+37 }
 0xb43   : > { %v11270_v40 = vpop.eup %11269 }
 0xb44   : > { %v7345_v11 = vadd.f32 1.0, %v11270_v40 }
 0xb46   : > { %v11272_v18 = vpop.eup %11271  ;;  %11273 = vrcp.f32 %v7345_v11  ;;  %v7358_v34 = vand.u32 2147483648, %v7345_v11  ;;  %v7356_v56 = vand.u32 2147483647, %v7345_v11  ;;  %vm7352_vm2 = vweird.f32 %v7345_v11 }
 0xb47   : > { %v7363_v21 = vmul.f32 %v11272_v18, %v7346_v52  ;;  %vm7368_vm0 = vweird.f32 %v11272_v18 }
 0xb48   : > { %vm7369_vm14 = vmor %vm7367_vm5, %vm7368_vm0  ;;  %v7359_v50 = vor.u32 1.1754944e-38, %v7358_v34  ;;  %vm7357_vm7 = vcmp.eq.f32.partialorder %v7356_v56, 8.507059e+37 }
 0xb49   : > { %v7364_v37 = vsub.f32 1.0, %v7363_v21 }
 0xb4b   : > { %v7365_v43 = vmul.f32 %v11272_v18, %v7364_v37 }
 0xb4c   : > { %v11274_v54 = vpop.eup %11273 }
 0xb4d   : > { %v7366_v14 = vadd.f32 %v11272_v18, %v7365_v43  ;;  %v7348_v12 = vmul.f32 %v11274_v54, %v7345_v11  ;;  %vm7353_vm1 = vweird.f32 %v11274_v54 }
 0xb4e   : > { %vm7354_vm6 = vmor %vm7352_vm2, %vm7353_vm1 }
 0xb4f   : > { %v7370_v36 = vsel %vm7369_vm14, %v11272_v18, %v7366_v14  ;;  %v7349_v10 = vsub.f32 1.0, %v7348_v12 }
 0xb50   : > { %v7375_v38 = vsel %vm7372_vm15, %v7374_v4, %v7370_v36 }
 0xb51   : > { %v7378_v61 = vperm.slane %v7375_v38, 0  ;;  %v7350_v30 = vmul.f32 %v11274_v54, %v7349_v10 }
 0xb53   : > { %v7380_v25 = vmul.f32 %v7378_v61, %v13337_v33  ;;  %v7382_v17 = vmul.f32 %v7378_v61, %v13331_v6  ;;  %v7384_v48 = vmul.f32 %v7378_v61, %v13339_v5  ;;  %v7386_v51 = vmul.f32 %v7378_v61, %v13346_v24 }
 0xb54   : > { %v7351_v9 = vadd.f32 %v11274_v54, %v7350_v30 }
 0xb55   : > { %v7388_v22 = vadd.f32 %v7380_v25, %v13004_v31  ;;  %v7390_v1 = vadd.f32 %v7382_v17, %v13002_v23  ;;  %v7392_v42 = vadd.f32 %v7384_v48, %v13016_v19  ;;  %v7394_v33 = vadd.f32 %v7386_v51, %v13020_v58 }
 0xb56   : > { %v7355_v57 = vsel %vm7354_vm6, %v11274_v54, %v7351_v9 }
 0xb57   : > { %7396 = vst [vmem:[%s1175_s0 + $0x8] sm:$0xff] %v7388_v22  ;;  %v7360_v6 = vsel %vm7357_vm7, %v7359_v50, %v7355_v57 }
 0xb58   : > { %7398 = vst [vmem:[%s1175_s0 + $0x18] sm:$0xff] %v7390_v1  ;;  %v7377_v5 = vperm.slane %v7360_v6, 0 }
 0xb59   : > { %7400 = vst [vmem:[%s1175_s0 + $0x28] sm:$0xff] %v7392_v42 }
 0xb5a   : > { %7402 = vst [vmem:[%s1175_s0 + $0x38] sm:$0xff] %v7394_v33  ;;  %v7379_v24 = vmul.f32 %v7377_v5, %v13315_v55  ;;  %v7381_v31 = vmul.f32 %v7377_v5, %v13308_v62  ;;  %v7383_v23 = vmul.f32 %v7377_v5, %v13317_v41  ;;  %v7385_v19 = vmul.f32 %v7377_v5, %v13334_v59 }
 0xb5c   : > { %v7387_v28 = vadd.f32 %v7379_v24, %v12998_v32  ;;  %v7389_v58 = vadd.f32 %v7381_v31, %v13000_v2  ;;  %v7391_v26 = vadd.f32 %v7383_v23, %v13014_v27  ;;  %v7393_v0 = vadd.f32 %v7385_v19, %v13018_v35 }
 0xb5e   : > { %7395 = vst [vmem:[%s1175_s0] sm:$0xff] %v7387_v28 }
 0xb5f   : > { %7397 = vst [vmem:[%s1175_s0 + $0x10] sm:$0xff] %v7389_v58 }
 0xb60   : > { %7399 = vst [vmem:[%s1175_s0 + $0x20] sm:$0xff] %v7391_v26 }
 0xb61   : > { %7401 = vst [vmem:[%s1175_s0 + $0x30] sm:$0xff] %v7393_v0 }
 0xb62 PF: > { %s13438_s1 = sld [smem:[#allocation38_spill]] }
 0xb68   : > { %s80_s28 = sadd.s32 1, %s13438_s1  }
 0xb69   : > { %p77_p3 = scmp.ge.s32.totalorder %s80_s28, 4  }
 0xb6b   :  { %79 = sbr.rel (!%p77_p3) target bundleno = 57 (0x39), region = 253 }
 0xb70   :  { %7424 = vsyncpa [#allocation3], 1 }
 0xb71   :  { %7426 = vsyncpa [#allocation3 + $0x1], 1 }
 0xb72   :  { %7427 = vsyncpa [#allocation5], 1 }
 0xb73   :  { %7428 = vsyncpa [#allocation8], 1 }
 0xb74   :  { %7429 = vsyncpa [#allocation11], 1 }
 0xb75   :  { %7430 = vsyncpa [#allocation14], 1 }

</bundles_post_ra>
